<compile_context>
chip_gen: v7x
topology: tpu7x:2x2x1
jax: 0.10.0
libtpu: 0.0.40
codegen_flags: <defaults>
</compile_context>

<pallas_src>
import jax
import jax.numpy as jnp
from jax.experimental import pallas as pl
from jax.experimental.pallas import tpu as pltpu

K = 4        # kernel_size
STRIDE = 2   # stride
PAD = 1      # padding
BN_EPS = 1e-5

_PHASES = ((0, 0), (0, 1), (1, 0), (1, 1))   # phase p = 2*di + dj


def _convt_phase_kernel(slab_ref, w_ref, conv_ref, stats_ref):
    """4-phase transposed-conv tile + BatchNorm partial statistics.

    slab_ref : (TR, 9*Cin)         bf16  shared 3x3-neighborhood im2col slab
    w_ref    : (4, 2, 2*Cin, Cout) bf16  per-phase weights, split into the
                                         top / bottom neighborhood-row halves
    conv_ref : (4, TR, Cout)       bf16  conv output, one full slab per phase
    stats_ref: (1, 8, 2*Cout)      f32   per-tile [sum | sumsq] partials
                                         (row-replicated so the block stays
                                          8-sublane aligned; wrapper uses row 0)
    """
    cin = slab_ref.shape[1] // 9
    s = None
    q = None
    for p, (di, dj) in enumerate(_PHASES):
        # Phase (di, dj) needs neighborhood taps (di+a, dj+b), a,b in {0,1}:
        # two contiguous 2*Cin-wide lane slices of the shared slab.
        top = slab_ref[:, (3 * di + dj) * cin:(3 * di + dj + 2) * cin]
        bot = slab_ref[:, (3 * di + 3 + dj) * cin:(3 * di + 3 + dj + 2) * cin]
        d = (jnp.dot(top, w_ref[p, 0], preferred_element_type=jnp.float32) +
             jnp.dot(bot, w_ref[p, 1], preferred_element_type=jnp.float32))
        conv_ref[p] = d.astype(conv_ref.dtype)        # direct per-phase store
        s = d if s is None else s + d                 # incremental f32 stats
        q = d * d if q is None else q + d * d
    # BatchNorm partials from the f32 accumulators (one broadcast per tile).
    row = jnp.concatenate([jnp.sum(s, axis=0, keepdims=True),
                           jnp.sum(q, axis=0, keepdims=True)], axis=-1)
    stats_ref[...] = jnp.broadcast_to(row[None], stats_ref.shape)


def _bn_relu_kernel(conv_ref, scale_ref, shift_ref, out_ref):
    """y = relu(conv * scale + shift), tile-wise (BN folded into scale/shift)."""
    sc = scale_ref[...]                                # (1, Cout) f32
    sh = shift_ref[...]
    for p in range(4):
        y = conv_ref[p].astype(jnp.float32) * sc + sh  # (TRB, Cout)
        out_ref[p] = jnp.maximum(y, 0.0).astype(out_ref.dtype)


def _neighborhood_slab(x_nchw):
    """(N,Cin,H,W) -> (N*H*W, 9*Cin); columns ordered (r, c, ci), r,c in 0..2.

    slab[(n,i,j), (3r+c)*Cin + ci] = x_pad[n, i+r, j+c, ci]  (1-pixel zero pad).
    """
    n, cin, h, w = x_nchw.shape
    x = jnp.transpose(x_nchw, (0, 2, 3, 1))                    # NHWC (1x input)
    xp = jnp.pad(x, ((0, 0), (1, 1), (1, 1), (0, 0)))
    taps = [xp[:, r:r + h, c:c + w, :] for r in (0, 1, 2) for c in (0, 1, 2)]
    return jnp.concatenate(taps, axis=-1).reshape(n * h * w, 9 * cin)


def _phase_weights(w_pt):
    """(Cin,Cout,K,K) ConvTranspose2d weight -> (4, 2, 2*Cin, Cout).

    [p, a, b*Cin+ci, co] = W[ci, co, K-1-di-2a, K-1-dj-2b] with p = 2*di + dj,
    matching the (c, ci)-ordered 2*Cin lane slices taken from the slab in-kernel.
    """
    phases = []
    for di, dj in _PHASES:
        halves = [jnp.concatenate(
                      [w_pt[:, :, K - 1 - di - 2 * a, K - 1 - dj - 2 * b]
                       for b in (0, 1)], axis=0)              # (2*Cin, Cout)
                  for a in (0, 1)]
        phases.append(jnp.stack(halves, axis=0))               # (2, 2*Cin, Cout)
    return jnp.stack(phases, axis=0)                           # (4, 2, 2*Cin, Cout)


def _vmem_limit_bytes():
    """Scoped-VMEM limit with headroom; adapts to v5e/v6e (128 MiB) vs v7x (64 MiB)."""
    try:
        phys = int(pltpu.get_tpu_info().vmem_capacity_bytes)
    except Exception:
        phys = 64 * 1024 * 1024          # assume the smallest (v7x-like) VMEM
    return int(min(96 * 1024 * 1024, max(32 * 1024 * 1024, (phys * 3) // 4)))


def conv_transpose2d_block(x_nchw, w_pt, gamma, beta, *,
                           tile_rows=512, bn_tile_rows=2048,
                           compute_dtype=jnp.bfloat16):
    """Forward of ConvTranspose2dBlock (transposed_conv + BatchNorm + ReLU path).

    x_nchw : (N, Cin, H, W)     w_pt : (Cin, Cout, K, K)    gamma/beta : (Cout,)
    returns: (N, Cout, 2H, 2W)
    """
    n, cin, h, w = x_nchw.shape
    cout = w_pt.shape[1]
    np_rows = n * h * w                    # super-pixel rows (each -> 2x2 outputs)

    slab = _neighborhood_slab(x_nchw).astype(compute_dtype)    # (NP, 9*Cin)
    wph = _phase_weights(w_pt).astype(compute_dtype)           # (4, 2, 2*Cin, Cout)

    vmem_limit = _vmem_limit_bytes()
    budget = (vmem_limit * 3) // 4

    def conv_pass_bytes(t):                # double-buffered blocks of the conv pass
        return (2 * t * 9 * cin * 2                    # slab block (bf16)
                + 2 * 4 * 2 * 2 * cin * cout * 2       # weights
                + 2 * 4 * t * cout * 2                 # conv output block (bf16)
                + 2 * 8 * 2 * cout * 4)                # stats block (f32)

    tr = max(8, min(tile_rows, np_rows))
    tr = ((tr + 7) // 8) * 8
    while conv_pass_bytes(tr) > budget and tr > 64:    # keep v7x (64 MiB VMEM) safe
        tr = max(64, ((tr // 2 + 7) // 8) * 8)
    npp = pl.cdiv(np_rows, tr) * tr
    if npp != np_rows:                     # zero rows contribute 0 to conv & stats
        slab = jnp.pad(slab, ((0, npp - np_rows), (0, 0)))
    num_tiles = npp // tr
    # NOTE(v7x): for best 2-TensorCore balance keep num_tiles even when > 1.

    conv_buf, stats = pl.pallas_call(
        _convt_phase_kernel,
        grid=(num_tiles,),
        in_specs=[
            pl.BlockSpec((tr, 9 * cin), lambda t: (t, 0)),
            # TODO(synk): single-buffer this constant weight block
            # (pipeline_mode=pl.Buffered(1)) to save one weight copy of VMEM once
            # that path is reliably supported; left double-buffered for safety.
            pl.BlockSpec((4, 2, 2 * cin, cout), lambda t: (0, 0, 0, 0)),
        ],
        out_specs=(
            pl.BlockSpec((4, tr, cout), lambda t: (0, t, 0)),
            pl.BlockSpec((1, 8, 2 * cout), lambda t: (t, 0, 0)),
        ),
        out_shape=(
            jax.ShapeDtypeStruct((4, npp, cout), compute_dtype),   # bf16 intermediate
            jax.ShapeDtypeStruct((num_tiles, 8, 2 * cout), jnp.float32),
        ),
        compiler_params=pltpu.CompilerParams(
            dimension_semantics=("parallel",),
            vmem_limit_bytes=vmem_limit),
    )(slab, wph)

    # Finalize BatchNorm batch statistics from the tiny per-tile partials.
    psum = jnp.sum(stats[:, 0, :cout], axis=0)
    psq = jnp.sum(stats[:, 0, cout:], axis=0)
    count = float(np_rows * 4)             # N * 2H * 2W samples per channel
    mean = psum / count
    # TODO(synk): E[x^2]-E[x]^2 in f32 can cancel for large channel means
    # (PyTorch BN uses a stabler reduction); clamp keeps rsqrt well-defined.
    var = jnp.maximum(psq / count - mean * mean, 0.0)
    inv = jax.lax.rsqrt(var + BN_EPS)
    scale = (gamma * inv).astype(jnp.float32).reshape(1, cout)
    shift = (beta - mean * gamma * inv).astype(jnp.float32).reshape(1, cout)

    # BN/ReLU pass: pure streaming, so use larger row tiles (g conv tiles each).
    bn_bytes_per_row = 32 * cout           # in+out blocks, double-buffered, bf16
    max_rows = max(tr, min(bn_tile_rows, budget // max(1, bn_bytes_per_row)))
    g = 1
    for cand in range(min(num_tiles, max(1, max_rows // tr)), 0, -1):
        if num_tiles % cand == 0:
            g = cand
            break
    trb = g * tr
    num_bn_tiles = num_tiles // g

    y_buf = pl.pallas_call(
        _bn_relu_kernel,
        grid=(num_bn_tiles,),
        in_specs=[
            pl.BlockSpec((4, trb, cout), lambda t: (0, t, 0)),
            pl.BlockSpec((1, cout), lambda t: (0, 0)),
            pl.BlockSpec((1, cout), lambda t: (0, 0)),
        ],
        out_specs=pl.BlockSpec((4, trb, cout), lambda t: (0, t, 0)),
        out_shape=jax.ShapeDtypeStruct((4, npp, cout), compute_dtype),
        input_output_aliases={0: 0},       # reuse conv_buf's HBM allocation
        compiler_params=pltpu.CompilerParams(
            dimension_semantics=("parallel",),
            vmem_limit_bytes=vmem_limit),
    )(conv_buf, scale, shift)

    # (di, dj, row, co) -> NCHW.  The single boundary transpose required by the
    # module's NCHW interface also performs the 2x2 phase interleave for free.
    # TODO(synk): in an NHWC model keep (N, H, 2, W, 2, Cout) and drop this.
    y = y_buf[:, :np_rows, :].reshape(2, 2, n, h, w, cout)
    y = jnp.transpose(y, (2, 5, 3, 0, 4, 1))           # (n, co, i, di, j, dj)
    return y.reshape(n, cout, STRIDE * h, STRIDE * w).astype(x_nchw.dtype)


def reference(x_nchw, w_pt, gamma, beta):
    """Plain-JAX f32 reference (lax conv with lhs dilation) for correctness."""
    x = jnp.transpose(x_nchw, (0, 2, 3, 1))
    w_hwio = jnp.transpose(w_pt[:, :, ::-1, ::-1], (2, 3, 0, 1))   # (K,K,Cin,Cout)
    pe = K - 1 - PAD
    conv = jax.lax.conv_general_dilated(
        x, w_hwio, window_strides=(1, 1), padding=[(pe, pe), (pe, pe)],
        lhs_dilation=(STRIDE, STRIDE),
        dimension_numbers=("NHWC", "HWIO", "NHWC"))
    mean = conv.mean(axis=(0, 1, 2), keepdims=True)
    var = ((conv - mean) ** 2).mean(axis=(0, 1, 2), keepdims=True)
    y = (conv - mean) * jax.lax.rsqrt(var + BN_EPS) * gamma + beta
    y = jnp.maximum(y, 0.0)
    return jnp.transpose(y, (0, 3, 1, 2))


def _run_case(key, n, cin, cout, h, w, gamma, beta, tol):
    kx, kw = jax.random.split(key)
    x = jax.random.normal(kx, (n, cin, h, w), jnp.float32)
    # ConvTranspose2d weight shape: (in_channels, out_channels, kH, kW); bias=False.
    fan_in = cout * K * K
    wt = jax.random.uniform(kw, (cin, cout, K, K), jnp.float32, -1.0, 1.0) / (fan_in ** 0.5)

    out = jax.block_until_ready(jax.jit(conv_transpose2d_block)(x, wt, gamma, beta))
    assert out.shape == (n, cout, STRIDE * h, STRIDE * w), out.shape

    ref = jax.block_until_ready(reference(x, wt, gamma, beta))
    err = float(jnp.max(jnp.abs(out - ref)))
    # bf16 MXU operands + bf16 intermediate (f32 accumulation / f32 BN stats).
    assert jnp.allclose(out, ref, atol=tol, rtol=tol), err


if __name__ == "__main__":
    key = jax.random.PRNGKey(0)
    k1, k2, kg, kb = jax.random.split(key, 4)

    # Small case matching the module's example scale (BatchNorm default init).
    _run_case(k1, n=2, cin=4, cout=8, h=16, w=16,
              gamma=jnp.ones((8,), jnp.float32),
              beta=jnp.zeros((8,), jnp.float32), tol=4e-2)

    # Wider-channel case: exercises >=128-lane conv slabs, unaligned 2*Cin tap
    # slices, and non-trivial affine BN parameters.
    cout2 = 128
    gamma2 = 1.0 + 0.2 * jax.random.normal(kg, (cout2,), jnp.float32)
    beta2 = 0.1 * jax.random.normal(kb, (cout2,), jnp.float32)
    _run_case(k2, n=1, cin=64, cout=cout2, h=8, w=8,
              gamma=gamma2, beta=beta2, tol=5e-2)

    print("KERNEL_OK")
</pallas_src>

<mosaic_0001>
module attributes {stable_mosaic.version = 11 : i64} {
  func.func @_convt_phase_kernel(%arg0: i32, %arg1: memref<512x36xbf16, #tpu.memory_space<vmem>>, %arg2: memref<4x2x8x8xbf16, #tpu.memory_space<vmem>>, %arg3: memref<4x512x8xbf16, #tpu.memory_space<vmem>>, %arg4: memref<1x8x16xf32, #tpu.memory_space<vmem>>) attributes {dimension_semantics = [#tpu.dimension_semantics<parallel>], iteration_bounds = array<i64: 1>, scalar_prefetch = 0 : i64, scratch_operands = 0 : i64, tpu.core_type = #tpu.core_type<tc>, window_params = [{transform_indices = @transform_0, window_bounds = array<i64: 512, 36>}, {pipeline_mode = #tpu.pipeline_mode<synchronous>, transform_indices = @transform_1, window_bounds = array<i64: 4, 2, 8, 8>}, {transform_indices = @transform_2, window_bounds = array<i64: 4, 512, 8>}, {transform_indices = @transform_3, window_bounds = array<i64: 1, 8, 16>}]} {
    %c0 = arith.constant 0 : index
    %c0_0 = arith.constant 0 : index
    %0 = vector.load %arg1[%c0, %c0_0] : memref<512x36xbf16, #tpu.memory_space<vmem>>, vector<512x8xbf16>
    %c0_1 = arith.constant 0 : index
    %c12 = arith.constant 12 : index
    %1 = vector.load %arg1[%c0_1, %c12] : memref<512x36xbf16, #tpu.memory_space<vmem>>, vector<512x8xbf16>
    %c0_2 = arith.constant 0 : index
    %c0_3 = arith.constant 0 : index
    %c0_4 = arith.constant 0 : index
    %c0_5 = arith.constant 0 : index
    %2 = vector.load %arg2[%c0_2, %c0_3, %c0_4, %c0_5] : memref<4x2x8x8xbf16, #tpu.memory_space<vmem>>, vector<1x1x8x8xbf16>
    %3 = vector.shape_cast %2 : vector<1x1x8x8xbf16> to vector<8x8xbf16>
    %cst = arith.constant dense<0.000000e+00> : vector<512x8xf32>
    %4 = tpu.matmul %0, %3, %cst {dimension_numbers = #tpu.dot_dimension_numbers<[1], [0], [0], [1], [0, 0, 1, 1], [], []>} : vector<512x8xbf16>, vector<8x8xbf16>, vector<512x8xf32> -> vector<512x8xf32>
    %c0_6 = arith.constant 0 : index
    %c1 = arith.constant 1 : index
    %c0_7 = arith.constant 0 : index
    %c0_8 = arith.constant 0 : index
    %5 = vector.load %arg2[%c0_6, %c1, %c0_7, %c0_8] : memref<4x2x8x8xbf16, #tpu.memory_space<vmem>>, vector<1x1x8x8xbf16>
    %6 = vector.shape_cast %5 : vector<1x1x8x8xbf16> to vector<8x8xbf16>
    %cst_9 = arith.constant dense<0.000000e+00> : vector<512x8xf32>
    %7 = tpu.matmul %1, %6, %cst_9 {dimension_numbers = #tpu.dot_dimension_numbers<[1], [0], [0], [1], [0, 0, 1, 1], [], []>} : vector<512x8xbf16>, vector<8x8xbf16>, vector<512x8xf32> -> vector<512x8xf32>
    %8 = arith.addf %4, %7 : vector<512x8xf32>
    %9 = arith.truncf %8 : vector<512x8xf32> to vector<512x8xbf16>
    %c0_10 = arith.constant 0 : index
    %c0_11 = arith.constant 0 : index
    %c0_12 = arith.constant 0 : index
    %10 = vector.load %arg3[%c0_10, %c0_11, %c0_12] : memref<4x512x8xbf16, #tpu.memory_space<vmem>>, vector<1x512x8xbf16>
    %11 = vector.shape_cast %10 : vector<1x512x8xbf16> to vector<512x8xbf16>
    %12 = vector.shape_cast %9 : vector<512x8xbf16> to vector<1x512x8xbf16>
    tpu.vector_store %arg3[%c0_10, %c0_11, %c0_12], %12 {strides = array<i32>} : memref<4x512x8xbf16, #tpu.memory_space<vmem>>, vector<1x512x8xbf16>,
    %13 = arith.mulf %8, %8 : vector<512x8xf32>
    %c0_13 = arith.constant 0 : index
    %c4 = arith.constant 4 : index
    %14 = vector.load %arg1[%c0_13, %c4] : memref<512x36xbf16, #tpu.memory_space<vmem>>, vector<512x8xbf16>
    %c0_14 = arith.constant 0 : index
    %c16 = arith.constant 16 : index
    %15 = vector.load %arg1[%c0_14, %c16] : memref<512x36xbf16, #tpu.memory_space<vmem>>, vector<512x8xbf16>
    %c1_15 = arith.constant 1 : index
    %c0_16 = arith.constant 0 : index
    %c0_17 = arith.constant 0 : index
    %c0_18 = arith.constant 0 : index
    %16 = vector.load %arg2[%c1_15, %c0_16, %c0_17, %c0_18] : memref<4x2x8x8xbf16, #tpu.memory_space<vmem>>, vector<1x1x8x8xbf16>
    %17 = vector.shape_cast %16 : vector<1x1x8x8xbf16> to vector<8x8xbf16>
    %cst_19 = arith.constant dense<0.000000e+00> : vector<512x8xf32>
    %18 = tpu.matmul %14, %17, %cst_19 {dimension_numbers = #tpu.dot_dimension_numbers<[1], [0], [0], [1], [0, 0, 1, 1], [], []>} : vector<512x8xbf16>, vector<8x8xbf16>, vector<512x8xf32> -> vector<512x8xf32>
    %c1_20 = arith.constant 1 : index
    %c1_21 = arith.constant 1 : index
    %c0_22 = arith.constant 0 : index
    %c0_23 = arith.constant 0 : index
    %19 = vector.load %arg2[%c1_20, %c1_21, %c0_22, %c0_23] : memref<4x2x8x8xbf16, #tpu.memory_space<vmem>>, vector<1x1x8x8xbf16>
    %20 = vector.shape_cast %19 : vector<1x1x8x8xbf16> to vector<8x8xbf16>
    %cst_24 = arith.constant dense<0.000000e+00> : vector<512x8xf32>
    %21 = tpu.matmul %15, %20, %cst_24 {dimension_numbers = #tpu.dot_dimension_numbers<[1], [0], [0], [1], [0, 0, 1, 1], [], []>} : vector<512x8xbf16>, vector<8x8xbf16>, vector<512x8xf32> -> vector<512x8xf32>
    %22 = arith.addf %18, %21 : vector<512x8xf32>
    %23 = arith.truncf %22 : vector<512x8xf32> to vector<512x8xbf16>
    %c1_25 = arith.constant 1 : index
    %c0_26 = arith.constant 0 : index
    %c0_27 = arith.constant 0 : index
    %24 = vector.load %arg3[%c1_25, %c0_26, %c0_27] : memref<4x512x8xbf16, #tpu.memory_space<vmem>>, vector<1x512x8xbf16>
    %25 = vector.shape_cast %24 : vector<1x512x8xbf16> to vector<512x8xbf16>
    %26 = vector.shape_cast %23 : vector<512x8xbf16> to vector<1x512x8xbf16>
    tpu.vector_store %arg3[%c1_25, %c0_26, %c0_27], %26 {strides = array<i32>} : memref<4x512x8xbf16, #tpu.memory_space<vmem>>, vector<1x512x8xbf16>,
    %27 = arith.addf %8, %22 : vector<512x8xf32>
    %28 = arith.mulf %22, %22 : vector<512x8xf32>
    %29 = arith.addf %13, %28 : vector<512x8xf32>
    %c0_28 = arith.constant 0 : index
    %c12_29 = arith.constant 12 : index
    %30 = vector.load %arg1[%c0_28, %c12_29] : memref<512x36xbf16, #tpu.memory_space<vmem>>, vector<512x8xbf16>
    %c0_30 = arith.constant 0 : index
    %c24 = arith.constant 24 : index
    %31 = vector.load %arg1[%c0_30, %c24] : memref<512x36xbf16, #tpu.memory_space<vmem>>, vector<512x8xbf16>
    %c2 = arith.constant 2 : index
    %c0_31 = arith.constant 0 : index
    %c0_32 = arith.constant 0 : index
    %c0_33 = arith.constant 0 : index
    %32 = vector.load %arg2[%c2, %c0_31, %c0_32, %c0_33] : memref<4x2x8x8xbf16, #tpu.memory_space<vmem>>, vector<1x1x8x8xbf16>
    %33 = vector.shape_cast %32 : vector<1x1x8x8xbf16> to vector<8x8xbf16>
    %cst_34 = arith.constant dense<0.000000e+00> : vector<512x8xf32>
    %34 = tpu.matmul %30, %33, %cst_34 {dimension_numbers = #tpu.dot_dimension_numbers<[1], [0], [0], [1], [0, 0, 1, 1], [], []>} : vector<512x8xbf16>, vector<8x8xbf16>, vector<512x8xf32> -> vector<512x8xf32>
    %c2_35 = arith.constant 2 : index
    %c1_36 = arith.constant 1 : index
    %c0_37 = arith.constant 0 : index
    %c0_38 = arith.constant 0 : index
    %35 = vector.load %arg2[%c2_35, %c1_36, %c0_37, %c0_38] : memref<4x2x8x8xbf16, #tpu.memory_space<vmem>>, vector<1x1x8x8xbf16>
    %36 = vector.shape_cast %35 : vector<1x1x8x8xbf16> to vector<8x8xbf16>
    %cst_39 = arith.constant dense<0.000000e+00> : vector<512x8xf32>
    %37 = tpu.matmul %31, %36, %cst_39 {dimension_numbers = #tpu.dot_dimension_numbers<[1], [0], [0], [1], [0, 0, 1, 1], [], []>} : vector<512x8xbf16>, vector<8x8xbf16>, vector<512x8xf32> -> vector<512x8xf32>
    %38 = arith.addf %34, %37 : vector<512x8xf32>
    %39 = arith.truncf %38 : vector<512x8xf32> to vector<512x8xbf16>
    %c2_40 = arith.constant 2 : index
    %c0_41 = arith.constant 0 : index
    %c0_42 = arith.constant 0 : index
    %40 = vector.load %arg3[%c2_40, %c0_41, %c0_42] : memref<4x512x8xbf16, #tpu.memory_space<vmem>>, vector<1x512x8xbf16>
    %41 = vector.shape_cast %40 : vector<1x512x8xbf16> to vector<512x8xbf16>
    %42 = vector.shape_cast %39 : vector<512x8xbf16> to vector<1x512x8xbf16>
    tpu.vector_store %arg3[%c2_40, %c0_41, %c0_42], %42 {strides = array<i32>} : memref<4x512x8xbf16, #tpu.memory_space<vmem>>, vector<1x512x8xbf16>,
    %43 = arith.addf %27, %38 : vector<512x8xf32>
    %44 = arith.mulf %38, %38 : vector<512x8xf32>
    %45 = arith.addf %29, %44 : vector<512x8xf32>
    %c0_43 = arith.constant 0 : index
    %c16_44 = arith.constant 16 : index
    %46 = vector.load %arg1[%c0_43, %c16_44] : memref<512x36xbf16, #tpu.memory_space<vmem>>, vector<512x8xbf16>
    %c0_45 = arith.constant 0 : index
    %c28 = arith.constant 28 : index
    %47 = vector.load %arg1[%c0_45, %c28] : memref<512x36xbf16, #tpu.memory_space<vmem>>, vector<512x8xbf16>
    %c3 = arith.constant 3 : index
    %c0_46 = arith.constant 0 : index
    %c0_47 = arith.constant 0 : index
    %c0_48 = arith.constant 0 : index
    %48 = vector.load %arg2[%c3, %c0_46, %c0_47, %c0_48] : memref<4x2x8x8xbf16, #tpu.memory_space<vmem>>, vector<1x1x8x8xbf16>
    %49 = vector.shape_cast %48 : vector<1x1x8x8xbf16> to vector<8x8xbf16>
    %cst_49 = arith.constant dense<0.000000e+00> : vector<512x8xf32>
    %50 = tpu.matmul %46, %49, %cst_49 {dimension_numbers = #tpu.dot_dimension_numbers<[1], [0], [0], [1], [0, 0, 1, 1], [], []>} : vector<512x8xbf16>, vector<8x8xbf16>, vector<512x8xf32> -> vector<512x8xf32>
    %c3_50 = arith.constant 3 : index
    %c1_51 = arith.constant 1 : index
    %c0_52 = arith.constant 0 : index
    %c0_53 = arith.constant 0 : index
    %51 = vector.load %arg2[%c3_50, %c1_51, %c0_52, %c0_53] : memref<4x2x8x8xbf16, #tpu.memory_space<vmem>>, vector<1x1x8x8xbf16>
    %52 = vector.shape_cast %51 : vector<1x1x8x8xbf16> to vector<8x8xbf16>
    %cst_54 = arith.constant dense<0.000000e+00> : vector<512x8xf32>
    %53 = tpu.matmul %47, %52, %cst_54 {dimension_numbers = #tpu.dot_dimension_numbers<[1], [0], [0], [1], [0, 0, 1, 1], [], []>} : vector<512x8xbf16>, vector<8x8xbf16>, vector<512x8xf32> -> vector<512x8xf32>
    %54 = arith.addf %50, %53 : vector<512x8xf32>
    %55 = arith.truncf %54 : vector<512x8xf32> to vector<512x8xbf16>
    %c3_55 = arith.constant 3 : index
    %c0_56 = arith.constant 0 : index
    %c0_57 = arith.constant 0 : index
    %56 = vector.load %arg3[%c3_55, %c0_56, %c0_57] : memref<4x512x8xbf16, #tpu.memory_space<vmem>>, vector<1x512x8xbf16>
    %57 = vector.shape_cast %56 : vector<1x512x8xbf16> to vector<512x8xbf16>
    %58 = vector.shape_cast %55 : vector<512x8xbf16> to vector<1x512x8xbf16>
    tpu.vector_store %arg3[%c3_55, %c0_56, %c0_57], %58 {strides = array<i32>} : memref<4x512x8xbf16, #tpu.memory_space<vmem>>, vector<1x512x8xbf16>,
    %59 = arith.addf %43, %54 : vector<512x8xf32>
    %60 = arith.mulf %54, %54 : vector<512x8xf32>
    %61 = arith.addf %45, %60 : vector<512x8xf32>
    %cst_58 = arith.constant dense<0.000000e+00> : vector<8xf32>
    %62 = vector.multi_reduction <add>, %59, %cst_58 [0] : vector<512x8xf32> to vector<8xf32>
    %63 = vector.shape_cast %62 : vector<8xf32> to vector<1x8xf32>
    %cst_59 = arith.constant dense<0.000000e+00> : vector<8xf32>
    %64 = vector.multi_reduction <add>, %61, %cst_59 [0] : vector<512x8xf32> to vector<8xf32>
    %65 = vector.shape_cast %64 : vector<8xf32> to vector<1x8xf32>
    %66 = tpu.concatenate %63, %65 in 1 : vector<1x8xf32>, vector<1x8xf32> -> vector<1x16xf32>
    %67 = vector.shape_cast %66 : vector<1x16xf32> to vector<1x1x16xf32>
    %68 = vector.shape_cast %67 : vector<1x1x16xf32> to vector<1x1x16xf32>
    %69 = vector.broadcast %68 : vector<1x1x16xf32> to vector<1x8x16xf32>
    %c0_60 = arith.constant 0 : index
    %c0_61 = arith.constant 0 : index
    %c0_62 = arith.constant 0 : index
    %70 = vector.load %arg4[%c0_60, %c0_61, %c0_62] : memref<1x8x16xf32, #tpu.memory_space<vmem>>, vector<1x8x16xf32>
    tpu.vector_store %arg4[%c0_60, %c0_61, %c0_62], %69 {strides = array<i32>} : memref<1x8x16xf32, #tpu.memory_space<vmem>>, vector<1x8x16xf32>,
    return
  }
  func.func @transform_0(%arg0: i32) -> (i32, i32) {
    %c0_i32 = arith.constant 0 : i32
    %c0_i32_0 = arith.constant 0 : i32
    return %arg0, %c0_i32 : i32, i32
  }
  func.func @transform_1(%arg0: i32) -> (i32, i32, i32, i32) {
    %c0_i32 = arith.constant 0 : i32
    %c0_i32_0 = arith.constant 0 : i32
    %c0_i32_1 = arith.constant 0 : i32
    %c0_i32_2 = arith.constant 0 : i32
    %c0_i32_3 = arith.constant 0 : i32
    return %c0_i32, %c0_i32_0, %c0_i32_1, %c0_i32_2 : i32, i32, i32, i32
  }
  func.func @transform_2(%arg0: i32) -> (i32, i32, i32) {
    %c0_i32 = arith.constant 0 : i32
    %c0_i32_0 = arith.constant 0 : i32
    %c0_i32_1 = arith.constant 0 : i32
    return %c0_i32, %arg0, %c0_i32_0 : i32, i32, i32
  }
  func.func @transform_3(%arg0: i32) -> (i32, i32, i32) {
    %c0_i32 = arith.constant 0 : i32
    %c0_i32_0 = arith.constant 0 : i32
    %c0_i32_1 = arith.constant 0 : i32
    return %arg0, %c0_i32, %c0_i32_0 : i32, i32, i32
  }
}

module attributes {stable_mosaic.version = 11 : i64} {
  func.func @_bn_relu_kernel(%arg0: i32, %arg1: memref<4x512x8xbf16, #tpu.memory_space<vmem>>, %arg2: memref<1x8xf32, #tpu.memory_space<vmem>>, %arg3: memref<1x8xf32, #tpu.memory_space<vmem>>, %arg4: memref<4x512x8xbf16, #tpu.memory_space<vmem>>) attributes {dimension_semantics = [#tpu.dimension_semantics<parallel>], iteration_bounds = array<i64: 1>, scalar_prefetch = 0 : i64, scratch_operands = 0 : i64, tpu.core_type = #tpu.core_type<tc>, window_params = [{transform_indices = @transform_0, window_bounds = array<i64: 4, 512, 8>}, {pipeline_mode = #tpu.pipeline_mode<synchronous>, transform_indices = @transform_1, window_bounds = array<i64: 1, 8>}, {pipeline_mode = #tpu.pipeline_mode<synchronous>, transform_indices = @transform_2, window_bounds = array<i64: 1, 8>}, {transform_indices = @transform_3, window_bounds = array<i64: 4, 512, 8>}]} {
    %c0 = arith.constant 0 : index
    %c0_0 = arith.constant 0 : index
    %0 = vector.load %arg2[%c0, %c0_0] : memref<1x8xf32, #tpu.memory_space<vmem>>, vector<1x8xf32>
    %c0_1 = arith.constant 0 : index
    %c0_2 = arith.constant 0 : index
    %1 = vector.load %arg3[%c0_1, %c0_2] : memref<1x8xf32, #tpu.memory_space<vmem>>, vector<1x8xf32>
    %c0_3 = arith.constant 0 : index
    %c0_4 = arith.constant 0 : index
    %c0_5 = arith.constant 0 : index
    %2 = vector.load %arg1[%c0_3, %c0_4, %c0_5] : memref<4x512x8xbf16, #tpu.memory_space<vmem>>, vector<1x512x8xbf16>
    %3 = vector.shape_cast %2 : vector<1x512x8xbf16> to vector<512x8xbf16>
    %4 = arith.extf %3 : vector<512x8xbf16> to vector<512x8xf32>
    %5 = vector.broadcast %0 : vector<1x8xf32> to vector<512x8xf32>
    %6 = arith.mulf %4, %5 : vector<512x8xf32>
    %7 = vector.broadcast %1 : vector<1x8xf32> to vector<512x8xf32>
    %8 = arith.addf %6, %7 : vector<512x8xf32>
    %cst = arith.constant 0.000000e+00 : f32
    %9 = vector.broadcast %cst : f32 to vector<512x8xf32>
    %10 = arith.maximumf %8, %9 : vector<512x8xf32>
    %11 = arith.truncf %10 : vector<512x8xf32> to vector<512x8xbf16>
    %c0_6 = arith.constant 0 : index
    %c0_7 = arith.constant 0 : index
    %c0_8 = arith.constant 0 : index
    %12 = vector.load %arg4[%c0_6, %c0_7, %c0_8] : memref<4x512x8xbf16, #tpu.memory_space<vmem>>, vector<1x512x8xbf16>
    %13 = vector.shape_cast %12 : vector<1x512x8xbf16> to vector<512x8xbf16>
    %14 = vector.shape_cast %11 : vector<512x8xbf16> to vector<1x512x8xbf16>
    tpu.vector_store %arg4[%c0_6, %c0_7, %c0_8], %14 {strides = array<i32>} : memref<4x512x8xbf16, #tpu.memory_space<vmem>>, vector<1x512x8xbf16>,
    %c1 = arith.constant 1 : index
    %c0_9 = arith.constant 0 : index
    %c0_10 = arith.constant 0 : index
    %15 = vector.load %arg1[%c1, %c0_9, %c0_10] : memref<4x512x8xbf16, #tpu.memory_space<vmem>>, vector<1x512x8xbf16>
    %16 = vector.shape_cast %15 : vector<1x512x8xbf16> to vector<512x8xbf16>
    %17 = arith.extf %16 : vector<512x8xbf16> to vector<512x8xf32>
    %18 = vector.broadcast %0 : vector<1x8xf32> to vector<512x8xf32>
    %19 = arith.mulf %17, %18 : vector<512x8xf32>
    %20 = vector.broadcast %1 : vector<1x8xf32> to vector<512x8xf32>
    %21 = arith.addf %19, %20 : vector<512x8xf32>
    %cst_11 = arith.constant 0.000000e+00 : f32
    %22 = vector.broadcast %cst_11 : f32 to vector<512x8xf32>
    %23 = arith.maximumf %21, %22 : vector<512x8xf32>
    %24 = arith.truncf %23 : vector<512x8xf32> to vector<512x8xbf16>
    %c1_12 = arith.constant 1 : index
    %c0_13 = arith.constant 0 : index
    %c0_14 = arith.constant 0 : index
    %25 = vector.load %arg4[%c1_12, %c0_13, %c0_14] : memref<4x512x8xbf16, #tpu.memory_space<vmem>>, vector<1x512x8xbf16>
    %26 = vector.shape_cast %25 : vector<1x512x8xbf16> to vector<512x8xbf16>
    %27 = vector.shape_cast %24 : vector<512x8xbf16> to vector<1x512x8xbf16>
    tpu.vector_store %arg4[%c1_12, %c0_13, %c0_14], %27 {strides = array<i32>} : memref<4x512x8xbf16, #tpu.memory_space<vmem>>, vector<1x512x8xbf16>,
    %c2 = arith.constant 2 : index
    %c0_15 = arith.constant 0 : index
    %c0_16 = arith.constant 0 : index
    %28 = vector.load %arg1[%c2, %c0_15, %c0_16] : memref<4x512x8xbf16, #tpu.memory_space<vmem>>, vector<1x512x8xbf16>
    %29 = vector.shape_cast %28 : vector<1x512x8xbf16> to vector<512x8xbf16>
    %30 = arith.extf %29 : vector<512x8xbf16> to vector<512x8xf32>
    %31 = vector.broadcast %0 : vector<1x8xf32> to vector<512x8xf32>
    %32 = arith.mulf %30, %31 : vector<512x8xf32>
    %33 = vector.broadcast %1 : vector<1x8xf32> to vector<512x8xf32>
    %34 = arith.addf %32, %33 : vector<512x8xf32>
    %cst_17 = arith.constant 0.000000e+00 : f32
    %35 = vector.broadcast %cst_17 : f32 to vector<512x8xf32>
    %36 = arith.maximumf %34, %35 : vector<512x8xf32>
    %37 = arith.truncf %36 : vector<512x8xf32> to vector<512x8xbf16>
    %c2_18 = arith.constant 2 : index
    %c0_19 = arith.constant 0 : index
    %c0_20 = arith.constant 0 : index
    %38 = vector.load %arg4[%c2_18, %c0_19, %c0_20] : memref<4x512x8xbf16, #tpu.memory_space<vmem>>, vector<1x512x8xbf16>
    %39 = vector.shape_cast %38 : vector<1x512x8xbf16> to vector<512x8xbf16>
    %40 = vector.shape_cast %37 : vector<512x8xbf16> to vector<1x512x8xbf16>
    tpu.vector_store %arg4[%c2_18, %c0_19, %c0_20], %40 {strides = array<i32>} : memref<4x512x8xbf16, #tpu.memory_space<vmem>>, vector<1x512x8xbf16>,
    %c3 = arith.constant 3 : index
    %c0_21 = arith.constant 0 : index
    %c0_22 = arith.constant 0 : index
    %41 = vector.load %arg1[%c3, %c0_21, %c0_22] : memref<4x512x8xbf16, #tpu.memory_space<vmem>>, vector<1x512x8xbf16>
    %42 = vector.shape_cast %41 : vector<1x512x8xbf16> to vector<512x8xbf16>
    %43 = arith.extf %42 : vector<512x8xbf16> to vector<512x8xf32>
    %44 = vector.broadcast %0 : vector<1x8xf32> to vector<512x8xf32>
    %45 = arith.mulf %43, %44 : vector<512x8xf32>
    %46 = vector.broadcast %1 : vector<1x8xf32> to vector<512x8xf32>
    %47 = arith.addf %45, %46 : vector<512x8xf32>
    %cst_23 = arith.constant 0.000000e+00 : f32
    %48 = vector.broadcast %cst_23 : f32 to vector<512x8xf32>
    %49 = arith.maximumf %47, %48 : vector<512x8xf32>
    %50 = arith.truncf %49 : vector<512x8xf32> to vector<512x8xbf16>
    %c3_24 = arith.constant 3 : index
    %c0_25 = arith.constant 0 : index
    %c0_26 = arith.constant 0 : index
    %51 = vector.load %arg4[%c3_24, %c0_25, %c0_26] : memref<4x512x8xbf16, #tpu.memory_space<vmem>>, vector<1x512x8xbf16>
    %52 = vector.shape_cast %51 : vector<1x512x8xbf16> to vector<512x8xbf16>
    %53 = vector.shape_cast %50 : vector<512x8xbf16> to vector<1x512x8xbf16>
    tpu.vector_store %arg4[%c3_24, %c0_25, %c0_26], %53 {strides = array<i32>} : memref<4x512x8xbf16, #tpu.memory_space<vmem>>, vector<1x512x8xbf16>,
    return
  }
  func.func @transform_0(%arg0: i32) -> (i32, i32, i32) {
    %c0_i32 = arith.constant 0 : i32
    %c0_i32_0 = arith.constant 0 : i32
    %c0_i32_1 = arith.constant 0 : i32
    return %c0_i32, %arg0, %c0_i32_0 : i32, i32, i32
  }
  func.func @transform_1(%arg0: i32) -> (i32, i32) {
    %c0_i32 = arith.constant 0 : i32
    %c0_i32_0 = arith.constant 0 : i32
    %c0_i32_1 = arith.constant 0 : i32
    return %c0_i32, %c0_i32_0 : i32, i32
  }
  func.func @transform_2(%arg0: i32) -> (i32, i32) {
    %c0_i32 = arith.constant 0 : i32
    %c0_i32_0 = arith.constant 0 : i32
    %c0_i32_1 = arith.constant 0 : i32
    return %c0_i32, %c0_i32_0 : i32, i32
  }
  func.func @transform_3(%arg0: i32) -> (i32, i32, i32) {
    %c0_i32 = arith.constant 0 : i32
    %c0_i32_0 = arith.constant 0 : i32
    %c0_i32_1 = arith.constant 0 : i32
    return %c0_i32, %arg0, %c0_i32_0 : i32, i32, i32
  }
}

</mosaic_0001>

<bundles_post_ra>
// kernel: conv_transpose2d_block.3
= control target key start
LH: loop header
LB: loop body
LE: loop exit
PB: predicated region body
PF: predicated region fallthrough
CT: control target
= control target key end

     0   :  { %vm604_vm0 = vcmask 60416   ;;  %s6122_s0 = inlined_call_operand.vmem [shape: bf16[4,512,8], index: 0, kind: input, shape index: {}, may-alias: {0,3}]   ;;  %s6123_s1 = inlined_call_operand.vmem [shape: f32[1,8], index: 1, kind: input, shape index: {}]   ;;  %s6124_s2 = inlined_call_operand.vmem [shape: f32[1,8], index: 2, kind: input, shape index: {}]   ;;  %s6125_s3 = inlined_call_operand.vmem [shape: bf16[4,512,8], index: 3, kind: output, shape index: {}, may-alias: {0,3}]  }
   0x1   :  { %v4165_v0 = vld [vmem:[%s6123_s1] ss:$0 sm:$0xff]  ;;  %v4009_v4 = vld [vmem:[%s6122_s0 + $0x8] sm:$0xff]   ;;  %v4010_v5 = vld [vmem:[%s6122_s0 + $0x10] sm:$0xff]  }
   0x2   :  { %v3498_v1 = vld [vmem:[%s6122_s0] sm:$0xff]   ;;  %v4011_v6 = vld [vmem:[%s6122_s0 + $0x18] sm:$0xff]   ;;  %v3503_v8 = vunpack.c.l.bf16 %v4009_v4  ;;  %v3504_v9 = vunpack.c.h.bf16 %v4009_v4  ;;  %v3507_v10 = vunpack.c.l.bf16 %v4010_v5  ;;  %v3508_v11 = vunpack.c.h.bf16 %v4010_v5  ;;  %v4013_v41 = vld [vmem:[%s6122_s0 + $0x28] sm:$0xff]  }
   0x3   :  { %v3499_v2 = vunpack.c.l.bf16 %v3498_v1  ;;  %v3500_v3 = vunpack.c.h.bf16 %v3498_v1  ;;  %v4182_v7 = vld [vmem:[%s6124_s2] ss:$0 sm:$0xff]  ;;  %v3511_v14 = vunpack.c.l.bf16 %v4011_v6  ;;  %v3512_v15 = vunpack.c.h.bf16 %v4011_v6  ;;  %v4014_v42 = vld [vmem:[%s6122_s0 + $0x30] sm:$0xff]   ;;  %v4015_v47 = vld [vmem:[%s6122_s0 + $0x38] sm:$0xff]  }
   0x4   :  { %v152_v16 = vmul.f32 %v3503_v8, %v4165_v0  ;;  %v153_v17 = vmul.f32 %v3504_v9, %v4165_v0  ;;  %v154_v18 = vmul.f32 %v3507_v10, %v4165_v0  ;;  %v155_v19 = vmul.f32 %v3508_v11, %v4165_v0  ;;  %v4012_v36 = vld [vmem:[%s6122_s0 + $0x20] sm:$0xff]  }
   0x5   :  { %v150_v12 = vmul.f32 %v3499_v2, %v4165_v0  ;;  %v151_v13 = vmul.f32 %v3500_v3, %v4165_v0  ;;  %v156_v22 = vmul.f32 %v3511_v14, %v4165_v0  ;;  %v157_v23 = vmul.f32 %v3512_v15, %v4165_v0 }
   0x6   :  { %v222_v24 = vadd.f32 %v4182_v7, %v152_v16  ;;  %v223_v25 = vadd.f32 %v4182_v7, %v153_v17  ;;  %v224_v26 = vadd.f32 %v4182_v7, %v154_v18  ;;  %v225_v27 = vadd.f32 %v4182_v7, %v155_v19 }
   0x7   :  { %v220_v20 = vadd.f32 %v4182_v7, %v150_v12  ;;  %v221_v21 = vadd.f32 %v4182_v7, %v151_v13  ;;  %v226_v30 = vadd.f32 %v4182_v7, %v156_v22  ;;  %v227_v31 = vadd.f32 %v4182_v7, %v157_v23 }
   0x8   :  { %v286_v32 = vmax.f32 %v222_v24, 0.0  ;;  %v287_v33 = vmax.f32 %v223_v25, 0.0  ;;  %v288_v34 = vmax.f32 %v224_v26, 0.0  ;;  %v289_v35 = vmax.f32 %v225_v27, 0.0 }
   0x9   :  { %v284_v28 = vmax.f32 %v220_v20, 0.0  ;;  %v285_v29 = vmax.f32 %v221_v21, 0.0  ;;  %v290_v39 = vmax.f32 %v226_v30, 0.0  ;;  %v291_v40 = vmax.f32 %v227_v31, 0.0 }
   0xa   :  { %v3243_v43 = vpack.c.bf16 %v286_v32, %v286_v32  ;;  %v3244_v44 = vpack.c.bf16 %v287_v33, %v287_v33  ;;  %v3245_v45 = vpack.c.bf16 %v288_v34, %v288_v34  ;;  %v3246_v46 = vpack.c.bf16 %v289_v35, %v289_v35 }
   0xb   :  { %v3241_v37 = vpack.c.bf16 %v284_v28, %v284_v28  ;;  %v3242_v38 = vpack.c.bf16 %v285_v29, %v285_v29  ;;  %v3247_v48 = vpack.c.bf16 %v290_v39, %v290_v39  ;;  %v3248_v49 = vpack.c.bf16 %v291_v40, %v291_v40 }
   0xc   :  { %v3515_v50 = vunpack.c.l.bf16 %v4012_v36  ;;  %v3516_v51 = vunpack.c.h.bf16 %v4012_v36  ;;  %607 = vst.msk [vmem:[%s6125_s3 + $0x8] sm:$0xf] %vm604_vm0, %v3243_v43  ;;  %608 = vst.msk [vmem:[%s6125_s3 + $0xc] sm:$0xf] %vm604_vm0, %v3244_v44  ;;  %v3519_v52 = vunpack.c.l.bf16 %v4013_v41  ;;  %v3520_v53 = vunpack.c.h.bf16 %v4013_v41 }
   0xd   :  { %605 = vst.msk [vmem:[%s6125_s3] sm:$0xf] %vm604_vm0, %v3241_v37  ;;  %606 = vst.msk [vmem:[%s6125_s3 + $0x4] sm:$0xf] %vm604_vm0, %v3242_v38  ;;  %v3523_v54 = vunpack.c.l.bf16 %v4014_v42  ;;  %v3524_v55 = vunpack.c.h.bf16 %v4014_v42  ;;  %v3527_v58 = vunpack.c.l.bf16 %v4015_v47  ;;  %v3528_v59 = vunpack.c.h.bf16 %v4015_v47 }
   0xe   :  { %609 = vst.msk [vmem:[%s6125_s3 + $0x10] sm:$0xf] %vm604_vm0, %v3245_v45  ;;  %610 = vst.msk [vmem:[%s6125_s3 + $0x14] sm:$0xf] %vm604_vm0, %v3246_v46  ;;  %v158_v56 = vmul.f32 %v3515_v50, %v4165_v0  ;;  %v159_v57 = vmul.f32 %v3516_v51, %v4165_v0  ;;  %v160_v60 = vmul.f32 %v3519_v52, %v4165_v0 }
   0xf   :  { %611 = vst.msk [vmem:[%s6125_s3 + $0x18] sm:$0xf] %vm604_vm0, %v3247_v48  ;;  %612 = vst.msk [vmem:[%s6125_s3 + $0x1c] sm:$0xf] %vm604_vm0, %v3248_v49  ;;  %v161_v61 = vmul.f32 %v3520_v53, %v4165_v0  ;;  %v162_v62 = vmul.f32 %v3523_v54, %v4165_v0  ;;  %v163_v63 = vmul.f32 %v3524_v55, %v4165_v0 }
  0x10   :  { %v228_v1 = vadd.f32 %v4182_v7, %v158_v56  ;;  %v229_v2 = vadd.f32 %v4182_v7, %v159_v57  ;;  %v164_v3 = vmul.f32 %v3527_v58, %v4165_v0  ;;  %v165_v4 = vmul.f32 %v3528_v59, %v4165_v0 }
  0x11   :  { %v230_v5 = vadd.f32 %v4182_v7, %v160_v60  ;;  %v231_v6 = vadd.f32 %v4182_v7, %v161_v61  ;;  %v232_v8 = vadd.f32 %v4182_v7, %v162_v62  ;;  %v233_v9 = vadd.f32 %v4182_v7, %v163_v63 }
  0x12   :  { %v292_v10 = vmax.f32 %v228_v1, 0.0  ;;  %v293_v11 = vmax.f32 %v229_v2, 0.0  ;;  %v234_v12 = vadd.f32 %v4182_v7, %v164_v3  ;;  %v235_v13 = vadd.f32 %v4182_v7, %v165_v4 }
  0x13   :  { %v294_v14 = vmax.f32 %v230_v5, 0.0  ;;  %v295_v15 = vmax.f32 %v231_v6, 0.0  ;;  %v296_v16 = vmax.f32 %v232_v8, 0.0  ;;  %v297_v17 = vmax.f32 %v233_v9, 0.0 }
  0x14   :  { %v3249_v19 = vpack.c.bf16 %v292_v10, %v292_v10  ;;  %v3250_v20 = vpack.c.bf16 %v293_v11, %v293_v11  ;;  %v298_v21 = vmax.f32 %v234_v12, 0.0  ;;  %v299_v22 = vmax.f32 %v235_v13, 0.0 }
  0x15   :  { %v3251_v25 = vpack.c.bf16 %v294_v14, %v294_v14  ;;  %v3252_v26 = vpack.c.bf16 %v295_v15, %v295_v15  ;;  %v3253_v27 = vpack.c.bf16 %v296_v16, %v296_v16  ;;  %v3254_v28 = vpack.c.bf16 %v297_v17, %v297_v17 }
  0x16   :  { %v4016_v18 = vld [vmem:[%s6122_s0 + $0x40] sm:$0xff]   ;;  %v4017_v23 = vld [vmem:[%s6122_s0 + $0x48] sm:$0xff]   ;;  %v4018_v24 = vld [vmem:[%s6122_s0 + $0x50] sm:$0xff]   ;;  %v3255_v30 = vpack.c.bf16 %v298_v21, %v298_v21  ;;  %v3256_v31 = vpack.c.bf16 %v299_v22, %v299_v22 }
  0x17   :  { %v4019_v29 = vld [vmem:[%s6122_s0 + $0x58] sm:$0xff]   ;;  %v3531_v32 = vunpack.c.l.bf16 %v4016_v18  ;;  %v3532_v33 = vunpack.c.h.bf16 %v4016_v18  ;;  %v3535_v34 = vunpack.c.l.bf16 %v4017_v23  ;;  %v3536_v35 = vunpack.c.h.bf16 %v4017_v23 }
  0x18   :  { %613 = vst.msk [vmem:[%s6125_s3 + $0x20] sm:$0xf] %vm604_vm0, %v3249_v19  ;;  %614 = vst.msk [vmem:[%s6125_s3 + $0x24] sm:$0xf] %vm604_vm0, %v3250_v20  ;;  %v3539_v36 = vunpack.c.l.bf16 %v4018_v24  ;;  %v3540_v37 = vunpack.c.h.bf16 %v4018_v24  ;;  %v3543_v40 = vunpack.c.l.bf16 %v4019_v29  ;;  %v3544_v41 = vunpack.c.h.bf16 %v4019_v29 }
  0x19   :  { %615 = vst.msk [vmem:[%s6125_s3 + $0x28] sm:$0xf] %vm604_vm0, %v3251_v25  ;;  %616 = vst.msk [vmem:[%s6125_s3 + $0x2c] sm:$0xf] %vm604_vm0, %v3252_v26  ;;  %v166_v38 = vmul.f32 %v3531_v32, %v4165_v0  ;;  %v167_v39 = vmul.f32 %v3532_v33, %v4165_v0  ;;  %v168_v42 = vmul.f32 %v3535_v34, %v4165_v0 }
  0x1a   :  { %617 = vst.msk [vmem:[%s6125_s3 + $0x30] sm:$0xf] %vm604_vm0, %v3253_v27  ;;  %618 = vst.msk [vmem:[%s6125_s3 + $0x34] sm:$0xf] %vm604_vm0, %v3254_v28  ;;  %v169_v43 = vmul.f32 %v3536_v35, %v4165_v0  ;;  %v170_v44 = vmul.f32 %v3539_v36, %v4165_v0  ;;  %v171_v45 = vmul.f32 %v3540_v37, %v4165_v0 }
  0x1b   :  { %619 = vst.msk [vmem:[%s6125_s3 + $0x38] sm:$0xf] %vm604_vm0, %v3255_v30  ;;  %620 = vst.msk [vmem:[%s6125_s3 + $0x3c] sm:$0xf] %vm604_vm0, %v3256_v31  ;;  %v236_v46 = vadd.f32 %v4182_v7, %v166_v38  ;;  %v237_v47 = vadd.f32 %v4182_v7, %v167_v39  ;;  %v172_v48 = vmul.f32 %v3543_v40, %v4165_v0 }
  0x1c   :  { %v173_v49 = vmul.f32 %v3544_v41, %v4165_v0  ;;  %v238_v50 = vadd.f32 %v4182_v7, %v168_v42  ;;  %v239_v51 = vadd.f32 %v4182_v7, %v169_v43  ;;  %v240_v52 = vadd.f32 %v4182_v7, %v170_v44 }
  0x1d   :  { %v241_v53 = vadd.f32 %v4182_v7, %v171_v45  ;;  %v300_v54 = vmax.f32 %v236_v46, 0.0  ;;  %v301_v55 = vmax.f32 %v237_v47, 0.0  ;;  %v242_v56 = vadd.f32 %v4182_v7, %v172_v48 }
  0x1e   :  { %v243_v57 = vadd.f32 %v4182_v7, %v173_v49  ;;  %v302_v58 = vmax.f32 %v238_v50, 0.0  ;;  %v303_v59 = vmax.f32 %v239_v51, 0.0  ;;  %v304_v60 = vmax.f32 %v240_v52, 0.0 }
  0x1f   :  { %v305_v61 = vmax.f32 %v241_v53, 0.0  ;;  %v3257_v63 = vpack.c.bf16 %v300_v54, %v300_v54  ;;  %v3258_v1 = vpack.c.bf16 %v301_v55, %v301_v55  ;;  %v306_v2 = vmax.f32 %v242_v56, 0.0 }
  0x20   :  { %v307_v3 = vmax.f32 %v243_v57, 0.0  ;;  %v3259_v6 = vpack.c.bf16 %v302_v58, %v302_v58  ;;  %v3260_v8 = vpack.c.bf16 %v303_v59, %v303_v59  ;;  %v3261_v9 = vpack.c.bf16 %v304_v60, %v304_v60 }
  0x21   :  { %v3262_v10 = vpack.c.bf16 %v305_v61, %v305_v61  ;;  %v3263_v12 = vpack.c.bf16 %v306_v2, %v306_v2 }
  0x22   :  { %v4020_v62 = vld [vmem:[%s6122_s0 + $0x60] sm:$0xff]   ;;  %v4021_v4 = vld [vmem:[%s6122_s0 + $0x68] sm:$0xff]   ;;  %v4022_v5 = vld [vmem:[%s6122_s0 + $0x70] sm:$0xff]   ;;  %v3264_v13 = vpack.c.bf16 %v307_v3, %v307_v3 }
  0x23   :  { %v4023_v11 = vld [vmem:[%s6122_s0 + $0x78] sm:$0xff]   ;;  %v3547_v14 = vunpack.c.l.bf16 %v4020_v62  ;;  %v3548_v15 = vunpack.c.h.bf16 %v4020_v62  ;;  %v3551_v16 = vunpack.c.l.bf16 %v4021_v4  ;;  %v3552_v17 = vunpack.c.h.bf16 %v4021_v4 }
  0x24   :  { %621 = vst.msk [vmem:[%s6125_s3 + $0x40] sm:$0xf] %vm604_vm0, %v3257_v63  ;;  %622 = vst.msk [vmem:[%s6125_s3 + $0x44] sm:$0xf] %vm604_vm0, %v3258_v1  ;;  %v3555_v18 = vunpack.c.l.bf16 %v4022_v5  ;;  %v3556_v19 = vunpack.c.h.bf16 %v4022_v5  ;;  %v3559_v22 = vunpack.c.l.bf16 %v4023_v11  ;;  %v3560_v23 = vunpack.c.h.bf16 %v4023_v11 }
  0x25   :  { %623 = vst.msk [vmem:[%s6125_s3 + $0x48] sm:$0xf] %vm604_vm0, %v3259_v6  ;;  %624 = vst.msk [vmem:[%s6125_s3 + $0x4c] sm:$0xf] %vm604_vm0, %v3260_v8  ;;  %v174_v20 = vmul.f32 %v3547_v14, %v4165_v0  ;;  %v175_v21 = vmul.f32 %v3548_v15, %v4165_v0  ;;  %v176_v24 = vmul.f32 %v3551_v16, %v4165_v0 }
  0x26   :  { %625 = vst.msk [vmem:[%s6125_s3 + $0x50] sm:$0xf] %vm604_vm0, %v3261_v9  ;;  %626 = vst.msk [vmem:[%s6125_s3 + $0x54] sm:$0xf] %vm604_vm0, %v3262_v10  ;;  %v177_v25 = vmul.f32 %v3552_v17, %v4165_v0  ;;  %v178_v26 = vmul.f32 %v3555_v18, %v4165_v0  ;;  %v179_v27 = vmul.f32 %v3556_v19, %v4165_v0 }
  0x27   :  { %627 = vst.msk [vmem:[%s6125_s3 + $0x58] sm:$0xf] %vm604_vm0, %v3263_v12  ;;  %628 = vst.msk [vmem:[%s6125_s3 + $0x5c] sm:$0xf] %vm604_vm0, %v3264_v13  ;;  %v244_v28 = vadd.f32 %v4182_v7, %v174_v20  ;;  %v245_v29 = vadd.f32 %v4182_v7, %v175_v21  ;;  %v180_v30 = vmul.f32 %v3559_v22, %v4165_v0 }
  0x28   :  { %v181_v31 = vmul.f32 %v3560_v23, %v4165_v0  ;;  %v246_v32 = vadd.f32 %v4182_v7, %v176_v24  ;;  %v247_v33 = vadd.f32 %v4182_v7, %v177_v25  ;;  %v248_v34 = vadd.f32 %v4182_v7, %v178_v26 }
  0x29   :  { %v249_v35 = vadd.f32 %v4182_v7, %v179_v27  ;;  %v308_v36 = vmax.f32 %v244_v28, 0.0  ;;  %v309_v37 = vmax.f32 %v245_v29, 0.0  ;;  %v250_v38 = vadd.f32 %v4182_v7, %v180_v30 }
  0x2a   :  { %v251_v39 = vadd.f32 %v4182_v7, %v181_v31  ;;  %v310_v40 = vmax.f32 %v246_v32, 0.0  ;;  %v311_v41 = vmax.f32 %v247_v33, 0.0  ;;  %v312_v42 = vmax.f32 %v248_v34, 0.0 }
  0x2b   :  { %v313_v43 = vmax.f32 %v249_v35, 0.0  ;;  %v3265_v45 = vpack.c.bf16 %v308_v36, %v308_v36  ;;  %v3266_v46 = vpack.c.bf16 %v309_v37, %v309_v37  ;;  %v314_v47 = vmax.f32 %v250_v38, 0.0 }
  0x2c   :  { %v315_v48 = vmax.f32 %v251_v39, 0.0  ;;  %v3267_v51 = vpack.c.bf16 %v310_v40, %v310_v40  ;;  %v3268_v52 = vpack.c.bf16 %v311_v41, %v311_v41  ;;  %v3269_v53 = vpack.c.bf16 %v312_v42, %v312_v42 }
  0x2d   :  { %v3270_v54 = vpack.c.bf16 %v313_v43, %v313_v43  ;;  %v3271_v56 = vpack.c.bf16 %v314_v47, %v314_v47 }
  0x2e   :  { %v4024_v44 = vld [vmem:[%s6122_s0 + $0x80] sm:$0xff]   ;;  %v4025_v49 = vld [vmem:[%s6122_s0 + $0x88] sm:$0xff]   ;;  %v4026_v50 = vld [vmem:[%s6122_s0 + $0x90] sm:$0xff]   ;;  %v3272_v57 = vpack.c.bf16 %v315_v48, %v315_v48 }
  0x2f   :  { %v4027_v55 = vld [vmem:[%s6122_s0 + $0x98] sm:$0xff]   ;;  %v3563_v58 = vunpack.c.l.bf16 %v4024_v44  ;;  %v3564_v59 = vunpack.c.h.bf16 %v4024_v44  ;;  %v3567_v60 = vunpack.c.l.bf16 %v4025_v49  ;;  %v3568_v61 = vunpack.c.h.bf16 %v4025_v49 }
  0x30   :  { %629 = vst.msk [vmem:[%s6125_s3 + $0x60] sm:$0xf] %vm604_vm0, %v3265_v45  ;;  %630 = vst.msk [vmem:[%s6125_s3 + $0x64] sm:$0xf] %vm604_vm0, %v3266_v46  ;;  %v3571_v62 = vunpack.c.l.bf16 %v4026_v50  ;;  %v3572_v63 = vunpack.c.h.bf16 %v4026_v50  ;;  %v3575_v3 = vunpack.c.l.bf16 %v4027_v55  ;;  %v3576_v4 = vunpack.c.h.bf16 %v4027_v55 }
  0x31   :  { %631 = vst.msk [vmem:[%s6125_s3 + $0x68] sm:$0xf] %vm604_vm0, %v3267_v51  ;;  %632 = vst.msk [vmem:[%s6125_s3 + $0x6c] sm:$0xf] %vm604_vm0, %v3268_v52  ;;  %v182_v1 = vmul.f32 %v3563_v58, %v4165_v0  ;;  %v183_v2 = vmul.f32 %v3564_v59, %v4165_v0  ;;  %v184_v5 = vmul.f32 %v3567_v60, %v4165_v0 }
  0x32   :  { %633 = vst.msk [vmem:[%s6125_s3 + $0x70] sm:$0xf] %vm604_vm0, %v3269_v53  ;;  %634 = vst.msk [vmem:[%s6125_s3 + $0x74] sm:$0xf] %vm604_vm0, %v3270_v54  ;;  %v185_v6 = vmul.f32 %v3568_v61, %v4165_v0  ;;  %v186_v8 = vmul.f32 %v3571_v62, %v4165_v0  ;;  %v187_v9 = vmul.f32 %v3572_v63, %v4165_v0 }
  0x33   :  { %635 = vst.msk [vmem:[%s6125_s3 + $0x78] sm:$0xf] %vm604_vm0, %v3271_v56  ;;  %636 = vst.msk [vmem:[%s6125_s3 + $0x7c] sm:$0xf] %vm604_vm0, %v3272_v57  ;;  %v252_v10 = vadd.f32 %v4182_v7, %v182_v1  ;;  %v253_v11 = vadd.f32 %v4182_v7, %v183_v2  ;;  %v188_v12 = vmul.f32 %v3575_v3, %v4165_v0 }
  0x34   :  { %v189_v13 = vmul.f32 %v3576_v4, %v4165_v0  ;;  %v254_v14 = vadd.f32 %v4182_v7, %v184_v5  ;;  %v255_v15 = vadd.f32 %v4182_v7, %v185_v6  ;;  %v256_v16 = vadd.f32 %v4182_v7, %v186_v8 }
  0x35   :  { %v257_v17 = vadd.f32 %v4182_v7, %v187_v9  ;;  %v316_v18 = vmax.f32 %v252_v10, 0.0  ;;  %v317_v19 = vmax.f32 %v253_v11, 0.0  ;;  %v258_v20 = vadd.f32 %v4182_v7, %v188_v12 }
  0x36   :  { %v259_v21 = vadd.f32 %v4182_v7, %v189_v13  ;;  %v318_v22 = vmax.f32 %v254_v14, 0.0  ;;  %v319_v23 = vmax.f32 %v255_v15, 0.0  ;;  %v320_v24 = vmax.f32 %v256_v16, 0.0 }
  0x37   :  { %v321_v25 = vmax.f32 %v257_v17, 0.0  ;;  %v3273_v27 = vpack.c.bf16 %v316_v18, %v316_v18  ;;  %v3274_v28 = vpack.c.bf16 %v317_v19, %v317_v19  ;;  %v322_v29 = vmax.f32 %v258_v20, 0.0 }
  0x38   :  { %v323_v30 = vmax.f32 %v259_v21, 0.0  ;;  %v3275_v33 = vpack.c.bf16 %v318_v22, %v318_v22  ;;  %v3276_v34 = vpack.c.bf16 %v319_v23, %v319_v23  ;;  %v3277_v35 = vpack.c.bf16 %v320_v24, %v320_v24 }
  0x39   :  { %v3278_v36 = vpack.c.bf16 %v321_v25, %v321_v25  ;;  %v3279_v38 = vpack.c.bf16 %v322_v29, %v322_v29 }
  0x3a   :  { %v4028_v26 = vld [vmem:[%s6122_s0 + $0xa0] sm:$0xff]   ;;  %v4029_v31 = vld [vmem:[%s6122_s0 + $0xa8] sm:$0xff]   ;;  %v4030_v32 = vld [vmem:[%s6122_s0 + $0xb0] sm:$0xff]   ;;  %v3280_v39 = vpack.c.bf16 %v323_v30, %v323_v30 }
  0x3b   :  { %v4031_v37 = vld [vmem:[%s6122_s0 + $0xb8] sm:$0xff]   ;;  %v3579_v40 = vunpack.c.l.bf16 %v4028_v26  ;;  %v3580_v41 = vunpack.c.h.bf16 %v4028_v26  ;;  %v3583_v42 = vunpack.c.l.bf16 %v4029_v31  ;;  %v3584_v43 = vunpack.c.h.bf16 %v4029_v31 }
  0x3c   :  { %637 = vst.msk [vmem:[%s6125_s3 + $0x80] sm:$0xf] %vm604_vm0, %v3273_v27  ;;  %638 = vst.msk [vmem:[%s6125_s3 + $0x84] sm:$0xf] %vm604_vm0, %v3274_v28  ;;  %v3587_v44 = vunpack.c.l.bf16 %v4030_v32  ;;  %v3588_v45 = vunpack.c.h.bf16 %v4030_v32  ;;  %v3591_v48 = vunpack.c.l.bf16 %v4031_v37  ;;  %v3592_v49 = vunpack.c.h.bf16 %v4031_v37 }
  0x3d   :  { %639 = vst.msk [vmem:[%s6125_s3 + $0x88] sm:$0xf] %vm604_vm0, %v3275_v33  ;;  %640 = vst.msk [vmem:[%s6125_s3 + $0x8c] sm:$0xf] %vm604_vm0, %v3276_v34  ;;  %v190_v46 = vmul.f32 %v3579_v40, %v4165_v0  ;;  %v191_v47 = vmul.f32 %v3580_v41, %v4165_v0  ;;  %v192_v50 = vmul.f32 %v3583_v42, %v4165_v0 }
  0x3e   :  { %641 = vst.msk [vmem:[%s6125_s3 + $0x90] sm:$0xf] %vm604_vm0, %v3277_v35  ;;  %642 = vst.msk [vmem:[%s6125_s3 + $0x94] sm:$0xf] %vm604_vm0, %v3278_v36  ;;  %v193_v51 = vmul.f32 %v3584_v43, %v4165_v0  ;;  %v194_v52 = vmul.f32 %v3587_v44, %v4165_v0  ;;  %v195_v53 = vmul.f32 %v3588_v45, %v4165_v0 }
  0x3f   :  { %643 = vst.msk [vmem:[%s6125_s3 + $0x98] sm:$0xf] %vm604_vm0, %v3279_v38  ;;  %644 = vst.msk [vmem:[%s6125_s3 + $0x9c] sm:$0xf] %vm604_vm0, %v3280_v39  ;;  %v260_v54 = vadd.f32 %v4182_v7, %v190_v46  ;;  %v261_v55 = vadd.f32 %v4182_v7, %v191_v47  ;;  %v196_v56 = vmul.f32 %v3591_v48, %v4165_v0 }
  0x40   :  { %v197_v57 = vmul.f32 %v3592_v49, %v4165_v0  ;;  %v262_v58 = vadd.f32 %v4182_v7, %v192_v50  ;;  %v263_v59 = vadd.f32 %v4182_v7, %v193_v51  ;;  %v264_v60 = vadd.f32 %v4182_v7, %v194_v52 }
  0x41   :  { %v265_v61 = vadd.f32 %v4182_v7, %v195_v53  ;;  %v324_v62 = vmax.f32 %v260_v54, 0.0  ;;  %v325_v63 = vmax.f32 %v261_v55, 0.0  ;;  %v266_v1 = vadd.f32 %v4182_v7, %v196_v56 }
  0x42   :  { %v267_v2 = vadd.f32 %v4182_v7, %v197_v57  ;;  %v326_v3 = vmax.f32 %v262_v58, 0.0  ;;  %v327_v4 = vmax.f32 %v263_v59, 0.0  ;;  %v328_v5 = vmax.f32 %v264_v60, 0.0 }
  0x43   :  { %v329_v6 = vmax.f32 %v265_v61, 0.0  ;;  %v3281_v9 = vpack.c.bf16 %v324_v62, %v324_v62  ;;  %v3282_v10 = vpack.c.bf16 %v325_v63, %v325_v63  ;;  %v330_v11 = vmax.f32 %v266_v1, 0.0 }
  0x44   :  { %v331_v12 = vmax.f32 %v267_v2, 0.0  ;;  %v3283_v15 = vpack.c.bf16 %v326_v3, %v326_v3  ;;  %v3284_v16 = vpack.c.bf16 %v327_v4, %v327_v4  ;;  %v3285_v17 = vpack.c.bf16 %v328_v5, %v328_v5 }
  0x45   :  { %v3286_v18 = vpack.c.bf16 %v329_v6, %v329_v6  ;;  %v3287_v20 = vpack.c.bf16 %v330_v11, %v330_v11 }
  0x46   :  { %v4032_v8 = vld [vmem:[%s6122_s0 + $0xc0] sm:$0xff]   ;;  %v4033_v13 = vld [vmem:[%s6122_s0 + $0xc8] sm:$0xff]   ;;  %v4034_v14 = vld [vmem:[%s6122_s0 + $0xd0] sm:$0xff]   ;;  %v3288_v21 = vpack.c.bf16 %v331_v12, %v331_v12 }
  0x47   :  { %v4035_v19 = vld [vmem:[%s6122_s0 + $0xd8] sm:$0xff]   ;;  %v3595_v22 = vunpack.c.l.bf16 %v4032_v8  ;;  %v3596_v23 = vunpack.c.h.bf16 %v4032_v8  ;;  %v3599_v24 = vunpack.c.l.bf16 %v4033_v13  ;;  %v3600_v25 = vunpack.c.h.bf16 %v4033_v13 }
  0x48   :  { %645 = vst.msk [vmem:[%s6125_s3 + $0xa0] sm:$0xf] %vm604_vm0, %v3281_v9  ;;  %646 = vst.msk [vmem:[%s6125_s3 + $0xa4] sm:$0xf] %vm604_vm0, %v3282_v10  ;;  %v3603_v26 = vunpack.c.l.bf16 %v4034_v14  ;;  %v3604_v27 = vunpack.c.h.bf16 %v4034_v14  ;;  %v3607_v30 = vunpack.c.l.bf16 %v4035_v19  ;;  %v3608_v31 = vunpack.c.h.bf16 %v4035_v19 }
  0x49   :  { %647 = vst.msk [vmem:[%s6125_s3 + $0xa8] sm:$0xf] %vm604_vm0, %v3283_v15  ;;  %648 = vst.msk [vmem:[%s6125_s3 + $0xac] sm:$0xf] %vm604_vm0, %v3284_v16  ;;  %v198_v28 = vmul.f32 %v3595_v22, %v4165_v0  ;;  %v199_v29 = vmul.f32 %v3596_v23, %v4165_v0  ;;  %v200_v32 = vmul.f32 %v3599_v24, %v4165_v0 }
  0x4a   :  { %649 = vst.msk [vmem:[%s6125_s3 + $0xb0] sm:$0xf] %vm604_vm0, %v3285_v17  ;;  %650 = vst.msk [vmem:[%s6125_s3 + $0xb4] sm:$0xf] %vm604_vm0, %v3286_v18  ;;  %v201_v33 = vmul.f32 %v3600_v25, %v4165_v0  ;;  %v202_v34 = vmul.f32 %v3603_v26, %v4165_v0  ;;  %v203_v35 = vmul.f32 %v3604_v27, %v4165_v0 }
  0x4b   :  { %651 = vst.msk [vmem:[%s6125_s3 + $0xb8] sm:$0xf] %vm604_vm0, %v3287_v20  ;;  %652 = vst.msk [vmem:[%s6125_s3 + $0xbc] sm:$0xf] %vm604_vm0, %v3288_v21  ;;  %v268_v36 = vadd.f32 %v4182_v7, %v198_v28  ;;  %v269_v37 = vadd.f32 %v4182_v7, %v199_v29  ;;  %v204_v38 = vmul.f32 %v3607_v30, %v4165_v0 }
  0x4c   :  { %v205_v39 = vmul.f32 %v3608_v31, %v4165_v0  ;;  %v270_v40 = vadd.f32 %v4182_v7, %v200_v32  ;;  %v271_v41 = vadd.f32 %v4182_v7, %v201_v33  ;;  %v272_v42 = vadd.f32 %v4182_v7, %v202_v34 }
  0x4d   :  { %v273_v43 = vadd.f32 %v4182_v7, %v203_v35  ;;  %v332_v44 = vmax.f32 %v268_v36, 0.0  ;;  %v333_v45 = vmax.f32 %v269_v37, 0.0  ;;  %v274_v46 = vadd.f32 %v4182_v7, %v204_v38 }
  0x4e   :  { %v275_v47 = vadd.f32 %v4182_v7, %v205_v39  ;;  %v334_v48 = vmax.f32 %v270_v40, 0.0  ;;  %v335_v49 = vmax.f32 %v271_v41, 0.0  ;;  %v336_v50 = vmax.f32 %v272_v42, 0.0 }
  0x4f   :  { %v337_v51 = vmax.f32 %v273_v43, 0.0  ;;  %v3289_v53 = vpack.c.bf16 %v332_v44, %v332_v44  ;;  %v3290_v54 = vpack.c.bf16 %v333_v45, %v333_v45  ;;  %v338_v55 = vmax.f32 %v274_v46, 0.0 }
  0x50   :  { %v339_v56 = vmax.f32 %v275_v47, 0.0  ;;  %v3291_v59 = vpack.c.bf16 %v334_v48, %v334_v48  ;;  %v3292_v60 = vpack.c.bf16 %v335_v49, %v335_v49  ;;  %v3293_v61 = vpack.c.bf16 %v336_v50, %v336_v50 }
  0x51   :  { %v3294_v62 = vpack.c.bf16 %v337_v51, %v337_v51  ;;  %v3295_v1 = vpack.c.bf16 %v338_v55, %v338_v55 }
  0x52   :  { %v4036_v52 = vld [vmem:[%s6122_s0 + $0xe0] sm:$0xff]   ;;  %v4037_v57 = vld [vmem:[%s6122_s0 + $0xe8] sm:$0xff]   ;;  %v4038_v58 = vld [vmem:[%s6122_s0 + $0xf0] sm:$0xff]   ;;  %v3296_v2 = vpack.c.bf16 %v339_v56, %v339_v56 }
  0x53   :  { %v4039_v63 = vld [vmem:[%s6122_s0 + $0xf8] sm:$0xff]   ;;  %v3611_v3 = vunpack.c.l.bf16 %v4036_v52  ;;  %v3612_v4 = vunpack.c.h.bf16 %v4036_v52  ;;  %v3615_v5 = vunpack.c.l.bf16 %v4037_v57  ;;  %v3616_v6 = vunpack.c.h.bf16 %v4037_v57 }
  0x54   :  { %653 = vst.msk [vmem:[%s6125_s3 + $0xc0] sm:$0xf] %vm604_vm0, %v3289_v53  ;;  %654 = vst.msk [vmem:[%s6125_s3 + $0xc4] sm:$0xf] %vm604_vm0, %v3290_v54  ;;  %v3619_v8 = vunpack.c.l.bf16 %v4038_v58  ;;  %v3620_v9 = vunpack.c.h.bf16 %v4038_v58  ;;  %v3623_v12 = vunpack.c.l.bf16 %v4039_v63  ;;  %v3624_v13 = vunpack.c.h.bf16 %v4039_v63 }
  0x55   :  { %655 = vst.msk [vmem:[%s6125_s3 + $0xc8] sm:$0xf] %vm604_vm0, %v3291_v59  ;;  %656 = vst.msk [vmem:[%s6125_s3 + $0xcc] sm:$0xf] %vm604_vm0, %v3292_v60  ;;  %v206_v10 = vmul.f32 %v3611_v3, %v4165_v0  ;;  %v207_v11 = vmul.f32 %v3612_v4, %v4165_v0  ;;  %v208_v14 = vmul.f32 %v3615_v5, %v4165_v0 }
  0x56   :  { %657 = vst.msk [vmem:[%s6125_s3 + $0xd0] sm:$0xf] %vm604_vm0, %v3293_v61  ;;  %658 = vst.msk [vmem:[%s6125_s3 + $0xd4] sm:$0xf] %vm604_vm0, %v3294_v62  ;;  %v209_v15 = vmul.f32 %v3616_v6, %v4165_v0  ;;  %v210_v16 = vmul.f32 %v3619_v8, %v4165_v0  ;;  %v211_v17 = vmul.f32 %v3620_v9, %v4165_v0 }
  0x57   :  { %659 = vst.msk [vmem:[%s6125_s3 + $0xd8] sm:$0xf] %vm604_vm0, %v3295_v1  ;;  %660 = vst.msk [vmem:[%s6125_s3 + $0xdc] sm:$0xf] %vm604_vm0, %v3296_v2  ;;  %v276_v18 = vadd.f32 %v4182_v7, %v206_v10  ;;  %v277_v19 = vadd.f32 %v4182_v7, %v207_v11  ;;  %v212_v20 = vmul.f32 %v3623_v12, %v4165_v0 }
  0x58   :  { %v213_v21 = vmul.f32 %v3624_v13, %v4165_v0  ;;  %v278_v22 = vadd.f32 %v4182_v7, %v208_v14  ;;  %v279_v23 = vadd.f32 %v4182_v7, %v209_v15  ;;  %v280_v24 = vadd.f32 %v4182_v7, %v210_v16 }
  0x59   :  { %v281_v25 = vadd.f32 %v4182_v7, %v211_v17  ;;  %v340_v26 = vmax.f32 %v276_v18, 0.0  ;;  %v341_v27 = vmax.f32 %v277_v19, 0.0  ;;  %v282_v28 = vadd.f32 %v4182_v7, %v212_v20 }
  0x5a   :  { %v283_v29 = vadd.f32 %v4182_v7, %v213_v21  ;;  %v342_v30 = vmax.f32 %v278_v22, 0.0  ;;  %v343_v31 = vmax.f32 %v279_v23, 0.0  ;;  %v344_v32 = vmax.f32 %v280_v24, 0.0 }
  0x5b   :  { %v345_v33 = vmax.f32 %v281_v25, 0.0  ;;  %v3297_v35 = vpack.c.bf16 %v340_v26, %v340_v26  ;;  %v3298_v36 = vpack.c.bf16 %v341_v27, %v341_v27  ;;  %v346_v37 = vmax.f32 %v282_v28, 0.0 }
  0x5c   :  { %v347_v38 = vmax.f32 %v283_v29, 0.0  ;;  %v3299_v41 = vpack.c.bf16 %v342_v30, %v342_v30  ;;  %v3300_v42 = vpack.c.bf16 %v343_v31, %v343_v31  ;;  %v3301_v43 = vpack.c.bf16 %v344_v32, %v344_v32 }
  0x5d   :  { %v3302_v44 = vpack.c.bf16 %v345_v33, %v345_v33  ;;  %v3303_v46 = vpack.c.bf16 %v346_v37, %v346_v37 }
  0x5e   :  { %v4040_v34 = vld [vmem:[%s6122_s0 + $0x100] sm:$0xff]   ;;  %v4041_v39 = vld [vmem:[%s6122_s0 + $0x108] sm:$0xff]   ;;  %v4042_v40 = vld [vmem:[%s6122_s0 + $0x110] sm:$0xff]   ;;  %v3304_v47 = vpack.c.bf16 %v347_v38, %v347_v38 }
  0x5f   :  { %v4043_v45 = vld [vmem:[%s6122_s0 + $0x118] sm:$0xff]   ;;  %v3627_v48 = vunpack.c.l.bf16 %v4040_v34  ;;  %v3628_v49 = vunpack.c.h.bf16 %v4040_v34  ;;  %v3631_v50 = vunpack.c.l.bf16 %v4041_v39  ;;  %v3632_v51 = vunpack.c.h.bf16 %v4041_v39 }
  0x60   :  { %661 = vst.msk [vmem:[%s6125_s3 + $0xe0] sm:$0xf] %vm604_vm0, %v3297_v35  ;;  %662 = vst.msk [vmem:[%s6125_s3 + $0xe4] sm:$0xf] %vm604_vm0, %v3298_v36  ;;  %v3635_v52 = vunpack.c.l.bf16 %v4042_v40  ;;  %v3636_v53 = vunpack.c.h.bf16 %v4042_v40  ;;  %v3639_v56 = vunpack.c.l.bf16 %v4043_v45  ;;  %v3640_v57 = vunpack.c.h.bf16 %v4043_v45 }
  0x61   :  { %663 = vst.msk [vmem:[%s6125_s3 + $0xe8] sm:$0xf] %vm604_vm0, %v3299_v41  ;;  %664 = vst.msk [vmem:[%s6125_s3 + $0xec] sm:$0xf] %vm604_vm0, %v3300_v42  ;;  %v798_v54 = vmul.f32 %v3627_v48, %v4165_v0  ;;  %v799_v55 = vmul.f32 %v3628_v49, %v4165_v0  ;;  %v800_v58 = vmul.f32 %v3631_v50, %v4165_v0 }
  0x62   :  { %665 = vst.msk [vmem:[%s6125_s3 + $0xf0] sm:$0xf] %vm604_vm0, %v3301_v43  ;;  %666 = vst.msk [vmem:[%s6125_s3 + $0xf4] sm:$0xf] %vm604_vm0, %v3302_v44  ;;  %v801_v59 = vmul.f32 %v3632_v51, %v4165_v0  ;;  %v802_v60 = vmul.f32 %v3635_v52, %v4165_v0  ;;  %v803_v61 = vmul.f32 %v3636_v53, %v4165_v0 }
  0x63   :  { %667 = vst.msk [vmem:[%s6125_s3 + $0xf8] sm:$0xf] %vm604_vm0, %v3303_v46  ;;  %668 = vst.msk [vmem:[%s6125_s3 + $0xfc] sm:$0xf] %vm604_vm0, %v3304_v47  ;;  %v862_v62 = vadd.f32 %v4182_v7, %v798_v54  ;;  %v863_v63 = vadd.f32 %v4182_v7, %v799_v55  ;;  %v804_v1 = vmul.f32 %v3639_v56, %v4165_v0 }
  0x64   :  { %v805_v2 = vmul.f32 %v3640_v57, %v4165_v0  ;;  %v864_v3 = vadd.f32 %v4182_v7, %v800_v58  ;;  %v865_v4 = vadd.f32 %v4182_v7, %v801_v59  ;;  %v866_v5 = vadd.f32 %v4182_v7, %v802_v60 }
  0x65   :  { %v867_v6 = vadd.f32 %v4182_v7, %v803_v61  ;;  %v926_v8 = vmax.f32 %v862_v62, 0.0  ;;  %v927_v9 = vmax.f32 %v863_v63, 0.0  ;;  %v868_v10 = vadd.f32 %v4182_v7, %v804_v1 }
  0x66   :  { %v869_v11 = vadd.f32 %v4182_v7, %v805_v2  ;;  %v928_v12 = vmax.f32 %v864_v3, 0.0  ;;  %v929_v13 = vmax.f32 %v865_v4, 0.0  ;;  %v930_v14 = vmax.f32 %v866_v5, 0.0 }
  0x67   :  { %v931_v15 = vmax.f32 %v867_v6, 0.0  ;;  %v3305_v17 = vpack.c.bf16 %v926_v8, %v926_v8  ;;  %v3306_v18 = vpack.c.bf16 %v927_v9, %v927_v9  ;;  %v932_v19 = vmax.f32 %v868_v10, 0.0 }
  0x68   :  { %v933_v20 = vmax.f32 %v869_v11, 0.0  ;;  %v3307_v23 = vpack.c.bf16 %v928_v12, %v928_v12  ;;  %v3308_v24 = vpack.c.bf16 %v929_v13, %v929_v13  ;;  %v3309_v25 = vpack.c.bf16 %v930_v14, %v930_v14 }
  0x69   :  { %v3310_v26 = vpack.c.bf16 %v931_v15, %v931_v15  ;;  %v3311_v28 = vpack.c.bf16 %v932_v19, %v932_v19 }
  0x6a   :  { %v4044_v16 = vld [vmem:[%s6122_s0 + $0x120] sm:$0xff]   ;;  %v4045_v21 = vld [vmem:[%s6122_s0 + $0x128] sm:$0xff]   ;;  %v4046_v22 = vld [vmem:[%s6122_s0 + $0x130] sm:$0xff]   ;;  %v3312_v29 = vpack.c.bf16 %v933_v20, %v933_v20 }
  0x6b   :  { %v4047_v27 = vld [vmem:[%s6122_s0 + $0x138] sm:$0xff]   ;;  %v3643_v30 = vunpack.c.l.bf16 %v4044_v16  ;;  %v3644_v31 = vunpack.c.h.bf16 %v4044_v16  ;;  %v3647_v32 = vunpack.c.l.bf16 %v4045_v21  ;;  %v3648_v33 = vunpack.c.h.bf16 %v4045_v21  ;;  %v4787_v16 = vld [vmem:[%s6123_s1] ss:$0 sm:$0xff] }
  0x6c   :  { %2793 = vst.msk [vmem:[%s6125_s3 + $0x100] sm:$0xf] %vm604_vm0, %v3305_v17  ;;  %2794 = vst.msk [vmem:[%s6125_s3 + $0x104] sm:$0xf] %vm604_vm0, %v3306_v18  ;;  %v3651_v34 = vunpack.c.l.bf16 %v4046_v22  ;;  %v3652_v35 = vunpack.c.h.bf16 %v4046_v22  ;;  %v3655_v38 = vunpack.c.l.bf16 %v4047_v27  ;;  %v3656_v39 = vunpack.c.h.bf16 %v4047_v27 }
  0x6d   :  { %2795 = vst.msk [vmem:[%s6125_s3 + $0x108] sm:$0xf] %vm604_vm0, %v3307_v23  ;;  %2796 = vst.msk [vmem:[%s6125_s3 + $0x10c] sm:$0xf] %vm604_vm0, %v3308_v24  ;;  %v806_v36 = vmul.f32 %v3643_v30, %v4165_v0  ;;  %v807_v37 = vmul.f32 %v3644_v31, %v4165_v0  ;;  %v808_v40 = vmul.f32 %v3647_v32, %v4165_v0 }
  0x6e   :  { %2797 = vst.msk [vmem:[%s6125_s3 + $0x110] sm:$0xf] %vm604_vm0, %v3309_v25  ;;  %2798 = vst.msk [vmem:[%s6125_s3 + $0x114] sm:$0xf] %vm604_vm0, %v3310_v26  ;;  %v809_v41 = vmul.f32 %v3648_v33, %v4165_v0  ;;  %v810_v42 = vmul.f32 %v3651_v34, %v4165_v0  ;;  %v811_v43 = vmul.f32 %v3652_v35, %v4165_v0  ;;  %v4798_v25 = vld [vmem:[%s6124_s2] ss:$0 sm:$0xff] }
  0x6f   :  { %2799 = vst.msk [vmem:[%s6125_s3 + $0x118] sm:$0xf] %vm604_vm0, %v3311_v28  ;;  %2800 = vst.msk [vmem:[%s6125_s3 + $0x11c] sm:$0xf] %vm604_vm0, %v3312_v29  ;;  %v870_v44 = vadd.f32 %v4182_v7, %v806_v36  ;;  %v871_v45 = vadd.f32 %v4182_v7, %v807_v37  ;;  %v812_v46 = vmul.f32 %v3655_v38, %v4165_v0 }
  0x70   :  { %v813_v47 = vmul.f32 %v3656_v39, %v4165_v0  ;;  %v872_v48 = vadd.f32 %v4182_v7, %v808_v40  ;;  %v873_v49 = vadd.f32 %v4182_v7, %v809_v41  ;;  %v874_v50 = vadd.f32 %v4182_v7, %v810_v42 }
  0x71   :  { %v875_v51 = vadd.f32 %v4182_v7, %v811_v43  ;;  %v934_v52 = vmax.f32 %v870_v44, 0.0  ;;  %v935_v53 = vmax.f32 %v871_v45, 0.0  ;;  %v876_v54 = vadd.f32 %v4182_v7, %v812_v46 }
  0x72   :  { %v877_v55 = vadd.f32 %v4182_v7, %v813_v47  ;;  %v936_v56 = vmax.f32 %v872_v48, 0.0  ;;  %v937_v57 = vmax.f32 %v873_v49, 0.0  ;;  %v938_v58 = vmax.f32 %v874_v50, 0.0 }
  0x73   :  { %v939_v59 = vmax.f32 %v875_v51, 0.0  ;;  %v3313_v60 = vpack.c.bf16 %v934_v52, %v934_v52  ;;  %v3314_v61 = vpack.c.bf16 %v935_v53, %v935_v53  ;;  %v940_v62 = vmax.f32 %v876_v54, 0.0 }
  0x74   :  { %v941_v63 = vmax.f32 %v877_v55, 0.0  ;;  %v3315_v2 = vpack.c.bf16 %v936_v56, %v936_v56  ;;  %v3316_v3 = vpack.c.bf16 %v937_v57, %v937_v57  ;;  %v3317_v4 = vpack.c.bf16 %v938_v58, %v938_v58 }
  0x75   :  { %v3318_v5 = vpack.c.bf16 %v939_v59, %v939_v59  ;;  %v3319_v8 = vpack.c.bf16 %v940_v62, %v940_v62 }
  0x76   :  { %v4048_v0 = vld [vmem:[%s6122_s0 + $0x140] sm:$0xff]   ;;  %v4049_v1 = vld [vmem:[%s6122_s0 + $0x148] sm:$0xff]   ;;  %v4050_v7 = vld [vmem:[%s6122_s0 + $0x150] sm:$0xff]   ;;  %v3320_v9 = vpack.c.bf16 %v941_v63, %v941_v63 }
  0x77   :  { %v4051_v6 = vld [vmem:[%s6122_s0 + $0x158] sm:$0xff]   ;;  %v3659_v10 = vunpack.c.l.bf16 %v4048_v0  ;;  %v3660_v11 = vunpack.c.h.bf16 %v4048_v0  ;;  %v3663_v12 = vunpack.c.l.bf16 %v4049_v1  ;;  %v3664_v13 = vunpack.c.h.bf16 %v4049_v1 }
  0x78   :  { %2801 = vst.msk [vmem:[%s6125_s3 + $0x120] sm:$0xf] %vm604_vm0, %v3313_v60  ;;  %2802 = vst.msk [vmem:[%s6125_s3 + $0x124] sm:$0xf] %vm604_vm0, %v3314_v61  ;;  %v3667_v14 = vunpack.c.l.bf16 %v4050_v7  ;;  %v3668_v15 = vunpack.c.h.bf16 %v4050_v7  ;;  %v3671_v19 = vunpack.c.l.bf16 %v4051_v6  ;;  %v3672_v20 = vunpack.c.h.bf16 %v4051_v6 }
  0x79   :  { %2803 = vst.msk [vmem:[%s6125_s3 + $0x128] sm:$0xf] %vm604_vm0, %v3315_v2  ;;  %2804 = vst.msk [vmem:[%s6125_s3 + $0x12c] sm:$0xf] %vm604_vm0, %v3316_v3  ;;  %v814_v17 = vmul.f32 %v4787_v16, %v3659_v10  ;;  %v815_v18 = vmul.f32 %v4787_v16, %v3660_v11  ;;  %v816_v21 = vmul.f32 %v4787_v16, %v3663_v12 }
  0x7a   :  { %2805 = vst.msk [vmem:[%s6125_s3 + $0x130] sm:$0xf] %vm604_vm0, %v3317_v4  ;;  %2806 = vst.msk [vmem:[%s6125_s3 + $0x134] sm:$0xf] %vm604_vm0, %v3318_v5  ;;  %v817_v22 = vmul.f32 %v4787_v16, %v3664_v13  ;;  %v818_v23 = vmul.f32 %v4787_v16, %v3667_v14  ;;  %v819_v24 = vmul.f32 %v4787_v16, %v3668_v15 }
  0x7b   :  { %2807 = vst.msk [vmem:[%s6125_s3 + $0x138] sm:$0xf] %vm604_vm0, %v3319_v8  ;;  %2808 = vst.msk [vmem:[%s6125_s3 + $0x13c] sm:$0xf] %vm604_vm0, %v3320_v9  ;;  %v878_v26 = vadd.f32 %v4798_v25, %v814_v17  ;;  %v879_v27 = vadd.f32 %v4798_v25, %v815_v18  ;;  %v820_v28 = vmul.f32 %v4787_v16, %v3671_v19 }
  0x7c   :  { %v821_v29 = vmul.f32 %v4787_v16, %v3672_v20  ;;  %v880_v30 = vadd.f32 %v4798_v25, %v816_v21  ;;  %v881_v31 = vadd.f32 %v4798_v25, %v817_v22  ;;  %v882_v32 = vadd.f32 %v4798_v25, %v818_v23 }
  0x7d   :  { %v883_v33 = vadd.f32 %v4798_v25, %v819_v24  ;;  %v942_v34 = vmax.f32 %v878_v26, 0.0  ;;  %v943_v35 = vmax.f32 %v879_v27, 0.0  ;;  %v884_v36 = vadd.f32 %v4798_v25, %v820_v28 }
  0x7e   :  { %v885_v37 = vadd.f32 %v4798_v25, %v821_v29  ;;  %v944_v38 = vmax.f32 %v880_v30, 0.0  ;;  %v945_v39 = vmax.f32 %v881_v31, 0.0  ;;  %v946_v40 = vmax.f32 %v882_v32, 0.0 }
  0x7f   :  { %v947_v41 = vmax.f32 %v883_v33, 0.0  ;;  %v3321_v43 = vpack.c.bf16 %v942_v34, %v942_v34  ;;  %v3322_v44 = vpack.c.bf16 %v943_v35, %v943_v35  ;;  %v948_v45 = vmax.f32 %v884_v36, 0.0 }
  0x80   :  { %v949_v46 = vmax.f32 %v885_v37, 0.0  ;;  %v3323_v49 = vpack.c.bf16 %v944_v38, %v944_v38  ;;  %v3324_v50 = vpack.c.bf16 %v945_v39, %v945_v39  ;;  %v3325_v51 = vpack.c.bf16 %v946_v40, %v946_v40 }
  0x81   :  { %v3326_v52 = vpack.c.bf16 %v947_v41, %v947_v41  ;;  %v3327_v54 = vpack.c.bf16 %v948_v45, %v948_v45 }
  0x82   :  { %v4052_v42 = vld [vmem:[%s6122_s0 + $0x160] sm:$0xff]   ;;  %v4053_v47 = vld [vmem:[%s6122_s0 + $0x168] sm:$0xff]   ;;  %v4054_v48 = vld [vmem:[%s6122_s0 + $0x170] sm:$0xff]   ;;  %v3328_v55 = vpack.c.bf16 %v949_v46, %v949_v46 }
  0x83   :  { %v4055_v53 = vld [vmem:[%s6122_s0 + $0x178] sm:$0xff]   ;;  %v3675_v56 = vunpack.c.l.bf16 %v4052_v42  ;;  %v3676_v57 = vunpack.c.h.bf16 %v4052_v42  ;;  %v3679_v58 = vunpack.c.l.bf16 %v4053_v47  ;;  %v3680_v59 = vunpack.c.h.bf16 %v4053_v47 }
  0x84   :  { %2809 = vst.msk [vmem:[%s6125_s3 + $0x140] sm:$0xf] %vm604_vm0, %v3321_v43  ;;  %2810 = vst.msk [vmem:[%s6125_s3 + $0x144] sm:$0xf] %vm604_vm0, %v3322_v44  ;;  %v3683_v0 = vunpack.c.l.bf16 %v4054_v48  ;;  %v3684_v60 = vunpack.c.h.bf16 %v4054_v48  ;;  %v3687_v63 = vunpack.c.l.bf16 %v4055_v53  ;;  %v3688_v1 = vunpack.c.h.bf16 %v4055_v53 }
  0x85   :  { %2811 = vst.msk [vmem:[%s6125_s3 + $0x148] sm:$0xf] %vm604_vm0, %v3323_v49  ;;  %2812 = vst.msk [vmem:[%s6125_s3 + $0x14c] sm:$0xf] %vm604_vm0, %v3324_v50  ;;  %v822_v61 = vmul.f32 %v4787_v16, %v3675_v56  ;;  %v823_v62 = vmul.f32 %v4787_v16, %v3676_v57  ;;  %v824_v7 = vmul.f32 %v4787_v16, %v3679_v58 }
  0x86   :  { %2813 = vst.msk [vmem:[%s6125_s3 + $0x150] sm:$0xf] %vm604_vm0, %v3325_v51  ;;  %2814 = vst.msk [vmem:[%s6125_s3 + $0x154] sm:$0xf] %vm604_vm0, %v3326_v52  ;;  %v825_v2 = vmul.f32 %v4787_v16, %v3680_v59  ;;  %v826_v3 = vmul.f32 %v4787_v16, %v3683_v0  ;;  %v827_v4 = vmul.f32 %v4787_v16, %v3684_v60 }
  0x87   :  { %2815 = vst.msk [vmem:[%s6125_s3 + $0x158] sm:$0xf] %vm604_vm0, %v3327_v54  ;;  %2816 = vst.msk [vmem:[%s6125_s3 + $0x15c] sm:$0xf] %vm604_vm0, %v3328_v55  ;;  %v886_v5 = vadd.f32 %v4798_v25, %v822_v61  ;;  %v887_v6 = vadd.f32 %v4798_v25, %v823_v62  ;;  %v828_v8 = vmul.f32 %v4787_v16, %v3687_v63 }
  0x88   :  { %v829_v9 = vmul.f32 %v4787_v16, %v3688_v1  ;;  %v888_v10 = vadd.f32 %v4798_v25, %v824_v7  ;;  %v889_v11 = vadd.f32 %v4798_v25, %v825_v2  ;;  %v890_v12 = vadd.f32 %v4798_v25, %v826_v3 }
  0x89   :  { %v891_v13 = vadd.f32 %v4798_v25, %v827_v4  ;;  %v950_v14 = vmax.f32 %v886_v5, 0.0  ;;  %v951_v15 = vmax.f32 %v887_v6, 0.0  ;;  %v892_v17 = vadd.f32 %v4798_v25, %v828_v8 }
  0x8a   :  { %v893_v18 = vadd.f32 %v4798_v25, %v829_v9  ;;  %v952_v19 = vmax.f32 %v888_v10, 0.0  ;;  %v953_v20 = vmax.f32 %v889_v11, 0.0  ;;  %v954_v21 = vmax.f32 %v890_v12, 0.0 }
  0x8b   :  { %v955_v22 = vmax.f32 %v891_v13, 0.0  ;;  %v3329_v24 = vpack.c.bf16 %v950_v14, %v950_v14  ;;  %v3330_v26 = vpack.c.bf16 %v951_v15, %v951_v15  ;;  %v956_v27 = vmax.f32 %v892_v17, 0.0 }
  0x8c   :  { %v957_v28 = vmax.f32 %v893_v18, 0.0  ;;  %v3331_v31 = vpack.c.bf16 %v952_v19, %v952_v19  ;;  %v3332_v32 = vpack.c.bf16 %v953_v20, %v953_v20  ;;  %v3333_v33 = vpack.c.bf16 %v954_v21, %v954_v21 }
  0x8d   :  { %v3334_v34 = vpack.c.bf16 %v955_v22, %v955_v22  ;;  %v3335_v36 = vpack.c.bf16 %v956_v27, %v956_v27 }
  0x8e   :  { %v4056_v23 = vld [vmem:[%s6122_s0 + $0x180] sm:$0xff]   ;;  %v4057_v29 = vld [vmem:[%s6122_s0 + $0x188] sm:$0xff]   ;;  %v4058_v30 = vld [vmem:[%s6122_s0 + $0x190] sm:$0xff]   ;;  %v3336_v37 = vpack.c.bf16 %v957_v28, %v957_v28 }
  0x8f   :  { %v4059_v35 = vld [vmem:[%s6122_s0 + $0x198] sm:$0xff]   ;;  %v3691_v38 = vunpack.c.l.bf16 %v4056_v23  ;;  %v3692_v39 = vunpack.c.h.bf16 %v4056_v23  ;;  %v3695_v40 = vunpack.c.l.bf16 %v4057_v29  ;;  %v3696_v41 = vunpack.c.h.bf16 %v4057_v29 }
  0x90   :  { %2817 = vst.msk [vmem:[%s6125_s3 + $0x160] sm:$0xf] %vm604_vm0, %v3329_v24  ;;  %2818 = vst.msk [vmem:[%s6125_s3 + $0x164] sm:$0xf] %vm604_vm0, %v3330_v26  ;;  %v3699_v42 = vunpack.c.l.bf16 %v4058_v30  ;;  %v3700_v43 = vunpack.c.h.bf16 %v4058_v30  ;;  %v3703_v46 = vunpack.c.l.bf16 %v4059_v35  ;;  %v3704_v47 = vunpack.c.h.bf16 %v4059_v35 }
  0x91   :  { %2819 = vst.msk [vmem:[%s6125_s3 + $0x168] sm:$0xf] %vm604_vm0, %v3331_v31  ;;  %2820 = vst.msk [vmem:[%s6125_s3 + $0x16c] sm:$0xf] %vm604_vm0, %v3332_v32  ;;  %v830_v44 = vmul.f32 %v4787_v16, %v3691_v38  ;;  %v831_v45 = vmul.f32 %v4787_v16, %v3692_v39  ;;  %v832_v48 = vmul.f32 %v4787_v16, %v3695_v40 }
  0x92   :  { %2821 = vst.msk [vmem:[%s6125_s3 + $0x170] sm:$0xf] %vm604_vm0, %v3333_v33  ;;  %2822 = vst.msk [vmem:[%s6125_s3 + $0x174] sm:$0xf] %vm604_vm0, %v3334_v34  ;;  %v833_v49 = vmul.f32 %v4787_v16, %v3696_v41  ;;  %v834_v50 = vmul.f32 %v4787_v16, %v3699_v42  ;;  %v835_v51 = vmul.f32 %v4787_v16, %v3700_v43 }
  0x93   :  { %2823 = vst.msk [vmem:[%s6125_s3 + $0x178] sm:$0xf] %vm604_vm0, %v3335_v36  ;;  %2824 = vst.msk [vmem:[%s6125_s3 + $0x17c] sm:$0xf] %vm604_vm0, %v3336_v37  ;;  %v894_v52 = vadd.f32 %v4798_v25, %v830_v44  ;;  %v895_v53 = vadd.f32 %v4798_v25, %v831_v45  ;;  %v836_v54 = vmul.f32 %v4787_v16, %v3703_v46 }
  0x94   :  { %v837_v55 = vmul.f32 %v4787_v16, %v3704_v47  ;;  %v896_v56 = vadd.f32 %v4798_v25, %v832_v48  ;;  %v897_v57 = vadd.f32 %v4798_v25, %v833_v49  ;;  %v898_v58 = vadd.f32 %v4798_v25, %v834_v50 }
  0x95   :  { %v899_v59 = vadd.f32 %v4798_v25, %v835_v51  ;;  %v958_v0 = vmax.f32 %v894_v52, 0.0  ;;  %v959_v60 = vmax.f32 %v895_v53, 0.0  ;;  %v900_v61 = vadd.f32 %v4798_v25, %v836_v54 }
  0x96   :  { %v901_v62 = vadd.f32 %v4798_v25, %v837_v55  ;;  %v960_v63 = vmax.f32 %v896_v56, 0.0  ;;  %v961_v1 = vmax.f32 %v897_v57, 0.0  ;;  %v962_v7 = vmax.f32 %v898_v58, 0.0 }
  0x97   :  { %v963_v2 = vmax.f32 %v899_v59, 0.0  ;;  %v3337_v4 = vpack.c.bf16 %v958_v0, %v958_v0  ;;  %v3338_v5 = vpack.c.bf16 %v959_v60, %v959_v60  ;;  %v964_v6 = vmax.f32 %v900_v61, 0.0 }
  0x98   :  { %v965_v8 = vmax.f32 %v901_v62, 0.0  ;;  %v3339_v11 = vpack.c.bf16 %v960_v63, %v960_v63  ;;  %v3340_v12 = vpack.c.bf16 %v961_v1, %v961_v1  ;;  %v3341_v13 = vpack.c.bf16 %v962_v7, %v962_v7 }
  0x99   :  { %v3342_v14 = vpack.c.bf16 %v963_v2, %v963_v2  ;;  %v3343_v17 = vpack.c.bf16 %v964_v6, %v964_v6 }
  0x9a   :  { %v4060_v3 = vld [vmem:[%s6122_s0 + $0x1a0] sm:$0xff]   ;;  %v4061_v9 = vld [vmem:[%s6122_s0 + $0x1a8] sm:$0xff]   ;;  %v4062_v10 = vld [vmem:[%s6122_s0 + $0x1b0] sm:$0xff]   ;;  %v3344_v18 = vpack.c.bf16 %v965_v8, %v965_v8 }
  0x9b   :  { %v4063_v15 = vld [vmem:[%s6122_s0 + $0x1b8] sm:$0xff]   ;;  %v3707_v19 = vunpack.c.l.bf16 %v4060_v3  ;;  %v3708_v20 = vunpack.c.h.bf16 %v4060_v3  ;;  %v3711_v21 = vunpack.c.l.bf16 %v4061_v9  ;;  %v3712_v22 = vunpack.c.h.bf16 %v4061_v9 }
  0x9c   :  { %2825 = vst.msk [vmem:[%s6125_s3 + $0x180] sm:$0xf] %vm604_vm0, %v3337_v4  ;;  %2826 = vst.msk [vmem:[%s6125_s3 + $0x184] sm:$0xf] %vm604_vm0, %v3338_v5  ;;  %v3715_v23 = vunpack.c.l.bf16 %v4062_v10  ;;  %v3716_v24 = vunpack.c.h.bf16 %v4062_v10  ;;  %v3719_v28 = vunpack.c.l.bf16 %v4063_v15  ;;  %v3720_v29 = vunpack.c.h.bf16 %v4063_v15 }
  0x9d   :  { %2827 = vst.msk [vmem:[%s6125_s3 + $0x188] sm:$0xf] %vm604_vm0, %v3339_v11  ;;  %2828 = vst.msk [vmem:[%s6125_s3 + $0x18c] sm:$0xf] %vm604_vm0, %v3340_v12  ;;  %v838_v26 = vmul.f32 %v4787_v16, %v3707_v19  ;;  %v839_v27 = vmul.f32 %v4787_v16, %v3708_v20  ;;  %v840_v30 = vmul.f32 %v4787_v16, %v3711_v21 }
  0x9e   :  { %2829 = vst.msk [vmem:[%s6125_s3 + $0x190] sm:$0xf] %vm604_vm0, %v3341_v13  ;;  %2830 = vst.msk [vmem:[%s6125_s3 + $0x194] sm:$0xf] %vm604_vm0, %v3342_v14  ;;  %v841_v31 = vmul.f32 %v4787_v16, %v3712_v22  ;;  %v842_v32 = vmul.f32 %v4787_v16, %v3715_v23  ;;  %v843_v33 = vmul.f32 %v4787_v16, %v3716_v24 }
  0x9f   :  { %2831 = vst.msk [vmem:[%s6125_s3 + $0x198] sm:$0xf] %vm604_vm0, %v3343_v17  ;;  %2832 = vst.msk [vmem:[%s6125_s3 + $0x19c] sm:$0xf] %vm604_vm0, %v3344_v18  ;;  %v902_v34 = vadd.f32 %v4798_v25, %v838_v26  ;;  %v903_v35 = vadd.f32 %v4798_v25, %v839_v27  ;;  %v844_v36 = vmul.f32 %v4787_v16, %v3719_v28 }
  0xa0   :  { %v845_v37 = vmul.f32 %v4787_v16, %v3720_v29  ;;  %v904_v38 = vadd.f32 %v4798_v25, %v840_v30  ;;  %v905_v39 = vadd.f32 %v4798_v25, %v841_v31  ;;  %v906_v40 = vadd.f32 %v4798_v25, %v842_v32 }
  0xa1   :  { %v907_v41 = vadd.f32 %v4798_v25, %v843_v33  ;;  %v966_v42 = vmax.f32 %v902_v34, 0.0  ;;  %v967_v43 = vmax.f32 %v903_v35, 0.0  ;;  %v908_v44 = vadd.f32 %v4798_v25, %v844_v36 }
  0xa2   :  { %v909_v45 = vadd.f32 %v4798_v25, %v845_v37  ;;  %v968_v46 = vmax.f32 %v904_v38, 0.0  ;;  %v969_v47 = vmax.f32 %v905_v39, 0.0  ;;  %v970_v48 = vmax.f32 %v906_v40, 0.0 }
  0xa3   :  { %v971_v49 = vmax.f32 %v907_v41, 0.0  ;;  %v3345_v51 = vpack.c.bf16 %v966_v42, %v966_v42  ;;  %v3346_v52 = vpack.c.bf16 %v967_v43, %v967_v43  ;;  %v972_v53 = vmax.f32 %v908_v44, 0.0 }
  0xa4   :  { %v973_v54 = vmax.f32 %v909_v45, 0.0  ;;  %v3347_v57 = vpack.c.bf16 %v968_v46, %v968_v46  ;;  %v3348_v58 = vpack.c.bf16 %v969_v47, %v969_v47  ;;  %v3349_v59 = vpack.c.bf16 %v970_v48, %v970_v48 }
  0xa5   :  { %v3350_v0 = vpack.c.bf16 %v971_v49, %v971_v49  ;;  %v3351_v61 = vpack.c.bf16 %v972_v53, %v972_v53 }
  0xa6   :  { %v4064_v50 = vld [vmem:[%s6122_s0 + $0x1c0] sm:$0xff]   ;;  %v4065_v55 = vld [vmem:[%s6122_s0 + $0x1c8] sm:$0xff]   ;;  %v4066_v56 = vld [vmem:[%s6122_s0 + $0x1d0] sm:$0xff]   ;;  %v3352_v62 = vpack.c.bf16 %v973_v54, %v973_v54 }
  0xa7   :  { %v4067_v60 = vld [vmem:[%s6122_s0 + $0x1d8] sm:$0xff]   ;;  %v3723_v63 = vunpack.c.l.bf16 %v4064_v50  ;;  %v3724_v1 = vunpack.c.h.bf16 %v4064_v50  ;;  %v3727_v7 = vunpack.c.l.bf16 %v4065_v55  ;;  %v3728_v2 = vunpack.c.h.bf16 %v4065_v55 }
  0xa8   :  { %2833 = vst.msk [vmem:[%s6125_s3 + $0x1a0] sm:$0xf] %vm604_vm0, %v3345_v51  ;;  %2834 = vst.msk [vmem:[%s6125_s3 + $0x1a4] sm:$0xf] %vm604_vm0, %v3346_v52  ;;  %v3731_v3 = vunpack.c.l.bf16 %v4066_v56  ;;  %v3732_v4 = vunpack.c.h.bf16 %v4066_v56  ;;  %v3735_v8 = vunpack.c.l.bf16 %v4067_v60  ;;  %v3736_v9 = vunpack.c.h.bf16 %v4067_v60 }
  0xa9   :  { %2835 = vst.msk [vmem:[%s6125_s3 + $0x1a8] sm:$0xf] %vm604_vm0, %v3347_v57  ;;  %2836 = vst.msk [vmem:[%s6125_s3 + $0x1ac] sm:$0xf] %vm604_vm0, %v3348_v58  ;;  %v846_v5 = vmul.f32 %v4787_v16, %v3723_v63  ;;  %v847_v6 = vmul.f32 %v4787_v16, %v3724_v1  ;;  %v848_v10 = vmul.f32 %v4787_v16, %v3727_v7 }
  0xaa   :  { %2837 = vst.msk [vmem:[%s6125_s3 + $0x1b0] sm:$0xf] %vm604_vm0, %v3349_v59  ;;  %2838 = vst.msk [vmem:[%s6125_s3 + $0x1b4] sm:$0xf] %vm604_vm0, %v3350_v0  ;;  %v849_v11 = vmul.f32 %v4787_v16, %v3728_v2  ;;  %v850_v12 = vmul.f32 %v4787_v16, %v3731_v3  ;;  %v851_v13 = vmul.f32 %v4787_v16, %v3732_v4 }
  0xab   :  { %2839 = vst.msk [vmem:[%s6125_s3 + $0x1b8] sm:$0xf] %vm604_vm0, %v3351_v61  ;;  %2840 = vst.msk [vmem:[%s6125_s3 + $0x1bc] sm:$0xf] %vm604_vm0, %v3352_v62  ;;  %v910_v14 = vadd.f32 %v4798_v25, %v846_v5  ;;  %v911_v15 = vadd.f32 %v4798_v25, %v847_v6  ;;  %v852_v17 = vmul.f32 %v4787_v16, %v3735_v8 }
  0xac   :  { %v853_v18 = vmul.f32 %v4787_v16, %v3736_v9  ;;  %v912_v19 = vadd.f32 %v4798_v25, %v848_v10  ;;  %v913_v20 = vadd.f32 %v4798_v25, %v849_v11  ;;  %v914_v21 = vadd.f32 %v4798_v25, %v850_v12 }
  0xad   :  { %v915_v22 = vadd.f32 %v4798_v25, %v851_v13  ;;  %v974_v23 = vmax.f32 %v910_v14, 0.0  ;;  %v975_v24 = vmax.f32 %v911_v15, 0.0  ;;  %v916_v26 = vadd.f32 %v4798_v25, %v852_v17 }
  0xae   :  { %v917_v27 = vadd.f32 %v4798_v25, %v853_v18  ;;  %v976_v28 = vmax.f32 %v912_v19, 0.0  ;;  %v977_v29 = vmax.f32 %v913_v20, 0.0  ;;  %v978_v30 = vmax.f32 %v914_v21, 0.0 }
  0xaf   :  { %v979_v31 = vmax.f32 %v915_v22, 0.0  ;;  %v3353_v33 = vpack.c.bf16 %v974_v23, %v974_v23  ;;  %v3354_v34 = vpack.c.bf16 %v975_v24, %v975_v24  ;;  %v980_v35 = vmax.f32 %v916_v26, 0.0 }
  0xb0   :  { %v981_v36 = vmax.f32 %v917_v27, 0.0  ;;  %v3355_v39 = vpack.c.bf16 %v976_v28, %v976_v28  ;;  %v3356_v40 = vpack.c.bf16 %v977_v29, %v977_v29  ;;  %v3357_v41 = vpack.c.bf16 %v978_v30, %v978_v30 }
  0xb1   :  { %v3358_v42 = vpack.c.bf16 %v979_v31, %v979_v31  ;;  %v3359_v44 = vpack.c.bf16 %v980_v35, %v980_v35 }
  0xb2   :  { %v4068_v32 = vld [vmem:[%s6122_s0 + $0x1e0] sm:$0xff]   ;;  %v4069_v37 = vld [vmem:[%s6122_s0 + $0x1e8] sm:$0xff]   ;;  %v4070_v38 = vld [vmem:[%s6122_s0 + $0x1f0] sm:$0xff]   ;;  %v3360_v45 = vpack.c.bf16 %v981_v36, %v981_v36 }
  0xb3   :  { %v4071_v43 = vld [vmem:[%s6122_s0 + $0x1f8] sm:$0xff]   ;;  %v3739_v46 = vunpack.c.l.bf16 %v4068_v32  ;;  %v3740_v47 = vunpack.c.h.bf16 %v4068_v32  ;;  %v3743_v48 = vunpack.c.l.bf16 %v4069_v37  ;;  %v3744_v49 = vunpack.c.h.bf16 %v4069_v37 }
  0xb4   :  { %2841 = vst.msk [vmem:[%s6125_s3 + $0x1c0] sm:$0xf] %vm604_vm0, %v3353_v33  ;;  %2842 = vst.msk [vmem:[%s6125_s3 + $0x1c4] sm:$0xf] %vm604_vm0, %v3354_v34  ;;  %v3747_v50 = vunpack.c.l.bf16 %v4070_v38  ;;  %v3748_v51 = vunpack.c.h.bf16 %v4070_v38  ;;  %v3751_v54 = vunpack.c.l.bf16 %v4071_v43  ;;  %v3752_v55 = vunpack.c.h.bf16 %v4071_v43 }
  0xb5   :  { %2843 = vst.msk [vmem:[%s6125_s3 + $0x1c8] sm:$0xf] %vm604_vm0, %v3355_v39  ;;  %2844 = vst.msk [vmem:[%s6125_s3 + $0x1cc] sm:$0xf] %vm604_vm0, %v3356_v40  ;;  %v854_v52 = vmul.f32 %v4787_v16, %v3739_v46  ;;  %v855_v53 = vmul.f32 %v4787_v16, %v3740_v47  ;;  %v856_v56 = vmul.f32 %v4787_v16, %v3743_v48 }
  0xb6   :  { %2845 = vst.msk [vmem:[%s6125_s3 + $0x1d0] sm:$0xf] %vm604_vm0, %v3357_v41  ;;  %2846 = vst.msk [vmem:[%s6125_s3 + $0x1d4] sm:$0xf] %vm604_vm0, %v3358_v42  ;;  %v857_v57 = vmul.f32 %v4787_v16, %v3744_v49  ;;  %v858_v58 = vmul.f32 %v4787_v16, %v3747_v50  ;;  %v859_v59 = vmul.f32 %v4787_v16, %v3748_v51 }
  0xb7   :  { %2847 = vst.msk [vmem:[%s6125_s3 + $0x1d8] sm:$0xf] %vm604_vm0, %v3359_v44  ;;  %2848 = vst.msk [vmem:[%s6125_s3 + $0x1dc] sm:$0xf] %vm604_vm0, %v3360_v45  ;;  %v918_v0 = vadd.f32 %v4798_v25, %v854_v52  ;;  %v919_v60 = vadd.f32 %v4798_v25, %v855_v53  ;;  %v860_v61 = vmul.f32 %v4787_v16, %v3751_v54 }
  0xb8   :  { %v861_v62 = vmul.f32 %v4787_v16, %v3752_v55  ;;  %v920_v63 = vadd.f32 %v4798_v25, %v856_v56  ;;  %v921_v1 = vadd.f32 %v4798_v25, %v857_v57  ;;  %v922_v7 = vadd.f32 %v4798_v25, %v858_v58 }
  0xb9   :  { %v923_v2 = vadd.f32 %v4798_v25, %v859_v59  ;;  %v982_v3 = vmax.f32 %v918_v0, 0.0  ;;  %v983_v4 = vmax.f32 %v919_v60, 0.0  ;;  %v924_v5 = vadd.f32 %v4798_v25, %v860_v61 }
  0xba   :  { %v925_v6 = vadd.f32 %v4798_v25, %v861_v62  ;;  %v984_v8 = vmax.f32 %v920_v63, 0.0  ;;  %v985_v9 = vmax.f32 %v921_v1, 0.0  ;;  %v986_v10 = vmax.f32 %v922_v7, 0.0 }
  0xbb   :  { %v987_v11 = vmax.f32 %v923_v2, 0.0  ;;  %v3361_v13 = vpack.c.bf16 %v982_v3, %v982_v3  ;;  %v3362_v14 = vpack.c.bf16 %v983_v4, %v983_v4  ;;  %v988_v15 = vmax.f32 %v924_v5, 0.0 }
  0xbc   :  { %v989_v17 = vmax.f32 %v925_v6, 0.0  ;;  %v3363_v20 = vpack.c.bf16 %v984_v8, %v984_v8  ;;  %v3364_v21 = vpack.c.bf16 %v985_v9, %v985_v9  ;;  %v3365_v22 = vpack.c.bf16 %v986_v10, %v986_v10 }
  0xbd   :  { %v3366_v23 = vpack.c.bf16 %v987_v11, %v987_v11  ;;  %v3367_v26 = vpack.c.bf16 %v988_v15, %v988_v15 }
  0xbe   :  { %v4072_v12 = vld [vmem:[%s6122_s0 + $0x200] sm:$0xff]   ;;  %v4073_v18 = vld [vmem:[%s6122_s0 + $0x208] sm:$0xff]   ;;  %v4074_v19 = vld [vmem:[%s6122_s0 + $0x210] sm:$0xff]   ;;  %v3368_v27 = vpack.c.bf16 %v989_v17, %v989_v17 }
  0xbf   :  { %v4075_v24 = vld [vmem:[%s6122_s0 + $0x218] sm:$0xff]   ;;  %v3755_v28 = vunpack.c.l.bf16 %v4072_v12  ;;  %v3756_v29 = vunpack.c.h.bf16 %v4072_v12  ;;  %v3759_v30 = vunpack.c.l.bf16 %v4073_v18  ;;  %v3760_v31 = vunpack.c.h.bf16 %v4073_v18 }
  0xc0   :  { %2849 = vst.msk [vmem:[%s6125_s3 + $0x1e0] sm:$0xf] %vm604_vm0, %v3361_v13  ;;  %2850 = vst.msk [vmem:[%s6125_s3 + $0x1e4] sm:$0xf] %vm604_vm0, %v3362_v14  ;;  %v3763_v32 = vunpack.c.l.bf16 %v4074_v19  ;;  %v3764_v33 = vunpack.c.h.bf16 %v4074_v19  ;;  %v3767_v36 = vunpack.c.l.bf16 %v4075_v24  ;;  %v3768_v37 = vunpack.c.h.bf16 %v4075_v24 }
  0xc1   :  { %2851 = vst.msk [vmem:[%s6125_s3 + $0x1e8] sm:$0xf] %vm604_vm0, %v3363_v20  ;;  %2852 = vst.msk [vmem:[%s6125_s3 + $0x1ec] sm:$0xf] %vm604_vm0, %v3364_v21  ;;  %v1440_v34 = vmul.f32 %v4787_v16, %v3755_v28  ;;  %v1441_v35 = vmul.f32 %v4787_v16, %v3756_v29  ;;  %v1442_v38 = vmul.f32 %v4787_v16, %v3759_v30 }
  0xc2   :  { %2853 = vst.msk [vmem:[%s6125_s3 + $0x1f0] sm:$0xf] %vm604_vm0, %v3365_v22  ;;  %2854 = vst.msk [vmem:[%s6125_s3 + $0x1f4] sm:$0xf] %vm604_vm0, %v3366_v23  ;;  %v1443_v39 = vmul.f32 %v4787_v16, %v3760_v31  ;;  %v1444_v40 = vmul.f32 %v4787_v16, %v3763_v32  ;;  %v1445_v41 = vmul.f32 %v4787_v16, %v3764_v33 }
  0xc3   :  { %2855 = vst.msk [vmem:[%s6125_s3 + $0x1f8] sm:$0xf] %vm604_vm0, %v3367_v26  ;;  %2856 = vst.msk [vmem:[%s6125_s3 + $0x1fc] sm:$0xf] %vm604_vm0, %v3368_v27  ;;  %v1504_v42 = vadd.f32 %v4798_v25, %v1440_v34  ;;  %v1505_v43 = vadd.f32 %v4798_v25, %v1441_v35  ;;  %v1446_v44 = vmul.f32 %v4787_v16, %v3767_v36 }
  0xc4   :  { %v1447_v45 = vmul.f32 %v4787_v16, %v3768_v37  ;;  %v1506_v46 = vadd.f32 %v4798_v25, %v1442_v38  ;;  %v1507_v47 = vadd.f32 %v4798_v25, %v1443_v39  ;;  %v1508_v48 = vadd.f32 %v4798_v25, %v1444_v40 }
  0xc5   :  { %v1509_v49 = vadd.f32 %v4798_v25, %v1445_v41  ;;  %v1568_v50 = vmax.f32 %v1504_v42, 0.0  ;;  %v1569_v51 = vmax.f32 %v1505_v43, 0.0  ;;  %v1510_v52 = vadd.f32 %v4798_v25, %v1446_v44 }
  0xc6   :  { %v1511_v53 = vadd.f32 %v4798_v25, %v1447_v45  ;;  %v1570_v54 = vmax.f32 %v1506_v46, 0.0  ;;  %v1571_v55 = vmax.f32 %v1507_v47, 0.0  ;;  %v1572_v56 = vmax.f32 %v1508_v48, 0.0 }
  0xc7   :  { %v1573_v57 = vmax.f32 %v1509_v49, 0.0  ;;  %v3369_v59 = vpack.c.bf16 %v1568_v50, %v1568_v50  ;;  %v3370_v0 = vpack.c.bf16 %v1569_v51, %v1569_v51  ;;  %v1574_v60 = vmax.f32 %v1510_v52, 0.0 }
  0xc8   :  { %v1575_v61 = vmax.f32 %v1511_v53, 0.0  ;;  %v3371_v1 = vpack.c.bf16 %v1570_v54, %v1570_v54  ;;  %v3372_v7 = vpack.c.bf16 %v1571_v55, %v1571_v55  ;;  %v3373_v2 = vpack.c.bf16 %v1572_v56, %v1572_v56 }
  0xc9   :  { %v3374_v3 = vpack.c.bf16 %v1573_v57, %v1573_v57  ;;  %v3375_v5 = vpack.c.bf16 %v1574_v60, %v1574_v60 }
  0xca   :  { %v4076_v58 = vld [vmem:[%s6122_s0 + $0x220] sm:$0xff]   ;;  %v4077_v62 = vld [vmem:[%s6122_s0 + $0x228] sm:$0xff]   ;;  %v4078_v63 = vld [vmem:[%s6122_s0 + $0x230] sm:$0xff]   ;;  %v3376_v6 = vpack.c.bf16 %v1575_v61, %v1575_v61 }
  0xcb   :  { %v4079_v4 = vld [vmem:[%s6122_s0 + $0x238] sm:$0xff]   ;;  %v3771_v8 = vunpack.c.l.bf16 %v4076_v58  ;;  %v3772_v9 = vunpack.c.h.bf16 %v4076_v58  ;;  %v3775_v10 = vunpack.c.l.bf16 %v4077_v62  ;;  %v3776_v11 = vunpack.c.h.bf16 %v4077_v62 }
  0xcc   :  { %2985 = vst.msk [vmem:[%s6125_s3 + $0x200] sm:$0xf] %vm604_vm0, %v3369_v59  ;;  %2986 = vst.msk [vmem:[%s6125_s3 + $0x204] sm:$0xf] %vm604_vm0, %v3370_v0  ;;  %v3779_v12 = vunpack.c.l.bf16 %v4078_v63  ;;  %v3780_v13 = vunpack.c.h.bf16 %v4078_v63  ;;  %v3783_v17 = vunpack.c.l.bf16 %v4079_v4  ;;  %v3784_v18 = vunpack.c.h.bf16 %v4079_v4 }
  0xcd   :  { %2987 = vst.msk [vmem:[%s6125_s3 + $0x208] sm:$0xf] %vm604_vm0, %v3371_v1  ;;  %2988 = vst.msk [vmem:[%s6125_s3 + $0x20c] sm:$0xf] %vm604_vm0, %v3372_v7  ;;  %v1448_v14 = vmul.f32 %v4787_v16, %v3771_v8  ;;  %v1449_v15 = vmul.f32 %v4787_v16, %v3772_v9  ;;  %v1450_v19 = vmul.f32 %v4787_v16, %v3775_v10 }
  0xce   :  { %2989 = vst.msk [vmem:[%s6125_s3 + $0x210] sm:$0xf] %vm604_vm0, %v3373_v2  ;;  %2990 = vst.msk [vmem:[%s6125_s3 + $0x214] sm:$0xf] %vm604_vm0, %v3374_v3  ;;  %v1451_v20 = vmul.f32 %v4787_v16, %v3776_v11  ;;  %v1452_v21 = vmul.f32 %v4787_v16, %v3779_v12  ;;  %v1453_v22 = vmul.f32 %v4787_v16, %v3780_v13 }
  0xcf   :  { %2991 = vst.msk [vmem:[%s6125_s3 + $0x218] sm:$0xf] %vm604_vm0, %v3375_v5  ;;  %2992 = vst.msk [vmem:[%s6125_s3 + $0x21c] sm:$0xf] %vm604_vm0, %v3376_v6  ;;  %v1512_v23 = vadd.f32 %v4798_v25, %v1448_v14  ;;  %v1513_v24 = vadd.f32 %v4798_v25, %v1449_v15  ;;  %v1454_v26 = vmul.f32 %v4787_v16, %v3783_v17 }
  0xd0   :  { %v1455_v27 = vmul.f32 %v4787_v16, %v3784_v18  ;;  %v1514_v28 = vadd.f32 %v4798_v25, %v1450_v19  ;;  %v1515_v29 = vadd.f32 %v4798_v25, %v1451_v20  ;;  %v1516_v30 = vadd.f32 %v4798_v25, %v1452_v21 }
  0xd1   :  { %v1517_v31 = vadd.f32 %v4798_v25, %v1453_v22  ;;  %v1576_v32 = vmax.f32 %v1512_v23, 0.0  ;;  %v1577_v33 = vmax.f32 %v1513_v24, 0.0  ;;  %v1518_v34 = vadd.f32 %v4798_v25, %v1454_v26 }
  0xd2   :  { %v1519_v35 = vadd.f32 %v4798_v25, %v1455_v27  ;;  %v1578_v36 = vmax.f32 %v1514_v28, 0.0  ;;  %v1579_v37 = vmax.f32 %v1515_v29, 0.0  ;;  %v1580_v38 = vmax.f32 %v1516_v30, 0.0 }
  0xd3   :  { %v1581_v39 = vmax.f32 %v1517_v31, 0.0  ;;  %v3377_v41 = vpack.c.bf16 %v1576_v32, %v1576_v32  ;;  %v3378_v42 = vpack.c.bf16 %v1577_v33, %v1577_v33  ;;  %v1582_v43 = vmax.f32 %v1518_v34, 0.0 }
  0xd4   :  { %v1583_v44 = vmax.f32 %v1519_v35, 0.0  ;;  %v3379_v47 = vpack.c.bf16 %v1578_v36, %v1578_v36  ;;  %v3380_v48 = vpack.c.bf16 %v1579_v37, %v1579_v37  ;;  %v3381_v49 = vpack.c.bf16 %v1580_v38, %v1580_v38 }
  0xd5   :  { %v3382_v50 = vpack.c.bf16 %v1581_v39, %v1581_v39  ;;  %v3383_v52 = vpack.c.bf16 %v1582_v43, %v1582_v43 }
  0xd6   :  { %v4080_v40 = vld [vmem:[%s6122_s0 + $0x240] sm:$0xff]   ;;  %v4081_v45 = vld [vmem:[%s6122_s0 + $0x248] sm:$0xff]   ;;  %v4082_v46 = vld [vmem:[%s6122_s0 + $0x250] sm:$0xff]   ;;  %v3384_v53 = vpack.c.bf16 %v1583_v44, %v1583_v44 }
  0xd7   :  { %v4083_v51 = vld [vmem:[%s6122_s0 + $0x258] sm:$0xff]   ;;  %v3787_v54 = vunpack.c.l.bf16 %v4080_v40  ;;  %v3788_v55 = vunpack.c.h.bf16 %v4080_v40  ;;  %v3791_v56 = vunpack.c.l.bf16 %v4081_v45  ;;  %v3792_v57 = vunpack.c.h.bf16 %v4081_v45 }
  0xd8   :  { %2993 = vst.msk [vmem:[%s6125_s3 + $0x220] sm:$0xf] %vm604_vm0, %v3377_v41  ;;  %2994 = vst.msk [vmem:[%s6125_s3 + $0x224] sm:$0xf] %vm604_vm0, %v3378_v42  ;;  %v3795_v58 = vunpack.c.l.bf16 %v4082_v46  ;;  %v3796_v59 = vunpack.c.h.bf16 %v4082_v46  ;;  %v3799_v61 = vunpack.c.l.bf16 %v4083_v51  ;;  %v3800_v62 = vunpack.c.h.bf16 %v4083_v51 }
  0xd9   :  { %2995 = vst.msk [vmem:[%s6125_s3 + $0x228] sm:$0xf] %vm604_vm0, %v3379_v47  ;;  %2996 = vst.msk [vmem:[%s6125_s3 + $0x22c] sm:$0xf] %vm604_vm0, %v3380_v48  ;;  %v1456_v0 = vmul.f32 %v4787_v16, %v3787_v54  ;;  %v1457_v60 = vmul.f32 %v4787_v16, %v3788_v55  ;;  %v1458_v63 = vmul.f32 %v4787_v16, %v3791_v56 }
  0xda   :  { %2997 = vst.msk [vmem:[%s6125_s3 + $0x230] sm:$0xf] %vm604_vm0, %v3381_v49  ;;  %2998 = vst.msk [vmem:[%s6125_s3 + $0x234] sm:$0xf] %vm604_vm0, %v3382_v50  ;;  %v1459_v1 = vmul.f32 %v4787_v16, %v3792_v57  ;;  %v1460_v7 = vmul.f32 %v4787_v16, %v3795_v58  ;;  %v1461_v2 = vmul.f32 %v4787_v16, %v3796_v59 }
  0xdb   :  { %2999 = vst.msk [vmem:[%s6125_s3 + $0x238] sm:$0xf] %vm604_vm0, %v3383_v52  ;;  %3000 = vst.msk [vmem:[%s6125_s3 + $0x23c] sm:$0xf] %vm604_vm0, %v3384_v53  ;;  %v1520_v3 = vadd.f32 %v4798_v25, %v1456_v0  ;;  %v1521_v4 = vadd.f32 %v4798_v25, %v1457_v60  ;;  %v1462_v5 = vmul.f32 %v4787_v16, %v3799_v61 }
  0xdc   :  { %v1463_v6 = vmul.f32 %v4787_v16, %v3800_v62  ;;  %v1522_v8 = vadd.f32 %v4798_v25, %v1458_v63  ;;  %v1523_v9 = vadd.f32 %v4798_v25, %v1459_v1  ;;  %v1524_v10 = vadd.f32 %v4798_v25, %v1460_v7 }
  0xdd   :  { %v1525_v11 = vadd.f32 %v4798_v25, %v1461_v2  ;;  %v1584_v12 = vmax.f32 %v1520_v3, 0.0  ;;  %v1585_v13 = vmax.f32 %v1521_v4, 0.0  ;;  %v1526_v14 = vadd.f32 %v4798_v25, %v1462_v5 }
  0xde   :  { %v1527_v15 = vadd.f32 %v4798_v25, %v1463_v6  ;;  %v1586_v17 = vmax.f32 %v1522_v8, 0.0  ;;  %v1587_v18 = vmax.f32 %v1523_v9, 0.0  ;;  %v1588_v19 = vmax.f32 %v1524_v10, 0.0 }
  0xdf   :  { %v1589_v20 = vmax.f32 %v1525_v11, 0.0  ;;  %v3385_v22 = vpack.c.bf16 %v1584_v12, %v1584_v12  ;;  %v3386_v23 = vpack.c.bf16 %v1585_v13, %v1585_v13  ;;  %v1590_v24 = vmax.f32 %v1526_v14, 0.0 }
  0xe0   :  { %v1591_v26 = vmax.f32 %v1527_v15, 0.0  ;;  %v3387_v29 = vpack.c.bf16 %v1586_v17, %v1586_v17  ;;  %v3388_v30 = vpack.c.bf16 %v1587_v18, %v1587_v18  ;;  %v3389_v31 = vpack.c.bf16 %v1588_v19, %v1588_v19 }
  0xe1   :  { %v3390_v32 = vpack.c.bf16 %v1589_v20, %v1589_v20  ;;  %v3391_v34 = vpack.c.bf16 %v1590_v24, %v1590_v24 }
  0xe2   :  { %v4084_v21 = vld [vmem:[%s6122_s0 + $0x260] sm:$0xff]   ;;  %v4085_v27 = vld [vmem:[%s6122_s0 + $0x268] sm:$0xff]   ;;  %v4086_v28 = vld [vmem:[%s6122_s0 + $0x270] sm:$0xff]   ;;  %v3392_v35 = vpack.c.bf16 %v1591_v26, %v1591_v26 }
  0xe3   :  { %v4087_v33 = vld [vmem:[%s6122_s0 + $0x278] sm:$0xff]   ;;  %v3803_v36 = vunpack.c.l.bf16 %v4084_v21  ;;  %v3804_v37 = vunpack.c.h.bf16 %v4084_v21  ;;  %v3807_v38 = vunpack.c.l.bf16 %v4085_v27  ;;  %v3808_v39 = vunpack.c.h.bf16 %v4085_v27  ;;  %v5397_v21 = vld [vmem:[%s6123_s1] ss:$0 sm:$0xff] }
  0xe4   :  { %3001 = vst.msk [vmem:[%s6125_s3 + $0x240] sm:$0xf] %vm604_vm0, %v3385_v22  ;;  %3002 = vst.msk [vmem:[%s6125_s3 + $0x244] sm:$0xf] %vm604_vm0, %v3386_v23  ;;  %v3811_v40 = vunpack.c.l.bf16 %v4086_v28  ;;  %v3812_v41 = vunpack.c.h.bf16 %v4086_v28  ;;  %v3815_v44 = vunpack.c.l.bf16 %v4087_v33  ;;  %v3816_v45 = vunpack.c.h.bf16 %v4087_v33 }
  0xe5   :  { %3003 = vst.msk [vmem:[%s6125_s3 + $0x248] sm:$0xf] %vm604_vm0, %v3387_v29  ;;  %3004 = vst.msk [vmem:[%s6125_s3 + $0x24c] sm:$0xf] %vm604_vm0, %v3388_v30  ;;  %v1464_v42 = vmul.f32 %v4787_v16, %v3803_v36  ;;  %v1465_v43 = vmul.f32 %v4787_v16, %v3804_v37  ;;  %v1466_v46 = vmul.f32 %v4787_v16, %v3807_v38 }
  0xe6   :  { %3005 = vst.msk [vmem:[%s6125_s3 + $0x250] sm:$0xf] %vm604_vm0, %v3389_v31  ;;  %3006 = vst.msk [vmem:[%s6125_s3 + $0x254] sm:$0xf] %vm604_vm0, %v3390_v32  ;;  %v1467_v47 = vmul.f32 %v4787_v16, %v3808_v39  ;;  %v1468_v48 = vmul.f32 %v4787_v16, %v3811_v40  ;;  %v1469_v49 = vmul.f32 %v4787_v16, %v3812_v41  ;;  %v5408_v31 = vld [vmem:[%s6124_s2] ss:$0 sm:$0xff] }
  0xe7   :  { %3007 = vst.msk [vmem:[%s6125_s3 + $0x258] sm:$0xf] %vm604_vm0, %v3391_v34  ;;  %3008 = vst.msk [vmem:[%s6125_s3 + $0x25c] sm:$0xf] %vm604_vm0, %v3392_v35  ;;  %v1528_v50 = vadd.f32 %v4798_v25, %v1464_v42  ;;  %v1529_v51 = vadd.f32 %v4798_v25, %v1465_v43  ;;  %v1470_v52 = vmul.f32 %v4787_v16, %v3815_v44 }
  0xe8   :  { %v1471_v53 = vmul.f32 %v4787_v16, %v3816_v45  ;;  %v1530_v54 = vadd.f32 %v4798_v25, %v1466_v46  ;;  %v1531_v55 = vadd.f32 %v4798_v25, %v1467_v47  ;;  %v1532_v56 = vadd.f32 %v4798_v25, %v1468_v48 }
  0xe9   :  { %v1533_v57 = vadd.f32 %v4798_v25, %v1469_v49  ;;  %v1592_v58 = vmax.f32 %v1528_v50, 0.0  ;;  %v1593_v59 = vmax.f32 %v1529_v51, 0.0  ;;  %v1534_v0 = vadd.f32 %v4798_v25, %v1470_v52 }
  0xea   :  { %v1535_v60 = vadd.f32 %v4798_v25, %v1471_v53  ;;  %v1594_v61 = vmax.f32 %v1530_v54, 0.0  ;;  %v1595_v62 = vmax.f32 %v1531_v55, 0.0  ;;  %v1596_v63 = vmax.f32 %v1532_v56, 0.0 }
  0xeb   :  { %v1597_v1 = vmax.f32 %v1533_v57, 0.0  ;;  %v3393_v7 = vpack.c.bf16 %v1592_v58, %v1592_v58  ;;  %v3394_v2 = vpack.c.bf16 %v1593_v59, %v1593_v59  ;;  %v1598_v3 = vmax.f32 %v1534_v0, 0.0 }
  0xec   :  { %v1599_v4 = vmax.f32 %v1535_v60, 0.0  ;;  %v3395_v6 = vpack.c.bf16 %v1594_v61, %v1594_v61  ;;  %v3396_v8 = vpack.c.bf16 %v1595_v62, %v1595_v62  ;;  %v3397_v9 = vpack.c.bf16 %v1596_v63, %v1596_v63 }
  0xed   :  { %v3398_v10 = vpack.c.bf16 %v1597_v1, %v1597_v1  ;;  %v3399_v12 = vpack.c.bf16 %v1598_v3, %v1598_v3 }
  0xee   :  { %v4088_v16 = vld [vmem:[%s6122_s0 + $0x280] sm:$0xff]   ;;  %v4089_v5 = vld [vmem:[%s6122_s0 + $0x288] sm:$0xff]   ;;  %v4090_v25 = vld [vmem:[%s6122_s0 + $0x290] sm:$0xff]   ;;  %v3400_v13 = vpack.c.bf16 %v1599_v4, %v1599_v4 }
  0xef   :  { %v4091_v11 = vld [vmem:[%s6122_s0 + $0x298] sm:$0xff]   ;;  %v3819_v14 = vunpack.c.l.bf16 %v4088_v16  ;;  %v3820_v15 = vunpack.c.h.bf16 %v4088_v16  ;;  %v3823_v17 = vunpack.c.l.bf16 %v4089_v5  ;;  %v3824_v18 = vunpack.c.h.bf16 %v4089_v5 }
  0xf0   :  { %3009 = vst.msk [vmem:[%s6125_s3 + $0x260] sm:$0xf] %vm604_vm0, %v3393_v7  ;;  %3010 = vst.msk [vmem:[%s6125_s3 + $0x264] sm:$0xf] %vm604_vm0, %v3394_v2  ;;  %v3827_v19 = vunpack.c.l.bf16 %v4090_v25  ;;  %v3828_v20 = vunpack.c.h.bf16 %v4090_v25  ;;  %v3831_v24 = vunpack.c.l.bf16 %v4091_v11  ;;  %v3832_v26 = vunpack.c.h.bf16 %v4091_v11 }
  0xf1   :  { %3011 = vst.msk [vmem:[%s6125_s3 + $0x268] sm:$0xf] %vm604_vm0, %v3395_v6  ;;  %3012 = vst.msk [vmem:[%s6125_s3 + $0x26c] sm:$0xf] %vm604_vm0, %v3396_v8  ;;  %v1472_v22 = vmul.f32 %v5397_v21, %v3819_v14  ;;  %v1473_v23 = vmul.f32 %v5397_v21, %v3820_v15  ;;  %v1474_v27 = vmul.f32 %v5397_v21, %v3823_v17 }
  0xf2   :  { %3013 = vst.msk [vmem:[%s6125_s3 + $0x270] sm:$0xf] %vm604_vm0, %v3397_v9  ;;  %3014 = vst.msk [vmem:[%s6125_s3 + $0x274] sm:$0xf] %vm604_vm0, %v3398_v10  ;;  %v1475_v28 = vmul.f32 %v5397_v21, %v3824_v18  ;;  %v1476_v29 = vmul.f32 %v5397_v21, %v3827_v19  ;;  %v1477_v30 = vmul.f32 %v5397_v21, %v3828_v20 }
  0xf3   :  { %3015 = vst.msk [vmem:[%s6125_s3 + $0x278] sm:$0xf] %vm604_vm0, %v3399_v12  ;;  %3016 = vst.msk [vmem:[%s6125_s3 + $0x27c] sm:$0xf] %vm604_vm0, %v3400_v13  ;;  %v1536_v32 = vadd.f32 %v5408_v31, %v1472_v22  ;;  %v1537_v33 = vadd.f32 %v5408_v31, %v1473_v23  ;;  %v1478_v34 = vmul.f32 %v5397_v21, %v3831_v24 }
  0xf4   :  { %v1479_v35 = vmul.f32 %v5397_v21, %v3832_v26  ;;  %v1538_v36 = vadd.f32 %v5408_v31, %v1474_v27  ;;  %v1539_v37 = vadd.f32 %v5408_v31, %v1475_v28  ;;  %v1540_v38 = vadd.f32 %v5408_v31, %v1476_v29 }
  0xf5   :  { %v1541_v39 = vadd.f32 %v5408_v31, %v1477_v30  ;;  %v1600_v40 = vmax.f32 %v1536_v32, 0.0  ;;  %v1601_v41 = vmax.f32 %v1537_v33, 0.0  ;;  %v1542_v42 = vadd.f32 %v5408_v31, %v1478_v34 }
  0xf6   :  { %v1543_v43 = vadd.f32 %v5408_v31, %v1479_v35  ;;  %v1602_v44 = vmax.f32 %v1538_v36, 0.0  ;;  %v1603_v45 = vmax.f32 %v1539_v37, 0.0  ;;  %v1604_v46 = vmax.f32 %v1540_v38, 0.0 }
  0xf7   :  { %v1605_v47 = vmax.f32 %v1541_v39, 0.0  ;;  %v3401_v49 = vpack.c.bf16 %v1600_v40, %v1600_v40  ;;  %v3402_v50 = vpack.c.bf16 %v1601_v41, %v1601_v41  ;;  %v1606_v51 = vmax.f32 %v1542_v42, 0.0 }
  0xf8   :  { %v1607_v52 = vmax.f32 %v1543_v43, 0.0  ;;  %v3403_v55 = vpack.c.bf16 %v1602_v44, %v1602_v44  ;;  %v3404_v56 = vpack.c.bf16 %v1603_v45, %v1603_v45  ;;  %v3405_v57 = vpack.c.bf16 %v1604_v46, %v1604_v46 }
  0xf9   :  { %v3406_v58 = vpack.c.bf16 %v1605_v47, %v1605_v47  ;;  %v3407_v0 = vpack.c.bf16 %v1606_v51, %v1606_v51 }
  0xfa   :  { %v4092_v48 = vld [vmem:[%s6122_s0 + $0x2a0] sm:$0xff]   ;;  %v4093_v53 = vld [vmem:[%s6122_s0 + $0x2a8] sm:$0xff]   ;;  %v4094_v54 = vld [vmem:[%s6122_s0 + $0x2b0] sm:$0xff]   ;;  %v3408_v60 = vpack.c.bf16 %v1607_v52, %v1607_v52 }
  0xfb   :  { %v4095_v59 = vld [vmem:[%s6122_s0 + $0x2b8] sm:$0xff]   ;;  %v3835_v61 = vunpack.c.l.bf16 %v4092_v48  ;;  %v3836_v62 = vunpack.c.h.bf16 %v4092_v48  ;;  %v3839_v63 = vunpack.c.l.bf16 %v4093_v53  ;;  %v3840_v1 = vunpack.c.h.bf16 %v4093_v53 }
  0xfc   :  { %3017 = vst.msk [vmem:[%s6125_s3 + $0x280] sm:$0xf] %vm604_vm0, %v3401_v49  ;;  %3018 = vst.msk [vmem:[%s6125_s3 + $0x284] sm:$0xf] %vm604_vm0, %v3402_v50  ;;  %v3843_v16 = vunpack.c.l.bf16 %v4094_v54  ;;  %v3844_v7 = vunpack.c.h.bf16 %v4094_v54  ;;  %v3847_v4 = vunpack.c.l.bf16 %v4095_v59  ;;  %v3848_v5 = vunpack.c.h.bf16 %v4095_v59 }
  0xfd   :  { %3019 = vst.msk [vmem:[%s6125_s3 + $0x288] sm:$0xf] %vm604_vm0, %v3403_v55  ;;  %3020 = vst.msk [vmem:[%s6125_s3 + $0x28c] sm:$0xf] %vm604_vm0, %v3404_v56  ;;  %v1480_v2 = vmul.f32 %v5397_v21, %v3835_v61  ;;  %v1481_v3 = vmul.f32 %v5397_v21, %v3836_v62  ;;  %v1482_v25 = vmul.f32 %v5397_v21, %v3839_v63 }
  0xfe   :  { %3021 = vst.msk [vmem:[%s6125_s3 + $0x290] sm:$0xf] %vm604_vm0, %v3405_v57  ;;  %3022 = vst.msk [vmem:[%s6125_s3 + $0x294] sm:$0xf] %vm604_vm0, %v3406_v58  ;;  %v1483_v6 = vmul.f32 %v5397_v21, %v3840_v1  ;;  %v1484_v8 = vmul.f32 %v5397_v21, %v3843_v16  ;;  %v1485_v9 = vmul.f32 %v5397_v21, %v3844_v7 }
  0xff   :  { %3023 = vst.msk [vmem:[%s6125_s3 + $0x298] sm:$0xf] %vm604_vm0, %v3407_v0  ;;  %3024 = vst.msk [vmem:[%s6125_s3 + $0x29c] sm:$0xf] %vm604_vm0, %v3408_v60  ;;  %v1544_v10 = vadd.f32 %v5408_v31, %v1480_v2  ;;  %v1545_v11 = vadd.f32 %v5408_v31, %v1481_v3  ;;  %v1486_v12 = vmul.f32 %v5397_v21, %v3847_v4 }
 0x100   :  { %v1487_v13 = vmul.f32 %v5397_v21, %v3848_v5  ;;  %v1546_v14 = vadd.f32 %v5408_v31, %v1482_v25  ;;  %v1547_v15 = vadd.f32 %v5408_v31, %v1483_v6  ;;  %v1548_v17 = vadd.f32 %v5408_v31, %v1484_v8 }
 0x101   :  { %v1549_v18 = vadd.f32 %v5408_v31, %v1485_v9  ;;  %v1608_v19 = vmax.f32 %v1544_v10, 0.0  ;;  %v1609_v20 = vmax.f32 %v1545_v11, 0.0  ;;  %v1550_v22 = vadd.f32 %v5408_v31, %v1486_v12 }
 0x102   :  { %v1551_v23 = vadd.f32 %v5408_v31, %v1487_v13  ;;  %v1610_v24 = vmax.f32 %v1546_v14, 0.0  ;;  %v1611_v26 = vmax.f32 %v1547_v15, 0.0  ;;  %v1612_v27 = vmax.f32 %v1548_v17, 0.0 }
 0x103   :  { %v1613_v28 = vmax.f32 %v1549_v18, 0.0  ;;  %v3409_v30 = vpack.c.bf16 %v1608_v19, %v1608_v19  ;;  %v3410_v32 = vpack.c.bf16 %v1609_v20, %v1609_v20  ;;  %v1614_v33 = vmax.f32 %v1550_v22, 0.0 }
 0x104   :  { %v1615_v34 = vmax.f32 %v1551_v23, 0.0  ;;  %v3411_v37 = vpack.c.bf16 %v1610_v24, %v1610_v24  ;;  %v3412_v38 = vpack.c.bf16 %v1611_v26, %v1611_v26  ;;  %v3413_v39 = vpack.c.bf16 %v1612_v27, %v1612_v27 }
 0x105   :  { %v3414_v40 = vpack.c.bf16 %v1613_v28, %v1613_v28  ;;  %v3415_v42 = vpack.c.bf16 %v1614_v33, %v1614_v33 }
 0x106   :  { %v4096_v29 = vld [vmem:[%s6122_s0 + $0x2c0] sm:$0xff]   ;;  %v4097_v35 = vld [vmem:[%s6122_s0 + $0x2c8] sm:$0xff]   ;;  %v4098_v36 = vld [vmem:[%s6122_s0 + $0x2d0] sm:$0xff]   ;;  %v3416_v43 = vpack.c.bf16 %v1615_v34, %v1615_v34 }
 0x107   :  { %v4099_v41 = vld [vmem:[%s6122_s0 + $0x2d8] sm:$0xff]   ;;  %v3851_v44 = vunpack.c.l.bf16 %v4096_v29  ;;  %v3852_v45 = vunpack.c.h.bf16 %v4096_v29  ;;  %v3855_v46 = vunpack.c.l.bf16 %v4097_v35  ;;  %v3856_v47 = vunpack.c.h.bf16 %v4097_v35 }
 0x108   :  { %3025 = vst.msk [vmem:[%s6125_s3 + $0x2a0] sm:$0xf] %vm604_vm0, %v3409_v30  ;;  %3026 = vst.msk [vmem:[%s6125_s3 + $0x2a4] sm:$0xf] %vm604_vm0, %v3410_v32  ;;  %v3859_v48 = vunpack.c.l.bf16 %v4098_v36  ;;  %v3860_v49 = vunpack.c.h.bf16 %v4098_v36  ;;  %v3863_v52 = vunpack.c.l.bf16 %v4099_v41  ;;  %v3864_v53 = vunpack.c.h.bf16 %v4099_v41 }
 0x109   :  { %3027 = vst.msk [vmem:[%s6125_s3 + $0x2a8] sm:$0xf] %vm604_vm0, %v3411_v37  ;;  %3028 = vst.msk [vmem:[%s6125_s3 + $0x2ac] sm:$0xf] %vm604_vm0, %v3412_v38  ;;  %v1488_v50 = vmul.f32 %v5397_v21, %v3851_v44  ;;  %v1489_v51 = vmul.f32 %v5397_v21, %v3852_v45  ;;  %v1490_v54 = vmul.f32 %v5397_v21, %v3855_v46 }
 0x10a   :  { %3029 = vst.msk [vmem:[%s6125_s3 + $0x2b0] sm:$0xf] %vm604_vm0, %v3413_v39  ;;  %3030 = vst.msk [vmem:[%s6125_s3 + $0x2b4] sm:$0xf] %vm604_vm0, %v3414_v40  ;;  %v1491_v55 = vmul.f32 %v5397_v21, %v3856_v47  ;;  %v1492_v56 = vmul.f32 %v5397_v21, %v3859_v48  ;;  %v1493_v57 = vmul.f32 %v5397_v21, %v3860_v49 }
 0x10b   :  { %3031 = vst.msk [vmem:[%s6125_s3 + $0x2b8] sm:$0xf] %vm604_vm0, %v3415_v42  ;;  %3032 = vst.msk [vmem:[%s6125_s3 + $0x2bc] sm:$0xf] %vm604_vm0, %v3416_v43  ;;  %v1552_v58 = vadd.f32 %v5408_v31, %v1488_v50  ;;  %v1553_v59 = vadd.f32 %v5408_v31, %v1489_v51  ;;  %v1494_v0 = vmul.f32 %v5397_v21, %v3863_v52 }
 0x10c   :  { %v1495_v60 = vmul.f32 %v5397_v21, %v3864_v53  ;;  %v1554_v61 = vadd.f32 %v5408_v31, %v1490_v54  ;;  %v1555_v62 = vadd.f32 %v5408_v31, %v1491_v55  ;;  %v1556_v63 = vadd.f32 %v5408_v31, %v1492_v56 }
 0x10d   :  { %v1557_v1 = vadd.f32 %v5408_v31, %v1493_v57  ;;  %v1616_v16 = vmax.f32 %v1552_v58, 0.0  ;;  %v1617_v7 = vmax.f32 %v1553_v59, 0.0  ;;  %v1558_v2 = vadd.f32 %v5408_v31, %v1494_v0 }
 0x10e   :  { %v1559_v3 = vadd.f32 %v5408_v31, %v1495_v60  ;;  %v1618_v4 = vmax.f32 %v1554_v61, 0.0  ;;  %v1619_v5 = vmax.f32 %v1555_v62, 0.0  ;;  %v1620_v25 = vmax.f32 %v1556_v63, 0.0 }
 0x10f   :  { %v1621_v6 = vmax.f32 %v1557_v1, 0.0  ;;  %v3417_v9 = vpack.c.bf16 %v1616_v16, %v1616_v16  ;;  %v3418_v10 = vpack.c.bf16 %v1617_v7, %v1617_v7  ;;  %v1622_v11 = vmax.f32 %v1558_v2, 0.0 }
 0x110   :  { %v1623_v12 = vmax.f32 %v1559_v3, 0.0  ;;  %v3419_v15 = vpack.c.bf16 %v1618_v4, %v1618_v4  ;;  %v3420_v17 = vpack.c.bf16 %v1619_v5, %v1619_v5  ;;  %v3421_v18 = vpack.c.bf16 %v1620_v25, %v1620_v25 }
 0x111   :  { %v3422_v19 = vpack.c.bf16 %v1621_v6, %v1621_v6  ;;  %v3423_v22 = vpack.c.bf16 %v1622_v11, %v1622_v11 }
 0x112   :  { %v4100_v8 = vld [vmem:[%s6122_s0 + $0x2e0] sm:$0xff]   ;;  %v4101_v13 = vld [vmem:[%s6122_s0 + $0x2e8] sm:$0xff]   ;;  %v4102_v14 = vld [vmem:[%s6122_s0 + $0x2f0] sm:$0xff]   ;;  %v3424_v23 = vpack.c.bf16 %v1623_v12, %v1623_v12 }
 0x113   :  { %v4103_v20 = vld [vmem:[%s6122_s0 + $0x2f8] sm:$0xff]   ;;  %v3867_v24 = vunpack.c.l.bf16 %v4100_v8  ;;  %v3868_v26 = vunpack.c.h.bf16 %v4100_v8  ;;  %v3871_v27 = vunpack.c.l.bf16 %v4101_v13  ;;  %v3872_v28 = vunpack.c.h.bf16 %v4101_v13 }
 0x114   :  { %3033 = vst.msk [vmem:[%s6125_s3 + $0x2c0] sm:$0xf] %vm604_vm0, %v3417_v9  ;;  %3034 = vst.msk [vmem:[%s6125_s3 + $0x2c4] sm:$0xf] %vm604_vm0, %v3418_v10  ;;  %v3875_v29 = vunpack.c.l.bf16 %v4102_v14  ;;  %v3876_v30 = vunpack.c.h.bf16 %v4102_v14  ;;  %v3879_v34 = vunpack.c.l.bf16 %v4103_v20  ;;  %v3880_v35 = vunpack.c.h.bf16 %v4103_v20 }
 0x115   :  { %3035 = vst.msk [vmem:[%s6125_s3 + $0x2c8] sm:$0xf] %vm604_vm0, %v3419_v15  ;;  %3036 = vst.msk [vmem:[%s6125_s3 + $0x2cc] sm:$0xf] %vm604_vm0, %v3420_v17  ;;  %v1496_v32 = vmul.f32 %v5397_v21, %v3867_v24  ;;  %v1497_v33 = vmul.f32 %v5397_v21, %v3868_v26  ;;  %v1498_v36 = vmul.f32 %v5397_v21, %v3871_v27 }
 0x116   :  { %3037 = vst.msk [vmem:[%s6125_s3 + $0x2d0] sm:$0xf] %vm604_vm0, %v3421_v18  ;;  %3038 = vst.msk [vmem:[%s6125_s3 + $0x2d4] sm:$0xf] %vm604_vm0, %v3422_v19  ;;  %v1499_v37 = vmul.f32 %v5397_v21, %v3872_v28  ;;  %v1500_v38 = vmul.f32 %v5397_v21, %v3875_v29  ;;  %v1501_v39 = vmul.f32 %v5397_v21, %v3876_v30 }
 0x117   :  { %3039 = vst.msk [vmem:[%s6125_s3 + $0x2d8] sm:$0xf] %vm604_vm0, %v3423_v22  ;;  %3040 = vst.msk [vmem:[%s6125_s3 + $0x2dc] sm:$0xf] %vm604_vm0, %v3424_v23  ;;  %v1560_v40 = vadd.f32 %v5408_v31, %v1496_v32  ;;  %v1561_v41 = vadd.f32 %v5408_v31, %v1497_v33  ;;  %v1502_v42 = vmul.f32 %v5397_v21, %v3879_v34 }
 0x118   :  { %v1503_v43 = vmul.f32 %v5397_v21, %v3880_v35  ;;  %v1562_v44 = vadd.f32 %v5408_v31, %v1498_v36  ;;  %v1563_v45 = vadd.f32 %v5408_v31, %v1499_v37  ;;  %v1564_v46 = vadd.f32 %v5408_v31, %v1500_v38 }
 0x119   :  { %v1565_v47 = vadd.f32 %v5408_v31, %v1501_v39  ;;  %v1624_v48 = vmax.f32 %v1560_v40, 0.0  ;;  %v1625_v49 = vmax.f32 %v1561_v41, 0.0  ;;  %v1566_v50 = vadd.f32 %v5408_v31, %v1502_v42 }
 0x11a   :  { %v1567_v51 = vadd.f32 %v5408_v31, %v1503_v43  ;;  %v1626_v52 = vmax.f32 %v1562_v44, 0.0  ;;  %v1627_v53 = vmax.f32 %v1563_v45, 0.0  ;;  %v1628_v54 = vmax.f32 %v1564_v46, 0.0 }
 0x11b   :  { %v1629_v55 = vmax.f32 %v1565_v47, 0.0  ;;  %v3425_v57 = vpack.c.bf16 %v1624_v48, %v1624_v48  ;;  %v3426_v58 = vpack.c.bf16 %v1625_v49, %v1625_v49  ;;  %v1630_v59 = vmax.f32 %v1566_v50, 0.0 }
 0x11c   :  { %v1631_v0 = vmax.f32 %v1567_v51, 0.0  ;;  %v3427_v62 = vpack.c.bf16 %v1626_v52, %v1626_v52  ;;  %v3428_v63 = vpack.c.bf16 %v1627_v53, %v1627_v53  ;;  %v3429_v1 = vpack.c.bf16 %v1628_v54, %v1628_v54 }
 0x11d   :  { %v3430_v16 = vpack.c.bf16 %v1629_v55, %v1629_v55  ;;  %v3431_v2 = vpack.c.bf16 %v1630_v59, %v1630_v59 }
 0x11e   :  { %v4104_v56 = vld [vmem:[%s6122_s0 + $0x300] sm:$0xff]   ;;  %v4105_v60 = vld [vmem:[%s6122_s0 + $0x308] sm:$0xff]   ;;  %v4106_v61 = vld [vmem:[%s6122_s0 + $0x310] sm:$0xff]   ;;  %v3432_v3 = vpack.c.bf16 %v1631_v0, %v1631_v0 }
 0x11f   :  { %v4107_v7 = vld [vmem:[%s6122_s0 + $0x318] sm:$0xff]   ;;  %v3883_v4 = vunpack.c.l.bf16 %v4104_v56  ;;  %v3884_v5 = vunpack.c.h.bf16 %v4104_v56  ;;  %v3887_v25 = vunpack.c.l.bf16 %v4105_v60  ;;  %v3888_v6 = vunpack.c.h.bf16 %v4105_v60 }
 0x120   :  { %3041 = vst.msk [vmem:[%s6125_s3 + $0x2e0] sm:$0xf] %vm604_vm0, %v3425_v57  ;;  %3042 = vst.msk [vmem:[%s6125_s3 + $0x2e4] sm:$0xf] %vm604_vm0, %v3426_v58  ;;  %v3891_v8 = vunpack.c.l.bf16 %v4106_v61  ;;  %v3892_v9 = vunpack.c.h.bf16 %v4106_v61  ;;  %v3895_v12 = vunpack.c.l.bf16 %v4107_v7  ;;  %v3896_v13 = vunpack.c.h.bf16 %v4107_v7 }
 0x121   :  { %3043 = vst.msk [vmem:[%s6125_s3 + $0x2e8] sm:$0xf] %vm604_vm0, %v3427_v62  ;;  %3044 = vst.msk [vmem:[%s6125_s3 + $0x2ec] sm:$0xf] %vm604_vm0, %v3428_v63  ;;  %v2082_v10 = vmul.f32 %v5397_v21, %v3883_v4  ;;  %v2083_v11 = vmul.f32 %v5397_v21, %v3884_v5  ;;  %v2084_v14 = vmul.f32 %v5397_v21, %v3887_v25 }
 0x122   :  { %3045 = vst.msk [vmem:[%s6125_s3 + $0x2f0] sm:$0xf] %vm604_vm0, %v3429_v1  ;;  %3046 = vst.msk [vmem:[%s6125_s3 + $0x2f4] sm:$0xf] %vm604_vm0, %v3430_v16  ;;  %v2085_v15 = vmul.f32 %v5397_v21, %v3888_v6  ;;  %v2086_v17 = vmul.f32 %v5397_v21, %v3891_v8  ;;  %v2087_v18 = vmul.f32 %v5397_v21, %v3892_v9 }
 0x123   :  { %3047 = vst.msk [vmem:[%s6125_s3 + $0x2f8] sm:$0xf] %vm604_vm0, %v3431_v2  ;;  %3048 = vst.msk [vmem:[%s6125_s3 + $0x2fc] sm:$0xf] %vm604_vm0, %v3432_v3  ;;  %v2146_v19 = vadd.f32 %v5408_v31, %v2082_v10  ;;  %v2147_v20 = vadd.f32 %v5408_v31, %v2083_v11  ;;  %v2088_v22 = vmul.f32 %v5397_v21, %v3895_v12 }
 0x124   :  { %v2089_v23 = vmul.f32 %v5397_v21, %v3896_v13  ;;  %v2148_v24 = vadd.f32 %v5408_v31, %v2084_v14  ;;  %v2149_v26 = vadd.f32 %v5408_v31, %v2085_v15  ;;  %v2150_v27 = vadd.f32 %v5408_v31, %v2086_v17 }
 0x125   :  { %v2151_v28 = vadd.f32 %v5408_v31, %v2087_v18  ;;  %v2210_v29 = vmax.f32 %v2146_v19, 0.0  ;;  %v2211_v30 = vmax.f32 %v2147_v20, 0.0  ;;  %v2152_v32 = vadd.f32 %v5408_v31, %v2088_v22 }
 0x126   :  { %v2153_v33 = vadd.f32 %v5408_v31, %v2089_v23  ;;  %v2212_v34 = vmax.f32 %v2148_v24, 0.0  ;;  %v2213_v35 = vmax.f32 %v2149_v26, 0.0  ;;  %v2214_v36 = vmax.f32 %v2150_v27, 0.0 }
 0x127   :  { %v2215_v37 = vmax.f32 %v2151_v28, 0.0  ;;  %v3433_v39 = vpack.c.bf16 %v2210_v29, %v2210_v29  ;;  %v3434_v40 = vpack.c.bf16 %v2211_v30, %v2211_v30  ;;  %v2216_v41 = vmax.f32 %v2152_v32, 0.0 }
 0x128   :  { %v2217_v42 = vmax.f32 %v2153_v33, 0.0  ;;  %v3435_v45 = vpack.c.bf16 %v2212_v34, %v2212_v34  ;;  %v3436_v46 = vpack.c.bf16 %v2213_v35, %v2213_v35  ;;  %v3437_v47 = vpack.c.bf16 %v2214_v36, %v2214_v36 }
 0x129   :  { %v3438_v48 = vpack.c.bf16 %v2215_v37, %v2215_v37  ;;  %v3439_v50 = vpack.c.bf16 %v2216_v41, %v2216_v41 }
 0x12a   :  { %v4108_v38 = vld [vmem:[%s6122_s0 + $0x320] sm:$0xff]   ;;  %v4109_v43 = vld [vmem:[%s6122_s0 + $0x328] sm:$0xff]   ;;  %v4110_v44 = vld [vmem:[%s6122_s0 + $0x330] sm:$0xff]   ;;  %v3440_v51 = vpack.c.bf16 %v2217_v42, %v2217_v42 }
 0x12b   :  { %v4111_v49 = vld [vmem:[%s6122_s0 + $0x338] sm:$0xff]   ;;  %v3899_v52 = vunpack.c.l.bf16 %v4108_v38  ;;  %v3900_v53 = vunpack.c.h.bf16 %v4108_v38  ;;  %v3903_v54 = vunpack.c.l.bf16 %v4109_v43  ;;  %v3904_v55 = vunpack.c.h.bf16 %v4109_v43 }
 0x12c   :  { %3177 = vst.msk [vmem:[%s6125_s3 + $0x300] sm:$0xf] %vm604_vm0, %v3433_v39  ;;  %3178 = vst.msk [vmem:[%s6125_s3 + $0x304] sm:$0xf] %vm604_vm0, %v3434_v40  ;;  %v3907_v56 = vunpack.c.l.bf16 %v4110_v44  ;;  %v3908_v57 = vunpack.c.h.bf16 %v4110_v44  ;;  %v3911_v0 = vunpack.c.l.bf16 %v4111_v49  ;;  %v3912_v60 = vunpack.c.h.bf16 %v4111_v49 }
 0x12d   :  { %3179 = vst.msk [vmem:[%s6125_s3 + $0x308] sm:$0xf] %vm604_vm0, %v3435_v45  ;;  %3180 = vst.msk [vmem:[%s6125_s3 + $0x30c] sm:$0xf] %vm604_vm0, %v3436_v46  ;;  %v2090_v58 = vmul.f32 %v5397_v21, %v3899_v52  ;;  %v2091_v59 = vmul.f32 %v5397_v21, %v3900_v53  ;;  %v2092_v61 = vmul.f32 %v5397_v21, %v3903_v54 }
 0x12e   :  { %3181 = vst.msk [vmem:[%s6125_s3 + $0x310] sm:$0xf] %vm604_vm0, %v3437_v47  ;;  %3182 = vst.msk [vmem:[%s6125_s3 + $0x314] sm:$0xf] %vm604_vm0, %v3438_v48  ;;  %v2093_v62 = vmul.f32 %v5397_v21, %v3904_v55  ;;  %v2094_v63 = vmul.f32 %v5397_v21, %v3907_v56  ;;  %v2095_v1 = vmul.f32 %v5397_v21, %v3908_v57 }
 0x12f   :  { %3183 = vst.msk [vmem:[%s6125_s3 + $0x318] sm:$0xf] %vm604_vm0, %v3439_v50  ;;  %3184 = vst.msk [vmem:[%s6125_s3 + $0x31c] sm:$0xf] %vm604_vm0, %v3440_v51  ;;  %v2154_v16 = vadd.f32 %v5408_v31, %v2090_v58  ;;  %v2155_v7 = vadd.f32 %v5408_v31, %v2091_v59  ;;  %v2096_v2 = vmul.f32 %v5397_v21, %v3911_v0 }
 0x130   :  { %v2097_v3 = vmul.f32 %v5397_v21, %v3912_v60  ;;  %v2156_v4 = vadd.f32 %v5408_v31, %v2092_v61  ;;  %v2157_v5 = vadd.f32 %v5408_v31, %v2093_v62  ;;  %v2158_v25 = vadd.f32 %v5408_v31, %v2094_v63 }
 0x131   :  { %v2159_v6 = vadd.f32 %v5408_v31, %v2095_v1  ;;  %v2218_v8 = vmax.f32 %v2154_v16, 0.0  ;;  %v2219_v9 = vmax.f32 %v2155_v7, 0.0  ;;  %v2160_v10 = vadd.f32 %v5408_v31, %v2096_v2 }
 0x132   :  { %v2161_v11 = vadd.f32 %v5408_v31, %v2097_v3  ;;  %v2220_v12 = vmax.f32 %v2156_v4, 0.0  ;;  %v2221_v13 = vmax.f32 %v2157_v5, 0.0  ;;  %v2222_v14 = vmax.f32 %v2158_v25, 0.0 }
 0x133   :  { %v2223_v15 = vmax.f32 %v2159_v6, 0.0  ;;  %v3441_v18 = vpack.c.bf16 %v2218_v8, %v2218_v8  ;;  %v3442_v19 = vpack.c.bf16 %v2219_v9, %v2219_v9  ;;  %v2224_v20 = vmax.f32 %v2160_v10, 0.0 }
 0x134   :  { %v2225_v22 = vmax.f32 %v2161_v11, 0.0  ;;  %v3443_v26 = vpack.c.bf16 %v2220_v12, %v2220_v12  ;;  %v3444_v27 = vpack.c.bf16 %v2221_v13, %v2221_v13  ;;  %v3445_v28 = vpack.c.bf16 %v2222_v14, %v2222_v14 }
 0x135   :  { %v3446_v29 = vpack.c.bf16 %v2223_v15, %v2223_v15  ;;  %v3447_v32 = vpack.c.bf16 %v2224_v20, %v2224_v20 }
 0x136   :  { %v4112_v17 = vld [vmem:[%s6122_s0 + $0x340] sm:$0xff]   ;;  %v4113_v23 = vld [vmem:[%s6122_s0 + $0x348] sm:$0xff]   ;;  %v4114_v24 = vld [vmem:[%s6122_s0 + $0x350] sm:$0xff]   ;;  %v3448_v33 = vpack.c.bf16 %v2225_v22, %v2225_v22 }
 0x137   :  { %v4115_v30 = vld [vmem:[%s6122_s0 + $0x358] sm:$0xff]   ;;  %v3915_v34 = vunpack.c.l.bf16 %v4112_v17  ;;  %v3916_v35 = vunpack.c.h.bf16 %v4112_v17  ;;  %v3919_v36 = vunpack.c.l.bf16 %v4113_v23  ;;  %v3920_v37 = vunpack.c.h.bf16 %v4113_v23 }
 0x138   :  { %3185 = vst.msk [vmem:[%s6125_s3 + $0x320] sm:$0xf] %vm604_vm0, %v3441_v18  ;;  %3186 = vst.msk [vmem:[%s6125_s3 + $0x324] sm:$0xf] %vm604_vm0, %v3442_v19  ;;  %v3923_v38 = vunpack.c.l.bf16 %v4114_v24  ;;  %v3924_v39 = vunpack.c.h.bf16 %v4114_v24  ;;  %v3927_v42 = vunpack.c.l.bf16 %v4115_v30  ;;  %v3928_v43 = vunpack.c.h.bf16 %v4115_v30 }
 0x139   :  { %3187 = vst.msk [vmem:[%s6125_s3 + $0x328] sm:$0xf] %vm604_vm0, %v3443_v26  ;;  %3188 = vst.msk [vmem:[%s6125_s3 + $0x32c] sm:$0xf] %vm604_vm0, %v3444_v27  ;;  %v2098_v40 = vmul.f32 %v5397_v21, %v3915_v34  ;;  %v2099_v41 = vmul.f32 %v5397_v21, %v3916_v35  ;;  %v2100_v44 = vmul.f32 %v5397_v21, %v3919_v36 }
 0x13a   :  { %3189 = vst.msk [vmem:[%s6125_s3 + $0x330] sm:$0xf] %vm604_vm0, %v3445_v28  ;;  %3190 = vst.msk [vmem:[%s6125_s3 + $0x334] sm:$0xf] %vm604_vm0, %v3446_v29  ;;  %v2101_v45 = vmul.f32 %v5397_v21, %v3920_v37  ;;  %v2102_v46 = vmul.f32 %v5397_v21, %v3923_v38  ;;  %v2103_v47 = vmul.f32 %v5397_v21, %v3924_v39 }
 0x13b   :  { %3191 = vst.msk [vmem:[%s6125_s3 + $0x338] sm:$0xf] %vm604_vm0, %v3447_v32  ;;  %3192 = vst.msk [vmem:[%s6125_s3 + $0x33c] sm:$0xf] %vm604_vm0, %v3448_v33  ;;  %v2162_v48 = vadd.f32 %v5408_v31, %v2098_v40  ;;  %v2163_v49 = vadd.f32 %v5408_v31, %v2099_v41  ;;  %v2104_v50 = vmul.f32 %v5397_v21, %v3927_v42 }
 0x13c   :  { %v2105_v51 = vmul.f32 %v5397_v21, %v3928_v43  ;;  %v2164_v52 = vadd.f32 %v5408_v31, %v2100_v44  ;;  %v2165_v53 = vadd.f32 %v5408_v31, %v2101_v45  ;;  %v2166_v54 = vadd.f32 %v5408_v31, %v2102_v46 }
 0x13d   :  { %v2167_v55 = vadd.f32 %v5408_v31, %v2103_v47  ;;  %v2226_v56 = vmax.f32 %v2162_v48, 0.0  ;;  %v2227_v57 = vmax.f32 %v2163_v49, 0.0  ;;  %v2168_v58 = vadd.f32 %v5408_v31, %v2104_v50 }
 0x13e   :  { %v2169_v59 = vadd.f32 %v5408_v31, %v2105_v51  ;;  %v2228_v0 = vmax.f32 %v2164_v52, 0.0  ;;  %v2229_v60 = vmax.f32 %v2165_v53, 0.0  ;;  %v2230_v61 = vmax.f32 %v2166_v54, 0.0 }
 0x13f   :  { %v2231_v62 = vmax.f32 %v2167_v55, 0.0  ;;  %v3449_v1 = vpack.c.bf16 %v2226_v56, %v2226_v56  ;;  %v3450_v16 = vpack.c.bf16 %v2227_v57, %v2227_v57  ;;  %v2232_v7 = vmax.f32 %v2168_v58, 0.0 }
 0x140   :  { %v2233_v2 = vmax.f32 %v2169_v59, 0.0  ;;  %v3451_v5 = vpack.c.bf16 %v2228_v0, %v2228_v0  ;;  %v3452_v25 = vpack.c.bf16 %v2229_v60, %v2229_v60  ;;  %v3453_v6 = vpack.c.bf16 %v2230_v61, %v2230_v61 }
 0x141   :  { %v3454_v8 = vpack.c.bf16 %v2231_v62, %v2231_v62  ;;  %v3455_v10 = vpack.c.bf16 %v2232_v7, %v2232_v7 }
 0x142   :  { %v4116_v63 = vld [vmem:[%s6122_s0 + $0x360] sm:$0xff]   ;;  %v4117_v3 = vld [vmem:[%s6122_s0 + $0x368] sm:$0xff]   ;;  %v4118_v4 = vld [vmem:[%s6122_s0 + $0x370] sm:$0xff]   ;;  %v3456_v11 = vpack.c.bf16 %v2233_v2, %v2233_v2 }
 0x143   :  { %v4119_v9 = vld [vmem:[%s6122_s0 + $0x378] sm:$0xff]   ;;  %v3931_v12 = vunpack.c.l.bf16 %v4116_v63  ;;  %v3932_v13 = vunpack.c.h.bf16 %v4116_v63  ;;  %v3935_v14 = vunpack.c.l.bf16 %v4117_v3  ;;  %v3936_v15 = vunpack.c.h.bf16 %v4117_v3 }
 0x144   :  { %3193 = vst.msk [vmem:[%s6125_s3 + $0x340] sm:$0xf] %vm604_vm0, %v3449_v1  ;;  %3194 = vst.msk [vmem:[%s6125_s3 + $0x344] sm:$0xf] %vm604_vm0, %v3450_v16  ;;  %v3939_v17 = vunpack.c.l.bf16 %v4118_v4  ;;  %v3940_v18 = vunpack.c.h.bf16 %v4118_v4  ;;  %v3943_v22 = vunpack.c.l.bf16 %v4119_v9  ;;  %v3944_v23 = vunpack.c.h.bf16 %v4119_v9 }
 0x145   :  { %3195 = vst.msk [vmem:[%s6125_s3 + $0x348] sm:$0xf] %vm604_vm0, %v3451_v5  ;;  %3196 = vst.msk [vmem:[%s6125_s3 + $0x34c] sm:$0xf] %vm604_vm0, %v3452_v25  ;;  %v2106_v19 = vmul.f32 %v5397_v21, %v3931_v12  ;;  %v2107_v20 = vmul.f32 %v5397_v21, %v3932_v13  ;;  %v2108_v24 = vmul.f32 %v5397_v21, %v3935_v14 }
 0x146   :  { %3197 = vst.msk [vmem:[%s6125_s3 + $0x350] sm:$0xf] %vm604_vm0, %v3453_v6  ;;  %3198 = vst.msk [vmem:[%s6125_s3 + $0x354] sm:$0xf] %vm604_vm0, %v3454_v8  ;;  %v2109_v26 = vmul.f32 %v5397_v21, %v3936_v15  ;;  %v2110_v27 = vmul.f32 %v5397_v21, %v3939_v17  ;;  %v2111_v28 = vmul.f32 %v5397_v21, %v3940_v18 }
 0x147   :  { %3199 = vst.msk [vmem:[%s6125_s3 + $0x358] sm:$0xf] %vm604_vm0, %v3455_v10  ;;  %3200 = vst.msk [vmem:[%s6125_s3 + $0x35c] sm:$0xf] %vm604_vm0, %v3456_v11  ;;  %v2170_v29 = vadd.f32 %v5408_v31, %v2106_v19  ;;  %v2171_v30 = vadd.f32 %v5408_v31, %v2107_v20  ;;  %v2112_v32 = vmul.f32 %v5397_v21, %v3943_v22 }
 0x148   :  { %v2113_v33 = vmul.f32 %v5397_v21, %v3944_v23  ;;  %v2172_v34 = vadd.f32 %v5408_v31, %v2108_v24  ;;  %v2173_v35 = vadd.f32 %v5408_v31, %v2109_v26  ;;  %v2174_v36 = vadd.f32 %v5408_v31, %v2110_v27 }
 0x149   :  { %v2175_v37 = vadd.f32 %v5408_v31, %v2111_v28  ;;  %v2234_v38 = vmax.f32 %v2170_v29, 0.0  ;;  %v2235_v39 = vmax.f32 %v2171_v30, 0.0  ;;  %v2176_v40 = vadd.f32 %v5408_v31, %v2112_v32 }
 0x14a   :  { %v2177_v41 = vadd.f32 %v5408_v31, %v2113_v33  ;;  %v2236_v42 = vmax.f32 %v2172_v34, 0.0  ;;  %v2237_v43 = vmax.f32 %v2173_v35, 0.0  ;;  %v2238_v44 = vmax.f32 %v2174_v36, 0.0 }
 0x14b   :  { %v2239_v45 = vmax.f32 %v2175_v37, 0.0  ;;  %v3457_v47 = vpack.c.bf16 %v2234_v38, %v2234_v38  ;;  %v3458_v48 = vpack.c.bf16 %v2235_v39, %v2235_v39  ;;  %v2240_v49 = vmax.f32 %v2176_v40, 0.0 }
 0x14c   :  { %v2241_v50 = vmax.f32 %v2177_v41, 0.0  ;;  %v3459_v53 = vpack.c.bf16 %v2236_v42, %v2236_v42  ;;  %v3460_v54 = vpack.c.bf16 %v2237_v43, %v2237_v43  ;;  %v3461_v55 = vpack.c.bf16 %v2238_v44, %v2238_v44 }
 0x14d   :  { %v3462_v56 = vpack.c.bf16 %v2239_v45, %v2239_v45  ;;  %v3463_v58 = vpack.c.bf16 %v2240_v49, %v2240_v49 }
 0x14e   :  { %v4120_v46 = vld [vmem:[%s6122_s0 + $0x380] sm:$0xff]   ;;  %v4121_v51 = vld [vmem:[%s6122_s0 + $0x388] sm:$0xff]   ;;  %v4122_v52 = vld [vmem:[%s6122_s0 + $0x390] sm:$0xff]   ;;  %v3464_v59 = vpack.c.bf16 %v2241_v50, %v2241_v50 }
 0x14f   :  { %v4123_v57 = vld [vmem:[%s6122_s0 + $0x398] sm:$0xff]   ;;  %v3947_v0 = vunpack.c.l.bf16 %v4120_v46  ;;  %v3948_v60 = vunpack.c.h.bf16 %v4120_v46  ;;  %v3951_v61 = vunpack.c.l.bf16 %v4121_v51  ;;  %v3952_v62 = vunpack.c.h.bf16 %v4121_v51 }
 0x150   :  { %3201 = vst.msk [vmem:[%s6125_s3 + $0x360] sm:$0xf] %vm604_vm0, %v3457_v47  ;;  %3202 = vst.msk [vmem:[%s6125_s3 + $0x364] sm:$0xf] %vm604_vm0, %v3458_v48  ;;  %v3955_v63 = vunpack.c.l.bf16 %v4122_v52  ;;  %v3956_v1 = vunpack.c.h.bf16 %v4122_v52  ;;  %v3959_v2 = vunpack.c.l.bf16 %v4123_v57  ;;  %v3960_v3 = vunpack.c.h.bf16 %v4123_v57 }
 0x151   :  { %3203 = vst.msk [vmem:[%s6125_s3 + $0x368] sm:$0xf] %vm604_vm0, %v3459_v53  ;;  %3204 = vst.msk [vmem:[%s6125_s3 + $0x36c] sm:$0xf] %vm604_vm0, %v3460_v54  ;;  %v2114_v16 = vmul.f32 %v5397_v21, %v3947_v0  ;;  %v2115_v7 = vmul.f32 %v5397_v21, %v3948_v60  ;;  %v2116_v4 = vmul.f32 %v5397_v21, %v3951_v61 }
 0x152   :  { %3205 = vst.msk [vmem:[%s6125_s3 + $0x370] sm:$0xf] %vm604_vm0, %v3461_v55  ;;  %3206 = vst.msk [vmem:[%s6125_s3 + $0x374] sm:$0xf] %vm604_vm0, %v3462_v56  ;;  %v2117_v5 = vmul.f32 %v5397_v21, %v3952_v62  ;;  %v2118_v25 = vmul.f32 %v5397_v21, %v3955_v63  ;;  %v2119_v6 = vmul.f32 %v5397_v21, %v3956_v1 }
 0x153   :  { %3207 = vst.msk [vmem:[%s6125_s3 + $0x378] sm:$0xf] %vm604_vm0, %v3463_v58  ;;  %3208 = vst.msk [vmem:[%s6125_s3 + $0x37c] sm:$0xf] %vm604_vm0, %v3464_v59  ;;  %v2178_v8 = vadd.f32 %v5408_v31, %v2114_v16  ;;  %v2179_v9 = vadd.f32 %v5408_v31, %v2115_v7  ;;  %v2120_v10 = vmul.f32 %v5397_v21, %v3959_v2 }
 0x154   :  { %v2121_v11 = vmul.f32 %v5397_v21, %v3960_v3  ;;  %v2180_v12 = vadd.f32 %v5408_v31, %v2116_v4  ;;  %v2181_v13 = vadd.f32 %v5408_v31, %v2117_v5  ;;  %v2182_v14 = vadd.f32 %v5408_v31, %v2118_v25 }
 0x155   :  { %v2183_v15 = vadd.f32 %v5408_v31, %v2119_v6  ;;  %v2242_v17 = vmax.f32 %v2178_v8, 0.0  ;;  %v2243_v18 = vmax.f32 %v2179_v9, 0.0  ;;  %v2184_v19 = vadd.f32 %v5408_v31, %v2120_v10 }
 0x156   :  { %v2185_v20 = vadd.f32 %v5408_v31, %v2121_v11  ;;  %v2244_v22 = vmax.f32 %v2180_v12, 0.0  ;;  %v2245_v23 = vmax.f32 %v2181_v13, 0.0  ;;  %v2246_v24 = vmax.f32 %v2182_v14, 0.0 }
 0x157   :  { %v2247_v26 = vmax.f32 %v2183_v15, 0.0  ;;  %v3465_v28 = vpack.c.bf16 %v2242_v17, %v2242_v17  ;;  %v3466_v29 = vpack.c.bf16 %v2243_v18, %v2243_v18  ;;  %v2248_v30 = vmax.f32 %v2184_v19, 0.0 }
 0x158   :  { %v2249_v32 = vmax.f32 %v2185_v20, 0.0  ;;  %v3467_v35 = vpack.c.bf16 %v2244_v22, %v2244_v22  ;;  %v3468_v36 = vpack.c.bf16 %v2245_v23, %v2245_v23  ;;  %v3469_v37 = vpack.c.bf16 %v2246_v24, %v2246_v24 }
 0x159   :  { %v3470_v38 = vpack.c.bf16 %v2247_v26, %v2247_v26  ;;  %v3471_v40 = vpack.c.bf16 %v2248_v30, %v2248_v30 }
 0x15a   :  { %v4124_v27 = vld [vmem:[%s6122_s0 + $0x3a0] sm:$0xff]   ;;  %v4125_v33 = vld [vmem:[%s6122_s0 + $0x3a8] sm:$0xff]   ;;  %v4126_v34 = vld [vmem:[%s6122_s0 + $0x3b0] sm:$0xff]   ;;  %v3472_v41 = vpack.c.bf16 %v2249_v32, %v2249_v32 }
 0x15b   :  { %v4127_v39 = vld [vmem:[%s6122_s0 + $0x3b8] sm:$0xff]   ;;  %v3963_v42 = vunpack.c.l.bf16 %v4124_v27  ;;  %v3964_v43 = vunpack.c.h.bf16 %v4124_v27  ;;  %v3967_v44 = vunpack.c.l.bf16 %v4125_v33  ;;  %v3968_v45 = vunpack.c.h.bf16 %v4125_v33  ;;  %v6007_v27 = vld [vmem:[%s6123_s1] ss:$0 sm:$0xff] }
 0x15c   :  { %3209 = vst.msk [vmem:[%s6125_s3 + $0x380] sm:$0xf] %vm604_vm0, %v3465_v28  ;;  %3210 = vst.msk [vmem:[%s6125_s3 + $0x384] sm:$0xf] %vm604_vm0, %v3466_v29  ;;  %v3971_v46 = vunpack.c.l.bf16 %v4126_v34  ;;  %v3972_v47 = vunpack.c.h.bf16 %v4126_v34  ;;  %v3975_v50 = vunpack.c.l.bf16 %v4127_v39  ;;  %v3976_v51 = vunpack.c.h.bf16 %v4127_v39 }
 0x15d   :  { %3211 = vst.msk [vmem:[%s6125_s3 + $0x388] sm:$0xf] %vm604_vm0, %v3467_v35  ;;  %3212 = vst.msk [vmem:[%s6125_s3 + $0x38c] sm:$0xf] %vm604_vm0, %v3468_v36  ;;  %v2122_v48 = vmul.f32 %v5397_v21, %v3963_v42  ;;  %v2123_v49 = vmul.f32 %v5397_v21, %v3964_v43  ;;  %v2124_v52 = vmul.f32 %v5397_v21, %v3967_v44 }
 0x15e   :  { %3213 = vst.msk [vmem:[%s6125_s3 + $0x390] sm:$0xf] %vm604_vm0, %v3469_v37  ;;  %3214 = vst.msk [vmem:[%s6125_s3 + $0x394] sm:$0xf] %vm604_vm0, %v3470_v38  ;;  %v2125_v53 = vmul.f32 %v5397_v21, %v3968_v45  ;;  %v2126_v54 = vmul.f32 %v5397_v21, %v3971_v46  ;;  %v2127_v55 = vmul.f32 %v5397_v21, %v3972_v47  ;;  %v6018_v37 = vld [vmem:[%s6124_s2] ss:$0 sm:$0xff] }
 0x15f   :  { %3215 = vst.msk [vmem:[%s6125_s3 + $0x398] sm:$0xf] %vm604_vm0, %v3471_v40  ;;  %3216 = vst.msk [vmem:[%s6125_s3 + $0x39c] sm:$0xf] %vm604_vm0, %v3472_v41  ;;  %v2186_v56 = vadd.f32 %v5408_v31, %v2122_v48  ;;  %v2187_v57 = vadd.f32 %v5408_v31, %v2123_v49  ;;  %v2128_v58 = vmul.f32 %v5397_v21, %v3975_v50 }
 0x160   :  { %v2129_v59 = vmul.f32 %v5397_v21, %v3976_v51  ;;  %v2188_v0 = vadd.f32 %v5408_v31, %v2124_v52  ;;  %v2189_v60 = vadd.f32 %v5408_v31, %v2125_v53  ;;  %v2190_v61 = vadd.f32 %v5408_v31, %v2126_v54 }
 0x161   :  { %v2191_v62 = vadd.f32 %v5408_v31, %v2127_v55  ;;  %v2250_v63 = vmax.f32 %v2186_v56, 0.0  ;;  %v2251_v1 = vmax.f32 %v2187_v57, 0.0  ;;  %v2192_v16 = vadd.f32 %v5408_v31, %v2128_v58 }
 0x162   :  { %v2193_v7 = vadd.f32 %v5408_v31, %v2129_v59  ;;  %v2252_v2 = vmax.f32 %v2188_v0, 0.0  ;;  %v2253_v3 = vmax.f32 %v2189_v60, 0.0  ;;  %v2254_v4 = vmax.f32 %v2190_v61, 0.0 }
 0x163   :  { %v2255_v5 = vmax.f32 %v2191_v62, 0.0  ;;  %v3473_v25 = vpack.c.bf16 %v2250_v63, %v2250_v63  ;;  %v3474_v6 = vpack.c.bf16 %v2251_v1, %v2251_v1  ;;  %v2256_v8 = vmax.f32 %v2192_v16, 0.0 }
 0x164   :  { %v2257_v9 = vmax.f32 %v2193_v7, 0.0  ;;  %v3475_v11 = vpack.c.bf16 %v2252_v2, %v2252_v2  ;;  %v3476_v12 = vpack.c.bf16 %v2253_v3, %v2253_v3  ;;  %v3477_v13 = vpack.c.bf16 %v2254_v4, %v2254_v4 }
 0x165   :  { %v3478_v14 = vpack.c.bf16 %v2255_v5, %v2255_v5  ;;  %v3479_v17 = vpack.c.bf16 %v2256_v8, %v2256_v8 }
 0x166   :  { %v4128_v21 = vld [vmem:[%s6122_s0 + $0x3c0] sm:$0xff]   ;;  %v4129_v10 = vld [vmem:[%s6122_s0 + $0x3c8] sm:$0xff]   ;;  %v4130_v31 = vld [vmem:[%s6122_s0 + $0x3d0] sm:$0xff]   ;;  %v3480_v18 = vpack.c.bf16 %v2257_v9, %v2257_v9 }
 0x167   :  { %v4131_v15 = vld [vmem:[%s6122_s0 + $0x3d8] sm:$0xff]   ;;  %v3979_v19 = vunpack.c.l.bf16 %v4128_v21  ;;  %v3980_v20 = vunpack.c.h.bf16 %v4128_v21  ;;  %v3983_v22 = vunpack.c.l.bf16 %v4129_v10  ;;  %v3984_v23 = vunpack.c.h.bf16 %v4129_v10 }
 0x168   :  { %3217 = vst.msk [vmem:[%s6125_s3 + $0x3a0] sm:$0xf] %vm604_vm0, %v3473_v25  ;;  %3218 = vst.msk [vmem:[%s6125_s3 + $0x3a4] sm:$0xf] %vm604_vm0, %v3474_v6  ;;  %v3987_v24 = vunpack.c.l.bf16 %v4130_v31  ;;  %v3988_v26 = vunpack.c.h.bf16 %v4130_v31  ;;  %v3991_v30 = vunpack.c.l.bf16 %v4131_v15  ;;  %v3992_v32 = vunpack.c.h.bf16 %v4131_v15 }
 0x169   :  { %3219 = vst.msk [vmem:[%s6125_s3 + $0x3a8] sm:$0xf] %vm604_vm0, %v3475_v11  ;;  %3220 = vst.msk [vmem:[%s6125_s3 + $0x3ac] sm:$0xf] %vm604_vm0, %v3476_v12  ;;  %v2130_v28 = vmul.f32 %v6007_v27, %v3979_v19  ;;  %v2131_v29 = vmul.f32 %v6007_v27, %v3980_v20  ;;  %v2132_v33 = vmul.f32 %v6007_v27, %v3983_v22 }
 0x16a   :  { %3221 = vst.msk [vmem:[%s6125_s3 + $0x3b0] sm:$0xf] %vm604_vm0, %v3477_v13  ;;  %3222 = vst.msk [vmem:[%s6125_s3 + $0x3b4] sm:$0xf] %vm604_vm0, %v3478_v14  ;;  %v2133_v34 = vmul.f32 %v6007_v27, %v3984_v23  ;;  %v2134_v35 = vmul.f32 %v6007_v27, %v3987_v24  ;;  %v2135_v36 = vmul.f32 %v6007_v27, %v3988_v26 }
 0x16b   :  { %3223 = vst.msk [vmem:[%s6125_s3 + $0x3b8] sm:$0xf] %vm604_vm0, %v3479_v17  ;;  %3224 = vst.msk [vmem:[%s6125_s3 + $0x3bc] sm:$0xf] %vm604_vm0, %v3480_v18  ;;  %v2194_v38 = vadd.f32 %v6018_v37, %v2130_v28  ;;  %v2195_v39 = vadd.f32 %v6018_v37, %v2131_v29  ;;  %v2136_v40 = vmul.f32 %v6007_v27, %v3991_v30 }
 0x16c   :  { %v2137_v41 = vmul.f32 %v6007_v27, %v3992_v32  ;;  %v2196_v42 = vadd.f32 %v6018_v37, %v2132_v33  ;;  %v2197_v43 = vadd.f32 %v6018_v37, %v2133_v34  ;;  %v2198_v44 = vadd.f32 %v6018_v37, %v2134_v35 }
 0x16d   :  { %v2199_v45 = vadd.f32 %v6018_v37, %v2135_v36  ;;  %v2258_v46 = vmax.f32 %v2194_v38, 0.0  ;;  %v2259_v47 = vmax.f32 %v2195_v39, 0.0  ;;  %v2200_v48 = vadd.f32 %v6018_v37, %v2136_v40 }
 0x16e   :  { %v2201_v49 = vadd.f32 %v6018_v37, %v2137_v41  ;;  %v2260_v50 = vmax.f32 %v2196_v42, 0.0  ;;  %v2261_v51 = vmax.f32 %v2197_v43, 0.0  ;;  %v2262_v52 = vmax.f32 %v2198_v44, 0.0 }
 0x16f   :  { %v2263_v53 = vmax.f32 %v2199_v45, 0.0  ;;  %v3481_v55 = vpack.c.bf16 %v2258_v46, %v2258_v46  ;;  %v3482_v56 = vpack.c.bf16 %v2259_v47, %v2259_v47  ;;  %v2264_v57 = vmax.f32 %v2200_v48, 0.0 }
 0x170   :  { %v2265_v58 = vmax.f32 %v2201_v49, 0.0  ;;  %v3483_v60 = vpack.c.bf16 %v2260_v50, %v2260_v50  ;;  %v3484_v61 = vpack.c.bf16 %v2261_v51, %v2261_v51  ;;  %v3485_v62 = vpack.c.bf16 %v2262_v52, %v2262_v52 }
 0x171   :  { %v3486_v63 = vpack.c.bf16 %v2263_v53, %v2263_v53  ;;  %v3487_v16 = vpack.c.bf16 %v2264_v57, %v2264_v57 }
 0x172   :  { %v4132_v54 = vld [vmem:[%s6122_s0 + $0x3e0] sm:$0xff]   ;;  %v4133_v59 = vld [vmem:[%s6122_s0 + $0x3e8] sm:$0xff]   ;;  %v4134_v0 = vld [vmem:[%s6122_s0 + $0x3f0] sm:$0xff]   ;;  %v3488_v7 = vpack.c.bf16 %v2265_v58, %v2265_v58 }
 0x173   :  { %v4135_v1 = vld [vmem:[%s6122_s0 + $0x3f8] sm:$0xff]   ;;  %v3995_v2 = vunpack.c.l.bf16 %v4132_v54  ;;  %v3996_v3 = vunpack.c.h.bf16 %v4132_v54  ;;  %v3999_v4 = vunpack.c.l.bf16 %v4133_v59  ;;  %v4000_v5 = vunpack.c.h.bf16 %v4133_v59 }
 0x174   :  { %3225 = vst.msk [vmem:[%s6125_s3 + $0x3c0] sm:$0xf] %vm604_vm0, %v3481_v55  ;;  %3226 = vst.msk [vmem:[%s6125_s3 + $0x3c4] sm:$0xf] %vm604_vm0, %v3482_v56  ;;  %v4003_v21 = vunpack.c.l.bf16 %v4134_v0  ;;  %v4004_v25 = vunpack.c.h.bf16 %v4134_v0  ;;  %v4007_v9 = vunpack.c.l.bf16 %v4135_v1  ;;  %v4008_v10 = vunpack.c.h.bf16 %v4135_v1 }
 0x175   :  { %3227 = vst.msk [vmem:[%s6125_s3 + $0x3c8] sm:$0xf] %vm604_vm0, %v3483_v60  ;;  %3228 = vst.msk [vmem:[%s6125_s3 + $0x3cc] sm:$0xf] %vm604_vm0, %v3484_v61  ;;  %v2138_v6 = vmul.f32 %v6007_v27, %v3995_v2  ;;  %v2139_v8 = vmul.f32 %v6007_v27, %v3996_v3  ;;  %v2140_v31 = vmul.f32 %v6007_v27, %v3999_v4 }
 0x176   :  { %3229 = vst.msk [vmem:[%s6125_s3 + $0x3d0] sm:$0xf] %vm604_vm0, %v3485_v62  ;;  %3230 = vst.msk [vmem:[%s6125_s3 + $0x3d4] sm:$0xf] %vm604_vm0, %v3486_v63  ;;  %v2141_v11 = vmul.f32 %v6007_v27, %v4000_v5  ;;  %v2142_v12 = vmul.f32 %v6007_v27, %v4003_v21  ;;  %v2143_v13 = vmul.f32 %v6007_v27, %v4004_v25 }
 0x177   :  { %3231 = vst.msk [vmem:[%s6125_s3 + $0x3d8] sm:$0xf] %vm604_vm0, %v3487_v16  ;;  %3232 = vst.msk [vmem:[%s6125_s3 + $0x3dc] sm:$0xf] %vm604_vm0, %v3488_v7  ;;  %v2202_v14 = vadd.f32 %v6018_v37, %v2138_v6  ;;  %v2203_v15 = vadd.f32 %v6018_v37, %v2139_v8  ;;  %v2144_v17 = vmul.f32 %v6007_v27, %v4007_v9 }
 0x178   :  { %v2145_v18 = vmul.f32 %v6007_v27, %v4008_v10  ;;  %v2204_v19 = vadd.f32 %v6018_v37, %v2140_v31  ;;  %v2205_v20 = vadd.f32 %v6018_v37, %v2141_v11  ;;  %v2206_v22 = vadd.f32 %v6018_v37, %v2142_v12 }
 0x179   :  { %v2207_v23 = vadd.f32 %v6018_v37, %v2143_v13  ;;  %v2266_v24 = vmax.f32 %v2202_v14, 0.0  ;;  %v2267_v26 = vmax.f32 %v2203_v15, 0.0  ;;  %v2208_v28 = vadd.f32 %v6018_v37, %v2144_v17 }
 0x17a   :  { %v2209_v29 = vadd.f32 %v6018_v37, %v2145_v18  ;;  %v2268_v30 = vmax.f32 %v2204_v19, 0.0  ;;  %v2269_v32 = vmax.f32 %v2205_v20, 0.0  ;;  %v2270_v33 = vmax.f32 %v2206_v22, 0.0 }
 0x17b   :  { %v2271_v34 = vmax.f32 %v2207_v23, 0.0  ;;  %v3489_v35 = vpack.c.bf16 %v2266_v24, %v2266_v24  ;;  %v3490_v27 = vpack.c.bf16 %v2267_v26, %v2267_v26  ;;  %v2272_v36 = vmax.f32 %v2208_v28, 0.0 }
 0x17c   :  { %v2273_v38 = vmax.f32 %v2209_v29, 0.0  ;;  %v3491_v39 = vpack.c.bf16 %v2268_v30, %v2268_v30  ;;  %v3492_v40 = vpack.c.bf16 %v2269_v32, %v2269_v32  ;;  %v3493_v41 = vpack.c.bf16 %v2270_v33, %v2270_v33 }
 0x17d   :  { %v3494_v42 = vpack.c.bf16 %v2271_v34, %v2271_v34  ;;  %3233 = vst.msk [vmem:[%s6125_s3 + $0x3e0] sm:$0xf] %vm604_vm0, %v3489_v35  ;;  %3234 = vst.msk [vmem:[%s6125_s3 + $0x3e4] sm:$0xf] %vm604_vm0, %v3490_v27  ;;  %v3495_v37 = vpack.c.bf16 %v2272_v36, %v2272_v36 }
 0x17e   :  { %v3496_v43 = vpack.c.bf16 %v2273_v38, %v2273_v38  ;;  %3235 = vst.msk [vmem:[%s6125_s3 + $0x3e8] sm:$0xf] %vm604_vm0, %v3491_v39  ;;  %3236 = vst.msk [vmem:[%s6125_s3 + $0x3ec] sm:$0xf] %vm604_vm0, %v3492_v40 }
 0x17f   :  { %3237 = vst.msk [vmem:[%s6125_s3 + $0x3f0] sm:$0xf] %vm604_vm0, %v3493_v41  ;;  %3238 = vst.msk [vmem:[%s6125_s3 + $0x3f4] sm:$0xf] %vm604_vm0, %v3494_v42 }
 0x180   :  { %3239 = vst.msk [vmem:[%s6125_s3 + $0x3f8] sm:$0xf] %vm604_vm0, %v3495_v37  ;;  %3240 = vst.msk [vmem:[%s6125_s3 + $0x3fc] sm:$0xf] %vm604_vm0, %v3496_v43 }

// kernel: conv_transpose2d_block.2
= control target key start
LH: loop header
LB: loop body
LE: loop exit
PB: predicated region body
PF: predicated region fallthrough
CT: control target
= control target key end

     0   :  { %s8997_s16 = smov 116   ;;  %s8998_s19 = smov 112   ;;  %vm402_vm0 = vcmask 1043456   ;;  %vm305_vm1 = vcmask 64512   ;;  %vm1339_vm2 = vcmask 60416   ;;  %vm6678_vm3 = vcmask 130048   ;;  %s13117_s0 = inlined_call_operand.vmem [shape: bf16[512,36], index: 0, kind: input, shape index: {}]   ;;  %s13118_s1 = inlined_call_operand.vmem [shape: bf16[4,2,8,8], index: 1, kind: input, shape index: {}]   ;;  %s13119_s2 = inlined_call_operand.vmem [shape: bf16[4,512,8], index: 2, kind: output, shape index: {0}]   ;;  %s13120_s3 = inlined_call_operand.vmem [shape: f32[1,8,16], index: 3, kind: output, shape index: {1}]  }
   0x1   :  { %v8845_v0 = vld [vmem:[%s13117_s0] sm:$0xff]   ;;  %v8847_v2 = vld [vmem:[%s13117_s0 + $0x8] sm:$0xff]   ;;  %v8849_v4 = vld [vmem:[%s13117_s0 + $0x10] sm:$0xff]   ;;  %s8999_s29 = smov 124   ;;  %s9000_s7 = smov 104  }
   0x2   :  { %v9029_v1 = vld [vmem:[%s13117_s0] sm:$0xff]   ;;  %241 = vrot.lane.b32.xlu0 %v8845_v0, %s8997_s16  ;;  %v9040_v3 = vld [vmem:[%s13117_s0 + $0x8] sm:$0xff]   ;;  %v8850_v5 = vld [vmem:[%s13117_s0 + $0x18] sm:$0xff]   ;;  %s9001_s12 = smov 100  }
   0x3   :  { %1696 = vrot.lane.b32.xlu1 %v9029_v1, %s8998_s19  ;;  %v9055_v6 = vld [vmem:[%s13117_s0 + $0x10] sm:$0xff]   ;;  %v9061_v7 = vld [vmem:[%s13117_s0 + $0x18] sm:$0xff]   ;;  %v8853_v8 = vld [vmem:[%s13117_s0 + $0x20] sm:$0xff]  }
   0x4   :  { %v8854_v9 = vld [vmem:[%s13117_s0 + $0x28] sm:$0xff]   ;;  %v9077_v10 = vld [vmem:[%s13117_s0 + $0x20] sm:$0xff]   ;;  %v8857_v12 = vld [vmem:[%s13117_s0 + $0x30] sm:$0xff]  }
   0x5   :  { %v9083_v11 = vld [vmem:[%s13117_s0 + $0x28] sm:$0xff]   ;;  %v8858_v13 = vld [vmem:[%s13117_s0 + $0x38] sm:$0xff]   ;;  %v9099_v14 = vld [vmem:[%s13117_s0 + $0x30] sm:$0xff]  }
   0x6   :  { %243 = vrot.lane.b32.xlu0 %v8847_v2, %s8997_s16  ;;  %v9105_v15 = vld [vmem:[%s13117_s0 + $0x38] sm:$0xff]   ;;  %v8861_v16 = vld [vmem:[%s13117_s0 + $0x40] sm:$0xff]   ;;  %v8862_v17 = vld [vmem:[%s13117_s0 + $0x48] sm:$0xff]  }
   0x7   :  { %1698 = vrot.lane.b32.xlu1 %v9040_v3, %s8998_s19  ;;  %v9121_v18 = vld [vmem:[%s13117_s0 + $0x40] sm:$0xff]   ;;  %v9127_v19 = vld [vmem:[%s13117_s0 + $0x48] sm:$0xff]   ;;  %v8865_v20 = vld [vmem:[%s13117_s0 + $0x50] sm:$0xff]  }
   0x8   :  { %v8866_v21 = vld [vmem:[%s13117_s0 + $0x58] sm:$0xff]   ;;  %v9143_v22 = vld [vmem:[%s13117_s0 + $0x50] sm:$0xff]   ;;  %v8869_v24 = vld [vmem:[%s13117_s0 + $0x60] sm:$0xff]  }
   0x9   :  { %v9149_v23 = vld [vmem:[%s13117_s0 + $0x58] sm:$0xff]   ;;  %v8870_v25 = vld [vmem:[%s13117_s0 + $0x68] sm:$0xff]   ;;  %v9165_v26 = vld [vmem:[%s13117_s0 + $0x60] sm:$0xff]  }
   0xa   :  { %245 = vrot.lane.b32.xlu0 %v8849_v4, %s8997_s16  ;;  %v9171_v27 = vld [vmem:[%s13117_s0 + $0x68] sm:$0xff]   ;;  %v8873_v28 = vld [vmem:[%s13117_s0 + $0x70] sm:$0xff]   ;;  %v8874_v29 = vld [vmem:[%s13117_s0 + $0x78] sm:$0xff]  }
   0xb   :  { %247 = vrot.lane.b32.xlu1 %v8850_v5, %s8997_s16  ;;  %v9186_v30 = vld [vmem:[%s13117_s0 + $0x70] sm:$0xff]   ;;  %v6688_v31 = vld [vmem:[%s13118_s1 + $0x4] sm:$0xf]  ;;  %v6850_v32 = vld [vmem:[%s13118_s1 + $0xc] sm:$0xf] }
   0xc   :  { %v9199_v33 = vld [vmem:[%s13117_s0 + $0x78] sm:$0xff]   ;;  %8831 = vmatprep.subr.msk.bf16.mxu0 %vm402_vm0, %v6688_v31  ;;  %v404_v34 = vsel %vm402_vm0, %v6688_v31, 0  ;;  %v1857_v35 = vsel %vm402_vm0, %v6850_v32, 0  ;;  %8833 = vmatprep.subr.msk.bf16.mxu1 %vm402_vm0, %v6850_v32  ;;  %v9208_v36 = vld [vmem:[%s13118_s1] sm:$0xf]  ;;  %v8878_v39 = vld [vmem:[%s13117_s0 + $0x88] sm:$0xff]  }
   0xd   :  { %8048 = vmatpush3.bf16.msra.mxu0 %v404_v34  ;;  %v8877_v37 = vld [vmem:[%s13117_s0 + $0x80] sm:$0xff]   ;;  %8180 = vmatpush3.bf16.msra.mxu1 %v1857_v35  ;;  %v9218_v38 = vld [vmem:[%s13118_s1 + $0x8] sm:$0xf]  ;;  %v8881_v42 = vld [vmem:[%s13117_s0 + $0x90] sm:$0xff]  }
   0xe   :  { %1700 = vrot.lane.b32.xlu0 %v9055_v6, %s8998_s19  ;;  %8832 = vmatprep.subr.msk.bf16.mxu0 %vm402_vm0, %v9208_v36  ;;  %v9232_v40 = vld [vmem:[%s13117_s0 + $0x80] sm:$0xff]   ;;  %v9237_v41 = vld [vmem:[%s13117_s0 + $0x88] sm:$0xff]   ;;  %v8882_v43 = vld [vmem:[%s13117_s0 + $0x98] sm:$0xff]  }
   0xf   :  { %1702 = vrot.lane.b32.xlu1 %v9061_v7, %s8998_s19  ;;  %8834 = vmatprep.subr.msk.bf16.mxu1 %vm402_vm0, %v9218_v38  ;;  %v9254_v44 = vld [vmem:[%s13117_s0 + $0x90] sm:$0xff]   ;;  %v9259_v45 = vld [vmem:[%s13117_s0 + $0x98] sm:$0xff]   ;;  %v8885_v46 = vld [vmem:[%s13117_s0 + $0xa0] sm:$0xff]  }
  0x10   :  { %v8886_v47 = vld [vmem:[%s13117_s0 + $0xa8] sm:$0xff]   ;;  %v9276_v48 = vld [vmem:[%s13117_s0 + $0xa0] sm:$0xff]   ;;  %v8889_v50 = vld [vmem:[%s13117_s0 + $0xb0] sm:$0xff]  }
  0x11   :  { %v9281_v49 = vld [vmem:[%s13117_s0 + $0xa8] sm:$0xff]   ;;  %v8890_v51 = vld [vmem:[%s13117_s0 + $0xb8] sm:$0xff]   ;;  %v9298_v52 = vld [vmem:[%s13117_s0 + $0xb0] sm:$0xff]  }
  0x12   :  { %249 = vrot.lane.b32.xlu0 %v8853_v8, %s8997_s16  ;;  %v9303_v53 = vld [vmem:[%s13117_s0 + $0xb8] sm:$0xff]   ;;  %v9310_v54 = vld [vmem:[%s13117_s0 + $0xc0] sm:$0xff]   ;;  %v9315_v55 = vld [vmem:[%s13117_s0 + $0xc8] sm:$0xff]   ;;  %v792_v8 = vsel %vm402_vm0, %v9208_v36, 0 }
  0x13   :  { %251 = vrot.lane.b32.xlu1 %v8854_v9, %s8997_s16  ;;  %v9324_v56 = vld [vmem:[%s13117_s0 + $0xc0] sm:$0xff]   ;;  %v9329_v57 = vld [vmem:[%s13117_s0 + $0xc8] sm:$0xff]   ;;  %v9338_v58 = vld [vmem:[%s13117_s0 + $0xd0] sm:$0xff]  }
  0x14   :  { %v9343_v59 = vld [vmem:[%s13117_s0 + $0xd8] sm:$0xff]   ;;  %v9352_v60 = vld [vmem:[%s13117_s0 + $0xd0] sm:$0xff]   ;;  %v9368_v62 = vld [vmem:[%s13117_s0 + $0xe0] sm:$0xff]  }
  0x15   :  { %v9357_v61 = vld [vmem:[%s13117_s0 + $0xd8] sm:$0xff]   ;;  %v9375_v63 = vld [vmem:[%s13117_s0 + $0xe8] sm:$0xff]   ;;  %v9382_v0 = vld [vmem:[%s13117_s0 + $0xe0] sm:$0xff]  }
  0x16   :  { %1704 = vrot.lane.b32.xlu0 %v9077_v10, %s8998_s19  ;;  %v9389_v2 = vld [vmem:[%s13117_s0 + $0xe8] sm:$0xff]   ;;  %v9402_v9 = vld [vmem:[%s13117_s0 + $0xf0] sm:$0xff]  }
  0x17   :  { %1706 = vrot.lane.b32.xlu1 %v9083_v11, %s8998_s19 }
  0x1a   :  { %253 = vrot.lane.b32.xlu0 %v8857_v12, %s8997_s16 }
  0x1b   :  { %255 = vrot.lane.b32.xlu1 %v8858_v13, %s8997_s16  ;;  %v2309_v13 = vsel %vm402_vm0, %v9218_v38, 0 }
  0x1e   :  { %1708 = vrot.lane.b32.xlu0 %v9099_v14, %s8998_s19 }
  0x1f   :  { %1710 = vrot.lane.b32.xlu1 %v9105_v15, %s8998_s19 }
  0x22   :  { %257 = vrot.lane.b32.xlu0 %v8861_v16, %s8997_s16  ;;  %v9409_v16 = vld [vmem:[%s13117_s0 + $0xf8] sm:$0xff]  }
  0x23   :  { %259 = vrot.lane.b32.xlu1 %v8862_v17, %s8997_s16 }
  0x26   :  { %1712 = vrot.lane.b32.xlu0 %v9121_v18, %s8998_s19 }
  0x27   :  { %1714 = vrot.lane.b32.xlu1 %v9127_v19, %s8998_s19 }
  0x2a   :  { %261 = vrot.lane.b32.xlu0 %v8865_v20, %s8997_s16  ;;  %v9415_v20 = vld [vmem:[%s13118_s1 + $0x14] sm:$0xf] }
  0x2b   :  { %263 = vrot.lane.b32.xlu1 %v8866_v21, %s8997_s16  ;;  %v9423_v21 = vld [vmem:[%s13117_s0 + $0xf0] sm:$0xff]  }
  0x2e   :  { %1716 = vrot.lane.b32.xlu0 %v9143_v22, %s8998_s19 }
  0x2f   :  { %1718 = vrot.lane.b32.xlu1 %v9149_v23, %s8998_s19 }
  0x32   :  { %265 = vrot.lane.b32.xlu0 %v8869_v24, %s8997_s16  ;;  %v9428_v24 = vld [vmem:[%s13118_s1 + $0x1c] sm:$0xf] }
  0x33   :  { %267 = vrot.lane.b32.xlu1 %v8870_v25, %s8997_s16 }
  0x36   :  { %1720 = vrot.lane.b32.xlu0 %v9165_v26, %s8998_s19 }
  0x37   :  { %1722 = vrot.lane.b32.xlu1 %v9171_v27, %s8998_s19 }
  0x3a   :  { %269 = vrot.lane.b32.xlu0 %v8873_v28, %s8997_s16  ;;  %v9435_v28 = vld [vmem:[%s13117_s0 + $0xf8] sm:$0xff]  }
  0x3b   :  { %271 = vrot.lane.b32.xlu1 %v8874_v29, %s8997_s16 }
  0x3e   :  { %1724 = vrot.lane.b32.xlu0 %v9186_v30, %s8998_s19 }
  0x3f   :  { %1726 = vrot.lane.b32.xlu1 %v9199_v33, %s8998_s19 }
  0x42   :  { %273 = vrot.lane.b32.xlu0 %v8877_v37, %s8997_s16 }
  0x43   :  { %275 = vrot.lane.b32.xlu1 %v8878_v39, %s8997_s16 }
  0x46   :  { %1728 = vrot.lane.b32.xlu0 %v9232_v40, %s8998_s19 }
  0x47   :  { %1730 = vrot.lane.b32.xlu1 %v9237_v41, %s8998_s19 }
  0x4a   :  { %277 = vrot.lane.b32.xlu0 %v8881_v42, %s8997_s16 }
  0x4b   :  { %279 = vrot.lane.b32.xlu1 %v8882_v43, %s8997_s16 }
  0x4e   :  { %1732 = vrot.lane.b32.xlu0 %v9254_v44, %s8998_s19 }
  0x4f   :  { %1734 = vrot.lane.b32.xlu1 %v9259_v45, %s8998_s19 }
  0x52   :  { %281 = vrot.lane.b32.xlu0 %v8885_v46, %s8997_s16 }
  0x53   :  { %283 = vrot.lane.b32.xlu1 %v8886_v47, %s8997_s16 }
  0x56   :  { %1736 = vrot.lane.b32.xlu0 %v9276_v48, %s8998_s19 }
  0x57   :  { %1738 = vrot.lane.b32.xlu1 %v9281_v49, %s8998_s19 }
  0x5a   :  { %285 = vrot.lane.b32.xlu0 %v8889_v50, %s8997_s16  ;;  %v9550_v50 = vld [vmem:[%s13117_s0 + $0x8] sm:$0xff]  }
  0x5b   :  { %287 = vrot.lane.b32.xlu1 %v8890_v51, %s8997_s16 }
  0x5e   :  { %1740 = vrot.lane.b32.xlu0 %v9298_v52, %s8998_s19 }
  0x5f   :  { %1742 = vrot.lane.b32.xlu1 %v9303_v53, %s8998_s19 }
  0x62   :  { %289 = vrot.lane.b32.xlu0 %v9310_v54, %s8997_s16 }
  0x63   :  { %291 = vrot.lane.b32.xlu1 %v9315_v55, %s8997_s16 }
  0x66   :  { %1744 = vrot.lane.b32.xlu0 %v9324_v56, %s8998_s19 }
  0x67   :  { %1746 = vrot.lane.b32.xlu1 %v9329_v57, %s8998_s19 }
  0x6a   :  { %293 = vrot.lane.b32.xlu0 %v9338_v58, %s8997_s16 }
  0x6b   :  { %295 = vrot.lane.b32.xlu1 %v9343_v59, %s8997_s16 }
  0x6e   :  { %1748 = vrot.lane.b32.xlu0 %v9352_v60, %s8998_s19 }
  0x6f   :  { %1750 = vrot.lane.b32.xlu1 %v9357_v61, %s8998_s19 }
  0x72   :  { %297 = vrot.lane.b32.xlu0 %v9368_v62, %s8997_s16 }
  0x73   :  { %299 = vrot.lane.b32.xlu1 %v9375_v63, %s8997_s16 }
  0x74   :  { %v242_v4 = vpop.permute.xlu0 %241 }
  0x75   :  { %v1697_v5 = vpop.permute.xlu1 %1696  ;;  %8049 = vmatprep.mubr.msk.bf16.mxu0 %vm305_vm1, %v242_v4  ;;  %v9592_v4 = vld [vmem:[%s13117_s0 + $0x10] sm:$0xff]  }
  0x76   :  { %1752 = vrot.lane.b32.xlu0 %v9382_v0, %s8998_s19  ;;  %8181 = vmatprep.mubr.msk.bf16.mxu1 %vm305_vm1, %v1697_v5 }
  0x77   :  { %1754 = vrot.lane.b32.xlu1 %v9389_v2, %s8998_s19 }
  0x78   :  { %v244_v12 = vpop.permute.xlu0 %243 }
  0x79   :  { %v1699_v17 = vpop.permute.xlu1 %1698  ;;  %8050 = vmatmul.mubr.msk.bf16.vlgmr.msra.gmra.mrb[0].mxu0 %vm305_vm1, %v244_v12 }
  0x7a   :  { %8114 = vmatpush3.bf16.msra.mxu0 %v792_v8  ;;  %8182 = vmatmul.mubr.msk.bf16.vlgmr.msra.gmra.mrb[0].mxu1 %vm305_vm1, %v1699_v17  ;;  %v9599_v8 = vld [vmem:[%s13117_s0 + $0x18] sm:$0xff]  }
  0x7b   :  { %301 = vrot.lane.b32.xlu0 %v9402_v9, %s8997_s16  ;;  %8246 = vmatpush3.bf16.msra.mxu1 %v2309_v13  ;;  %v9607_v13 = vld [vmem:[%s13117_s0 + $0x20] sm:$0xff]  }
  0x7c   :  { %303 = vrot.lane.b32.xlu1 %v9409_v16, %s8997_s16  ;;  %v246_v25 = vpop.permute.xlu0 %245  ;;  %8835 = vmatprep.subr.msk.bf16.mxu0 %vm402_vm0, %v9415_v20 }
  0x7d   :  { %v248_v29 = vpop.permute.xlu1 %247  ;;  %8053 = vmatprep.mubr.msk.bf16.mxu0 %vm305_vm1, %v246_v25  ;;  %8837 = vmatprep.subr.msk.bf16.mxu1 %vm402_vm0, %v9428_v24 }
  0x7f   :  { %1756 = vrot.lane.b32.xlu0 %v9423_v21, %s8998_s19 }
  0x80   :  { %1758 = vrot.lane.b32.xlu1 %v9435_v28, %s8998_s19  ;;  %v1701_v31 = vpop.permute.xlu0 %1700 }
  0x81   :  { %v1703_v32 = vpop.permute.xlu1 %1702  ;;  %8054 = vmatmul.mubr.msk.bf16.gmra.mrb[4].mxu0 %vm305_vm1, %v248_v29  ;;  %8185 = vmatprep.mubr.msk.bf16.mxu1 %vm305_vm1, %v1701_v31  ;;  %v9631_v31 = vld [vmem:[%s13117_s0 + $0x28] sm:$0xff]  }
  0x82   :  { %8186 = vmatmul.mubr.msk.bf16.gmra.mrb[4].mxu1 %vm305_vm1, %v1703_v32 }
  0x83   :  { %2148 = vrot.lane.b32.xlu0 %v9029_v1, %s8999_s29 }
  0x84   :  { %v250_v34 = vpop.permute.xlu0 %249  ;;  %2150 = vrot.lane.b32.xlu1 %v9040_v3, %s8999_s29 }
  0x85   :  { %v252_v35 = vpop.permute.xlu1 %251  ;;  %8057 = vmatprep.mubr.msk.bf16.mxu0 %vm305_vm1, %v250_v34  ;;  %v9639_v34 = vld [vmem:[%s13117_s0 + $0x30] sm:$0xff]  }
  0x87   :  { %2152 = vrot.lane.b32.xlu0 %v9055_v6, %s8999_s29 }
  0x88   :  { %v1705_v36 = vpop.permute.xlu0 %1704  ;;  %2154 = vrot.lane.b32.xlu1 %v9061_v7, %s8999_s29 }
  0x89   :  { %v1707_v37 = vpop.permute.xlu1 %1706  ;;  %8058 = vmatmul.mubr.msk.bf16.gmra.mrb[8].mxu0 %vm305_vm1, %v252_v35  ;;  %8189 = vmatprep.mubr.msk.bf16.mxu1 %vm305_vm1, %v1705_v36  ;;  %v9646_v36 = vld [vmem:[%s13117_s0 + $0x38] sm:$0xff]  }
  0x8a   :  { %8190 = vmatmul.mubr.msk.bf16.gmra.mrb[8].mxu1 %vm305_vm1, %v1707_v37 }
  0x8b   :  { %2156 = vrot.lane.b32.xlu0 %v9077_v10, %s8999_s29 }
  0x8c   :  { %v254_v1 = vpop.permute.xlu0 %253  ;;  %2158 = vrot.lane.b32.xlu1 %v9083_v11, %s8999_s29 }
  0x8d   :  { %v256_v3 = vpop.permute.xlu1 %255  ;;  %8061 = vmatprep.mubr.msk.bf16.mxu0 %vm305_vm1, %v254_v1  ;;  %v9656_v1 = vld [vmem:[%s13117_s0 + $0x30] sm:$0xff]  }
  0x8f   :  { %2160 = vrot.lane.b32.xlu0 %v9099_v14, %s8999_s29 }
  0x90   :  { %v1709_v6 = vpop.permute.xlu0 %1708  ;;  %2162 = vrot.lane.b32.xlu1 %v9105_v15, %s8999_s29 }
  0x91   :  { %v1711_v7 = vpop.permute.xlu1 %1710  ;;  %8062 = vmatmul.mubr.msk.bf16.gmra.mrb[12].mxu0 %vm305_vm1, %v256_v3  ;;  %8193 = vmatprep.mubr.msk.bf16.mxu1 %vm305_vm1, %v1709_v6  ;;  %v9663_v6 = vld [vmem:[%s13117_s0 + $0x38] sm:$0xff]  }
  0x92   :  { %8194 = vmatmul.mubr.msk.bf16.gmra.mrb[12].mxu1 %vm305_vm1, %v1711_v7 }
  0x93   :  { %2164 = vrot.lane.b32.xlu0 %v9121_v18, %s8999_s29 }
  0x94   :  { %v258_v10 = vpop.permute.xlu0 %257  ;;  %2166 = vrot.lane.b32.xlu1 %v9127_v19, %s8999_s29 }
  0x95   :  { %v260_v11 = vpop.permute.xlu1 %259  ;;  %8065 = vmatprep.mubr.msk.bf16.mxu0 %vm305_vm1, %v258_v10  ;;  %v9671_v10 = vld [vmem:[%s13117_s0 + $0x40] sm:$0xff]  }
  0x97   :  { %2168 = vrot.lane.b32.xlu0 %v9143_v22, %s8999_s29 }
  0x98   :  { %v1713_v14 = vpop.permute.xlu0 %1712  ;;  %2170 = vrot.lane.b32.xlu1 %v9149_v23, %s8999_s29 }
  0x99   :  { %v1715_v15 = vpop.permute.xlu1 %1714  ;;  %8066 = vmatmul.mubr.msk.bf16.gmra.mrb[16].mxu0 %vm305_vm1, %v260_v11  ;;  %8197 = vmatprep.mubr.msk.bf16.mxu1 %vm305_vm1, %v1713_v14  ;;  %v9678_v14 = vld [vmem:[%s13117_s0 + $0x48] sm:$0xff]  }
  0x9a   :  { %8198 = vmatmul.mubr.msk.bf16.gmra.mrb[16].mxu1 %vm305_vm1, %v1715_v15 }
  0x9b   :  { %2172 = vrot.lane.b32.xlu0 %v9165_v26, %s8999_s29 }
  0x9c   :  { %v262_v18 = vpop.permute.xlu0 %261  ;;  %2174 = vrot.lane.b32.xlu1 %v9171_v27, %s8999_s29 }
  0x9d   :  { %v264_v19 = vpop.permute.xlu1 %263  ;;  %8069 = vmatprep.mubr.msk.bf16.mxu0 %vm305_vm1, %v262_v18  ;;  %v9688_v18 = vld [vmem:[%s13117_s0 + $0x40] sm:$0xff]  }
  0x9f   :  { %2176 = vrot.lane.b32.xlu0 %v9186_v30, %s8999_s29 }
  0xa0   :  { %v1717_v22 = vpop.permute.xlu0 %1716  ;;  %2178 = vrot.lane.b32.xlu1 %v9199_v33, %s8999_s29 }
  0xa1   :  { %v1719_v23 = vpop.permute.xlu1 %1718  ;;  %8070 = vmatmul.mubr.msk.bf16.gmra.mrb[20].mxu0 %vm305_vm1, %v264_v19  ;;  %8201 = vmatprep.mubr.msk.bf16.mxu1 %vm305_vm1, %v1717_v22  ;;  %v9695_v22 = vld [vmem:[%s13117_s0 + $0x48] sm:$0xff]  }
  0xa2   :  { %8202 = vmatmul.mubr.msk.bf16.gmra.mrb[20].mxu1 %vm305_vm1, %v1719_v23 }
  0xa3   :  { %2180 = vrot.lane.b32.xlu0 %v9232_v40, %s8999_s29 }
  0xa4   :  { %v266_v26 = vpop.permute.xlu0 %265  ;;  %2182 = vrot.lane.b32.xlu1 %v9237_v41, %s8999_s29 }
  0xa5   :  { %v268_v27 = vpop.permute.xlu1 %267  ;;  %8073 = vmatprep.mubr.msk.bf16.mxu0 %vm305_vm1, %v266_v26  ;;  %v9703_v26 = vld [vmem:[%s13117_s0 + $0x50] sm:$0xff]  }
  0xa7   :  { %2184 = vrot.lane.b32.xlu0 %v9254_v44, %s8999_s29 }
  0xa8   :  { %v1721_v30 = vpop.permute.xlu0 %1720  ;;  %2186 = vrot.lane.b32.xlu1 %v9259_v45, %s8999_s29 }
  0xa9   :  { %v1723_v33 = vpop.permute.xlu1 %1722  ;;  %8074 = vmatmul.mubr.msk.bf16.gmra.mrb[24].mxu0 %vm305_vm1, %v268_v27  ;;  %8205 = vmatprep.mubr.msk.bf16.mxu1 %vm305_vm1, %v1721_v30  ;;  %v9710_v30 = vld [vmem:[%s13117_s0 + $0x58] sm:$0xff]  }
  0xaa   :  { %8206 = vmatmul.mubr.msk.bf16.gmra.mrb[24].mxu1 %vm305_vm1, %v1723_v33 }
  0xab   :  { %2188 = vrot.lane.b32.xlu0 %v9276_v48, %s8999_s29  ;;  %v9543_v48 = vld [vmem:[%s13117_s0] sm:$0xff]  }
  0xac   :  { %v270_v38 = vpop.permute.xlu0 %269  ;;  %2190 = vrot.lane.b32.xlu1 %v9281_v49, %s8999_s29 }
  0xad   :  { %v272_v39 = vpop.permute.xlu1 %271  ;;  %8077 = vmatprep.mubr.msk.bf16.mxu0 %vm305_vm1, %v270_v38  ;;  %v9720_v38 = vld [vmem:[%s13117_s0 + $0x50] sm:$0xff]  }
  0xaf   :  { %2192 = vrot.lane.b32.xlu0 %v9298_v52, %s8999_s29  ;;  %v9560_v52 = vld [vmem:[%s13117_s0] sm:$0xff]  }
  0xb0   :  { %v1725_v40 = vpop.permute.xlu0 %1724  ;;  %2194 = vrot.lane.b32.xlu1 %v9303_v53, %s8999_s29 }
  0xb1   :  { %v1727_v41 = vpop.permute.xlu1 %1726  ;;  %8078 = vmatmul.mubr.msk.bf16.gmra.mrb[28].mxu0 %vm305_vm1, %v272_v39  ;;  %8209 = vmatprep.mubr.msk.bf16.mxu1 %vm305_vm1, %v1725_v40  ;;  %v9727_v39 = vld [vmem:[%s13117_s0 + $0x58] sm:$0xff]  }
  0xb2   :  { %8210 = vmatmul.mubr.msk.bf16.gmra.mrb[28].mxu1 %vm305_vm1, %v1727_v41 }
  0xb3   :  { %2196 = vrot.lane.b32.xlu0 %v9324_v56, %s8999_s29  ;;  %v9567_v56 = vld [vmem:[%s13117_s0 + $0x8] sm:$0xff]  }
  0xb4   :  { %v274_v42 = vpop.permute.xlu0 %273  ;;  %2198 = vrot.lane.b32.xlu1 %v9329_v57, %s8999_s29 }
  0xb5   :  { %v276_v43 = vpop.permute.xlu1 %275  ;;  %8081 = vmatprep.mubr.msk.bf16.mxu0 %vm305_vm1, %v274_v42  ;;  %v9735_v42 = vld [vmem:[%s13117_s0 + $0x60] sm:$0xff]  }
  0xb7   :  { %2200 = vrot.lane.b32.xlu0 %v9352_v60, %s8999_s29  ;;  %v9575_v60 = vld [vmem:[%s13117_s0 + $0x10] sm:$0xff]  }
  0xb8   :  { %v1729_v44 = vpop.permute.xlu0 %1728  ;;  %2202 = vrot.lane.b32.xlu1 %v9357_v61, %s8999_s29 }
  0xb9   :  { %v1731_v45 = vpop.permute.xlu1 %1730  ;;  %8082 = vmatmul.mubr.msk.bf16.gmra.mrb[32].mxu0 %vm305_vm1, %v276_v43  ;;  %8213 = vmatprep.mubr.msk.bf16.mxu1 %vm305_vm1, %v1729_v44  ;;  %v9742_v43 = vld [vmem:[%s13117_s0 + $0x68] sm:$0xff]  }
  0xba   :  { %8214 = vmatmul.mubr.msk.bf16.gmra.mrb[32].mxu1 %vm305_vm1, %v1731_v45 }
  0xbb   :  { %2204 = vrot.lane.b32.xlu0 %v9382_v0, %s8999_s29  ;;  %v9582_v0 = vld [vmem:[%s13117_s0 + $0x18] sm:$0xff]  }
  0xbc   :  { %v278_v46 = vpop.permute.xlu0 %277  ;;  %2206 = vrot.lane.b32.xlu1 %v9389_v2, %s8999_s29 }
  0xbd   :  { %v280_v47 = vpop.permute.xlu1 %279  ;;  %8085 = vmatprep.mubr.msk.bf16.mxu0 %vm305_vm1, %v278_v46  ;;  %v8973_v46 = vld [vmem:[%s13117_s0] sm:$0xff]  }
  0xbf   :  { %2208 = vrot.lane.b32.xlu0 %v9423_v21, %s8999_s29  ;;  %v9614_v21 = vld [vmem:[%s13117_s0 + $0x28] sm:$0xff]  }
  0xc0   :  { %v1733_v49 = vpop.permute.xlu0 %1732  ;;  %2210 = vrot.lane.b32.xlu1 %v9435_v28, %s8999_s29  ;;  %v9624_v28 = vld [vmem:[%s13117_s0 + $0x20] sm:$0xff]  }
  0xc1   :  { %v1735_v51 = vpop.permute.xlu1 %1734  ;;  %8086 = vmatmul.mubr.msk.bf16.gmra.mrb[36].mxu0 %vm305_vm1, %v280_v47  ;;  %8217 = vmatprep.mubr.msk.bf16.mxu1 %vm305_vm1, %v1733_v49  ;;  %v9756_v47 = vld [vmem:[%s13117_s0 + $0x60] sm:$0xff]   ;;  %v9763_v49 = vld [vmem:[%s13117_s0 + $0x68] sm:$0xff]  }
  0xc2   :  { %8218 = vmatmul.mubr.msk.bf16.gmra.mrb[36].mxu1 %vm305_vm1, %v1735_v51 }
  0xc3   :  { %3341 = vrot.lane.b32.xlu0 %v9543_v48, %s9000_s7 }
  0xc4   :  { %v282_v53 = vpop.permute.xlu0 %281  ;;  %3343 = vrot.lane.b32.xlu1 %v9550_v50, %s9000_s7 }
  0xc5   :  { %v284_v57 = vpop.permute.xlu1 %283  ;;  %8089 = vmatprep.mubr.msk.bf16.mxu0 %vm305_vm1, %v282_v53 }
  0xc7   :  { %4986 = vrot.lane.b32.xlu0 %v9560_v52, %s9001_s12 }
  0xc8   :  { %v1737_v61 = vpop.permute.xlu0 %1736  ;;  %4988 = vrot.lane.b32.xlu1 %v9567_v56, %s9001_s12 }
  0xc9   :  { %v1739_v2 = vpop.permute.xlu1 %1738  ;;  %8090 = vmatmul.mubr.msk.bf16.gmra.mrb[40].mxu0 %vm305_vm1, %v284_v57  ;;  %8221 = vmatprep.mubr.msk.bf16.mxu1 %vm305_vm1, %v1737_v61  ;;  %v3502_v57 = vsel %vm402_vm0, %v9415_v20, 0  ;;  %v9773_v61 = vld [vmem:[%s13117_s0 + $0x70] sm:$0xff]   ;;  %v5147_v20 = vsel %vm402_vm0, %v9428_v24, 0 }
  0xca   :  { %8222 = vmatmul.mubr.msk.bf16.gmra.mrb[40].mxu1 %vm305_vm1, %v1739_v2  ;;  %v8974_v2 = vld [vmem:[%s13117_s0 + $0x8] sm:$0xff]   ;;  %v9803_v24 = vld [vmem:[%s13117_s0 + $0x70] sm:$0xff]  }
  0xcb   :  { %3345 = vrot.lane.b32.xlu0 %v9575_v60, %s9000_s7  ;;  %13159 = vst [vmem:[#allocation2_spill] sm:$0xff] %v9803_v24 }
  0xcc   :  { %v286_v5 = vpop.permute.xlu0 %285  ;;  %3347 = vrot.lane.b32.xlu1 %v9582_v0, %s9000_s7 }
  0xcd   :  { %v288_v12 = vpop.permute.xlu1 %287  ;;  %8093 = vmatprep.mubr.msk.bf16.mxu0 %vm305_vm1, %v286_v5 }
  0xcf   :  { %4990 = vrot.lane.b32.xlu0 %v9592_v4, %s9001_s12 }
  0xd0   :  { %v1741_v17 = vpop.permute.xlu0 %1740  ;;  %4992 = vrot.lane.b32.xlu1 %v9599_v8, %s9001_s12 }
  0xd1   :  { %v1743_v25 = vpop.permute.xlu1 %1742  ;;  %8094 = vmatmul.mubr.msk.bf16.gmra.mrb[44].mxu0 %vm305_vm1, %v288_v12  ;;  %8225 = vmatprep.mubr.msk.bf16.mxu1 %vm305_vm1, %v1741_v17  ;;  %v9786_v12 = vld [vmem:[%s13117_s0 + $0x78] sm:$0xff]   ;;  %v8975_v17 = vld [vmem:[%s13117_s0 + $0x10] sm:$0xff]  }
  0xd2   :  { %8226 = vmatmul.mubr.msk.bf16.gmra.mrb[44].mxu1 %vm305_vm1, %v1743_v25 }
  0xd3   :  { %3349 = vrot.lane.b32.xlu0 %v9607_v13, %s9000_s7 }
  0xd4   :  { %v290_v29 = vpop.permute.xlu0 %289  ;;  %3351 = vrot.lane.b32.xlu1 %v9614_v21, %s9000_s7 }
  0xd5   :  { %v292_v32 = vpop.permute.xlu1 %291  ;;  %8097 = vmatprep.mubr.msk.bf16.mxu0 %vm305_vm1, %v290_v29  ;;  %v9795_v29 = vld [vmem:[%s13118_s1 + $0x10] sm:$0xf] }
  0xd7   :  { %4994 = vrot.lane.b32.xlu0 %v9624_v28, %s9001_s12 }
  0xd8   :  { %v1745_v35 = vpop.permute.xlu0 %1744  ;;  %4996 = vrot.lane.b32.xlu1 %v9631_v31, %s9001_s12 }
  0xd9   :  { %v1747_v37 = vpop.permute.xlu1 %1746  ;;  %8098 = vmatmul.mubr.msk.bf16.gmra.mrb[48].mxu0 %vm305_vm1, %v292_v32  ;;  %8229 = vmatprep.mubr.msk.bf16.mxu1 %vm305_vm1, %v1745_v35  ;;  %v9808_v32 = vld [vmem:[%s13118_s1 + $0x18] sm:$0xf] }
  0xda   :  { %8230 = vmatmul.mubr.msk.bf16.gmra.mrb[48].mxu1 %vm305_vm1, %v1747_v37  ;;  %v9816_v37 = vld [vmem:[%s13117_s0 + $0x78] sm:$0xff]  }
  0xdb   :  { %3353 = vrot.lane.b32.xlu0 %v9639_v34, %s9000_s7  ;;  %13160 = vst [vmem:[#allocation3_spill] sm:$0xff] %v9816_v37 }
  0xdc   :  { %v294_v3 = vpop.permute.xlu0 %293  ;;  %3355 = vrot.lane.b32.xlu1 %v9646_v36, %s9000_s7 }
  0xdd   :  { %v296_v7 = vpop.permute.xlu1 %295  ;;  %8101 = vmatprep.mubr.msk.bf16.mxu0 %vm305_vm1, %v294_v3 }
  0xdf   :  { %4998 = vrot.lane.b32.xlu0 %v9656_v1, %s9001_s12 }
  0xe0   :  { %v1749_v11 = vpop.permute.xlu0 %1748  ;;  %5000 = vrot.lane.b32.xlu1 %v9663_v6, %s9001_s12 }
  0xe1   :  { %v1751_v15 = vpop.permute.xlu1 %1750  ;;  %8102 = vmatmul.mubr.msk.bf16.gmra.mrb[52].mxu0 %vm305_vm1, %v296_v7  ;;  %8233 = vmatprep.mubr.msk.bf16.mxu1 %vm305_vm1, %v1749_v11  ;;  %v9827_v7 = vld [vmem:[%s13117_s0 + $0x80] sm:$0xff]   ;;  %v8976_v11 = vld [vmem:[%s13117_s0 + $0x18] sm:$0xff]  }
  0xe2   :  { %8234 = vmatmul.mubr.msk.bf16.gmra.mrb[52].mxu1 %vm305_vm1, %v1751_v15  ;;  %13161 = vst [vmem:[#allocation4_spill] sm:$0xff] %v9827_v7 }
  0xe3   :  { %3357 = vrot.lane.b32.xlu0 %v9671_v10, %s9000_s7 }
  0xe4   :  { %v298_v19 = vpop.permute.xlu0 %297  ;;  %3359 = vrot.lane.b32.xlu1 %v9678_v14, %s9000_s7 }
  0xe5   :  { %v300_v23 = vpop.permute.xlu1 %299  ;;  %8105 = vmatprep.mubr.msk.bf16.mxu0 %vm305_vm1, %v298_v19  ;;  %v9838_v19 = vld [vmem:[%s13117_s0 + $0x88] sm:$0xff]  }
  0xe6   :  { %13162 = vst [vmem:[#allocation5_spill] sm:$0xff] %v9838_v19 }
  0xe7   :  { %5002 = vrot.lane.b32.xlu0 %v9688_v18, %s9001_s12 }
  0xe8   :  { %v1753_v27 = vpop.permute.xlu0 %1752  ;;  %5004 = vrot.lane.b32.xlu1 %v9695_v22, %s9001_s12 }
  0xe9   :  { %v1755_v33 = vpop.permute.xlu1 %1754  ;;  %8106 = vmatmul.mubr.msk.bf16.gmra.mrb[56].mxu0 %vm305_vm1, %v300_v23  ;;  %8237 = vmatprep.mubr.msk.bf16.mxu1 %vm305_vm1, %v1753_v27  ;;  %v8977_v23 = vld [vmem:[%s13117_s0 + $0x20] sm:$0xff]  }
  0xea   :  { %8238 = vmatmul.mubr.msk.bf16.gmra.mrb[56].mxu1 %vm305_vm1, %v1755_v33  ;;  %v9850_v33 = vld [vmem:[%s13117_s0 + $0x80] sm:$0xff]  }
  0xeb   :  { %3361 = vrot.lane.b32.xlu0 %v9703_v26, %s9000_s7  ;;  %13163 = vst [vmem:[#allocation6_spill] sm:$0xff] %v9850_v33 }
  0xec   :  { %3363 = vrot.lane.b32.xlu1 %v9710_v30, %s9000_s7 }
  0xed   :  { %v302_v40 = vpop.permute.xlu0 %301 }
  0xee   :  { %v304_v41 = vpop.permute.xlu1 %303  ;;  %8109 = vmatprep.mubr.msk.bf16.mxu0 %vm305_vm1, %v302_v40 }
  0xef   :  { %5006 = vrot.lane.b32.xlu0 %v9720_v38, %s9001_s12 }
  0xf0   :  { %5008 = vrot.lane.b32.xlu1 %v9727_v39, %s9001_s12 }
  0xf1   :  { %v1757_v44 = vpop.permute.xlu0 %1756  ;;  %8110 = vmatmul.mubr.msk.bf16.gmra.mrb[60].mxu0 %vm305_vm1, %v304_v41  ;;  %v9858_v41 = vld [vmem:[%s13117_s0 + $0x88] sm:$0xff]  }
  0xf2   :  { %v1759_v45 = vpop.permute.xlu1 %1758  ;;  %8241 = vmatprep.mubr.msk.bf16.mxu1 %vm305_vm1, %v1757_v44  ;;  %8115 = vmatprep.mubr.msk.bf16.mxu0 %vm305_vm1, %v8973_v46  ;;  %13164 = vst [vmem:[#allocation7_spill] sm:$0xff] %v9858_v41  ;;  %v8978_v46 = vld [vmem:[%s13117_s0 + $0x28] sm:$0xff]  }
  0xf3   :  { %8242 = vmatmul.mubr.msk.bf16.gmra.mrb[60].mxu1 %vm305_vm1, %v1759_v45  ;;  %3365 = vrot.lane.b32.xlu0 %v9735_v42, %s9000_s7  ;;  %v9865_v45 = vld [vmem:[%s13117_s0 + $0x90] sm:$0xff]  }
  0xf4   :  { %3367 = vrot.lane.b32.xlu1 %v9742_v43, %s9000_s7  ;;  %13165 = vst [vmem:[#allocation8_spill] sm:$0xff] %v9865_v45 }
  0xf5   :  { %v2149_v51 = vpop.permute.xlu0 %2148 }
  0xf6   :  { %v2151_v53 = vpop.permute.xlu1 %2150  ;;  %8247 = vmatprep.mubr.msk.bf16.mxu1 %vm305_vm1, %v2149_v51 }
  0xf7   :  { %5010 = vrot.lane.b32.xlu0 %v9756_v47, %s9001_s12 }
  0xf8   :  { %5012 = vrot.lane.b32.xlu1 %v9763_v49, %s9001_s12 }
  0xf9   :  { %8116 = vmatmul.mubr.msk.bf16.vlgmr.msra.gmra.mrb[0].mxu0 %vm305_vm1, %v8974_v2  ;;  %v2153_v5 = vpop.permute.xlu0 %2152 }
  0xfa   :  { %8312 = vmatpush3.bf16.msra.mxu0 %v3502_v57  ;;  %8119 = vmatprep.mubr.msk.bf16.mxu0 %vm305_vm1, %v8975_v17  ;;  %v2155_v25 = vpop.permute.xlu1 %2154  ;;  %v8979_v57 = vld [vmem:[%s13117_s0 + $0x30] sm:$0xff]   ;;  %v9896_v17 = vld [vmem:[%s13117_s0 + $0x98] sm:$0xff]  }
  0xfb   :  { %8248 = vmatmul.mubr.msk.bf16.vlgmr.msra.gmra.mrb[0].mxu1 %vm305_vm1, %v2151_v53  ;;  %3369 = vrot.lane.b32.xlu0 %v9773_v61, %s9000_s7  ;;  %v9876_v53 = vld [vmem:[%s13117_s0 + $0x98] sm:$0xff]   ;;  %13168 = vst [vmem:[#allocation11_spill] sm:$0xff] %v9896_v17 }
  0xfc   :  { %8444 = vmatpush3.bf16.msra.mxu1 %v5147_v20  ;;  %8251 = vmatprep.mubr.msk.bf16.mxu1 %vm305_vm1, %v2153_v5  ;;  %13166 = vst [vmem:[#allocation9_spill] sm:$0xff] %v9876_v53  ;;  %v9888_v20 = vld [vmem:[%s13117_s0 + $0x90] sm:$0xff]  }
  0xfd   :  { %v2157_v35 = vpop.permute.xlu0 %2156  ;;  %3371 = vrot.lane.b32.xlu1 %v9786_v12, %s9000_s7  ;;  %8836 = vmatprep.subr.msk.bf16.mxu0 %vm402_vm0, %v9795_v29  ;;  %13167 = vst [vmem:[#allocation10_spill] sm:$0xff] %v9888_v20 }
  0xfe   :  { %v2159_v3 = vpop.permute.xlu1 %2158  ;;  %8838 = vmatprep.subr.msk.bf16.mxu1 %vm402_vm0, %v9808_v32 }
  0xff   :  { %5014 = vrot.lane.b32.xlu0 %v9803_v24, %s9001_s12 }
 0x101   :  { %8120 = vmatmul.mubr.msk.bf16.gmra.mrb[4].mxu0 %vm305_vm1, %v8976_v11  ;;  %v2161_v15 = vpop.permute.xlu0 %2160  ;;  %5016 = vrot.lane.b32.xlu1 %v9816_v37, %s9001_s12  ;;  %v8991_v37 = vld [vmem:[%s13117_s0 + $0x90] sm:$0xff]  }
 0x102   :  { %8123 = vmatprep.mubr.msk.bf16.mxu0 %vm305_vm1, %v8977_v23  ;;  %v2163_v27 = vpop.permute.xlu1 %2162  ;;  %v8981_v23 = vld [vmem:[%s13117_s0 + $0x40] sm:$0xff]  }
 0x103   :  { %8252 = vmatmul.mubr.msk.bf16.gmra.mrb[4].mxu1 %vm305_vm1, %v2155_v25  ;;  %3373 = vrot.lane.b32.xlu0 %v9827_v7, %s9000_s7 }
 0x104   :  { %8255 = vmatprep.mubr.msk.bf16.mxu1 %vm305_vm1, %v2157_v35  ;;  %v9905_v35 = vld [vmem:[%s13117_s0 + $0xa0] sm:$0xff]  }
 0x105   :  { %v2165_v40 = vpop.permute.xlu0 %2164  ;;  %3375 = vrot.lane.b32.xlu1 %v9838_v19, %s9000_s7  ;;  %13169 = vst [vmem:[#allocation12_spill] sm:$0xff] %v9905_v35  ;;  %v8989_v19 = vld [vmem:[%s13117_s0 + $0x80] sm:$0xff]  }
 0x106   :  { %v2167_v44 = vpop.permute.xlu1 %2166 }
 0x107   :  { %5018 = vrot.lane.b32.xlu0 %v9850_v33, %s9001_s12 }
 0x109   :  { %8124 = vmatmul.mubr.msk.bf16.gmra.mrb[8].mxu0 %vm305_vm1, %v8978_v46  ;;  %v2169_v51 = vpop.permute.xlu0 %2168  ;;  %5020 = vrot.lane.b32.xlu1 %v9858_v41, %s9001_s12  ;;  %v8987_v41 = vld [vmem:[%s13117_s0 + $0x70] sm:$0xff]  }
 0x10a   :  { %8127 = vmatprep.mubr.msk.bf16.mxu0 %vm305_vm1, %v8979_v57  ;;  %v2171_v2 = vpop.permute.xlu1 %2170  ;;  %v9932_v57 = vld [vmem:[%s13117_s0 + $0xa0] sm:$0xff]  }
 0x10b   :  { %8256 = vmatmul.mubr.msk.bf16.gmra.mrb[8].mxu1 %vm305_vm1, %v2159_v3  ;;  %3377 = vrot.lane.b32.xlu0 %v9865_v45, %s9000_s7  ;;  %v8980_v3 = vld [vmem:[%s13117_s0 + $0x38] sm:$0xff]   ;;  %13171 = vst [vmem:[#allocation14_spill] sm:$0xff] %v9932_v57 }
 0x10c   :  { %8259 = vmatprep.mubr.msk.bf16.mxu1 %vm305_vm1, %v2161_v15  ;;  %v9918_v15 = vld [vmem:[%s13117_s0 + $0xa8] sm:$0xff]  }
 0x10d   :  { %v2173_v5 = vpop.permute.xlu0 %2172  ;;  %3379 = vrot.lane.b32.xlu1 %v9876_v53, %s9000_s7  ;;  %13170 = vst [vmem:[#allocation13_spill] sm:$0xff] %v9918_v15  ;;  %v8985_v53 = vld [vmem:[%s13117_s0 + $0x60] sm:$0xff]  }
 0x10e   :  { %v9898_v25 = vpop.permute.xlu1 %2174 }
 0x10f   :  { %5022 = vrot.lane.b32.xlu0 %v9888_v20, %s9001_s12 }
 0x111   :  { %8128 = vmatmul.mubr.msk.bf16.gmra.mrb[12].mxu0 %vm305_vm1, %v8980_v3  ;;  %v9911_v11 = vpop.permute.xlu0 %2176  ;;  %5024 = vrot.lane.b32.xlu1 %v9896_v17, %s9001_s12  ;;  %v8983_v17 = vld [vmem:[%s13117_s0 + $0x50] sm:$0xff]  }
 0x112   :  { %8131 = vmatprep.mubr.msk.bf16.mxu0 %vm305_vm1, %v8981_v23  ;;  %v9924_v46 = vpop.permute.xlu1 %2178  ;;  %v9942_v23 = vld [vmem:[%s13117_s0 + $0xa8] sm:$0xff]  }
 0x113   :  { %8260 = vmatmul.mubr.msk.bf16.gmra.mrb[12].mxu1 %vm305_vm1, %v2163_v27  ;;  %3381 = vrot.lane.b32.xlu0 %v9905_v35, %s9000_s7  ;;  %13172 = vst [vmem:[#allocation15_spill] sm:$0xff] %v9942_v23  ;;  %v9951_v35 = vld [vmem:[%s13117_s0 + $0xb0] sm:$0xff]  }
 0x114   :  { %8263 = vmatprep.mubr.msk.bf16.mxu1 %vm305_vm1, %v2165_v40  ;;  %13173 = vst [vmem:[#allocation16_spill] sm:$0xff] %v9951_v35  ;;  %v8982_v40 = vld [vmem:[%s13117_s0 + $0x48] sm:$0xff]  }
 0x115   :  { %v9935_v3 = vpop.permute.xlu0 %2180  ;;  %3383 = vrot.lane.b32.xlu1 %v9918_v15, %s9000_s7 }
 0x116   :  { %v9944_v27 = vpop.permute.xlu1 %2182 }
 0x117   :  { %5026 = vrot.lane.b32.xlu0 %v9932_v57, %s9001_s12  ;;  %v9964_v57 = vld [vmem:[%s13117_s0 + $0xb8] sm:$0xff]  }
 0x118   :  { %13174 = vst [vmem:[#allocation17_spill] sm:$0xff] %v9964_v57 }
 0x119   :  { %8132 = vmatmul.mubr.msk.bf16.gmra.mrb[16].mxu0 %vm305_vm1, %v8982_v40  ;;  %v9957_v15 = vpop.permute.xlu0 %2184  ;;  %5028 = vrot.lane.b32.xlu1 %v9942_v23, %s9001_s12  ;;  %v9978_v40 = vld [vmem:[%s13117_s0 + $0xb0] sm:$0xff]  }
 0x11a   :  { %8135 = vmatprep.mubr.msk.bf16.mxu0 %vm305_vm1, %v8983_v17  ;;  %v9970_v20 = vpop.permute.xlu1 %2186  ;;  %13175 = vst [vmem:[#allocation18_spill] sm:$0xff] %v9978_v40  ;;  %v9988_v17 = vld [vmem:[%s13117_s0 + $0xb8] sm:$0xff]  }
 0x11b   :  { %8264 = vmatmul.mubr.msk.bf16.gmra.mrb[16].mxu1 %vm305_vm1, %v2167_v44  ;;  %3385 = vrot.lane.b32.xlu0 %v9951_v35, %s9000_s7  ;;  %13176 = vst [vmem:[#allocation19_spill] sm:$0xff] %v9988_v17  ;;  %v9997_v35 = vld [vmem:[%s13117_s0 + $0xc0] sm:$0xff]  }
 0x11c   :  { %8267 = vmatprep.mubr.msk.bf16.mxu1 %vm305_vm1, %v2169_v51  ;;  %13177 = vst [vmem:[#allocation20_spill] sm:$0xff] %v9997_v35  ;;  %v8984_v51 = vld [vmem:[%s13117_s0 + $0x58] sm:$0xff]  }
 0x11d   :  { %v9981_v23 = vpop.permute.xlu0 %2188  ;;  %3387 = vrot.lane.b32.xlu1 %v9964_v57, %s9000_s7 }
 0x11e   :  { %v9990_v44 = vpop.permute.xlu1 %2190 }
 0x11f   :  { %5030 = vrot.lane.b32.xlu0 %v9978_v40, %s9001_s12  ;;  %v10010_v40 = vld [vmem:[%s13117_s0 + $0xc8] sm:$0xff]  }
 0x120   :  { %13178 = vst [vmem:[#allocation21_spill] sm:$0xff] %v10010_v40 }
 0x121   :  { %8136 = vmatmul.mubr.msk.bf16.gmra.mrb[20].mxu0 %vm305_vm1, %v8984_v51  ;;  %v10003_v57 = vpop.permute.xlu0 %2192  ;;  %5032 = vrot.lane.b32.xlu1 %v9988_v17, %s9001_s12  ;;  %v10024_v51 = vld [vmem:[%s13117_s0 + $0xc0] sm:$0xff]  }
 0x122   :  { %8139 = vmatprep.mubr.msk.bf16.mxu0 %vm305_vm1, %v8985_v53  ;;  %v10016_v45 = vpop.permute.xlu1 %2194  ;;  %13179 = vst [vmem:[#allocation22_spill] sm:$0xff] %v10024_v51  ;;  %v10034_v53 = vld [vmem:[%s13117_s0 + $0xc8] sm:$0xff]  }
 0x123   :  { %8268 = vmatmul.mubr.msk.bf16.gmra.mrb[20].mxu1 %vm305_vm1, %v2171_v2  ;;  %3389 = vrot.lane.b32.xlu0 %v9997_v35, %s9000_s7  ;;  %13180 = vst [vmem:[#allocation23_spill] sm:$0xff] %v10034_v53  ;;  %v10043_v35 = vld [vmem:[%s13117_s0 + $0xd0] sm:$0xff]  }
 0x124   :  { %8271 = vmatprep.mubr.msk.bf16.mxu1 %vm305_vm1, %v2173_v5  ;;  %13181 = vst [vmem:[#allocation24_spill] sm:$0xff] %v10043_v35  ;;  %v8986_v5 = vld [vmem:[%s13117_s0 + $0x68] sm:$0xff]  }
 0x125   :  { %v10027_v17 = vpop.permute.xlu0 %2196  ;;  %3391 = vrot.lane.b32.xlu1 %v10010_v40, %s9000_s7 }
 0x126   :  { %v10036_v2 = vpop.permute.xlu1 %2198 }
 0x127   :  { %5034 = vrot.lane.b32.xlu0 %v10024_v51, %s9001_s12  ;;  %v10056_v51 = vld [vmem:[%s13117_s0 + $0xd8] sm:$0xff]  }
 0x128   :  { %13182 = vst [vmem:[#allocation25_spill] sm:$0xff] %v10056_v51 }
 0x129   :  { %8140 = vmatmul.mubr.msk.bf16.gmra.mrb[24].mxu0 %vm305_vm1, %v8986_v5  ;;  %v10049_v40 = vpop.permute.xlu0 %2200  ;;  %5036 = vrot.lane.b32.xlu1 %v10034_v53, %s9001_s12  ;;  %v10071_v5 = vld [vmem:[%s13117_s0 + $0xd0] sm:$0xff]  }
 0x12a   :  { %8143 = vmatprep.mubr.msk.bf16.mxu0 %vm305_vm1, %v8987_v41  ;;  %v10062_v33 = vpop.permute.xlu1 %2202  ;;  %13183 = vst [vmem:[#allocation26_spill] sm:$0xff] %v10071_v5  ;;  %v10082_v41 = vld [vmem:[%s13117_s0 + $0xd8] sm:$0xff]  }
 0x12b   :  { %8272 = vmatmul.mubr.msk.bf16.gmra.mrb[24].mxu1 %vm305_vm1, %v9898_v25  ;;  %3393 = vrot.lane.b32.xlu0 %v10043_v35, %s9000_s7  ;;  %13184 = vst [vmem:[#allocation27_spill] sm:$0xff] %v10082_v41  ;;  %v10091_v35 = vld [vmem:[%s13117_s0 + $0xe0] sm:$0xff]  }
 0x12c   :  { %8275 = vmatprep.mubr.msk.bf16.mxu1 %vm305_vm1, %v9911_v11  ;;  %13185 = vst [vmem:[#allocation28_spill] sm:$0xff] %v10091_v35  ;;  %v8988_v11 = vld [vmem:[%s13117_s0 + $0x78] sm:$0xff]  }
 0x12d   :  { %v10075_v53 = vpop.permute.xlu0 %2204  ;;  %3395 = vrot.lane.b32.xlu1 %v10056_v51, %s9000_s7 }
 0x12e   :  { %v10084_v25 = vpop.permute.xlu1 %2206 }
 0x12f   :  { %5038 = vrot.lane.b32.xlu0 %v10071_v5, %s9001_s12  ;;  %v10104_v5 = vld [vmem:[%s13117_s0 + $0xe8] sm:$0xff]  }
 0x130   :  { %13186 = vst [vmem:[#allocation29_spill] sm:$0xff] %v10104_v5 }
 0x131   :  { %8144 = vmatmul.mubr.msk.bf16.gmra.mrb[28].mxu0 %vm305_vm1, %v8988_v11  ;;  %5040 = vrot.lane.b32.xlu1 %v10082_v41, %s9001_s12  ;;  %v10099_v51 = vpop.permute.xlu0 %2208  ;;  %v10119_v11 = vld [vmem:[%s13117_s0 + $0xe0] sm:$0xff]  }
 0x132   :  { %8147 = vmatprep.mubr.msk.bf16.mxu0 %vm305_vm1, %v8989_v19  ;;  %v10110_v7 = vpop.permute.xlu1 %2210  ;;  %13187 = vst [vmem:[#allocation30_spill] sm:$0xff] %v10119_v11 }
 0x133   :  { %8276 = vmatmul.mubr.msk.bf16.gmra.mrb[28].mxu1 %vm305_vm1, %v9924_v46  ;;  %3397 = vrot.lane.b32.xlu0 %v10091_v35, %s9000_s7  ;;  %v10130_v46 = vld [vmem:[%s13117_s0 + $0xe8] sm:$0xff]   ;;  %v10139_v35 = vld [vmem:[%s13117_s0 + $0xf0] sm:$0xff]  }
 0x134   :  { %8279 = vmatprep.mubr.msk.bf16.mxu1 %vm305_vm1, %v9935_v3  ;;  %13188 = vst [vmem:[#allocation31_spill] sm:$0xff] %v10130_v46  ;;  %13189 = vst [vmem:[#allocation32_spill] sm:$0xff] %v10139_v35  ;;  %v8990_v3 = vld [vmem:[%s13117_s0 + $0x88] sm:$0xff]  }
 0x135   :  { %3399 = vrot.lane.b32.xlu1 %v10104_v5, %s9000_s7  ;;  %v10125_v19 = vpop.permute.xlu0 %3341 }
 0x136   :  { %v10132_v41 = vpop.permute.xlu1 %3343 }
 0x137   :  { %5042 = vrot.lane.b32.xlu0 %v10119_v11, %s9001_s12  ;;  %v10152_v11 = vld [vmem:[%s13117_s0 + $0xf8] sm:$0xff]  }
 0x138   :  { %13190 = vst [vmem:[#allocation33_spill] sm:$0xff] %v10152_v11 }
 0x139   :  { %8148 = vmatmul.mubr.msk.bf16.gmra.mrb[32].mxu0 %vm305_vm1, %v8990_v3  ;;  %5044 = vrot.lane.b32.xlu1 %v10130_v46, %s9001_s12  ;;  %v10147_v5 = vpop.permute.xlu0 %4986  ;;  %v10167_v3 = vld [vmem:[%s13117_s0 + $0xf0] sm:$0xff]  }
 0x13a   :  { %8151 = vmatprep.mubr.msk.bf16.mxu0 %vm305_vm1, %v8991_v37  ;;  %v10158_v24 = vpop.permute.xlu1 %4988 }
 0x13b   :  { %8280 = vmatmul.mubr.msk.bf16.gmra.mrb[32].mxu1 %vm305_vm1, %v9944_v27  ;;  %3401 = vrot.lane.b32.xlu0 %v10139_v35, %s9000_s7  ;;  %v10178_v27 = vld [vmem:[%s13117_s0 + $0xf8] sm:$0xff]  }
 0x13c   :  { %8283 = vmatprep.mubr.msk.bf16.mxu1 %vm305_vm1, %v9957_v15  ;;  %13191 = vst [vmem:[#allocation34_spill] sm:$0xff] %v10178_v27  ;;  %v8992_v35 = vld [vmem:[%s13117_s0 + $0x98] sm:$0xff]  }
 0x13d   :  { %3403 = vrot.lane.b32.xlu1 %v10152_v11, %s9000_s7  ;;  %v10173_v37 = vpop.permute.xlu0 %3345  ;;  %v8993_v11 = vld [vmem:[%s13117_s0 + $0xa0] sm:$0xff]  }
 0x13e   :  { %v10180_v46 = vpop.permute.xlu1 %3347 }
 0x13f   :  { %13192 = vst [vmem:[#allocation35_spill] sm:$0xff] %v10180_v46  ;;  %5046 = vrot.lane.b32.xlu0 %v10167_v3, %s9001_s12 }
 0x141   :  { %8152 = vmatmul.mubr.msk.bf16.gmra.mrb[36].mxu0 %vm305_vm1, %v8992_v35  ;;  %5048 = vrot.lane.b32.xlu1 %v10178_v27, %s9001_s12  ;;  %v10190_v15 = vpop.permute.xlu0 %4990 }
 0x142   :  { %8155 = vmatprep.mubr.msk.bf16.mxu0 %vm305_vm1, %v8993_v11  ;;  %v10196_v46 = vpop.permute.xlu1 %4992 }
 0x143   :  { %8284 = vmatmul.mubr.msk.bf16.gmra.mrb[36].mxu1 %vm305_vm1, %v9970_v20  ;;  %3793 = vrot.lane.b32.xlu0 %v9543_v48, %s8997_s16  ;;  %v8994_v20 = vld [vmem:[%s13117_s0 + $0xa8] sm:$0xff]  }
 0x144   :  { %8287 = vmatprep.mubr.msk.bf16.mxu1 %vm305_vm1, %v9981_v23 }
 0x145   :  { %3795 = vrot.lane.b32.xlu1 %v9550_v50, %s8997_s16  ;;  %v10206_v35 = vpop.permute.xlu0 %3349  ;;  %v8995_v50 = vld [vmem:[%s13117_s0 + $0xb0] sm:$0xff]  }
 0x146   :  { %v10208_v27 = vpop.permute.xlu1 %3351 }
 0x147   :  { %5438 = vrot.lane.b32.xlu0 %v9560_v52, %s8998_s19 }
 0x149   :  { %8156 = vmatmul.mubr.msk.bf16.gmra.mrb[40].mxu0 %vm305_vm1, %v8994_v20  ;;  %5440 = vrot.lane.b32.xlu1 %v9567_v56, %s8998_s19  ;;  %v10218_v48 = vpop.permute.xlu0 %4994  ;;  %v13209_v20 = vld [vmem:[#allocation17_spill] sm:$0xff] }
 0x14a   :  { %8159 = vmatprep.mubr.msk.bf16.mxu0 %vm305_vm1, %v8995_v50  ;;  %v10224_v23 = vpop.permute.xlu1 %4996 }
 0x14b   :  { %8288 = vmatmul.mubr.msk.bf16.gmra.mrb[40].mxu1 %vm305_vm1, %v9990_v44  ;;  %3797 = vrot.lane.b32.xlu0 %v9575_v60, %s8997_s16  ;;  %v8996_v44 = vld [vmem:[%s13117_s0 + $0xb8] sm:$0xff]  }
 0x14c   :  { %8291 = vmatprep.mubr.msk.bf16.mxu1 %vm305_vm1, %v10003_v57  ;;  %v13201_v57 = vld [vmem:[#allocation9_spill] sm:$0xff] }
 0x14d   :  { %3799 = vrot.lane.b32.xlu1 %v9582_v0, %s8997_s16  ;;  %v10234_v52 = vpop.permute.xlu0 %3353 }
 0x14e   :  { %v10236_v56 = vpop.permute.xlu1 %3355 }
 0x14f   :  { %5442 = vrot.lane.b32.xlu0 %v9592_v4, %s8998_s19 }
 0x151   :  { %8160 = vmatmul.mubr.msk.bf16.gmra.mrb[44].mxu0 %vm305_vm1, %v8996_v44  ;;  %5444 = vrot.lane.b32.xlu1 %v9599_v8, %s8998_s19  ;;  %v10246_v60 = vpop.permute.xlu0 %4998 }
 0x152   :  { %8163 = vmatprep.mubr.msk.bf16.mxu0 %vm305_vm1, %v9310_v54  ;;  %v10250_v0 = vpop.permute.xlu1 %5000 }
 0x153   :  { %8292 = vmatmul.mubr.msk.bf16.gmra.mrb[44].mxu1 %vm305_vm1, %v10016_v45  ;;  %3801 = vrot.lane.b32.xlu0 %v9607_v13, %s8997_s16  ;;  %v13200_v45 = vld [vmem:[#allocation8_spill] sm:$0xff] }
 0x154   :  { %8295 = vmatprep.mubr.msk.bf16.mxu1 %vm305_vm1, %v10027_v17 }
 0x155   :  { %3803 = vrot.lane.b32.xlu1 %v9614_v21, %s8997_s16  ;;  %v10260_v4 = vpop.permute.xlu0 %3357 }
 0x156   :  { %v10262_v8 = vpop.permute.xlu1 %3359 }
 0x157   :  { %5446 = vrot.lane.b32.xlu0 %v9624_v28, %s8998_s19 }
 0x159   :  { %8164 = vmatmul.mubr.msk.bf16.gmra.mrb[48].mxu0 %vm305_vm1, %v9315_v55  ;;  %5448 = vrot.lane.b32.xlu1 %v9631_v31, %s8998_s19  ;;  %v10270_v54 = vpop.permute.xlu0 %5002 }
 0x15a   :  { %8167 = vmatprep.mubr.msk.bf16.mxu0 %vm305_vm1, %v9338_v58  ;;  %v10274_v13 = vpop.permute.xlu1 %5004 }
 0x15b   :  { %8296 = vmatmul.mubr.msk.bf16.gmra.mrb[48].mxu1 %vm305_vm1, %v10036_v2  ;;  %3805 = vrot.lane.b32.xlu0 %v9639_v34, %s8997_s16 }
 0x15c   :  { %8299 = vmatprep.mubr.msk.bf16.mxu1 %vm305_vm1, %v10049_v40 }
 0x15d   :  { %3807 = vrot.lane.b32.xlu1 %v9646_v36, %s8997_s16  ;;  %v10284_v55 = vpop.permute.xlu0 %3361 }
 0x15e   :  { %v10286_v21 = vpop.permute.xlu1 %3363 }
 0x15f   :  { %5450 = vrot.lane.b32.xlu0 %v9656_v1, %s8998_s19 }
 0x161   :  { %8168 = vmatmul.mubr.msk.bf16.gmra.mrb[52].mxu0 %vm305_vm1, %v9343_v59  ;;  %5452 = vrot.lane.b32.xlu1 %v9663_v6, %s8998_s19  ;;  %v10294_v58 = vpop.permute.xlu0 %5006  ;;  %v3954_v6 = vsel %vm402_vm0, %v9795_v29, 0 }
 0x162   :  { %8171 = vmatprep.mubr.msk.bf16.mxu0 %vm305_vm1, %v9368_v62  ;;  %v10298_v28 = vpop.permute.xlu1 %5008 }
 0x163   :  { %8300 = vmatmul.mubr.msk.bf16.gmra.mrb[52].mxu1 %vm305_vm1, %v10062_v33  ;;  %3809 = vrot.lane.b32.xlu0 %v9671_v10, %s8997_s16 }
 0x164   :  { %8303 = vmatprep.mubr.msk.bf16.mxu1 %vm305_vm1, %v10075_v53  ;;  %v13203_v53 = vld [vmem:[#allocation11_spill] sm:$0xff] }
 0x165   :  { %3811 = vrot.lane.b32.xlu1 %v9678_v14, %s8997_s16  ;;  %v10308_v59 = vpop.permute.xlu0 %3365  ;;  %v5599_v14 = vsel %vm402_vm0, %v9808_v32, 0  ;;  %v13199_v32 = vld [vmem:[#allocation7_spill] sm:$0xff] }
 0x166   :  { %v10310_v31 = vpop.permute.xlu1 %3367 }
 0x167   :  { %5454 = vrot.lane.b32.xlu0 %v9688_v18, %s8998_s19 }
 0x169   :  { %8172 = vmatmul.mubr.msk.bf16.gmra.mrb[56].mxu0 %vm305_vm1, %v9375_v63  ;;  %5456 = vrot.lane.b32.xlu1 %v9695_v22, %s8998_s19  ;;  %v10318_v62 = vpop.permute.xlu0 %5010 }
 0x16a   :  { %8175 = vmatprep.mubr.msk.bf16.mxu0 %vm305_vm1, %v9402_v9  ;;  %v10322_v34 = vpop.permute.xlu1 %5012 }
 0x16b   :  { %8304 = vmatmul.mubr.msk.bf16.gmra.mrb[56].mxu1 %vm305_vm1, %v10084_v25  ;;  %3813 = vrot.lane.b32.xlu0 %v9703_v26, %s8997_s16  ;;  %v13205_v25 = vld [vmem:[#allocation13_spill] sm:$0xff] }
 0x16c   :  { %8307 = vmatprep.mubr.msk.bf16.mxu1 %vm305_vm1, %v10099_v51  ;;  %v13202_v51 = vld [vmem:[#allocation10_spill] sm:$0xff] }
 0x16d   :  { %3815 = vrot.lane.b32.xlu1 %v9710_v30, %s8997_s16  ;;  %v10332_v63 = vpop.permute.xlu0 %3369 }
 0x16f   :  { %v10334_v36 = vpop.permute.xlu1 %3371  ;;  %5458 = vrot.lane.b32.xlu0 %v9720_v38, %s8998_s19  ;;  %v13193_v38 = vld [vmem:[#allocation2_spill] sm:$0xff] }
 0x171   :  { %8176 = vmatmul.mubr.msk.bf16.gmra.mrb[60].mxu0 %vm305_vm1, %v9409_v16  ;;  %5460 = vrot.lane.b32.xlu1 %v9727_v39, %s8998_s19  ;;  %v10342_v9 = vpop.permute.xlu0 %5014  ;;  %v13194_v39 = vld [vmem:[#allocation35_spill] sm:$0xff] }
 0x172   :  { %8313 = vmatprep.mubr.msk.bf16.mxu0 %vm305_vm1, %v10125_v19 }
 0x173   :  { %8308 = vmatmul.mubr.msk.bf16.gmra.mrb[60].mxu1 %vm305_vm1, %v10110_v7  ;;  %v10348_v1 = vpop.permute.xlu1 %5016  ;;  %3817 = vrot.lane.b32.xlu0 %v9735_v42, %s8997_s16  ;;  %v13195_v42 = vld [vmem:[#allocation3_spill] sm:$0xff] }
 0x174   :  { %8445 = vmatprep.mubr.msk.bf16.mxu1 %vm305_vm1, %v10147_v5 }
 0x175   :  { %3819 = vrot.lane.b32.xlu1 %v9742_v43, %s8997_s16  ;;  %v10356_v16 = vpop.permute.xlu0 %3373 }
 0x177   :  { %v10360_v10 = vpop.permute.xlu1 %3375  ;;  %5462 = vrot.lane.b32.xlu0 %v9756_v47, %s8998_s19 }
 0x179   :  { %8314 = vmatmul.mubr.msk.bf16.vlgmr.msra.gmra.mrb[64].mxu0 %vm305_vm1, %v10132_v41  ;;  %5464 = vrot.lane.b32.xlu1 %v9763_v49, %s8998_s19  ;;  %v10370_v18 = vpop.permute.xlu0 %5018  ;;  %v13196_v49 = vld [vmem:[#allocation4_spill] sm:$0xff] }
 0x17a   :  { %8378 = vmatpush3.bf16.msra.mxu0 %v3954_v6  ;;  %8317 = vmatprep.mubr.msk.bf16.mxu0 %vm305_vm1, %v10173_v37  ;;  %v13204_v41 = vld [vmem:[#allocation12_spill] sm:$0xff]  ;;  %v13207_v37 = vld [vmem:[#allocation15_spill] sm:$0xff] }
 0x17b   :  { %8446 = vmatmul.mubr.msk.bf16.vlgmr.msra.gmra.mrb[64].mxu1 %vm305_vm1, %v10158_v24  ;;  %v10376_v22 = vpop.permute.xlu1 %5020  ;;  %3821 = vrot.lane.b32.xlu0 %v9773_v61, %s8997_s16  ;;  %v13197_v61 = vld [vmem:[#allocation5_spill] sm:$0xff]  ;;  %v13198_v24 = vld [vmem:[#allocation6_spill] sm:$0xff]  ;;  %v13220_v6 = vld [vmem:[#allocation28_spill] sm:$0xff] }
 0x17c   :  { %8510 = vmatpush3.bf16.msra.mxu1 %v5599_v14  ;;  %8449 = vmatprep.mubr.msk.bf16.mxu1 %vm305_vm1, %v10190_v15 }
 0x17d   :  { %3823 = vrot.lane.b32.xlu1 %v9786_v12, %s8997_s16  ;;  %v10384_v26 = vpop.permute.xlu0 %3377 }
 0x17f   :  { %v10386_v30 = vpop.permute.xlu1 %3379  ;;  %5466 = vrot.lane.b32.xlu0 %v13193_v38, %s8998_s19 }
 0x181   :  { %8318 = vmatmul.mubr.msk.bf16.gmra.mrb[68].mxu0 %vm305_vm1, %v13194_v39  ;;  %5468 = vrot.lane.b32.xlu1 %v13195_v42, %s8998_s19  ;;  %v10394_v43 = vpop.permute.xlu0 %5022  ;;  %v13224_v42 = vld [vmem:[#allocation32_spill] sm:$0xff] }
 0x182   :  { %8321 = vmatprep.mubr.msk.bf16.mxu0 %vm305_vm1, %v10206_v35  ;;  %v13208_v35 = vld [vmem:[#allocation16_spill] sm:$0xff] }
 0x183   :  { %8450 = vmatmul.mubr.msk.bf16.gmra.mrb[68].mxu1 %vm305_vm1, %v10196_v46  ;;  %v10400_v47 = vpop.permute.xlu1 %5024  ;;  %3825 = vrot.lane.b32.xlu0 %v13196_v49, %s8997_s16  ;;  %v13206_v46 = vld [vmem:[#allocation14_spill] sm:$0xff] }
 0x184   :  { %8453 = vmatprep.mubr.msk.bf16.mxu1 %vm305_vm1, %v10218_v48 }
 0x185   :  { %3827 = vrot.lane.b32.xlu1 %v13197_v61, %s8997_s16  ;;  %v10408_v12 = vpop.permute.xlu0 %3381 }
 0x187   :  { %v10410_v29 = vpop.permute.xlu1 %3383  ;;  %5470 = vrot.lane.b32.xlu0 %v13198_v24, %s8998_s19 }
 0x189   :  { %8322 = vmatmul.mubr.msk.bf16.gmra.mrb[72].mxu0 %vm305_vm1, %v10208_v27  ;;  %5472 = vrot.lane.b32.xlu1 %v13199_v32, %s8998_s19  ;;  %v10418_v7 = vpop.permute.xlu0 %5026 }
 0x18a   :  { %8325 = vmatprep.mubr.msk.bf16.mxu0 %vm305_vm1, %v10234_v52  ;;  %v13211_v52 = vld [vmem:[#allocation19_spill] sm:$0xff] }
 0x18b   :  { %8454 = vmatmul.mubr.msk.bf16.gmra.mrb[72].mxu1 %vm305_vm1, %v10224_v23  ;;  %v10424_v33 = vpop.permute.xlu1 %5028  ;;  %3829 = vrot.lane.b32.xlu0 %v13200_v45, %s8997_s16  ;;  %v13210_v23 = vld [vmem:[#allocation18_spill] sm:$0xff] }
 0x18c   :  { %8457 = vmatprep.mubr.msk.bf16.mxu1 %vm305_vm1, %v10246_v60  ;;  %v13212_v60 = vld [vmem:[#allocation20_spill] sm:$0xff] }
 0x18d   :  { %3831 = vrot.lane.b32.xlu1 %v13201_v57, %s8997_s16  ;;  %v10432_v40 = vpop.permute.xlu0 %3385 }
 0x18f   :  { %v10434_v17 = vpop.permute.xlu1 %3387  ;;  %5474 = vrot.lane.b32.xlu0 %v13202_v51, %s8998_s19 }
 0x191   :  { %8326 = vmatmul.mubr.msk.bf16.gmra.mrb[76].mxu0 %vm305_vm1, %v10236_v56  ;;  %5476 = vrot.lane.b32.xlu1 %v13203_v53, %s8998_s19  ;;  %v10442_v2 = vpop.permute.xlu0 %5030 }
 0x192   :  { %8329 = vmatprep.mubr.msk.bf16.mxu0 %vm305_vm1, %v10260_v4 }
 0x193   :  { %8458 = vmatmul.mubr.msk.bf16.gmra.mrb[76].mxu1 %vm305_vm1, %v10250_v0  ;;  %v10448_v5 = vpop.permute.xlu1 %5032  ;;  %3833 = vrot.lane.b32.xlu0 %v13204_v41, %s8997_s16  ;;  %v13213_v0 = vld [vmem:[#allocation21_spill] sm:$0xff] }
 0x194   :  { %8461 = vmatprep.mubr.msk.bf16.mxu1 %vm305_vm1, %v10270_v54  ;;  %v13214_v54 = vld [vmem:[#allocation22_spill] sm:$0xff] }
 0x195   :  { %3835 = vrot.lane.b32.xlu1 %v13205_v25, %s8997_s16  ;;  %v10456_v11 = vpop.permute.xlu0 %3389 }
 0x197   :  { %v10458_v19 = vpop.permute.xlu1 %3391  ;;  %5478 = vrot.lane.b32.xlu0 %v13206_v46, %s8998_s19 }
 0x199   :  { %8330 = vmatmul.mubr.msk.bf16.gmra.mrb[80].mxu0 %vm305_vm1, %v10262_v8  ;;  %5480 = vrot.lane.b32.xlu1 %v13207_v37, %s8998_s19  ;;  %v10466_v27 = vpop.permute.xlu0 %5034 }
 0x19a   :  { %8333 = vmatprep.mubr.msk.bf16.mxu0 %vm305_vm1, %v10284_v55 }
 0x19b   :  { %8462 = vmatmul.mubr.msk.bf16.gmra.mrb[80].mxu1 %vm305_vm1, %v10274_v13  ;;  %v10472_v15 = vpop.permute.xlu1 %5036  ;;  %3837 = vrot.lane.b32.xlu0 %v13208_v35, %s8997_s16  ;;  %v13215_v13 = vld [vmem:[#allocation23_spill] sm:$0xff] }
 0x19c   :  { %8465 = vmatprep.mubr.msk.bf16.mxu1 %vm305_vm1, %v10294_v58  ;;  %v13216_v58 = vld [vmem:[#allocation24_spill] sm:$0xff] }
 0x19d   :  { %3839 = vrot.lane.b32.xlu1 %v13209_v20, %s8997_s16  ;;  %v10480_v48 = vpop.permute.xlu0 %3393 }
 0x19f   :  { %v10482_v50 = vpop.permute.xlu1 %3395  ;;  %5482 = vrot.lane.b32.xlu0 %v13210_v23, %s8998_s19 }
 0x1a1   :  { %8334 = vmatmul.mubr.msk.bf16.gmra.mrb[84].mxu0 %vm305_vm1, %v10286_v21  ;;  %5484 = vrot.lane.b32.xlu1 %v13211_v52, %s8998_s19  ;;  %v10490_v56 = vpop.permute.xlu0 %5038 }
 0x1a2   :  { %8337 = vmatprep.mubr.msk.bf16.mxu0 %vm305_vm1, %v10308_v59 }
 0x1a3   :  { %8466 = vmatmul.mubr.msk.bf16.gmra.mrb[84].mxu1 %vm305_vm1, %v10298_v28  ;;  %v10496_v44 = vpop.permute.xlu1 %5040  ;;  %3841 = vrot.lane.b32.xlu0 %v13212_v60, %s8997_s16  ;;  %v13217_v28 = vld [vmem:[#allocation25_spill] sm:$0xff] }
 0x1a4   :  { %8469 = vmatprep.mubr.msk.bf16.mxu1 %vm305_vm1, %v10318_v62  ;;  %v13218_v62 = vld [vmem:[#allocation26_spill] sm:$0xff] }
 0x1a5   :  { %3843 = vrot.lane.b32.xlu1 %v13213_v0, %s8997_s16  ;;  %v10504_v4 = vpop.permute.xlu0 %3397 }
 0x1a7   :  { %v10506_v8 = vpop.permute.xlu1 %3399  ;;  %5486 = vrot.lane.b32.xlu0 %v13214_v54, %s8998_s19 }
 0x1a9   :  { %8338 = vmatmul.mubr.msk.bf16.gmra.mrb[88].mxu0 %vm305_vm1, %v10310_v31  ;;  %5488 = vrot.lane.b32.xlu1 %v13215_v13, %s8998_s19  ;;  %v10514_v55 = vpop.permute.xlu0 %5042 }
 0x1aa   :  { %8341 = vmatprep.mubr.msk.bf16.mxu0 %vm305_vm1, %v10332_v63 }
 0x1ab   :  { %8470 = vmatmul.mubr.msk.bf16.gmra.mrb[88].mxu1 %vm305_vm1, %v10322_v34  ;;  %v10520_v21 = vpop.permute.xlu1 %5044  ;;  %3845 = vrot.lane.b32.xlu0 %v13216_v58, %s8997_s16  ;;  %v13219_v34 = vld [vmem:[#allocation27_spill] sm:$0xff] }
 0x1ac   :  { %8473 = vmatprep.mubr.msk.bf16.mxu1 %vm305_vm1, %v10342_v9 }
 0x1ad   :  { %3847 = vrot.lane.b32.xlu1 %v13217_v28, %s8997_s16  ;;  %v10528_v59 = vpop.permute.xlu0 %3401 }
 0x1af   :  { %v10530_v31 = vpop.permute.xlu1 %3403  ;;  %5490 = vrot.lane.b32.xlu0 %v13218_v62, %s8998_s19 }
 0x1b1   :  { %8342 = vmatmul.mubr.msk.bf16.gmra.mrb[92].mxu0 %vm305_vm1, %v10334_v36  ;;  %5492 = vrot.lane.b32.xlu1 %v13219_v34, %s8998_s19  ;;  %v10538_v63 = vpop.permute.xlu0 %5046  ;;  %v13221_v36 = vld [vmem:[#allocation29_spill] sm:$0xff] }
 0x1b2   :  { %8345 = vmatprep.mubr.msk.bf16.mxu0 %vm305_vm1, %v10356_v16  ;;  %v13222_v16 = vld [vmem:[#allocation30_spill] sm:$0xff] }
 0x1b3   :  { %8474 = vmatmul.mubr.msk.bf16.gmra.mrb[92].mxu1 %vm305_vm1, %v10348_v1  ;;  %v10544_v9 = vpop.permute.xlu1 %5048  ;;  %3849 = vrot.lane.b32.xlu0 %v13220_v6, %s8997_s16  ;;  %v13223_v1 = vld [vmem:[#allocation31_spill] sm:$0xff] }
 0x1b4   :  { %8477 = vmatprep.mubr.msk.bf16.mxu1 %vm305_vm1, %v10370_v18 }
 0x1b5   :  { %3851 = vrot.lane.b32.xlu1 %v13221_v36, %s8997_s16  ;;  %v10552_v14 = vpop.permute.xlu0 %3793 }
 0x1b7   :  { %v10554_v38 = vpop.permute.xlu1 %3795  ;;  %5494 = vrot.lane.b32.xlu0 %v13222_v16, %s8998_s19 }
 0x1b9   :  { %8346 = vmatmul.mubr.msk.bf16.gmra.mrb[96].mxu0 %vm305_vm1, %v10360_v10  ;;  %5496 = vrot.lane.b32.xlu1 %v13223_v1, %s8998_s19  ;;  %v10562_v39 = vpop.permute.xlu0 %5438  ;;  %v13225_v10 = vld [vmem:[#allocation33_spill] sm:$0xff] }
 0x1ba   :  { %8349 = vmatprep.mubr.msk.bf16.mxu0 %vm305_vm1, %v10384_v26 }
 0x1bb   :  { %8478 = vmatmul.mubr.msk.bf16.gmra.mrb[96].mxu1 %vm305_vm1, %v10376_v22  ;;  %v10568_v18 = vpop.permute.xlu1 %5440  ;;  %3853 = vrot.lane.b32.xlu0 %v13224_v42, %s8997_s16  ;;  %v13226_v22 = vld [vmem:[#allocation34_spill] sm:$0xff] }
 0x1bc   :  { %8481 = vmatprep.mubr.msk.bf16.mxu1 %vm305_vm1, %v10394_v43 }
 0x1bd   :  { %3855 = vrot.lane.b32.xlu1 %v13225_v10, %s8997_s16  ;;  %v10576_v49 = vpop.permute.xlu0 %3797 }
 0x1bf   :  { %v10578_v61 = vpop.permute.xlu1 %3799  ;;  %5498 = vrot.lane.b32.xlu0 %v10167_v3, %s8998_s19 }
 0x1c1   :  { %8350 = vmatmul.mubr.msk.bf16.gmra.mrb[100].mxu0 %vm305_vm1, %v10386_v30  ;;  %5500 = vrot.lane.b32.xlu1 %v13226_v22, %s8998_s19  ;;  %v10586_v26 = vpop.permute.xlu0 %5442 }
 0x1c2   :  { %8353 = vmatprep.mubr.msk.bf16.mxu0 %vm305_vm1, %v10408_v12 }
 0x1c3   :  { %8482 = vmatmul.mubr.msk.bf16.gmra.mrb[100].mxu1 %vm305_vm1, %v10400_v47  ;;  %v10592_v43 = vpop.permute.xlu1 %5444 }
 0x1c4   :  { %8485 = vmatprep.mubr.msk.bf16.mxu1 %vm305_vm1, %v10418_v7 }
 0x1c5   :  { %v10596_v3 = vpop.permute.xlu0 %3801 }
 0x1c7   :  { %v10598_v24 = vpop.permute.xlu1 %3803 }
 0x1c9   :  { %8354 = vmatmul.mubr.msk.bf16.gmra.mrb[104].mxu0 %vm305_vm1, %v10410_v29  ;;  %v10602_v30 = vpop.permute.xlu0 %5446 }
 0x1ca   :  { %8357 = vmatprep.mubr.msk.bf16.mxu0 %vm305_vm1, %v10432_v40 }
 0x1cb   :  { %8486 = vmatmul.mubr.msk.bf16.gmra.mrb[104].mxu1 %vm305_vm1, %v10424_v33  ;;  %v10608_v47 = vpop.permute.xlu1 %5448 }
 0x1cc   :  { %v8117_v12 = vpop.f32.mrb[0].mxu0  ;;  %8489 = vmatprep.mubr.msk.bf16.mxu1 %vm305_vm1, %v10442_v2 }
 0x1cd   :  { %v7529_v32 = vpack.c.bf16 %v8117_v12, %v8117_v12  ;;  %v1406_v7 = vmul.f32 %v8117_v12, %v8117_v12  ;;  %v828_v45 = vpop.f32.mrb[1].mxu0  ;;  %v10612_v57 = vpop.permute.xlu0 %3805 }
 0x1ce   :  { %v7527_v29 = vpack.c.bf16 %v828_v45, %v828_v45  ;;  %v1404_v51 = vmul.f32 %v828_v45, %v828_v45  ;;  %v8249_v53 = vpop.f32.mrb[0].mxu1  ;;  %v8118_v41 = vpop.f32.mrb[2].mxu0 }
 0x1cf   :  { %1342 = vst.msk [vmem:[%s13119_s2 + $0x8] sm:$0xf] %vm1339_vm2, %v7529_v32  ;;  %v7593_v33 = vpack.c.bf16 %v8249_v53, %v8249_v53  ;;  %v10618_v40 = vadd.f32 %v8249_v53, %v8117_v12  ;;  %v2987_v25 = vmul.f32 %v8249_v53, %v8249_v53  ;;  %v7530_v46 = vpack.c.bf16 %v8118_v41, %v8118_v41  ;;  %v2345_v2 = vpop.f32.mrb[1].mxu1  ;;  %v831_v37 = vpop.f32.mrb[3].mxu0 }
 0x1d0   :  { %1340 = vst.msk [vmem:[%s13119_s2] sm:$0xf] %vm1339_vm2, %v7527_v29  ;;  %v1407_v35 = vmul.f32 %v8118_v41, %v8118_v41  ;;  %v7591_v20 = vpack.c.bf16 %v2345_v2, %v2345_v2  ;;  %v10624_v23 = vadd.f32 %v2345_v2, %v828_v45  ;;  %v2985_v52 = vmul.f32 %v2345_v2, %v2345_v2  ;;  %v8250_v60 = vpop.f32.mrb[2].mxu1  ;;  %v10626_v0 = vpop.permute.xlu1 %3807 }
 0x1d1   :  { %7013 = vst.msk [vmem:[%s13119_s2 + $0x108] sm:$0xf] %vm1339_vm2, %v7593_v33  ;;  %v10632_v54 = vadd.f32 %v2987_v25, %v1406_v7  ;;  %1343 = vst.msk [vmem:[%s13119_s2 + $0xc] sm:$0xf] %vm1339_vm2, %v7530_v46  ;;  %v7528_v13 = vpack.c.bf16 %v831_v37, %v831_v37  ;;  %v1405_v58 = vmul.f32 %v831_v37, %v831_v37  ;;  %v2348_v62 = vpop.f32.mrb[3].mxu1  ;;  %8358 = vmatmul.mubr.msk.bf16.gmra.mrb[108].mxu0 %vm305_vm1, %v10434_v17  ;;  %v10640_v34 = vpop.permute.xlu0 %5450 }
 0x1d2   :  { %v7594_v28 = vpack.c.bf16 %v8250_v60, %v8250_v60  ;;  %7011 = vst.msk [vmem:[%s13119_s2 + $0x100] sm:$0xf] %vm1339_vm2, %v7591_v20  ;;  %v10646_v6 = vadd.f32 %v2985_v52, %v1404_v51  ;;  %v10648_v36 = vadd.f32 %v8250_v60, %v8118_v41  ;;  %v2988_v16 = vmul.f32 %v8250_v60, %v8250_v60 }
 0x1d3   :  { %v7592_v1 = vpack.c.bf16 %v2348_v62, %v2348_v62  ;;  %8361 = vmatprep.mubr.msk.bf16.mxu0 %vm305_vm1, %v10456_v11  ;;  %1341 = vst.msk [vmem:[%s13119_s2 + $0x4] sm:$0xf] %vm1339_vm2, %v7528_v13  ;;  %v10660_v17 = vadd.f32 %v2348_v62, %v831_v37  ;;  %v2986_v42 = vmul.f32 %v2348_v62, %v2348_v62 }
 0x1d4   :  { %7014 = vst.msk [vmem:[%s13119_s2 + $0x10c] sm:$0xf] %vm1339_vm2, %v7594_v28  ;;  %8490 = vmatmul.mubr.msk.bf16.gmra.mrb[108].mxu1 %vm305_vm1, %v10448_v5  ;;  %v10664_v10 = vadd.f32 %v2988_v16, %v1407_v35  ;;  %v8121_v11 = vpop.f32.mrb[4].mxu0  ;;  %v10672_v22 = vpop.permute.xlu1 %5452 }
 0x1d5   :  { %7012 = vst.msk [vmem:[%s13119_s2 + $0x104] sm:$0xf] %vm1339_vm2, %v7592_v1  ;;  %8493 = vmatprep.mubr.msk.bf16.mxu1 %vm305_vm1, %v10466_v27  ;;  %v10674_v12 = vadd.f32 %v2986_v42, %v1405_v58  ;;  %v7533_v32 = vpack.c.bf16 %v8121_v11, %v8121_v11  ;;  %v1410_v7 = vmul.f32 %v8121_v11, %v8121_v11  ;;  %v844_v45 = vpop.f32.mrb[5].mxu0  ;;  %v10676_v29 = vpop.permute.xlu0 %3809 }
 0x1d6   :  { %v7531_v5 = vpack.c.bf16 %v844_v45, %v844_v45  ;;  %v1408_v51 = vmul.f32 %v844_v45, %v844_v45  ;;  %v8253_v53 = vpop.f32.mrb[4].mxu1  ;;  %v8122_v41 = vpop.f32.mrb[6].mxu0 }
 0x1d7   :  { %1346 = vst.msk [vmem:[%s13119_s2 + $0x18] sm:$0xf] %vm1339_vm2, %v7533_v32  ;;  %v7597_v33 = vpack.c.bf16 %v8253_v53, %v8253_v53  ;;  %v10682_v27 = vadd.f32 %v8253_v53, %v8121_v11  ;;  %v2991_v25 = vmul.f32 %v8253_v53, %v8253_v53  ;;  %v7534_v46 = vpack.c.bf16 %v8122_v41, %v8122_v41  ;;  %v2361_v2 = vpop.f32.mrb[5].mxu1  ;;  %v847_v37 = vpop.f32.mrb[7].mxu0 }
 0x1d8   :  { %1344 = vst.msk [vmem:[%s13119_s2 + $0x10] sm:$0xf] %vm1339_vm2, %v7531_v5  ;;  %v1411_v35 = vmul.f32 %v8122_v41, %v8122_v41  ;;  %v7595_v20 = vpack.c.bf16 %v2361_v2, %v2361_v2  ;;  %v10688_v52 = vadd.f32 %v2361_v2, %v844_v45  ;;  %v2989_v60 = vmul.f32 %v2361_v2, %v2361_v2  ;;  %v8254_v13 = vpop.f32.mrb[6].mxu1  ;;  %v10690_v58 = vpop.permute.xlu1 %3811 }
 0x1d9   :  { %7017 = vst.msk [vmem:[%s13119_s2 + $0x118] sm:$0xf] %vm1339_vm2, %v7597_v33  ;;  %v10696_v28 = vadd.f32 %v2991_v25, %v1410_v7  ;;  %1347 = vst.msk [vmem:[%s13119_s2 + $0x1c] sm:$0xf] %vm1339_vm2, %v7534_v46  ;;  %v7532_v62 = vpack.c.bf16 %v847_v37, %v847_v37  ;;  %v1409_v16 = vmul.f32 %v847_v37, %v847_v37  ;;  %v2364_v42 = vpop.f32.mrb[7].mxu1  ;;  %8362 = vmatmul.mubr.msk.bf16.gmra.mrb[112].mxu0 %vm305_vm1, %v10458_v19  ;;  %v10704_v11 = vpop.permute.xlu0 %5454 }
 0x1da   :  { %v7598_v1 = vpack.c.bf16 %v8254_v13, %v8254_v13  ;;  %7015 = vst.msk [vmem:[%s13119_s2 + $0x110] sm:$0xf] %vm1339_vm2, %v7595_v20  ;;  %v10710_v32 = vadd.f32 %v2989_v60, %v1408_v51  ;;  %v10712_v7 = vadd.f32 %v8254_v13, %v8122_v41  ;;  %v2992_v45 = vmul.f32 %v8254_v13, %v8254_v13 }
 0x1db   :  { %v7596_v5 = vpack.c.bf16 %v2364_v42, %v2364_v42  ;;  %8365 = vmatprep.mubr.msk.bf16.mxu0 %vm305_vm1, %v10480_v48  ;;  %1345 = vst.msk [vmem:[%s13119_s2 + $0x14] sm:$0xf] %vm1339_vm2, %v7532_v62  ;;  %v10724_v19 = vadd.f32 %v2364_v42, %v847_v37  ;;  %v2990_v51 = vmul.f32 %v2364_v42, %v2364_v42 }
 0x1dc   :  { %7018 = vst.msk [vmem:[%s13119_s2 + $0x11c] sm:$0xf] %vm1339_vm2, %v7598_v1  ;;  %8494 = vmatmul.mubr.msk.bf16.gmra.mrb[112].mxu1 %vm305_vm1, %v10472_v15  ;;  %v10728_v53 = vadd.f32 %v2992_v45, %v1411_v35  ;;  %v8125_v48 = vpop.f32.mrb[8].mxu0  ;;  %v10736_v41 = vpop.permute.xlu1 %5456 }
 0x1dd   :  { %13227 = vst [vmem:[#allocation2_spill] sm:$0xff] %v10724_v19  ;;  %7016 = vst.msk [vmem:[%s13119_s2 + $0x114] sm:$0xf] %vm1339_vm2, %v7596_v5  ;;  %8497 = vmatprep.mubr.msk.bf16.mxu1 %vm305_vm1, %v10490_v56  ;;  %v10738_v33 = vadd.f32 %v2990_v51, %v1409_v16  ;;  %v7537_v25 = vpack.c.bf16 %v8125_v48, %v8125_v48  ;;  %v1414_v46 = vmul.f32 %v8125_v48, %v8125_v48  ;;  %v860_v2 = vpop.f32.mrb[9].mxu0  ;;  %v10740_v37 = vpop.permute.xlu0 %3813 }
 0x1de   :  { %13228 = vst [vmem:[#allocation35_spill] sm:$0xff] %v10728_v53  ;;  %v7535_v15 = vpack.c.bf16 %v860_v2, %v860_v2  ;;  %v1412_v35 = vmul.f32 %v860_v2, %v860_v2  ;;  %v8257_v20 = vpop.f32.mrb[8].mxu1  ;;  %v8126_v60 = vpop.f32.mrb[10].mxu0 }
 0x1df   :  { %13229 = vst [vmem:[#allocation3_spill] sm:$0xff] %v10738_v33  ;;  %1350 = vst.msk [vmem:[%s13119_s2 + $0x28] sm:$0xf] %vm1339_vm2, %v7537_v25  ;;  %v7601_v13 = vpack.c.bf16 %v8257_v20, %v8257_v20  ;;  %v10746_v56 = vadd.f32 %v8257_v20, %v8125_v48  ;;  %v2995_v62 = vmul.f32 %v8257_v20, %v8257_v20  ;;  %v2377_v1 = vpop.f32.mrb[9].mxu1  ;;  %v863_v42 = vpop.f32.mrb[11].mxu0 }
 0x1e0   :  { %v7538_v16 = vpack.c.bf16 %v8126_v60, %v8126_v60  ;;  %1348 = vst.msk [vmem:[%s13119_s2 + $0x20] sm:$0xf] %vm1339_vm2, %v7535_v15  ;;  %v1415_v45 = vmul.f32 %v8126_v60, %v8126_v60  ;;  %v7599_v5 = vpack.c.bf16 %v2377_v1, %v2377_v1  ;;  %v10752_v51 = vadd.f32 %v2377_v1, %v860_v2  ;;  %v8258_v19 = vpop.f32.mrb[10].mxu1  ;;  %v10754_v53 = vpop.permute.xlu1 %3815 }
 0x1e1   :  { %13230 = vst [vmem:[#allocation4_spill] sm:$0xff] %v10746_v56  ;;  %v2993_v33 = vmul.f32 %v2377_v1, %v2377_v1  ;;  %7021 = vst.msk [vmem:[%s13119_s2 + $0x128] sm:$0xf] %vm1339_vm2, %v7601_v13  ;;  %v10760_v48 = vadd.f32 %v2995_v62, %v1414_v46  ;;  %v7536_v25 = vpack.c.bf16 %v863_v42, %v863_v42  ;;  %v2380_v20 = vpop.f32.mrb[11].mxu1  ;;  %8366 = vmatmul.mubr.msk.bf16.gmra.mrb[116].mxu0 %vm305_vm1, %v10482_v50  ;;  %v10768_v1 = vpop.permute.xlu0 %5458 }
 0x1e2   :  { %13231 = vst [vmem:[#allocation5_spill] sm:$0xff] %v10752_v51  ;;  %1351 = vst.msk [vmem:[%s13119_s2 + $0x2c] sm:$0xf] %vm1339_vm2, %v7538_v16  ;;  %v1413_v15 = vmul.f32 %v863_v42, %v863_v42  ;;  %v7602_v2 = vpack.c.bf16 %v8258_v19, %v8258_v19  ;;  %v10776_v13 = vadd.f32 %v8258_v19, %v8126_v60  ;;  %8369 = vmatprep.mubr.msk.bf16.mxu0 %vm305_vm1, %v10504_v4 }
 0x1e3   :  { %13232 = vst [vmem:[#allocation6_spill] sm:$0xff] %v10760_v48  ;;  %7019 = vst.msk [vmem:[%s13119_s2 + $0x120] sm:$0xf] %vm1339_vm2, %v7599_v5  ;;  %v10774_v46 = vadd.f32 %v2993_v33, %v1412_v35  ;;  %v2996_v62 = vmul.f32 %v8258_v19, %v8258_v19  ;;  %v7600_v16 = vpack.c.bf16 %v2380_v20, %v2380_v20 }
 0x1e4   :  { %13234 = vst [vmem:[#allocation8_spill] sm:$0xff] %v10776_v13  ;;  %1349 = vst.msk [vmem:[%s13119_s2 + $0x24] sm:$0xf] %vm1339_vm2, %v7536_v25  ;;  %v10788_v50 = vadd.f32 %v2380_v20, %v863_v42  ;;  %v2994_v33 = vmul.f32 %v2380_v20, %v2380_v20  ;;  %8498 = vmatmul.mubr.msk.bf16.gmra.mrb[116].mxu1 %vm305_vm1, %v10496_v44  ;;  %v8129_v4 = vpop.f32.mrb[12].mxu0  ;;  %v10800_v35 = vpop.permute.xlu1 %5460 }
 0x1e5   :  { %13233 = vst [vmem:[#allocation7_spill] sm:$0xff] %v10774_v46  ;;  %7022 = vst.msk [vmem:[%s13119_s2 + $0x12c] sm:$0xf] %vm1339_vm2, %v7602_v2  ;;  %v10792_v19 = vadd.f32 %v2996_v62, %v1415_v45  ;;  %8501 = vmatprep.mubr.msk.bf16.mxu1 %vm305_vm1, %v10514_v55  ;;  %v7541_v42 = vpack.c.bf16 %v8129_v4, %v8129_v4  ;;  %v1418_v5 = vmul.f32 %v8129_v4, %v8129_v4  ;;  %v876_v25 = vpop.f32.mrb[13].mxu0  ;;  %v10804_v2 = vpop.permute.xlu0 %3817 }
 0x1e6   :  { %13235 = vst [vmem:[#allocation9_spill] sm:$0xff] %v10788_v50  ;;  %7020 = vst.msk [vmem:[%s13119_s2 + $0x124] sm:$0xf] %vm1339_vm2, %v7600_v16  ;;  %v10802_v60 = vadd.f32 %v2994_v33, %v1413_v15  ;;  %v7539_v44 = vpack.c.bf16 %v876_v25, %v876_v25  ;;  %v1416_v45 = vmul.f32 %v876_v25, %v876_v25  ;;  %v8261_v20 = vpop.f32.mrb[12].mxu1  ;;  %v8130_v62 = vpop.f32.mrb[14].mxu0 }
 0x1e7   :  { %13236 = vst [vmem:[#allocation10_spill] sm:$0xff] %v10792_v19  ;;  %1354 = vst.msk [vmem:[%s13119_s2 + $0x38] sm:$0xf] %vm1339_vm2, %v7541_v42  ;;  %v7605_v16 = vpack.c.bf16 %v8261_v20, %v8261_v20  ;;  %v10810_v55 = vadd.f32 %v8261_v20, %v8129_v4  ;;  %v2999_v50 = vmul.f32 %v8261_v20, %v8261_v20  ;;  %v2393_v33 = vpop.f32.mrb[13].mxu1 }
 0x1e8   :  { %13237 = vst [vmem:[#allocation11_spill] sm:$0xff] %v10802_v60  ;;  %v7542_v15 = vpack.c.bf16 %v8130_v62, %v8130_v62  ;;  %v879_v60 = vpop.f32.mrb[15].mxu0  ;;  %1352 = vst.msk [vmem:[%s13119_s2 + $0x30] sm:$0xf] %vm1339_vm2, %v7539_v44  ;;  %v1419_v19 = vmul.f32 %v8130_v62, %v8130_v62  ;;  %v7603_v13 = vpack.c.bf16 %v2393_v33, %v2393_v33  ;;  %v8262_v51 = vpop.f32.mrb[14].mxu1 }
 0x1e9   :  { %v10816_v46 = vadd.f32 %v2393_v33, %v876_v25  ;;  %v2997_v48 = vmul.f32 %v2393_v33, %v2393_v33  ;;  %v10818_v56 = vpop.permute.xlu1 %3819  ;;  %7025 = vst.msk [vmem:[%s13119_s2 + $0x138] sm:$0xf] %vm1339_vm2, %v7605_v16  ;;  %v10824_v4 = vadd.f32 %v2999_v50, %v1418_v5  ;;  %v7540_v42 = vpack.c.bf16 %v879_v60, %v879_v60  ;;  %v2396_v20 = vpop.f32.mrb[15].mxu1 }
 0x1ea   :  { %1355 = vst.msk [vmem:[%s13119_s2 + $0x3c] sm:$0xf] %vm1339_vm2, %v7542_v15  ;;  %v1417_v44 = vmul.f32 %v879_v60, %v879_v60  ;;  %v7606_v25 = vpack.c.bf16 %v8262_v51, %v8262_v51  ;;  %8370 = vmatmul.mubr.msk.bf16.gmra.mrb[120].mxu0 %vm305_vm1, %v10506_v8  ;;  %v10832_v33 = vpop.permute.xlu0 %5462  ;;  %7023 = vst.msk [vmem:[%s13119_s2 + $0x130] sm:$0xf] %vm1339_vm2, %v7603_v13  ;;  %v10840_v5 = vadd.f32 %v8262_v51, %v8130_v62 }
 0x1eb   :  { %13238 = vst [vmem:[#allocation12_spill] sm:$0xff] %v10816_v46  ;;  %13239 = vst [vmem:[#allocation13_spill] sm:$0xff] %v10824_v4  ;;  %v10838_v50 = vadd.f32 %v2997_v48, %v1416_v45  ;;  %v3000_v16 = vmul.f32 %v8262_v51, %v8262_v51  ;;  %v7604_v15 = vpack.c.bf16 %v2396_v20, %v2396_v20  ;;  %8373 = vmatprep.mubr.msk.bf16.mxu0 %vm305_vm1, %v10528_v59 }
 0x1ec   :  { %13241 = vst [vmem:[#allocation15_spill] sm:$0xff] %v10840_v5  ;;  %1353 = vst.msk [vmem:[%s13119_s2 + $0x34] sm:$0xf] %vm1339_vm2, %v7540_v42  ;;  %v10852_v8 = vadd.f32 %v2396_v20, %v879_v60  ;;  %v2998_v48 = vmul.f32 %v2396_v20, %v2396_v20  ;;  %8502 = vmatmul.mubr.msk.bf16.gmra.mrb[120].mxu1 %vm305_vm1, %v10520_v21  ;;  %v8133_v59 = vpop.f32.mrb[16].mxu0 }
 0x1ed   :  { %13240 = vst [vmem:[#allocation14_spill] sm:$0xff] %v10838_v50  ;;  %7026 = vst.msk [vmem:[%s13119_s2 + $0x13c] sm:$0xf] %vm1339_vm2, %v7606_v25  ;;  %v10856_v51 = vadd.f32 %v3000_v16, %v1419_v19  ;;  %8505 = vmatprep.mubr.msk.bf16.mxu1 %vm305_vm1, %v10538_v63  ;;  %v10864_v13 = vpop.permute.xlu1 %5464  ;;  %v7545_v60 = vpack.c.bf16 %v8133_v59, %v8133_v59  ;;  %v1422_v62 = vmul.f32 %v8133_v59, %v8133_v59  ;;  %v892_v42 = vpop.f32.mrb[17].mxu0 }
 0x1ee   :  { %13242 = vst [vmem:[#allocation16_spill] sm:$0xff] %v10852_v8  ;;  %7024 = vst.msk [vmem:[%s13119_s2 + $0x134] sm:$0xf] %vm1339_vm2, %v7604_v15  ;;  %v10866_v45 = vadd.f32 %v2998_v48, %v1417_v44  ;;  %v10868_v25 = vpop.permute.xlu0 %3821  ;;  %v7543_v21 = vpack.c.bf16 %v892_v42, %v892_v42  ;;  %v1420_v19 = vmul.f32 %v892_v42, %v892_v42  ;;  %v8265_v20 = vpop.f32.mrb[16].mxu1 }
 0x1ef   :  { %13243 = vst [vmem:[#allocation17_spill] sm:$0xff] %v10856_v51  ;;  %v8134_v16 = vpop.f32.mrb[18].mxu0  ;;  %1358 = vst.msk [vmem:[%s13119_s2 + $0x48] sm:$0xf] %vm1339_vm2, %v7545_v60  ;;  %v7609_v15 = vpack.c.bf16 %v8265_v20, %v8265_v20  ;;  %v10874_v63 = vadd.f32 %v8265_v20, %v8133_v59  ;;  %v3003_v8 = vmul.f32 %v8265_v20, %v8265_v20  ;;  %v2409_v48 = vpop.f32.mrb[17].mxu1 }
 0x1f0   :  { %13244 = vst [vmem:[#allocation18_spill] sm:$0xff] %v10866_v45  ;;  %v7546_v44 = vpack.c.bf16 %v8134_v16, %v8134_v16  ;;  %v895_v45 = vpop.f32.mrb[19].mxu0  ;;  %1356 = vst.msk [vmem:[%s13119_s2 + $0x40] sm:$0xf] %vm1339_vm2, %v7543_v21  ;;  %v1423_v51 = vmul.f32 %v8134_v16, %v8134_v16  ;;  %v7607_v5 = vpack.c.bf16 %v2409_v48, %v2409_v48  ;;  %v8266_v46 = vpop.f32.mrb[18].mxu1 }
 0x1f1   :  { %13245 = vst [vmem:[#allocation19_spill] sm:$0xff] %v10874_v63  ;;  %v10880_v50 = vadd.f32 %v2409_v48, %v892_v42  ;;  %v3001_v4 = vmul.f32 %v2409_v48, %v2409_v48  ;;  %7029 = vst.msk [vmem:[%s13119_s2 + $0x148] sm:$0xf] %vm1339_vm2, %v7609_v15  ;;  %v10886_v59 = vadd.f32 %v3003_v8, %v1422_v62  ;;  %v2412_v63 = vpop.f32.mrb[19].mxu1 }
 0x1f2   :  { %1359 = vst.msk [vmem:[%s13119_s2 + $0x4c] sm:$0xf] %vm1339_vm2, %v7546_v44  ;;  %v7544_v60 = vpack.c.bf16 %v895_v45, %v895_v45  ;;  %v1421_v21 = vmul.f32 %v895_v45, %v895_v45  ;;  %v7610_v20 = vpack.c.bf16 %v8266_v46, %v8266_v46  ;;  %8374 = vmatmul.mubr.msk.bf16.gmra.mrb[124].mxu0 %vm305_vm1, %v10530_v31  ;;  %7027 = vst.msk [vmem:[%s13119_s2 + $0x140] sm:$0xf] %vm1339_vm2, %v7607_v5  ;;  %v10924_v5 = vpop.permute.xlu1 %3823  ;;  %v10928_v44 = vpop.permute.xlu0 %5466 }
 0x1f3   :  { %v10898_v42 = vadd.f32 %v3001_v4, %v1420_v19  ;;  %v10900_v8 = vadd.f32 %v8266_v46, %v8134_v16  ;;  %v3004_v62 = vmul.f32 %v8266_v46, %v8266_v46  ;;  %v7608_v15 = vpack.c.bf16 %v2412_v63, %v2412_v63  ;;  %8379 = vmatprep.mubr.msk.bf16.mxu0 %vm305_vm1, %v10552_v14 }
 0x1f4   :  { %1357 = vst.msk [vmem:[%s13119_s2 + $0x44] sm:$0xf] %vm1339_vm2, %v7544_v60  ;;  %7030 = vst.msk [vmem:[%s13119_s2 + $0x14c] sm:$0xf] %vm1339_vm2, %v7610_v20  ;;  %v10912_v31 = vadd.f32 %v2412_v63, %v895_v45  ;;  %v3002_v4 = vmul.f32 %v2412_v63, %v2412_v63  ;;  %8506 = vmatmul.mubr.msk.bf16.gmra.mrb[124].mxu1 %vm305_vm1, %v10544_v9  ;;  %v8137_v14 = vpop.f32.mrb[20].mxu0 }
 0x1f5   :  { %13246 = vst [vmem:[#allocation20_spill] sm:$0xff] %v10898_v42  ;;  %13247 = vst [vmem:[#allocation21_spill] sm:$0xff] %v10900_v8  ;;  %v10916_v46 = vadd.f32 %v3004_v62, %v1423_v51  ;;  %8511 = vmatprep.mubr.msk.bf16.mxu1 %vm305_vm1, %v10562_v39  ;;  %v7549_v45 = vpack.c.bf16 %v8137_v14, %v8137_v14  ;;  %v1426_v16 = vmul.f32 %v8137_v14, %v8137_v14  ;;  %v908_v63 = vpop.f32.mrb[21].mxu0 }
 0x1f6   :  { %13248 = vst [vmem:[#allocation22_spill] sm:$0xff] %v10912_v31  ;;  %7028 = vst.msk [vmem:[%s13119_s2 + $0x144] sm:$0xf] %vm1339_vm2, %v7608_v15  ;;  %v10926_v19 = vadd.f32 %v3002_v4, %v1421_v21  ;;  %v7547_v9 = vpack.c.bf16 %v908_v63, %v908_v63  ;;  %v1424_v51 = vmul.f32 %v908_v63, %v908_v63  ;;  %v8269_v48 = vpop.f32.mrb[20].mxu1  ;;  %v8138_v60 = vpop.f32.mrb[22].mxu0 }
 0x1f7   :  { %13249 = vst [vmem:[#allocation23_spill] sm:$0xff] %v10916_v46  ;;  %1362 = vst.msk [vmem:[%s13119_s2 + $0x58] sm:$0xf] %vm1339_vm2, %v7549_v45  ;;  %v7613_v20 = vpack.c.bf16 %v8269_v48, %v8269_v48  ;;  %v10934_v39 = vadd.f32 %v8269_v48, %v8137_v14  ;;  %v3007_v62 = vmul.f32 %v8269_v48, %v8269_v48  ;;  %v2425_v15 = vpop.f32.mrb[21].mxu1  ;;  %v911_v4 = vpop.f32.mrb[23].mxu0 }
 0x1f8   :  { %13250 = vst [vmem:[#allocation24_spill] sm:$0xff] %v10926_v19  ;;  %v7550_v21 = vpack.c.bf16 %v8138_v60, %v8138_v60  ;;  %1360 = vst.msk [vmem:[%s13119_s2 + $0x50] sm:$0xf] %vm1339_vm2, %v7547_v9  ;;  %v1427_v19 = vmul.f32 %v8138_v60, %v8138_v60  ;;  %v7611_v31 = vpack.c.bf16 %v2425_v15, %v2425_v15  ;;  %v8270_v42 = vpop.f32.mrb[22].mxu1 }
 0x1f9   :  { %13251 = vst [vmem:[#allocation25_spill] sm:$0xff] %v10934_v39  ;;  %v10940_v46 = vadd.f32 %v2425_v15, %v908_v63  ;;  %v3005_v8 = vmul.f32 %v2425_v15, %v2425_v15  ;;  %7033 = vst.msk [vmem:[%s13119_s2 + $0x158] sm:$0xf] %vm1339_vm2, %v7613_v20  ;;  %v10946_v14 = vadd.f32 %v3007_v62, %v1426_v16  ;;  %v2428_v39 = vpop.f32.mrb[23].mxu1  ;;  %v10988_v15 = vpop.permute.xlu0 %3825 }
 0x1fa   :  { %1363 = vst.msk [vmem:[%s13119_s2 + $0x5c] sm:$0xf] %vm1339_vm2, %v7550_v21  ;;  %v7548_v45 = vpack.c.bf16 %v911_v4, %v911_v4  ;;  %v1425_v9 = vmul.f32 %v911_v4, %v911_v4  ;;  %v7614_v48 = vpack.c.bf16 %v8270_v42, %v8270_v42  ;;  %8380 = vmatmul.mubr.msk.bf16.vlgmr.msra.gmra.mrb[64].mxu0 %vm305_vm1, %v10554_v38  ;;  %7031 = vst.msk [vmem:[%s13119_s2 + $0x150] sm:$0xf] %vm1339_vm2, %v7611_v31  ;;  %v10984_v31 = vpop.permute.xlu1 %5468 }
 0x1fb   :  { %v10958_v63 = vadd.f32 %v3005_v8, %v1424_v51  ;;  %v10960_v16 = vadd.f32 %v8270_v42, %v8138_v60  ;;  %v3008_v20 = vmul.f32 %v8270_v42, %v8270_v42  ;;  %v7612_v62 = vpack.c.bf16 %v2428_v39, %v2428_v39  ;;  %8383 = vmatprep.mubr.msk.bf16.mxu0 %vm305_vm1, %v10576_v49 }
 0x1fc   :  { %1361 = vst.msk [vmem:[%s13119_s2 + $0x54] sm:$0xf] %vm1339_vm2, %v7548_v45  ;;  %7034 = vst.msk [vmem:[%s13119_s2 + $0x15c] sm:$0xf] %vm1339_vm2, %v7614_v48  ;;  %v10972_v38 = vadd.f32 %v2428_v39, %v911_v4  ;;  %v3006_v8 = vmul.f32 %v2428_v39, %v2428_v39  ;;  %8512 = vmatmul.mubr.msk.bf16.vlgmr.msra.gmra.mrb[64].mxu1 %vm305_vm1, %v10568_v18  ;;  %v8141_v49 = vpop.f32.mrb[24].mxu0 }
 0x1fd   :  { %13252 = vst [vmem:[#allocation26_spill] sm:$0xff] %v10958_v63  ;;  %13253 = vst [vmem:[#allocation27_spill] sm:$0xff] %v10960_v16  ;;  %v10976_v42 = vadd.f32 %v3008_v20, %v1427_v19  ;;  %8515 = vmatprep.mubr.msk.bf16.mxu1 %vm305_vm1, %v10586_v26  ;;  %v7553_v60 = vpack.c.bf16 %v8141_v49, %v8141_v49  ;;  %v1430_v39 = vmul.f32 %v8141_v49, %v8141_v49  ;;  %v924_v21 = vpop.f32.mrb[25].mxu0 }
 0x1fe   :  { %13254 = vst [vmem:[#allocation28_spill] sm:$0xff] %v10972_v38  ;;  %7032 = vst.msk [vmem:[%s13119_s2 + $0x154] sm:$0xf] %vm1339_vm2, %v7612_v62  ;;  %v10986_v51 = vadd.f32 %v3006_v8, %v1425_v9  ;;  %v7551_v18 = vpack.c.bf16 %v924_v21, %v924_v21  ;;  %v1428_v19 = vmul.f32 %v924_v21, %v924_v21  ;;  %v8273_v4 = vpop.f32.mrb[24].mxu1  ;;  %v8142_v45 = vpop.f32.mrb[26].mxu0 }
 0x1ff   :  { %13255 = vst [vmem:[#allocation29_spill] sm:$0xff] %v10976_v42  ;;  %1366 = vst.msk [vmem:[%s13119_s2 + $0x68] sm:$0xf] %vm1339_vm2, %v7553_v60  ;;  %v7617_v48 = vpack.c.bf16 %v8273_v4, %v8273_v4  ;;  %v10994_v26 = vadd.f32 %v8273_v4, %v8141_v49  ;;  %v3011_v20 = vmul.f32 %v8273_v4, %v8273_v4  ;;  %v2441_v62 = vpop.f32.mrb[25].mxu1  ;;  %v927_v8 = vpop.f32.mrb[27].mxu0 }
 0x200   :  { %13256 = vst [vmem:[#allocation30_spill] sm:$0xff] %v10986_v51  ;;  %v7554_v9 = vpack.c.bf16 %v8142_v45, %v8142_v45  ;;  %1364 = vst.msk [vmem:[%s13119_s2 + $0x60] sm:$0xf] %vm1339_vm2, %v7551_v18  ;;  %v1431_v51 = vmul.f32 %v8142_v45, %v8142_v45  ;;  %v7615_v38 = vpack.c.bf16 %v2441_v62, %v2441_v62  ;;  %v8274_v63 = vpop.f32.mrb[26].mxu1 }
 0x201   :  { %13257 = vst [vmem:[#allocation31_spill] sm:$0xff] %v10994_v26  ;;  %v11000_v42 = vadd.f32 %v2441_v62, %v924_v21  ;;  %v3009_v16 = vmul.f32 %v2441_v62, %v2441_v62  ;;  %7037 = vst.msk [vmem:[%s13119_s2 + $0x168] sm:$0xf] %vm1339_vm2, %v7617_v48  ;;  %v11006_v49 = vadd.f32 %v3011_v20, %v1430_v39  ;;  %v2444_v26 = vpop.f32.mrb[27].mxu1  ;;  %v11048_v62 = vpop.permute.xlu0 %5470 }
 0x202   :  { %1367 = vst.msk [vmem:[%s13119_s2 + $0x6c] sm:$0xf] %vm1339_vm2, %v7554_v9  ;;  %v7552_v60 = vpack.c.bf16 %v927_v8, %v927_v8  ;;  %v1429_v18 = vmul.f32 %v927_v8, %v927_v8  ;;  %v7618_v4 = vpack.c.bf16 %v8274_v63, %v8274_v63  ;;  %8384 = vmatmul.mubr.msk.bf16.gmra.mrb[68].mxu0 %vm305_vm1, %v10578_v61  ;;  %7035 = vst.msk [vmem:[%s13119_s2 + $0x160] sm:$0xf] %vm1339_vm2, %v7615_v38  ;;  %v11044_v38 = vpop.permute.xlu1 %3827 }
 0x203   :  { %v11018_v21 = vadd.f32 %v3009_v16, %v1428_v19  ;;  %v11020_v39 = vadd.f32 %v8274_v63, %v8142_v45  ;;  %v3012_v48 = vmul.f32 %v8274_v63, %v8274_v63  ;;  %v7616_v20 = vpack.c.bf16 %v2444_v26, %v2444_v26  ;;  %8387 = vmatprep.mubr.msk.bf16.mxu0 %vm305_vm1, %v10596_v3 }
 0x204   :  { %1365 = vst.msk [vmem:[%s13119_s2 + $0x64] sm:$0xf] %vm1339_vm2, %v7552_v60  ;;  %7038 = vst.msk [vmem:[%s13119_s2 + $0x16c] sm:$0xf] %vm1339_vm2, %v7618_v4  ;;  %v11032_v61 = vadd.f32 %v2444_v26, %v927_v8  ;;  %v3010_v16 = vmul.f32 %v2444_v26, %v2444_v26  ;;  %8516 = vmatmul.mubr.msk.bf16.gmra.mrb[68].mxu1 %vm305_vm1, %v10592_v43  ;;  %v8145_v3 = vpop.f32.mrb[28].mxu0 }
 0x205   :  { %13258 = vst [vmem:[#allocation32_spill] sm:$0xff] %v11018_v21  ;;  %13259 = vst [vmem:[#allocation33_spill] sm:$0xff] %v11020_v39  ;;  %v11036_v63 = vadd.f32 %v3012_v48, %v1431_v51  ;;  %8519 = vmatprep.mubr.msk.bf16.mxu1 %vm305_vm1, %v10602_v30  ;;  %v7557_v45 = vpack.c.bf16 %v8145_v3, %v8145_v3  ;;  %v1434_v26 = vmul.f32 %v8145_v3, %v8145_v3  ;;  %v940_v9 = vpop.f32.mrb[29].mxu0 }
 0x206   :  { %13260 = vst [vmem:[#allocation34_spill] sm:$0xff] %v11032_v61  ;;  %7036 = vst.msk [vmem:[%s13119_s2 + $0x164] sm:$0xf] %vm1339_vm2, %v7616_v20  ;;  %v11046_v19 = vadd.f32 %v3010_v16, %v1429_v18  ;;  %v7555_v43 = vpack.c.bf16 %v940_v9, %v940_v9  ;;  %v1432_v51 = vmul.f32 %v940_v9, %v940_v9  ;;  %v8277_v8 = vpop.f32.mrb[28].mxu1  ;;  %v8146_v60 = vpop.f32.mrb[30].mxu0 }
 0x207   :  { %13261 = vst [vmem:[#allocation36_spill] sm:$0xff] %v11036_v63  ;;  %1370 = vst.msk [vmem:[%s13119_s2 + $0x78] sm:$0xf] %vm1339_vm2, %v7557_v45  ;;  %v7621_v4 = vpack.c.bf16 %v8277_v8, %v8277_v8  ;;  %v11054_v30 = vadd.f32 %v8277_v8, %v8145_v3  ;;  %v3015_v48 = vmul.f32 %v8277_v8, %v8277_v8  ;;  %v2457_v20 = vpop.f32.mrb[29].mxu1  ;;  %v943_v16 = vpop.f32.mrb[31].mxu0 }
 0x208   :  { %13262 = vst [vmem:[#allocation37_spill] sm:$0xff] %v11046_v19  ;;  %v7558_v18 = vpack.c.bf16 %v8146_v60, %v8146_v60  ;;  %1368 = vst.msk [vmem:[%s13119_s2 + $0x70] sm:$0xf] %vm1339_vm2, %v7555_v43  ;;  %v1435_v19 = vmul.f32 %v8146_v60, %v8146_v60  ;;  %v7619_v61 = vpack.c.bf16 %v2457_v20, %v2457_v20  ;;  %v8278_v21 = vpop.f32.mrb[30].mxu1 }
 0x209   :  { %13263 = vst [vmem:[#allocation38_spill] sm:$0xff] %v11054_v30  ;;  %v11060_v63 = vadd.f32 %v2457_v20, %v940_v9  ;;  %v3013_v39 = vmul.f32 %v2457_v20, %v2457_v20  ;;  %7041 = vst.msk [vmem:[%s13119_s2 + $0x178] sm:$0xf] %vm1339_vm2, %v7621_v4  ;;  %v11066_v3 = vadd.f32 %v3015_v48, %v1434_v26  ;;  %v2460_v30 = vpop.f32.mrb[31].mxu1  ;;  %v11108_v20 = vpop.permute.xlu0 %3829 }
 0x20a   :  { %1371 = vst.msk [vmem:[%s13119_s2 + $0x7c] sm:$0xf] %vm1339_vm2, %v7558_v18  ;;  %v7556_v45 = vpack.c.bf16 %v943_v16, %v943_v16  ;;  %v1433_v43 = vmul.f32 %v943_v16, %v943_v16  ;;  %v7622_v8 = vpack.c.bf16 %v8278_v21, %v8278_v21  ;;  %8388 = vmatmul.mubr.msk.bf16.gmra.mrb[72].mxu0 %vm305_vm1, %v10598_v24  ;;  %7039 = vst.msk [vmem:[%s13119_s2 + $0x170] sm:$0xf] %vm1339_vm2, %v7619_v61  ;;  %v11104_v61 = vpop.permute.xlu1 %5472 }
 0x20b   :  { %v11078_v9 = vadd.f32 %v3013_v39, %v1432_v51  ;;  %v11080_v26 = vadd.f32 %v8278_v21, %v8146_v60  ;;  %v3016_v4 = vmul.f32 %v8278_v21, %v8278_v21  ;;  %v7620_v48 = vpack.c.bf16 %v2460_v30, %v2460_v30  ;;  %8391 = vmatprep.mubr.msk.bf16.mxu0 %vm305_vm1, %v10612_v57 }
 0x20c   :  { %1369 = vst.msk [vmem:[%s13119_s2 + $0x74] sm:$0xf] %vm1339_vm2, %v7556_v45  ;;  %7042 = vst.msk [vmem:[%s13119_s2 + $0x17c] sm:$0xf] %vm1339_vm2, %v7622_v8  ;;  %v11092_v24 = vadd.f32 %v2460_v30, %v943_v16  ;;  %v3014_v39 = vmul.f32 %v2460_v30, %v2460_v30  ;;  %8520 = vmatmul.mubr.msk.bf16.gmra.mrb[72].mxu1 %vm305_vm1, %v10608_v47  ;;  %v8149_v57 = vpop.f32.mrb[32].mxu0 }
 0x20d   :  { %13264 = vst [vmem:[#allocation39_spill] sm:$0xff] %v11078_v9  ;;  %13265 = vst [vmem:[#allocation40_spill] sm:$0xff] %v11080_v26  ;;  %v11096_v21 = vadd.f32 %v3016_v4, %v1435_v19  ;;  %8523 = vmatprep.mubr.msk.bf16.mxu1 %vm305_vm1, %v10640_v34  ;;  %v7561_v60 = vpack.c.bf16 %v8149_v57, %v8149_v57  ;;  %v1438_v30 = vmul.f32 %v8149_v57, %v8149_v57  ;;  %v956_v18 = vpop.f32.mrb[33].mxu0 }
 0x20e   :  { %13266 = vst [vmem:[#allocation41_spill] sm:$0xff] %v11092_v24  ;;  %7040 = vst.msk [vmem:[%s13119_s2 + $0x174] sm:$0xf] %vm1339_vm2, %v7620_v48  ;;  %v11106_v51 = vadd.f32 %v3014_v39, %v1433_v43  ;;  %v7559_v47 = vpack.c.bf16 %v956_v18, %v956_v18  ;;  %v1436_v19 = vmul.f32 %v956_v18, %v956_v18  ;;  %v8281_v16 = vpop.f32.mrb[32].mxu1  ;;  %v8150_v45 = vpop.f32.mrb[34].mxu0 }
 0x20f   :  { %13267 = vst [vmem:[#allocation42_spill] sm:$0xff] %v11096_v21  ;;  %1374 = vst.msk [vmem:[%s13119_s2 + $0x88] sm:$0xf] %vm1339_vm2, %v7561_v60  ;;  %v7625_v8 = vpack.c.bf16 %v8281_v16, %v8281_v16  ;;  %v11114_v34 = vadd.f32 %v8281_v16, %v8149_v57  ;;  %v3019_v4 = vmul.f32 %v8281_v16, %v8281_v16  ;;  %v2473_v48 = vpop.f32.mrb[33].mxu1  ;;  %v959_v39 = vpop.f32.mrb[35].mxu0 }
 0x210   :  { %13268 = vst [vmem:[#allocation43_spill] sm:$0xff] %v11106_v51  ;;  %v7562_v43 = vpack.c.bf16 %v8150_v45, %v8150_v45  ;;  %1372 = vst.msk [vmem:[%s13119_s2 + $0x80] sm:$0xf] %vm1339_vm2, %v7559_v47  ;;  %v1439_v51 = vmul.f32 %v8150_v45, %v8150_v45  ;;  %v7623_v24 = vpack.c.bf16 %v2473_v48, %v2473_v48  ;;  %v8282_v9 = vpop.f32.mrb[34].mxu1 }
 0x211   :  { %13269 = vst [vmem:[#allocation44_spill] sm:$0xff] %v11114_v34  ;;  %v11120_v21 = vadd.f32 %v2473_v48, %v956_v18  ;;  %v3017_v26 = vmul.f32 %v2473_v48, %v2473_v48  ;;  %7045 = vst.msk [vmem:[%s13119_s2 + $0x188] sm:$0xf] %vm1339_vm2, %v7625_v8  ;;  %v11126_v57 = vadd.f32 %v3019_v4, %v1438_v30  ;;  %v2476_v34 = vpop.f32.mrb[35].mxu1  ;;  %v11168_v48 = vpop.permute.xlu0 %5474 }
 0x212   :  { %1375 = vst.msk [vmem:[%s13119_s2 + $0x8c] sm:$0xf] %vm1339_vm2, %v7562_v43  ;;  %v7560_v60 = vpack.c.bf16 %v959_v39, %v959_v39  ;;  %v1437_v47 = vmul.f32 %v959_v39, %v959_v39  ;;  %v7626_v16 = vpack.c.bf16 %v8282_v9, %v8282_v9  ;;  %8392 = vmatmul.mubr.msk.bf16.gmra.mrb[76].mxu0 %vm305_vm1, %v10626_v0  ;;  %7043 = vst.msk [vmem:[%s13119_s2 + $0x180] sm:$0xf] %vm1339_vm2, %v7623_v24  ;;  %v11164_v24 = vpop.permute.xlu1 %3831 }
 0x213   :  { %v11138_v18 = vadd.f32 %v3017_v26, %v1436_v19  ;;  %v11140_v30 = vadd.f32 %v8282_v9, %v8150_v45  ;;  %v3020_v8 = vmul.f32 %v8282_v9, %v8282_v9  ;;  %v7624_v4 = vpack.c.bf16 %v2476_v34, %v2476_v34  ;;  %8395 = vmatprep.mubr.msk.bf16.mxu0 %vm305_vm1, %v10676_v29 }
 0x214   :  { %1373 = vst.msk [vmem:[%s13119_s2 + $0x84] sm:$0xf] %vm1339_vm2, %v7560_v60  ;;  %7046 = vst.msk [vmem:[%s13119_s2 + $0x18c] sm:$0xf] %vm1339_vm2, %v7626_v16  ;;  %v11152_v0 = vadd.f32 %v2476_v34, %v959_v39  ;;  %v3018_v26 = vmul.f32 %v2476_v34, %v2476_v34  ;;  %8524 = vmatmul.mubr.msk.bf16.gmra.mrb[76].mxu1 %vm305_vm1, %v10672_v22  ;;  %v8153_v29 = vpop.f32.mrb[36].mxu0 }
 0x215   :  { %13270 = vst [vmem:[#allocation45_spill] sm:$0xff] %v11138_v18  ;;  %13271 = vst [vmem:[#allocation46_spill] sm:$0xff] %v11140_v30  ;;  %v11156_v9 = vadd.f32 %v3020_v8, %v1439_v51  ;;  %8527 = vmatprep.mubr.msk.bf16.mxu1 %vm305_vm1, %v10704_v11  ;;  %v7565_v45 = vpack.c.bf16 %v8153_v29, %v8153_v29  ;;  %v1442_v34 = vmul.f32 %v8153_v29, %v8153_v29  ;;  %v972_v43 = vpop.f32.mrb[37].mxu0 }
 0x216   :  { %13272 = vst [vmem:[#allocation47_spill] sm:$0xff] %v11152_v0  ;;  %7044 = vst.msk [vmem:[%s13119_s2 + $0x184] sm:$0xf] %vm1339_vm2, %v7624_v4  ;;  %v11166_v19 = vadd.f32 %v3018_v26, %v1437_v47  ;;  %v7563_v22 = vpack.c.bf16 %v972_v43, %v972_v43  ;;  %v1440_v51 = vmul.f32 %v972_v43, %v972_v43  ;;  %v8285_v39 = vpop.f32.mrb[36].mxu1  ;;  %v8154_v60 = vpop.f32.mrb[38].mxu0 }
 0x217   :  { %13273 = vst [vmem:[#allocation48_spill] sm:$0xff] %v11156_v9  ;;  %1378 = vst.msk [vmem:[%s13119_s2 + $0x98] sm:$0xf] %vm1339_vm2, %v7565_v45  ;;  %v7629_v16 = vpack.c.bf16 %v8285_v39, %v8285_v39  ;;  %v11174_v11 = vadd.f32 %v8285_v39, %v8153_v29  ;;  %v3023_v8 = vmul.f32 %v8285_v39, %v8285_v39  ;;  %v2489_v4 = vpop.f32.mrb[37].mxu1  ;;  %v975_v26 = vpop.f32.mrb[39].mxu0 }
 0x218   :  { %13274 = vst [vmem:[#allocation49_spill] sm:$0xff] %v11166_v19  ;;  %v7566_v47 = vpack.c.bf16 %v8154_v60, %v8154_v60  ;;  %1376 = vst.msk [vmem:[%s13119_s2 + $0x90] sm:$0xf] %vm1339_vm2, %v7563_v22  ;;  %v1443_v19 = vmul.f32 %v8154_v60, %v8154_v60  ;;  %v7627_v0 = vpack.c.bf16 %v2489_v4, %v2489_v4  ;;  %v8286_v18 = vpop.f32.mrb[38].mxu1 }
 0x219   :  { %13275 = vst [vmem:[#allocation50_spill] sm:$0xff] %v11174_v11  ;;  %v11180_v9 = vadd.f32 %v2489_v4, %v972_v43  ;;  %v3021_v30 = vmul.f32 %v2489_v4, %v2489_v4  ;;  %7049 = vst.msk [vmem:[%s13119_s2 + $0x198] sm:$0xf] %vm1339_vm2, %v7629_v16  ;;  %v11186_v29 = vadd.f32 %v3023_v8, %v1442_v34  ;;  %v2492_v11 = vpop.f32.mrb[39].mxu1  ;;  %v11228_v4 = vpop.permute.xlu0 %3833 }
 0x21a   :  { %1379 = vst.msk [vmem:[%s13119_s2 + $0x9c] sm:$0xf] %vm1339_vm2, %v7566_v47  ;;  %v7564_v45 = vpack.c.bf16 %v975_v26, %v975_v26  ;;  %v1441_v22 = vmul.f32 %v975_v26, %v975_v26  ;;  %v7630_v39 = vpack.c.bf16 %v8286_v18, %v8286_v18  ;;  %8396 = vmatmul.mubr.msk.bf16.gmra.mrb[80].mxu0 %vm305_vm1, %v10690_v58  ;;  %7047 = vst.msk [vmem:[%s13119_s2 + $0x190] sm:$0xf] %vm1339_vm2, %v7627_v0  ;;  %v11224_v0 = vpop.permute.xlu1 %5476 }
 0x21b   :  { %v11198_v43 = vadd.f32 %v3021_v30, %v1440_v51  ;;  %v11200_v34 = vadd.f32 %v8286_v18, %v8154_v60  ;;  %v3024_v16 = vmul.f32 %v8286_v18, %v8286_v18  ;;  %v7628_v8 = vpack.c.bf16 %v2492_v11, %v2492_v11  ;;  %8399 = vmatprep.mubr.msk.bf16.mxu0 %vm305_vm1, %v10740_v37 }
 0x21c   :  { %1377 = vst.msk [vmem:[%s13119_s2 + $0x94] sm:$0xf] %vm1339_vm2, %v7564_v45  ;;  %7050 = vst.msk [vmem:[%s13119_s2 + $0x19c] sm:$0xf] %vm1339_vm2, %v7630_v39  ;;  %v11212_v58 = vadd.f32 %v2492_v11, %v975_v26  ;;  %v3022_v30 = vmul.f32 %v2492_v11, %v2492_v11  ;;  %8528 = vmatmul.mubr.msk.bf16.gmra.mrb[80].mxu1 %vm305_vm1, %v10736_v41  ;;  %v8157_v37 = vpop.f32.mrb[40].mxu0 }
 0x21d   :  { %13276 = vst [vmem:[#allocation51_spill] sm:$0xff] %v11198_v43  ;;  %13277 = vst [vmem:[#allocation52_spill] sm:$0xff] %v11200_v34  ;;  %v11216_v18 = vadd.f32 %v3024_v16, %v1443_v19  ;;  %8531 = vmatprep.mubr.msk.bf16.mxu1 %vm305_vm1, %v10768_v1  ;;  %v7569_v60 = vpack.c.bf16 %v8157_v37, %v8157_v37  ;;  %v1446_v11 = vmul.f32 %v8157_v37, %v8157_v37  ;;  %v988_v47 = vpop.f32.mrb[41].mxu0 }
 0x21e   :  { %13278 = vst [vmem:[#allocation53_spill] sm:$0xff] %v11212_v58  ;;  %7048 = vst.msk [vmem:[%s13119_s2 + $0x194] sm:$0xf] %vm1339_vm2, %v7628_v8  ;;  %v11226_v51 = vadd.f32 %v3022_v30, %v1441_v22  ;;  %v7567_v41 = vpack.c.bf16 %v988_v47, %v988_v47  ;;  %v1444_v19 = vmul.f32 %v988_v47, %v988_v47  ;;  %v8289_v26 = vpop.f32.mrb[40].mxu1  ;;  %v8158_v45 = vpop.f32.mrb[42].mxu0 }
 0x21f   :  { %13279 = vst [vmem:[#allocation54_spill] sm:$0xff] %v11216_v18  ;;  %1382 = vst.msk [vmem:[%s13119_s2 + $0xa8] sm:$0xf] %vm1339_vm2, %v7569_v60  ;;  %v7633_v39 = vpack.c.bf16 %v8289_v26, %v8289_v26  ;;  %v11234_v1 = vadd.f32 %v8289_v26, %v8157_v37  ;;  %v3027_v16 = vmul.f32 %v8289_v26, %v8289_v26  ;;  %v2505_v8 = vpop.f32.mrb[41].mxu1  ;;  %v991_v30 = vpop.f32.mrb[43].mxu0 }
 0x220   :  { %13280 = vst [vmem:[#allocation55_spill] sm:$0xff] %v11226_v51  ;;  %v7570_v22 = vpack.c.bf16 %v8158_v45, %v8158_v45  ;;  %1380 = vst.msk [vmem:[%s13119_s2 + $0xa0] sm:$0xf] %vm1339_vm2, %v7567_v41  ;;  %v1447_v51 = vmul.f32 %v8158_v45, %v8158_v45  ;;  %v7631_v58 = vpack.c.bf16 %v2505_v8, %v2505_v8  ;;  %v8290_v43 = vpop.f32.mrb[42].mxu1 }
 0x221   :  { %13281 = vst [vmem:[#allocation56_spill] sm:$0xff] %v11234_v1  ;;  %v11240_v18 = vadd.f32 %v2505_v8, %v988_v47  ;;  %v3025_v34 = vmul.f32 %v2505_v8, %v2505_v8  ;;  %7053 = vst.msk [vmem:[%s13119_s2 + $0x1a8] sm:$0xf] %vm1339_vm2, %v7633_v39  ;;  %v11246_v37 = vadd.f32 %v3027_v16, %v1446_v11  ;;  %v2508_v1 = vpop.f32.mrb[43].mxu1  ;;  %v11288_v8 = vpop.permute.xlu0 %5478 }
 0x222   :  { %1383 = vst.msk [vmem:[%s13119_s2 + $0xac] sm:$0xf] %vm1339_vm2, %v7570_v22  ;;  %v7568_v60 = vpack.c.bf16 %v991_v30, %v991_v30  ;;  %v1445_v41 = vmul.f32 %v991_v30, %v991_v30  ;;  %v7634_v26 = vpack.c.bf16 %v8290_v43, %v8290_v43  ;;  %8400 = vmatmul.mubr.msk.bf16.gmra.mrb[84].mxu0 %vm305_vm1, %v10754_v53  ;;  %7051 = vst.msk [vmem:[%s13119_s2 + $0x1a0] sm:$0xf] %vm1339_vm2, %v7631_v58  ;;  %v11284_v58 = vpop.permute.xlu1 %3835 }
 0x223   :  { %v11258_v47 = vadd.f32 %v3025_v34, %v1444_v19  ;;  %v11260_v11 = vadd.f32 %v8290_v43, %v8158_v45  ;;  %v3028_v39 = vmul.f32 %v8290_v43, %v8290_v43  ;;  %v7632_v16 = vpack.c.bf16 %v2508_v1, %v2508_v1  ;;  %8403 = vmatprep.mubr.msk.bf16.mxu0 %vm305_vm1, %v10804_v2 }
 0x224   :  { %1381 = vst.msk [vmem:[%s13119_s2 + $0xa4] sm:$0xf] %vm1339_vm2, %v7568_v60  ;;  %7054 = vst.msk [vmem:[%s13119_s2 + $0x1ac] sm:$0xf] %vm1339_vm2, %v7634_v26  ;;  %v11272_v53 = vadd.f32 %v2508_v1, %v991_v30  ;;  %v3026_v34 = vmul.f32 %v2508_v1, %v2508_v1  ;;  %8532 = vmatmul.mubr.msk.bf16.gmra.mrb[84].mxu1 %vm305_vm1, %v10800_v35  ;;  %v8161_v2 = vpop.f32.mrb[44].mxu0 }
 0x225   :  { %13282 = vst [vmem:[#allocation57_spill] sm:$0xff] %v11258_v47  ;;  %13283 = vst [vmem:[#allocation58_spill] sm:$0xff] %v11260_v11  ;;  %v11276_v43 = vadd.f32 %v3028_v39, %v1447_v51  ;;  %8535 = vmatprep.mubr.msk.bf16.mxu1 %vm305_vm1, %v10832_v33  ;;  %v7573_v45 = vpack.c.bf16 %v8161_v2, %v8161_v2  ;;  %v1450_v1 = vmul.f32 %v8161_v2, %v8161_v2  ;;  %v1004_v22 = vpop.f32.mrb[45].mxu0 }
 0x226   :  { %13284 = vst [vmem:[#allocation59_spill] sm:$0xff] %v11272_v53  ;;  %7052 = vst.msk [vmem:[%s13119_s2 + $0x1a4] sm:$0xf] %vm1339_vm2, %v7632_v16  ;;  %v11286_v19 = vadd.f32 %v3026_v34, %v1445_v41  ;;  %v7571_v35 = vpack.c.bf16 %v1004_v22, %v1004_v22  ;;  %v1448_v51 = vmul.f32 %v1004_v22, %v1004_v22  ;;  %v8293_v30 = vpop.f32.mrb[44].mxu1  ;;  %v8162_v60 = vpop.f32.mrb[46].mxu0 }
 0x227   :  { %13285 = vst [vmem:[#allocation60_spill] sm:$0xff] %v11276_v43  ;;  %1386 = vst.msk [vmem:[%s13119_s2 + $0xb8] sm:$0xf] %vm1339_vm2, %v7573_v45  ;;  %v7637_v26 = vpack.c.bf16 %v8293_v30, %v8293_v30  ;;  %v11294_v33 = vadd.f32 %v8293_v30, %v8161_v2  ;;  %v3031_v39 = vmul.f32 %v8293_v30, %v8293_v30  ;;  %v2521_v16 = vpop.f32.mrb[45].mxu1  ;;  %v1007_v34 = vpop.f32.mrb[47].mxu0 }
 0x228   :  { %13286 = vst [vmem:[#allocation61_spill] sm:$0xff] %v11286_v19  ;;  %v7574_v41 = vpack.c.bf16 %v8162_v60, %v8162_v60  ;;  %1384 = vst.msk [vmem:[%s13119_s2 + $0xb0] sm:$0xf] %vm1339_vm2, %v7571_v35  ;;  %v1451_v19 = vmul.f32 %v8162_v60, %v8162_v60  ;;  %v7635_v53 = vpack.c.bf16 %v2521_v16, %v2521_v16  ;;  %v8294_v47 = vpop.f32.mrb[46].mxu1 }
 0x229   :  { %13287 = vst [vmem:[#allocation62_spill] sm:$0xff] %v11294_v33  ;;  %v11300_v43 = vadd.f32 %v2521_v16, %v1004_v22  ;;  %v3029_v11 = vmul.f32 %v2521_v16, %v2521_v16  ;;  %7057 = vst.msk [vmem:[%s13119_s2 + $0x1b8] sm:$0xf] %vm1339_vm2, %v7637_v26  ;;  %v11306_v2 = vadd.f32 %v3031_v39, %v1450_v1  ;;  %v2524_v33 = vpop.f32.mrb[47].mxu1  ;;  %v11348_v16 = vpop.permute.xlu0 %3837 }
 0x22a   :  { %1387 = vst.msk [vmem:[%s13119_s2 + $0xbc] sm:$0xf] %vm1339_vm2, %v7574_v41  ;;  %v7572_v45 = vpack.c.bf16 %v1007_v34, %v1007_v34  ;;  %v1449_v35 = vmul.f32 %v1007_v34, %v1007_v34  ;;  %v7638_v30 = vpack.c.bf16 %v8294_v47, %v8294_v47  ;;  %8404 = vmatmul.mubr.msk.bf16.gmra.mrb[88].mxu0 %vm305_vm1, %v10818_v56  ;;  %7055 = vst.msk [vmem:[%s13119_s2 + $0x1b0] sm:$0xf] %vm1339_vm2, %v7635_v53  ;;  %v11344_v53 = vpop.permute.xlu1 %5480 }
 0x22b   :  { %v11318_v22 = vadd.f32 %v3029_v11, %v1448_v51  ;;  %v11320_v1 = vadd.f32 %v8294_v47, %v8162_v60  ;;  %v3032_v26 = vmul.f32 %v8294_v47, %v8294_v47  ;;  %v7636_v39 = vpack.c.bf16 %v2524_v33, %v2524_v33  ;;  %8407 = vmatprep.mubr.msk.bf16.mxu0 %vm305_vm1, %v10868_v25 }
 0x22c   :  { %1385 = vst.msk [vmem:[%s13119_s2 + $0xb4] sm:$0xf] %vm1339_vm2, %v7572_v45  ;;  %7058 = vst.msk [vmem:[%s13119_s2 + $0x1bc] sm:$0xf] %vm1339_vm2, %v7638_v30  ;;  %v11332_v56 = vadd.f32 %v2524_v33, %v1007_v34  ;;  %v3030_v11 = vmul.f32 %v2524_v33, %v2524_v33  ;;  %8536 = vmatmul.mubr.msk.bf16.gmra.mrb[88].mxu1 %vm305_vm1, %v10864_v13  ;;  %v8165_v25 = vpop.f32.mrb[48].mxu0 }
 0x22d   :  { %13288 = vst [vmem:[#allocation63_spill] sm:$0xff] %v11318_v22  ;;  %13289 = vst [vmem:[#allocation64_spill] sm:$0xff] %v11320_v1  ;;  %v11336_v47 = vadd.f32 %v3032_v26, %v1451_v19  ;;  %8539 = vmatprep.mubr.msk.bf16.mxu1 %vm305_vm1, %v10928_v44  ;;  %v7577_v60 = vpack.c.bf16 %v8165_v25, %v8165_v25  ;;  %v1454_v33 = vmul.f32 %v8165_v25, %v8165_v25  ;;  %v1020_v41 = vpop.f32.mrb[49].mxu0 }
 0x22e   :  { %13290 = vst [vmem:[#allocation65_spill] sm:$0xff] %v11332_v56  ;;  %7056 = vst.msk [vmem:[%s13119_s2 + $0x1b4] sm:$0xf] %vm1339_vm2, %v7636_v39  ;;  %v11346_v51 = vadd.f32 %v3030_v11, %v1449_v35  ;;  %v7575_v13 = vpack.c.bf16 %v1020_v41, %v1020_v41  ;;  %v1452_v19 = vmul.f32 %v1020_v41, %v1020_v41  ;;  %v8297_v34 = vpop.f32.mrb[48].mxu1  ;;  %v8166_v45 = vpop.f32.mrb[50].mxu0 }
 0x22f   :  { %13291 = vst [vmem:[#allocation66_spill] sm:$0xff] %v11336_v47  ;;  %1390 = vst.msk [vmem:[%s13119_s2 + $0xc8] sm:$0xf] %vm1339_vm2, %v7577_v60  ;;  %v7641_v30 = vpack.c.bf16 %v8297_v34, %v8297_v34  ;;  %v11354_v44 = vadd.f32 %v8297_v34, %v8165_v25  ;;  %v3035_v26 = vmul.f32 %v8297_v34, %v8297_v34  ;;  %v2537_v39 = vpop.f32.mrb[49].mxu1  ;;  %v1023_v11 = vpop.f32.mrb[51].mxu0 }
 0x230   :  { %13292 = vst [vmem:[#allocation67_spill] sm:$0xff] %v11346_v51  ;;  %v7578_v35 = vpack.c.bf16 %v8166_v45, %v8166_v45  ;;  %1388 = vst.msk [vmem:[%s13119_s2 + $0xc0] sm:$0xf] %vm1339_vm2, %v7575_v13  ;;  %v1455_v51 = vmul.f32 %v8166_v45, %v8166_v45  ;;  %v7639_v56 = vpack.c.bf16 %v2537_v39, %v2537_v39  ;;  %v8298_v22 = vpop.f32.mrb[50].mxu1 }
 0x231   :  { %13293 = vst [vmem:[#allocation68_spill] sm:$0xff] %v11354_v44  ;;  %v11360_v47 = vadd.f32 %v2537_v39, %v1020_v41  ;;  %v3033_v1 = vmul.f32 %v2537_v39, %v2537_v39  ;;  %7061 = vst.msk [vmem:[%s13119_s2 + $0x1c8] sm:$0xf] %vm1339_vm2, %v7641_v30  ;;  %v11366_v25 = vadd.f32 %v3035_v26, %v1454_v33  ;;  %v2540_v44 = vpop.f32.mrb[51].mxu1  ;;  %v11408_v39 = vpop.permute.xlu0 %5482 }
 0x232   :  { %1391 = vst.msk [vmem:[%s13119_s2 + $0xcc] sm:$0xf] %vm1339_vm2, %v7578_v35  ;;  %v7576_v60 = vpack.c.bf16 %v1023_v11, %v1023_v11  ;;  %v1453_v13 = vmul.f32 %v1023_v11, %v1023_v11  ;;  %v7642_v34 = vpack.c.bf16 %v8298_v22, %v8298_v22  ;;  %8408 = vmatmul.mubr.msk.bf16.gmra.mrb[92].mxu0 %vm305_vm1, %v10924_v5  ;;  %7059 = vst.msk [vmem:[%s13119_s2 + $0x1c0] sm:$0xf] %vm1339_vm2, %v7639_v56  ;;  %v11404_v56 = vpop.permute.xlu1 %3839 }
 0x233   :  { %v11378_v41 = vadd.f32 %v3033_v1, %v1452_v19  ;;  %v11380_v33 = vadd.f32 %v8298_v22, %v8166_v45  ;;  %v3036_v30 = vmul.f32 %v8298_v22, %v8298_v22  ;;  %v7640_v26 = vpack.c.bf16 %v2540_v44, %v2540_v44  ;;  %8411 = vmatprep.mubr.msk.bf16.mxu0 %vm305_vm1, %v10988_v15 }
 0x234   :  { %1389 = vst.msk [vmem:[%s13119_s2 + $0xc4] sm:$0xf] %vm1339_vm2, %v7576_v60  ;;  %7062 = vst.msk [vmem:[%s13119_s2 + $0x1cc] sm:$0xf] %vm1339_vm2, %v7642_v34  ;;  %v11392_v5 = vadd.f32 %v2540_v44, %v1023_v11  ;;  %v3034_v1 = vmul.f32 %v2540_v44, %v2540_v44  ;;  %8540 = vmatmul.mubr.msk.bf16.gmra.mrb[92].mxu1 %vm305_vm1, %v10984_v31  ;;  %v8169_v15 = vpop.f32.mrb[52].mxu0 }
 0x235   :  { %13294 = vst [vmem:[#allocation69_spill] sm:$0xff] %v11378_v41  ;;  %13295 = vst [vmem:[#allocation70_spill] sm:$0xff] %v11380_v33  ;;  %v11396_v22 = vadd.f32 %v3036_v30, %v1455_v51  ;;  %8543 = vmatprep.mubr.msk.bf16.mxu1 %vm305_vm1, %v11048_v62  ;;  %v7581_v45 = vpack.c.bf16 %v8169_v15, %v8169_v15  ;;  %v1458_v44 = vmul.f32 %v8169_v15, %v8169_v15  ;;  %v1036_v35 = vpop.f32.mrb[53].mxu0 }
 0x236   :  { %13296 = vst [vmem:[#allocation71_spill] sm:$0xff] %v11392_v5  ;;  %7060 = vst.msk [vmem:[%s13119_s2 + $0x1c4] sm:$0xf] %vm1339_vm2, %v7640_v26  ;;  %v11406_v19 = vadd.f32 %v3034_v1, %v1453_v13  ;;  %v7579_v31 = vpack.c.bf16 %v1036_v35, %v1036_v35  ;;  %v1456_v51 = vmul.f32 %v1036_v35, %v1036_v35  ;;  %v8301_v11 = vpop.f32.mrb[52].mxu1  ;;  %v8170_v60 = vpop.f32.mrb[54].mxu0 }
 0x237   :  { %13297 = vst [vmem:[#allocation72_spill] sm:$0xff] %v11396_v22  ;;  %1394 = vst.msk [vmem:[%s13119_s2 + $0xd8] sm:$0xf] %vm1339_vm2, %v7581_v45  ;;  %v7645_v34 = vpack.c.bf16 %v8301_v11, %v8301_v11  ;;  %v11414_v62 = vadd.f32 %v8301_v11, %v8169_v15  ;;  %v3039_v30 = vmul.f32 %v8301_v11, %v8301_v11  ;;  %v2553_v26 = vpop.f32.mrb[53].mxu1  ;;  %v1039_v1 = vpop.f32.mrb[55].mxu0 }
 0x238   :  { %13298 = vst [vmem:[#allocation73_spill] sm:$0xff] %v11406_v19  ;;  %v7582_v13 = vpack.c.bf16 %v8170_v60, %v8170_v60  ;;  %1392 = vst.msk [vmem:[%s13119_s2 + $0xd0] sm:$0xf] %vm1339_vm2, %v7579_v31  ;;  %v1459_v19 = vmul.f32 %v8170_v60, %v8170_v60  ;;  %v7643_v5 = vpack.c.bf16 %v2553_v26, %v2553_v26  ;;  %v8302_v41 = vpop.f32.mrb[54].mxu1 }
 0x239   :  { %13299 = vst [vmem:[#allocation74_spill] sm:$0xff] %v11414_v62  ;;  %v11420_v22 = vadd.f32 %v2553_v26, %v1036_v35  ;;  %v3037_v33 = vmul.f32 %v2553_v26, %v2553_v26  ;;  %7065 = vst.msk [vmem:[%s13119_s2 + $0x1d8] sm:$0xf] %vm1339_vm2, %v7645_v34  ;;  %v11426_v15 = vadd.f32 %v3039_v30, %v1458_v44  ;;  %v2556_v62 = vpop.f32.mrb[55].mxu1  ;;  %v11468_v26 = vpop.permute.xlu0 %3841 }
 0x23a   :  { %1395 = vst.msk [vmem:[%s13119_s2 + $0xdc] sm:$0xf] %vm1339_vm2, %v7582_v13  ;;  %v7580_v45 = vpack.c.bf16 %v1039_v1, %v1039_v1  ;;  %v1457_v31 = vmul.f32 %v1039_v1, %v1039_v1  ;;  %v7646_v11 = vpack.c.bf16 %v8302_v41, %v8302_v41  ;;  %8412 = vmatmul.mubr.msk.bf16.gmra.mrb[96].mxu0 %vm305_vm1, %v11044_v38  ;;  %7063 = vst.msk [vmem:[%s13119_s2 + $0x1d0] sm:$0xf] %vm1339_vm2, %v7643_v5  ;;  %v11464_v5 = vpop.permute.xlu1 %5484 }
 0x23b   :  { %13300 = vst [vmem:[#allocation75_spill] sm:$0xff] %v11420_v22  ;;  %13301 = vst [vmem:[#allocation76_spill] sm:$0xff] %v11426_v15  ;;  %v11438_v35 = vadd.f32 %v3037_v33, %v1456_v51  ;;  %v11440_v44 = vadd.f32 %v8302_v41, %v8170_v60  ;;  %v3040_v34 = vmul.f32 %v8302_v41, %v8302_v41  ;;  %8415 = vmatprep.mubr.msk.bf16.mxu0 %vm305_vm1, %v11108_v20 }
 0x23c   :  { %v7644_v30 = vpack.c.bf16 %v2556_v62, %v2556_v62  ;;  %1393 = vst.msk [vmem:[%s13119_s2 + $0xd4] sm:$0xf] %vm1339_vm2, %v7580_v45  ;;  %7066 = vst.msk [vmem:[%s13119_s2 + $0x1dc] sm:$0xf] %vm1339_vm2, %v7646_v11  ;;  %v11452_v38 = vadd.f32 %v2556_v62, %v1039_v1  ;;  %v3038_v33 = vmul.f32 %v2556_v62, %v2556_v62  ;;  %8544 = vmatmul.mubr.msk.bf16.gmra.mrb[96].mxu1 %vm305_vm1, %v11104_v61  ;;  %v8173_v20 = vpop.f32.mrb[56].mxu0 }
 0x23d   :  { %13302 = vst [vmem:[#allocation77_spill] sm:$0xff] %v11438_v35  ;;  %13303 = vst [vmem:[#allocation78_spill] sm:$0xff] %v11440_v44  ;;  %v11456_v41 = vadd.f32 %v3040_v34, %v1459_v19  ;;  %8547 = vmatprep.mubr.msk.bf16.mxu1 %vm305_vm1, %v11168_v48  ;;  %v7585_v60 = vpack.c.bf16 %v8173_v20, %v8173_v20  ;;  %v1462_v62 = vmul.f32 %v8173_v20, %v8173_v20  ;;  %v1052_v13 = vpop.f32.mrb[57].mxu0 }
 0x23e   :  { %13304 = vst [vmem:[#allocation79_spill] sm:$0xff] %v11452_v38  ;;  %7064 = vst.msk [vmem:[%s13119_s2 + $0x1d4] sm:$0xf] %vm1339_vm2, %v7644_v30  ;;  %v11466_v51 = vadd.f32 %v3038_v33, %v1457_v31  ;;  %v7583_v61 = vpack.c.bf16 %v1052_v13, %v1052_v13  ;;  %v1460_v19 = vmul.f32 %v1052_v13, %v1052_v13  ;;  %v8305_v1 = vpop.f32.mrb[56].mxu1  ;;  %v8174_v45 = vpop.f32.mrb[58].mxu0 }
 0x23f   :  { %13305 = vst [vmem:[#allocation80_spill] sm:$0xff] %v11456_v41  ;;  %1398 = vst.msk [vmem:[%s13119_s2 + $0xe8] sm:$0xf] %vm1339_vm2, %v7585_v60  ;;  %v7649_v11 = vpack.c.bf16 %v8305_v1, %v8305_v1  ;;  %v11474_v48 = vadd.f32 %v8305_v1, %v8173_v20  ;;  %v3043_v34 = vmul.f32 %v8305_v1, %v8305_v1  ;;  %v2569_v30 = vpop.f32.mrb[57].mxu1  ;;  %v1055_v33 = vpop.f32.mrb[59].mxu0 }
 0x240   :  { %13306 = vst [vmem:[#allocation81_spill] sm:$0xff] %v11466_v51  ;;  %v7586_v31 = vpack.c.bf16 %v8174_v45, %v8174_v45  ;;  %1396 = vst.msk [vmem:[%s13119_s2 + $0xe0] sm:$0xf] %vm1339_vm2, %v7583_v61  ;;  %v1463_v51 = vmul.f32 %v8174_v45, %v8174_v45  ;;  %v7647_v38 = vpack.c.bf16 %v2569_v30, %v2569_v30  ;;  %v8306_v35 = vpop.f32.mrb[58].mxu1 }
 0x241   :  { %13307 = vst [vmem:[#allocation82_spill] sm:$0xff] %v11474_v48  ;;  %v11480_v41 = vadd.f32 %v2569_v30, %v1052_v13  ;;  %v3041_v44 = vmul.f32 %v2569_v30, %v2569_v30  ;;  %7069 = vst.msk [vmem:[%s13119_s2 + $0x1e8] sm:$0xf] %vm1339_vm2, %v7649_v11  ;;  %v11486_v20 = vadd.f32 %v3043_v34, %v1462_v62  ;;  %v2572_v48 = vpop.f32.mrb[59].mxu1  ;;  %v5487_v30 = vpop.permute.xlu0 %5486 }
 0x242   :  { %1399 = vst.msk [vmem:[%s13119_s2 + $0xec] sm:$0xf] %vm1339_vm2, %v7586_v31  ;;  %v7584_v60 = vpack.c.bf16 %v1055_v33, %v1055_v33  ;;  %v1461_v61 = vmul.f32 %v1055_v33, %v1055_v33  ;;  %v7650_v1 = vpack.c.bf16 %v8306_v35, %v8306_v35  ;;  %8416 = vmatmul.mubr.msk.bf16.gmra.mrb[100].mxu0 %vm305_vm1, %v11164_v24  ;;  %7067 = vst.msk [vmem:[%s13119_s2 + $0x1e0] sm:$0xf] %vm1339_vm2, %v7647_v38  ;;  %v3844_v38 = vpop.permute.xlu1 %3843 }
 0x243   :  { %13308 = vst [vmem:[#allocation83_spill] sm:$0xff] %v11480_v41  ;;  %13309 = vst [vmem:[#allocation84_spill] sm:$0xff] %v11486_v20  ;;  %v11498_v13 = vadd.f32 %v3041_v44, %v1460_v19  ;;  %v11500_v62 = vadd.f32 %v8306_v35, %v8174_v45  ;;  %v3044_v11 = vmul.f32 %v8306_v35, %v8306_v35  ;;  %8419 = vmatprep.mubr.msk.bf16.mxu0 %vm305_vm1, %v11228_v4 }
 0x244   :  { %v7648_v34 = vpack.c.bf16 %v2572_v48, %v2572_v48  ;;  %1397 = vst.msk [vmem:[%s13119_s2 + $0xe4] sm:$0xf] %vm1339_vm2, %v7584_v60  ;;  %7070 = vst.msk [vmem:[%s13119_s2 + $0x1ec] sm:$0xf] %vm1339_vm2, %v7650_v1  ;;  %v11512_v24 = vadd.f32 %v2572_v48, %v1055_v33  ;;  %v3042_v44 = vmul.f32 %v2572_v48, %v2572_v48  ;;  %8548 = vmatmul.mubr.msk.bf16.gmra.mrb[100].mxu1 %vm305_vm1, %v11224_v0  ;;  %v8177_v4 = vpop.f32.mrb[60].mxu0 }
 0x245   :  { %13310 = vst [vmem:[#allocation85_spill] sm:$0xff] %v11498_v13  ;;  %13311 = vst [vmem:[#allocation86_spill] sm:$0xff] %v11500_v62  ;;  %v11516_v35 = vadd.f32 %v3044_v11, %v1463_v51  ;;  %8551 = vmatprep.mubr.msk.bf16.mxu1 %vm305_vm1, %v11288_v8  ;;  %v7589_v45 = vpack.c.bf16 %v8177_v4, %v8177_v4  ;;  %v1466_v31 = vmul.f32 %v8177_v4, %v8177_v4  ;;  %v1068_v48 = vpop.f32.mrb[61].mxu0 }
 0x246   :  { %13312 = vst [vmem:[#allocation87_spill] sm:$0xff] %v11512_v24  ;;  %7068 = vst.msk [vmem:[%s13119_s2 + $0x1e4] sm:$0xf] %vm1339_vm2, %v7648_v34  ;;  %v11524_v19 = vadd.f32 %v3042_v44, %v1461_v61  ;;  %v7587_v33 = vpack.c.bf16 %v1068_v48, %v1068_v48  ;;  %v1464_v0 = vmul.f32 %v1068_v48, %v1068_v48  ;;  %v8309_v51 = vpop.f32.mrb[60].mxu1  ;;  %v8178_v60 = vpop.f32.mrb[62].mxu0 }
 0x247   :  { %13313 = vst [vmem:[#allocation88_spill] sm:$0xff] %v11516_v35  ;;  %1402 = vst.msk [vmem:[%s13119_s2 + $0xf8] sm:$0xf] %vm1339_vm2, %v7589_v45  ;;  %v7653_v1 = vpack.c.bf16 %v8309_v51, %v8309_v51  ;;  %v11530_v11 = vadd.f32 %v8309_v51, %v8177_v4  ;;  %v3047_v8 = vmul.f32 %v8309_v51, %v8309_v51  ;;  %v2585_v61 = vpop.f32.mrb[61].mxu1  ;;  %v1071_v44 = vpop.f32.mrb[63].mxu0 }
 0x248   :  { %13314 = vst [vmem:[#allocation89_spill] sm:$0xff] %v11524_v19  ;;  %v7590_v34 = vpack.c.bf16 %v8178_v60, %v8178_v60  ;;  %1400 = vst.msk [vmem:[%s13119_s2 + $0xf0] sm:$0xf] %vm1339_vm2, %v7587_v33  ;;  %v1467_v19 = vmul.f32 %v8178_v60, %v8178_v60  ;;  %v7651_v24 = vpack.c.bf16 %v2585_v61, %v2585_v61  ;;  %v8310_v13 = vpop.f32.mrb[62].mxu1 }
 0x249   :  { %13315 = vst [vmem:[#allocation90_spill] sm:$0xff] %v11530_v11  ;;  %v11536_v35 = vadd.f32 %v2585_v61, %v1068_v48  ;;  %v3045_v62 = vmul.f32 %v2585_v61, %v2585_v61  ;;  %7073 = vst.msk [vmem:[%s13119_s2 + $0x1f8] sm:$0xf] %vm1339_vm2, %v7653_v1  ;;  %v11542_v4 = vadd.f32 %v3047_v8, %v1466_v31  ;;  %v2588_v11 = vpop.f32.mrb[63].mxu1 }
 0x24a   :  { %1403 = vst.msk [vmem:[%s13119_s2 + $0xfc] sm:$0xf] %vm1339_vm2, %v7590_v34  ;;  %v7588_v45 = vpack.c.bf16 %v1071_v44, %v1071_v44  ;;  %v1465_v33 = vmul.f32 %v1071_v44, %v1071_v44  ;;  %v7654_v51 = vpack.c.bf16 %v8310_v13, %v8310_v13  ;;  %8420 = vmatmul.mubr.msk.bf16.gmra.mrb[104].mxu0 %vm305_vm1, %v11284_v58  ;;  %7071 = vst.msk [vmem:[%s13119_s2 + $0x1f0] sm:$0xf] %vm1339_vm2, %v7651_v24 }
 0x24b   :  { %13316 = vst [vmem:[#allocation91_spill] sm:$0xff] %v11536_v35  ;;  %13317 = vst [vmem:[#allocation92_spill] sm:$0xff] %v11542_v4  ;;  %v11554_v48 = vadd.f32 %v3045_v62, %v1464_v0  ;;  %v11556_v31 = vadd.f32 %v8310_v13, %v8178_v60  ;;  %v3048_v1 = vmul.f32 %v8310_v13, %v8310_v13  ;;  %8423 = vmatprep.mubr.msk.bf16.mxu0 %vm305_vm1, %v11348_v16  ;;  %v3846_v13 = vpop.permute.xlu0 %3845  ;;  %v5489_v16 = vpop.permute.xlu1 %5488 }
 0x24c   :  { %v7652_v8 = vpack.c.bf16 %v2588_v11, %v2588_v11  ;;  %1401 = vst.msk [vmem:[%s13119_s2 + $0xf4] sm:$0xf] %vm1339_vm2, %v7588_v45  ;;  %7074 = vst.msk [vmem:[%s13119_s2 + $0x1fc] sm:$0xf] %vm1339_vm2, %v7654_v51  ;;  %v11568_v58 = vadd.f32 %v2588_v11, %v1071_v44  ;;  %v3046_v62 = vmul.f32 %v2588_v11, %v2588_v11  ;;  %8552 = vmatmul.mubr.msk.bf16.gmra.mrb[104].mxu1 %vm305_vm1, %v11344_v53 }
 0x24d   :  { %13318 = vst [vmem:[#allocation93_spill] sm:$0xff] %v11554_v48  ;;  %13319 = vst [vmem:[#allocation94_spill] sm:$0xff] %v11556_v31  ;;  %v11572_v24 = vadd.f32 %v3048_v1, %v1467_v19  ;;  %8555 = vmatprep.mubr.msk.bf16.mxu1 %vm305_vm1, %v11408_v39 }
 0x24e   :  { %13320 = vst [vmem:[#allocation95_spill] sm:$0xff] %v11568_v58  ;;  %7072 = vst.msk [vmem:[%s13119_s2 + $0x1f4] sm:$0xf] %vm1339_vm2, %v7652_v8  ;;  %v11580_v0 = vadd.f32 %v3046_v62, %v1465_v33 }
 0x24f   :  { %13321 = vst [vmem:[#allocation96_spill] sm:$0xff] %v11572_v24  ;;  %v5491_v60 = vpop.permute.xlu0 %5490  ;;  %v3848_v53 = vpop.permute.xlu1 %3847 }
 0x250   :  { %13322 = vst [vmem:[#allocation97_spill] sm:$0xff] %v11580_v0 }
 0x252   :  { %8424 = vmatmul.mubr.msk.bf16.gmra.mrb[108].mxu0 %vm305_vm1, %v11404_v56 }
 0x253   :  { %8427 = vmatprep.mubr.msk.bf16.mxu0 %vm305_vm1, %v11468_v26  ;;  %v3850_v19 = vpop.permute.xlu0 %3849  ;;  %v5493_v11 = vpop.permute.xlu1 %5492 }
 0x254   :  { %8556 = vmatmul.mubr.msk.bf16.gmra.mrb[108].mxu1 %vm305_vm1, %v11464_v5 }
 0x255   :  { %8559 = vmatprep.mubr.msk.bf16.mxu1 %vm305_vm1, %v5487_v30 }
 0x257   :  { %v5495_v56 = vpop.permute.xlu0 %5494  ;;  %v3852_v39 = vpop.permute.xlu1 %3851 }
 0x25a   :  { %8428 = vmatmul.mubr.msk.bf16.gmra.mrb[112].mxu0 %vm305_vm1, %v3844_v38 }
 0x25b   :  { %8431 = vmatprep.mubr.msk.bf16.mxu0 %vm305_vm1, %v3846_v13  ;;  %v3854_v5 = vpop.permute.xlu0 %3853  ;;  %v5497_v26 = vpop.permute.xlu1 %5496 }
 0x25c   :  { %8560 = vmatmul.mubr.msk.bf16.gmra.mrb[112].mxu1 %vm305_vm1, %v5489_v16 }
 0x25d   :  { %8563 = vmatprep.mubr.msk.bf16.mxu1 %vm305_vm1, %v5491_v60 }
 0x25f   :  { %v5499_v38 = vpop.permute.xlu0 %5498  ;;  %v3856_v30 = vpop.permute.xlu1 %3855 }
 0x262   :  { %8432 = vmatmul.mubr.msk.bf16.gmra.mrb[116].mxu0 %vm305_vm1, %v3848_v53 }
 0x263   :  { %8435 = vmatprep.mubr.msk.bf16.mxu0 %vm305_vm1, %v3850_v19  ;;  %v5501_v34 = vpop.permute.xlu1 %5500 }
 0x264   :  { %8564 = vmatmul.mubr.msk.bf16.gmra.mrb[116].mxu1 %vm305_vm1, %v5493_v11 }
 0x265   :  { %8567 = vmatprep.mubr.msk.bf16.mxu1 %vm305_vm1, %v5495_v56 }
 0x26a   :  { %8436 = vmatmul.mubr.msk.bf16.gmra.mrb[120].mxu0 %vm305_vm1, %v3852_v39 }
 0x26b   :  { %8439 = vmatprep.mubr.msk.bf16.mxu0 %vm305_vm1, %v3854_v5 }
 0x26c   :  { %8568 = vmatmul.mubr.msk.bf16.gmra.mrb[120].mxu1 %vm305_vm1, %v5497_v26 }
 0x26d   :  { %8571 = vmatprep.mubr.msk.bf16.mxu1 %vm305_vm1, %v5499_v38 }
 0x272   :  { %8440 = vmatmul.mubr.msk.bf16.gmra.mrb[124].mxu0 %vm305_vm1, %v3856_v30 }
 0x274   :  { %8572 = vmatmul.mubr.msk.bf16.gmra.mrb[124].mxu1 %vm305_vm1, %v5501_v34 }
 0x2cd   :  { %v8381_v61 = vpop.f32.mrb[64].mxu0 }
 0x2ce   :  { %v7657_v44 = vpack.c.bf16 %v8381_v61, %v8381_v61  ;;  %v4568_v45 = vadd.f32 %v8381_v61, %v10618_v40  ;;  %v4632_v33 = vmul.f32 %v8381_v61, %v8381_v61  ;;  %v3990_v51 = vpop.f32.mrb[65].mxu0 }
 0x2cf   :  { %v7655_v1 = vpack.c.bf16 %v3990_v51, %v3990_v51  ;;  %v4566_v8 = vadd.f32 %v3990_v51, %v10624_v23  ;;  %v4630_v62 = vmul.f32 %v3990_v51, %v3990_v51  ;;  %v8513_v13 = vpop.f32.mrb[64].mxu1  ;;  %v8382_v16 = vpop.f32.mrb[66].mxu0 }
 0x2d0   :  { %7239 = vst.msk [vmem:[%s13119_s2 + $0x208] sm:$0xf] %vm1339_vm2, %v7657_v44  ;;  %v4696_v60 = vadd.f32 %v4632_v33, %v10632_v54  ;;  %v7721_v53 = vpack.c.bf16 %v8513_v13, %v8513_v13  ;;  %v6213_v19 = vadd.f32 %v8513_v13, %v4568_v45  ;;  %v6277_v11 = vmul.f32 %v8513_v13, %v8513_v13  ;;  %v5635_v56 = vpop.f32.mrb[65].mxu1  ;;  %v3993_v40 = vpop.f32.mrb[67].mxu0 }
 0x2d1   :  { %7237 = vst.msk [vmem:[%s13119_s2 + $0x200] sm:$0xf] %vm1339_vm2, %v7655_v1  ;;  %v4694_v23 = vadd.f32 %v4630_v62, %v10646_v6  ;;  %v7658_v39 = vpack.c.bf16 %v8382_v16, %v8382_v16  ;;  %v4569_v5 = vadd.f32 %v8382_v16, %v10648_v36  ;;  %v4633_v26 = vmul.f32 %v8382_v16, %v8382_v16  ;;  %v8514_v38 = vpop.f32.mrb[66].mxu1 }
 0x2d2   :  { %7465 = vst.msk [vmem:[%s13119_s2 + $0x308] sm:$0xf] %vm1339_vm2, %v7721_v53  ;;  %v6341_v54 = vadd.f32 %v6277_v11, %v4696_v60  ;;  %v7719_v30 = vpack.c.bf16 %v5635_v56, %v5635_v56  ;;  %v6211_v34 = vadd.f32 %v5635_v56, %v4566_v8  ;;  %v5638_v61 = vpop.f32.mrb[67].mxu1  ;;  %v6275_v44 = vmul.f32 %v5635_v56, %v5635_v56 }
 0x2d3   :  { %7240 = vst.msk [vmem:[%s13119_s2 + $0x20c] sm:$0xf] %vm1339_vm2, %v7658_v39  ;;  %v4697_v6 = vadd.f32 %v4633_v26, %v10664_v10  ;;  %v7656_v36 = vpack.c.bf16 %v3993_v40, %v3993_v40  ;;  %v4567_v45 = vadd.f32 %v3993_v40, %v10660_v17  ;;  %v6406_v33 = vsel %vm305_vm1, %v6213_v19, 0.0 }
 0x2d4   :  { %v6539_v51 = vsel %vm305_vm1, %v6341_v54, 0.0  ;;  %7463 = vst.msk [vmem:[%s13119_s2 + $0x300] sm:$0xf] %vm1339_vm2, %v7719_v30  ;;  %v4631_v1 = vmul.f32 %v3993_v40, %v3993_v40  ;;  %v7722_v8 = vpack.c.bf16 %v8514_v38, %v8514_v38  ;;  %v6339_v62 = vadd.f32 %v6275_v44, %v4694_v23 }
 0x2d5   :  { %7238 = vst.msk [vmem:[%s13119_s2 + $0x204] sm:$0xf] %vm1339_vm2, %v7656_v36  ;;  %v6214_v10 = vadd.f32 %v8514_v38, %v4569_v5  ;;  %v6278_v13 = vmul.f32 %v8514_v38, %v8514_v38  ;;  %v7720_v17 = vpack.c.bf16 %v5638_v61, %v5638_v61  ;;  %v8385_v16 = vpop.f32.mrb[68].mxu0  ;;  %v6212_v53 = vadd.f32 %v5638_v61, %v4567_v45 }
 0x2d6   :  { %v4695_v60 = vadd.f32 %v4631_v1, %v10674_v12  ;;  %7466 = vst.msk [vmem:[%s13119_s2 + $0x30c] sm:$0xf] %vm1339_vm2, %v7722_v8  ;;  %v6276_v19 = vmul.f32 %v5638_v61, %v5638_v61  ;;  %v7661_v11 = vpack.c.bf16 %v8385_v16, %v8385_v16  ;;  %v4006_v56 = vpop.f32.mrb[69].mxu0  ;;  %v6403_v40 = vsel %vm305_vm1, %v6211_v34, 0.0 }
 0x2d7   :  { %v6536_v23 = vsel %vm305_vm1, %v6339_v62, 0.0  ;;  %v6342_v39 = vadd.f32 %v6278_v13, %v4697_v6  ;;  %7464 = vst.msk [vmem:[%s13119_s2 + $0x304] sm:$0xf] %vm1339_vm2, %v7720_v17  ;;  %v4572_v12 = vadd.f32 %v8385_v16, %v10682_v27  ;;  %v8517_v5 = vpop.f32.mrb[68].mxu1  ;;  %v8386_v26 = vpop.f32.mrb[70].mxu0  ;;  %v6404_v54 = vsel %vm305_vm1, %v6212_v53, 0.0 }
 0x2d8   :  { %v6340_v38 = vadd.f32 %v6276_v19, %v4695_v60  ;;  %7243 = vst.msk [vmem:[%s13119_s2 + $0x218] sm:$0xf] %vm1339_vm2, %v7661_v11  ;;  %v4636_v30 = vmul.f32 %v8385_v16, %v8385_v16  ;;  %v7659_v34 = vpack.c.bf16 %v4006_v56, %v4006_v56  ;;  %v5651_v61 = vpop.f32.mrb[69].mxu1  ;;  %v4009_v6 = vpop.f32.mrb[71].mxu0  ;;  %v6408_v44 = vsel %vm305_vm1, %v6214_v10, 0.0 }
 0x2d9   :  { %v6405_v36 = vadd.f32 %v6404_v54, %v6403_v40  ;;  %v4570_v45 = vadd.f32 %v4006_v56, %v10688_v52  ;;  %v4634_v27 = vmul.f32 %v4006_v56, %v4006_v56  ;;  %v8518_v1 = vpop.f32.mrb[70].mxu1  ;;  %v7725_v13 = vpack.c.bf16 %v8517_v5, %v8517_v5 }
 0x2da   :  { %v6537_v8 = vsel %vm305_vm1, %v6340_v38, 0.0  ;;  %v4700_v62 = vadd.f32 %v4636_v30, %v10696_v28  ;;  %7241 = vst.msk [vmem:[%s13119_s2 + $0x210] sm:$0xf] %vm1339_vm2, %v7659_v34  ;;  %v6217_v17 = vadd.f32 %v8517_v5, %v4572_v12  ;;  %v5654_v16 = vpop.f32.mrb[71].mxu1  ;;  %v6281_v19 = vmul.f32 %v8517_v5, %v8517_v5 }
 0x2db   :  { %v6407_v60 = vadd.f32 %v6406_v33, %v6405_v36  ;;  %v6538_v53 = vadd.f32 %v6537_v8, %v6536_v23  ;;  %v4698_v10 = vadd.f32 %v4634_v27, %v10710_v32  ;;  %v6541_v52 = vsel %vm305_vm1, %v6342_v39, 0.0  ;;  %7469 = vst.msk [vmem:[%s13119_s2 + $0x318] sm:$0xf] %vm1339_vm2, %v7725_v13  ;;  %v13323_v32 = vld [vmem:[#allocation35_spill] sm:$0xff] }
 0x2dc   :  { %v7662_v28 = vpack.c.bf16 %v8386_v26, %v8386_v26  ;;  %v4573_v11 = vadd.f32 %v8386_v26, %v10712_v7  ;;  %v4637_v56 = vmul.f32 %v8386_v26, %v8386_v26  ;;  %v6345_v38 = vadd.f32 %v6281_v19, %v4700_v62  ;;  %v13324_v26 = vld [vmem:[#allocation2_spill] sm:$0xff] }
 0x2dd   :  { %v6540_v40 = vadd.f32 %v6539_v51, %v6538_v53  ;;  %v7723_v12 = vpack.c.bf16 %v5651_v61, %v5651_v61  ;;  %v6215_v54 = vadd.f32 %v5651_v61, %v4570_v45  ;;  %v8389_v33 = vpop.f32.mrb[72].mxu0  ;;  %v6279_v39 = vmul.f32 %v5651_v61, %v5651_v61 }
 0x2de   :  { %7244 = vst.msk [vmem:[%s13119_s2 + $0x21c] sm:$0xf] %vm1339_vm2, %v7662_v28  ;;  %v4701_v23 = vadd.f32 %v4637_v56, %v13323_v32  ;;  %v6409_v5 = vadd.f32 %v6408_v44, %v6407_v60  ;;  %v7660_v30 = vpack.c.bf16 %v4009_v6, %v4009_v6  ;;  %v4022_v34 = vpop.f32.mrb[73].mxu0  ;;  %v6414_v36 = vsel %vm305_vm1, %v6217_v17, 0.0 }
 0x2df   :  { %7467 = vst.msk [vmem:[%s13119_s2 + $0x310] sm:$0xf] %vm1339_vm2, %v7723_v12  ;;  %v6410_v7 = vsel %vm305_vm1, %v6215_v54, 0.0  ;;  %v6542_v51 = vadd.f32 %v6541_v52, %v6540_v40  ;;  %v4571_v45 = vadd.f32 %v4009_v6, %v13324_v26  ;;  %v8521_v27 = vpop.f32.mrb[72].mxu1  ;;  %v8390_v8 = vpop.f32.mrb[74].mxu0  ;;  %v6343_v62 = vadd.f32 %v6279_v39, %v4698_v10  ;;  %v13325_v10 = vld [vmem:[#allocation3_spill] sm:$0xff] }
 0x2e0   :  { %v6411_v13 = vadd.f32 %v6410_v7, %v6409_v5  ;;  %7242 = vst.msk [vmem:[%s13119_s2 + $0x214] sm:$0xf] %vm1339_vm2, %v7660_v30  ;;  %v4635_v61 = vmul.f32 %v4009_v6, %v4009_v6  ;;  %v7726_v44 = vpack.c.bf16 %v8518_v1, %v8518_v1  ;;  %v5667_v17 = vpop.f32.mrb[73].mxu1  ;;  %v11684_v60 = vpop.f32.mrb[75].mxu0  ;;  %v6218_v53 = vadd.f32 %v8518_v1, %v4573_v11 }
 0x2e1   :  { %v6282_v19 = vmul.f32 %v8518_v1, %v8518_v1  ;;  %v7724_v28 = vpack.c.bf16 %v5654_v16, %v5654_v16  ;;  %v6216_v52 = vadd.f32 %v5654_v16, %v4571_v45  ;;  %v11686_v56 = vpop.f32.mrb[74].mxu1  ;;  %v6543_v40 = vsel %vm305_vm1, %v6343_v62, 0.0 }
 0x2e2   :  { %v4699_v12 = vadd.f32 %v4635_v61, %v13325_v10  ;;  %7470 = vst.msk [vmem:[%s13119_s2 + $0x31c] sm:$0xf] %vm1339_vm2, %v7726_v44  ;;  %v6280_v6 = vmul.f32 %v5654_v16, %v5654_v16  ;;  %v7665_v54 = vpack.c.bf16 %v8389_v33, %v8389_v33  ;;  %v11694_v32 = vpop.f32.mrb[75].mxu1  ;;  %v6547_v11 = vsel %vm305_vm1, %v6345_v38, 0.0  ;;  %v13326_v16 = vld [vmem:[#allocation4_spill] sm:$0xff] }
 0x2e3   :  { %v6544_v1 = vadd.f32 %v6543_v40, %v6542_v51  ;;  %v6346_v39 = vadd.f32 %v6282_v19, %v4701_v23  ;;  %7468 = vst.msk [vmem:[%s13119_s2 + $0x314] sm:$0xf] %vm1339_vm2, %v7724_v28  ;;  %v6412_v5 = vsel %vm305_vm1, %v6216_v52, 0.0  ;;  %v4576_v26 = vadd.f32 %v8389_v33, %v13326_v16  ;;  %v13327_v51 = vld [vmem:[#allocation5_spill] sm:$0xff]  ;;  %v13328_v52 = vld [vmem:[#allocation6_spill] sm:$0xff] }
 0x2e4   :  { %v6344_v30 = vadd.f32 %v6280_v6, %v4699_v12  ;;  %v6413_v7 = vadd.f32 %v6412_v5, %v6411_v13  ;;  %7247 = vst.msk [vmem:[%s13119_s2 + $0x228] sm:$0xf] %vm1339_vm2, %v7665_v54  ;;  %v4640_v45 = vmul.f32 %v8389_v33, %v8389_v33  ;;  %v6416_v38 = vsel %vm305_vm1, %v6218_v53, 0.0  ;;  %v13329_v33 = vld [vmem:[#allocation7_spill] sm:$0xff] }
 0x2e5   :  { %v7663_v23 = vpack.c.bf16 %v4022_v34, %v4022_v34  ;;  %v4574_v62 = vadd.f32 %v4022_v34, %v13327_v51  ;;  %v4638_v61 = vmul.f32 %v4022_v34, %v4022_v34  ;;  %v8393_v44 = vpop.f32.mrb[76].mxu0  ;;  %v7729_v40 = vpack.c.bf16 %v8521_v27, %v8521_v27 }
 0x2e6   :  { %v6415_v19 = vadd.f32 %v6414_v36, %v6413_v7  ;;  %v6545_v28 = vsel %vm305_vm1, %v6344_v30, 0.0  ;;  %v4704_v13 = vadd.f32 %v4640_v45, %v13328_v52  ;;  %v11711_v10 = vpop.f32.mrb[77].mxu0  ;;  %v6221_v6 = vadd.f32 %v8521_v27, %v4576_v26  ;;  %v13331_v52 = vld [vmem:[#allocation10_spill] sm:$0xff] }
 0x2e7   :  { %v6546_v12 = vadd.f32 %v6545_v28, %v6544_v1  ;;  %7245 = vst.msk [vmem:[%s13119_s2 + $0x220] sm:$0xf] %vm1339_vm2, %v7663_v23  ;;  %v4702_v53 = vadd.f32 %v4638_v61, %v13329_v33  ;;  %v6285_v54 = vmul.f32 %v8521_v27, %v8521_v27  ;;  %v11718_v34 = vpop.f32.mrb[76].mxu1  ;;  %v11720_v36 = vpop.f32.mrb[78].mxu0  ;;  %7473 = vst.msk [vmem:[%s13119_s2 + $0x328] sm:$0xf] %vm1339_vm2, %v7729_v40 }
 0x2e8   :  { %v7666_v5 = vpack.c.bf16 %v8390_v8, %v8390_v8  ;;  %v13330_v1 = vld [vmem:[#allocation8_spill] sm:$0xff]  ;;  %v4641_v7 = vmul.f32 %v8390_v8, %v8390_v8  ;;  %v7727_v16 = vpack.c.bf16 %v5667_v17, %v5667_v17  ;;  %v11727_v45 = vpop.f32.mrb[77].mxu1  ;;  %v11729_v23 = vpop.f32.mrb[79].mxu0  ;;  %v6549_v27 = vsel %vm305_vm1, %v6346_v39, 0.0 }
 0x2e9   :  { %v4577_v30 = vadd.f32 %v8390_v8, %v13330_v1  ;;  %v6548_v26 = vadd.f32 %v6547_v11, %v6546_v12  ;;  %v6349_v51 = vadd.f32 %v6285_v54, %v4704_v13  ;;  %v6219_v61 = vadd.f32 %v5667_v17, %v4574_v62  ;;  %v11732_v28 = vpop.f32.mrb[78].mxu1  ;;  %v13332_v54 = vld [vmem:[#allocation9_spill] sm:$0xff] }
 0x2ea   :  { %7248 = vst.msk [vmem:[%s13119_s2 + $0x22c] sm:$0xf] %vm1339_vm2, %v7666_v5  ;;  %v4705_v40 = vadd.f32 %v4641_v7, %v13331_v52  ;;  %7471 = vst.msk [vmem:[%s13119_s2 + $0x320] sm:$0xf] %vm1339_vm2, %v7727_v16  ;;  %v6283_v8 = vmul.f32 %v5667_v17, %v5667_v17  ;;  %v6417_v33 = vadd.f32 %v6416_v38, %v6415_v19  ;;  %v11745_v39 = vpop.f32.mrb[79].mxu1  ;;  %v6422_v62 = vsel %vm305_vm1, %v6221_v6, 0.0 }
 0x2eb   :  { %v7664_v11 = vpack.c.bf16 %v11684_v60, %v11684_v60  ;;  %v6418_v13 = vsel %vm305_vm1, %v6219_v61, 0.0  ;;  %v6550_v12 = vadd.f32 %v6549_v27, %v6548_v26  ;;  %v4575_v5 = vadd.f32 %v11684_v60, %v13332_v54  ;;  %v13333_v61 = vld [vmem:[#allocation11_spill] sm:$0xff] }
 0x2ec   :  { %v6347_v1 = vadd.f32 %v6283_v8, %v4702_v53  ;;  %v6419_v7 = vadd.f32 %v6418_v13, %v6417_v33  ;;  %v4639_v17 = vmul.f32 %v11684_v60, %v11684_v60  ;;  %v7730_v38 = vpack.c.bf16 %v11686_v56, %v11686_v56 }
 0x2ed   :  { %7246 = vst.msk [vmem:[%s13119_s2 + $0x224] sm:$0xf] %vm1339_vm2, %v7664_v11  ;;  %v6222_v19 = vadd.f32 %v11686_v56, %v4577_v30  ;;  %v6286_v6 = vmul.f32 %v11686_v56, %v11686_v56  ;;  %v7728_v53 = vpack.c.bf16 %v11694_v32, %v11694_v32  ;;  %v6220_v16 = vadd.f32 %v11694_v32, %v4575_v5  ;;  %v11765_v27 = vpop.f32.mrb[80].mxu0 }
 0x2ee   :  { %v6551_v26 = vsel %vm305_vm1, %v6347_v1, 0.0  ;;  %v4703_v52 = vadd.f32 %v4639_v17, %v13333_v61  ;;  %7474 = vst.msk [vmem:[%s13119_s2 + $0x32c] sm:$0xf] %vm1339_vm2, %v7730_v38  ;;  %v6284_v60 = vmul.f32 %v11694_v32, %v11694_v32  ;;  %v7669_v56 = vpack.c.bf16 %v8393_v44, %v8393_v44  ;;  %v11775_v30 = vpop.f32.mrb[81].mxu0 }
 0x2ef   :  { %v6555_v8 = vsel %vm305_vm1, %v6349_v51, 0.0  ;;  %v6552_v33 = vadd.f32 %v6551_v26, %v6550_v12  ;;  %v6350_v11 = vadd.f32 %v6286_v6, %v4705_v40  ;;  %7472 = vst.msk [vmem:[%s13119_s2 + $0x324] sm:$0xf] %vm1339_vm2, %v7728_v53  ;;  %v6420_v13 = vsel %vm305_vm1, %v6220_v16, 0.0  ;;  %v11783_v54 = vpop.f32.mrb[80].mxu1  ;;  %v11785_v5 = vpop.f32.mrb[82].mxu0 }
 0x2f0   :  { %v6348_v1 = vadd.f32 %v6284_v60, %v4703_v52  ;;  %v6421_v32 = vadd.f32 %v6420_v13, %v6419_v7  ;;  %7251 = vst.msk [vmem:[%s13119_s2 + $0x238] sm:$0xf] %vm1339_vm2, %v7669_v56  ;;  %v4580_v51 = vadd.f32 %v8393_v44, %v10810_v55  ;;  %v4644_v40 = vmul.f32 %v8393_v44, %v8393_v44  ;;  %v11792_v12 = vpop.f32.mrb[81].mxu1  ;;  %v11794_v17 = vpop.f32.mrb[83].mxu0  ;;  %v13334_v53 = vld [vmem:[#allocation12_spill] sm:$0xff]  ;;  %v13335_v44 = vld [vmem:[#allocation13_spill] sm:$0xff] }
 0x2f1   :  { %v6424_v38 = vsel %vm305_vm1, %v6222_v19, 0.0  ;;  %v7667_v6 = vpack.c.bf16 %v11711_v10, %v11711_v10  ;;  %v4578_v7 = vadd.f32 %v11711_v10, %v13334_v53  ;;  %v4642_v16 = vmul.f32 %v11711_v10, %v11711_v10  ;;  %v11803_v26 = vpop.f32.mrb[82].mxu1  ;;  %v13336_v13 = vld [vmem:[#allocation14_spill] sm:$0xff] }
 0x2f2   :  { %v6423_v61 = vadd.f32 %v6422_v62, %v6421_v32  ;;  %v6553_v55 = vsel %vm305_vm1, %v6348_v1, 0.0  ;;  %v4708_v52 = vadd.f32 %v4644_v40, %v13335_v44  ;;  %v7733_v60 = vpack.c.bf16 %v11718_v34, %v11718_v34  ;;  %v11809_v19 = vpop.f32.mrb[83].mxu1  ;;  %v13337_v1 = vld [vmem:[#allocation15_spill] sm:$0xff] }
 0x2f3   :  { %v6554_v56 = vadd.f32 %v6553_v55, %v6552_v33  ;;  %7249 = vst.msk [vmem:[%s13119_s2 + $0x230] sm:$0xf] %vm1339_vm2, %v7667_v6  ;;  %v4706_v10 = vadd.f32 %v4642_v16, %v13336_v13  ;;  %v6225_v53 = vadd.f32 %v11718_v34, %v4580_v51  ;;  %v6289_v62 = vmul.f32 %v11718_v34, %v11718_v34 }
 0x2f4   :  { %7477 = vst.msk [vmem:[%s13119_s2 + $0x338] sm:$0xf] %vm1339_vm2, %v7733_v60  ;;  %v7670_v33 = vpack.c.bf16 %v11720_v36, %v11720_v36  ;;  %v4581_v32 = vadd.f32 %v11720_v36, %v13337_v1  ;;  %v4645_v40 = vmul.f32 %v11720_v36, %v11720_v36  ;;  %v7731_v51 = vpack.c.bf16 %v11727_v45, %v11727_v45  ;;  %v13338_v60 = vld [vmem:[#allocation17_spill] sm:$0xff] }
 0x2f5   :  { %v6557_v6 = vsel %vm305_vm1, %v6350_v11, 0.0  ;;  %v6556_v34 = vadd.f32 %v6555_v8, %v6554_v56  ;;  %v6353_v16 = vadd.f32 %v6289_v62, %v4708_v52  ;;  %v6223_v55 = vadd.f32 %v11727_v45, %v4578_v7  ;;  %v11833_v44 = vpop.f32.mrb[84].mxu0 }
 0x2f6   :  { %7252 = vst.msk [vmem:[%s13119_s2 + $0x23c] sm:$0xf] %vm1339_vm2, %v7670_v33  ;;  %v4709_v13 = vadd.f32 %v4645_v40, %v13338_v60  ;;  %7475 = vst.msk [vmem:[%s13119_s2 + $0x330] sm:$0xf] %vm1339_vm2, %v7731_v51  ;;  %v6287_v36 = vmul.f32 %v11727_v45, %v11727_v45  ;;  %v6425_v8 = vadd.f32 %v6424_v38, %v6423_v61  ;;  %v11848_v7 = vpop.f32.mrb[85].mxu0  ;;  %v6430_v52 = vsel %vm305_vm1, %v6225_v53, 0.0 }
 0x2f7   :  { %v7668_v11 = vpack.c.bf16 %v11729_v23, %v11729_v23  ;;  %v6426_v56 = vsel %vm305_vm1, %v6223_v55, 0.0  ;;  %v6558_v62 = vadd.f32 %v6557_v6, %v6556_v34  ;;  %v13339_v33 = vld [vmem:[#allocation16_spill] sm:$0xff]  ;;  %v11854_v40 = vpop.f32.mrb[84].mxu1  ;;  %v11856_v51 = vpop.f32.mrb[86].mxu0  ;;  %v4643_v38 = vmul.f32 %v11729_v23, %v11729_v23 }
 0x2f8   :  { %v4579_v1 = vadd.f32 %v11729_v23, %v13339_v33  ;;  %v6351_v60 = vadd.f32 %v6287_v36, %v4706_v10  ;;  %v6427_v45 = vadd.f32 %v6426_v56, %v6425_v8  ;;  %v7734_v61 = vpack.c.bf16 %v11732_v28, %v11732_v28  ;;  %v11866_v53 = vpop.f32.mrb[85].mxu1  ;;  %v11868_v6 = vpop.f32.mrb[87].mxu0 }
 0x2f9   :  { %7250 = vst.msk [vmem:[%s13119_s2 + $0x234] sm:$0xf] %vm1339_vm2, %v7668_v11  ;;  %v6226_v34 = vadd.f32 %v11732_v28, %v4581_v32  ;;  %v6290_v10 = vmul.f32 %v11732_v28, %v11732_v28  ;;  %v7732_v55 = vpack.c.bf16 %v11745_v39, %v11745_v39  ;;  %v11876_v8 = vpop.f32.mrb[86].mxu1  ;;  %v13340_v11 = vld [vmem:[#allocation18_spill] sm:$0xff]  ;;  %v6288_v32 = vmul.f32 %v11745_v39, %v11745_v39 }
 0x2fa   :  { %v6224_v36 = vadd.f32 %v11745_v39, %v4579_v1  ;;  %v6559_v23 = vsel %vm305_vm1, %v6351_v60, 0.0  ;;  %v4707_v56 = vadd.f32 %v4643_v38, %v13340_v11  ;;  %7478 = vst.msk [vmem:[%s13119_s2 + $0x33c] sm:$0xf] %vm1339_vm2, %v7734_v61  ;;  %v7673_v28 = vpack.c.bf16 %v11765_v27, %v11765_v27  ;;  %v11888_v33 = vpop.f32.mrb[87].mxu1  ;;  %v13341_v39 = vld [vmem:[#allocation19_spill] sm:$0xff] }
 0x2fb   :  { %v6563_v1 = vsel %vm305_vm1, %v6353_v16, 0.0  ;;  %v6560_v0 = vadd.f32 %v6559_v23, %v6558_v62  ;;  %v6354_v58 = vadd.f32 %v6290_v10, %v4709_v13  ;;  %7476 = vst.msk [vmem:[%s13119_s2 + $0x334] sm:$0xf] %vm1339_vm2, %v7732_v55  ;;  %v4584_v11 = vadd.f32 %v11765_v27, %v13341_v39 }
 0x2fc   :  { %v6428_v60 = vsel %vm305_vm1, %v6224_v36, 0.0  ;;  %v6352_v38 = vadd.f32 %v6288_v32, %v4707_v56  ;;  %7255 = vst.msk [vmem:[%s13119_s2 + $0x248] sm:$0xf] %vm1339_vm2, %v7673_v28  ;;  %v4648_v16 = vmul.f32 %v11765_v27, %v11765_v27  ;;  %v6432_v13 = vsel %vm305_vm1, %v6226_v34, 0.0 }
 0x2fd   :  { %v6429_v61 = vadd.f32 %v6428_v60, %v6427_v45  ;;  %v7671_v62 = vpack.c.bf16 %v11775_v30, %v11775_v30  ;;  %v4582_v10 = vadd.f32 %v11775_v30, %v10880_v50  ;;  %v4646_v45 = vmul.f32 %v11775_v30, %v11775_v30  ;;  %v11911_v55 = vpop.f32.mrb[88].mxu0  ;;  %v13342_v50 = vld [vmem:[#allocation20_spill] sm:$0xff] }
 0x2fe   :  { %v6561_v23 = vsel %vm305_vm1, %v6352_v38, 0.0  ;;  %v4712_v56 = vadd.f32 %v4648_v16, %v10886_v59  ;;  %v7737_v27 = vpack.c.bf16 %v11783_v54, %v11783_v54  ;;  %v11917_v34 = vpop.f32.mrb[89].mxu0  ;;  %v6229_v28 = vadd.f32 %v11783_v54, %v4584_v11  ;;  %v13343_v38 = vld [vmem:[#allocation21_spill] sm:$0xff] }
 0x2ff   :  { %v6431_v36 = vadd.f32 %v6430_v52, %v6429_v61  ;;  %v6562_v32 = vadd.f32 %v6561_v23, %v6560_v0  ;;  %7253 = vst.msk [vmem:[%s13119_s2 + $0x240] sm:$0xf] %vm1339_vm2, %v7671_v62  ;;  %v4710_v30 = vadd.f32 %v4646_v45, %v13342_v50  ;;  %v6293_v52 = vmul.f32 %v11783_v54, %v11783_v54  ;;  %v11927_v60 = vpop.f32.mrb[88].mxu1  ;;  %v11929_v59 = vpop.f32.mrb[90].mxu0 }
 0x300   :  { %7481 = vst.msk [vmem:[%s13119_s2 + $0x348] sm:$0xf] %vm1339_vm2, %v7737_v27  ;;  %v7674_v0 = vpack.c.bf16 %v11785_v5, %v11785_v5  ;;  %v4585_v61 = vadd.f32 %v11785_v5, %v13343_v38  ;;  %v4649_v39 = vmul.f32 %v11785_v5, %v11785_v5  ;;  %v7735_v54 = vpack.c.bf16 %v11792_v12, %v11792_v12  ;;  %v11943_v11 = vpop.f32.mrb[89].mxu1  ;;  %v11945_v16 = vpop.f32.mrb[91].mxu0  ;;  %v13344_v5 = vld [vmem:[#allocation23_spill] sm:$0xff] }
 0x301   :  { %v6565_v62 = vsel %vm305_vm1, %v6354_v58, 0.0  ;;  %v6564_v45 = vadd.f32 %v6563_v1, %v6562_v32  ;;  %v6357_v23 = vadd.f32 %v6293_v52, %v4712_v56  ;;  %v6227_v27 = vadd.f32 %v11792_v12, %v4582_v10  ;;  %v11949_v50 = vpop.f32.mrb[90].mxu1 }
 0x302   :  { %7256 = vst.msk [vmem:[%s13119_s2 + $0x24c] sm:$0xf] %vm1339_vm2, %v7674_v0  ;;  %v4713_v38 = vadd.f32 %v4649_v39, %v13344_v5  ;;  %7479 = vst.msk [vmem:[%s13119_s2 + $0x340] sm:$0xf] %vm1339_vm2, %v7735_v54  ;;  %v6291_v58 = vmul.f32 %v11792_v12, %v11792_v12  ;;  %v6433_v1 = vadd.f32 %v6432_v13, %v6431_v36  ;;  %v11964_v56 = vpop.f32.mrb[91].mxu1  ;;  %v6438_v32 = vsel %vm305_vm1, %v6229_v28, 0.0 }
 0x303   :  { %v7672_v10 = vpack.c.bf16 %v11794_v17, %v11794_v17  ;;  %v6434_v52 = vsel %vm305_vm1, %v6227_v27, 0.0  ;;  %v6566_v0 = vadd.f32 %v6565_v62, %v6564_v45  ;;  %v13345_v39 = vld [vmem:[#allocation22_spill] sm:$0xff]  ;;  %v4647_v12 = vmul.f32 %v11794_v17, %v11794_v17  ;;  %v13346_v27 = vld [vmem:[#allocation24_spill] sm:$0xff] }
 0x304   :  { %v4583_v5 = vadd.f32 %v11794_v17, %v13345_v39  ;;  %v6355_v24 = vadd.f32 %v6291_v58, %v4710_v30  ;;  %v6435_v31 = vadd.f32 %v6434_v52, %v6433_v1  ;;  %v7738_v13 = vpack.c.bf16 %v11803_v26, %v11803_v26 }
 0x305   :  { %7254 = vst.msk [vmem:[%s13119_s2 + $0x244] sm:$0xf] %vm1339_vm2, %v7672_v10  ;;  %v6230_v36 = vadd.f32 %v11803_v26, %v4585_v61  ;;  %v6294_v28 = vmul.f32 %v11803_v26, %v11803_v26  ;;  %v7736_v30 = vpack.c.bf16 %v11809_v19, %v11809_v19  ;;  %v11984_v62 = vpop.f32.mrb[92].mxu0  ;;  %v4711_v58 = vadd.f32 %v4647_v12, %v13346_v27 }
 0x306   :  { %v6228_v54 = vadd.f32 %v11809_v19, %v4583_v5  ;;  %v6567_v45 = vsel %vm305_vm1, %v6355_v24, 0.0  ;;  %7482 = vst.msk [vmem:[%s13119_s2 + $0x34c] sm:$0xf] %vm1339_vm2, %v7738_v13  ;;  %v6292_v17 = vmul.f32 %v11809_v19, %v11809_v19  ;;  %v7677_v26 = vpack.c.bf16 %v11833_v44, %v11833_v44  ;;  %v11996_v61 = vpop.f32.mrb[93].mxu0 }
 0x307   :  { %v6571_v1 = vsel %vm305_vm1, %v6357_v23, 0.0  ;;  %v6568_v10 = vadd.f32 %v6567_v45, %v6566_v0  ;;  %v6358_v52 = vadd.f32 %v6294_v28, %v4713_v38  ;;  %7480 = vst.msk [vmem:[%s13119_s2 + $0x344] sm:$0xf] %vm1339_vm2, %v7736_v30  ;;  %v12004_v39 = vpop.f32.mrb[92].mxu1  ;;  %v12006_v5 = vpop.f32.mrb[94].mxu0  ;;  %v13347_v23 = vld [vmem:[#allocation25_spill] sm:$0xff]  ;;  %v4652_v0 = vmul.f32 %v11833_v44, %v11833_v44 }
 0x308   :  { %v6436_v24 = vsel %vm305_vm1, %v6228_v54, 0.0  ;;  %v6356_v19 = vadd.f32 %v6292_v17, %v4711_v58  ;;  %7259 = vst.msk [vmem:[%s13119_s2 + $0x258] sm:$0xf] %vm1339_vm2, %v7677_v26  ;;  %v4588_v38 = vadd.f32 %v11833_v44, %v13347_v23  ;;  %v12016_v13 = vpop.f32.mrb[93].mxu1  ;;  %v12018_v28 = vpop.f32.mrb[95].mxu0  ;;  %v6440_v30 = vsel %vm305_vm1, %v6230_v36, 0.0 }
 0x309   :  { %v6437_v12 = vadd.f32 %v6436_v24, %v6435_v31  ;;  %v7675_v31 = vpack.c.bf16 %v11848_v7, %v11848_v7  ;;  %v4586_v54 = vadd.f32 %v11848_v7, %v10940_v46  ;;  %v4650_v45 = vmul.f32 %v11848_v7, %v11848_v7  ;;  %v12027_v27 = vpop.f32.mrb[94].mxu1  ;;  %v13348_v46 = vld [vmem:[#allocation26_spill] sm:$0xff] }
 0x30a   :  { %v6569_v44 = vsel %vm305_vm1, %v6356_v19, 0.0  ;;  %v4716_v17 = vadd.f32 %v4652_v0, %v10946_v14  ;;  %v7741_v26 = vpack.c.bf16 %v11854_v40, %v11854_v40  ;;  %v12033_v36 = vpop.f32.mrb[95].mxu1  ;;  %v6233_v23 = vadd.f32 %v11854_v40, %v4588_v38 }
 0x30b   :  { %v6439_v58 = vadd.f32 %v6438_v32, %v6437_v12  ;;  %v6570_v24 = vadd.f32 %v6569_v44, %v6568_v10  ;;  %7257 = vst.msk [vmem:[%s13119_s2 + $0x250] sm:$0xf] %vm1339_vm2, %v7675_v31  ;;  %v4714_v7 = vadd.f32 %v4650_v45, %v13348_v46  ;;  %v6297_v32 = vmul.f32 %v11854_v40, %v11854_v40  ;;  %v13349_v10 = vld [vmem:[#allocation27_spill] sm:$0xff] }
 0x30c   :  { %7485 = vst.msk [vmem:[%s13119_s2 + $0x358] sm:$0xf] %vm1339_vm2, %v7741_v26  ;;  %v7678_v14 = vpack.c.bf16 %v11856_v51, %v11856_v51  ;;  %v4589_v19 = vadd.f32 %v11856_v51, %v13349_v10  ;;  %v4653_v12 = vmul.f32 %v11856_v51, %v11856_v51  ;;  %v7739_v38 = vpack.c.bf16 %v11866_v53, %v11866_v53  ;;  %v13350_v26 = vld [vmem:[#allocation29_spill] sm:$0xff] }
 0x30d   :  { %v6573_v0 = vsel %vm305_vm1, %v6358_v52, 0.0  ;;  %v6572_v40 = vadd.f32 %v6571_v1, %v6570_v24  ;;  %v6361_v31 = vadd.f32 %v6297_v32, %v4716_v17  ;;  %v6231_v45 = vadd.f32 %v11866_v53, %v4586_v54  ;;  %v12057_v44 = vpop.f32.mrb[96].mxu0 }
 0x30e   :  { %7260 = vst.msk [vmem:[%s13119_s2 + $0x25c] sm:$0xf] %vm1339_vm2, %v7678_v14  ;;  %v4717_v46 = vadd.f32 %v4653_v12, %v13350_v26  ;;  %7483 = vst.msk [vmem:[%s13119_s2 + $0x350] sm:$0xf] %vm1339_vm2, %v7739_v38  ;;  %v6295_v51 = vmul.f32 %v11866_v53, %v11866_v53  ;;  %v6441_v1 = vadd.f32 %v6440_v30, %v6439_v58  ;;  %v12072_v54 = vpop.f32.mrb[97].mxu0  ;;  %v6446_v17 = vsel %vm305_vm1, %v6233_v23, 0.0 }
 0x30f   :  { %v7676_v52 = vpack.c.bf16 %v11868_v6, %v11868_v6  ;;  %v6442_v24 = vsel %vm305_vm1, %v6231_v45, 0.0  ;;  %v6574_v32 = vadd.f32 %v6573_v0, %v6572_v40  ;;  %v13351_v14 = vld [vmem:[#allocation28_spill] sm:$0xff]  ;;  %v12078_v12 = vpop.f32.mrb[96].mxu1  ;;  %v12080_v38 = vpop.f32.mrb[98].mxu0  ;;  %v4651_v30 = vmul.f32 %v11868_v6, %v11868_v6 }
 0x310   :  { %v4587_v10 = vadd.f32 %v11868_v6, %v13351_v14  ;;  %v6359_v26 = vadd.f32 %v6295_v51, %v4714_v7  ;;  %v6443_v53 = vadd.f32 %v6442_v24, %v6441_v1  ;;  %v7742_v58 = vpack.c.bf16 %v11876_v8, %v11876_v8  ;;  %v12090_v23 = vpop.f32.mrb[97].mxu1  ;;  %v12092_v0 = vpop.f32.mrb[99].mxu0 }
 0x311   :  { %7258 = vst.msk [vmem:[%s13119_s2 + $0x254] sm:$0xf] %vm1339_vm2, %v7676_v52  ;;  %v6234_v40 = vadd.f32 %v11876_v8, %v4589_v19  ;;  %v6298_v7 = vmul.f32 %v11876_v8, %v11876_v8  ;;  %v7740_v45 = vpack.c.bf16 %v11888_v33, %v11888_v33  ;;  %v12100_v1 = vpop.f32.mrb[98].mxu1  ;;  %v13352_v52 = vld [vmem:[#allocation30_spill] sm:$0xff]  ;;  %v6296_v19 = vmul.f32 %v11888_v33, %v11888_v33 }
 0x312   :  { %v6232_v51 = vadd.f32 %v11888_v33, %v4587_v10  ;;  %v6575_v6 = vsel %vm305_vm1, %v6359_v26, 0.0  ;;  %v4715_v24 = vadd.f32 %v4651_v30, %v13352_v52  ;;  %7486 = vst.msk [vmem:[%s13119_s2 + $0x35c] sm:$0xf] %vm1339_vm2, %v7742_v58  ;;  %v7681_v8 = vpack.c.bf16 %v11911_v55, %v11911_v55  ;;  %v12112_v14 = vpop.f32.mrb[99].mxu1  ;;  %v13353_v33 = vld [vmem:[#allocation31_spill] sm:$0xff] }
 0x313   :  { %v6579_v10 = vsel %vm305_vm1, %v6361_v31, 0.0  ;;  %v6576_v48 = vadd.f32 %v6575_v6, %v6574_v32  ;;  %v6362_v4 = vadd.f32 %v6298_v7, %v4717_v46  ;;  %7484 = vst.msk [vmem:[%s13119_s2 + $0x354] sm:$0xf] %vm1339_vm2, %v7740_v45  ;;  %v4592_v52 = vadd.f32 %v11911_v55, %v13353_v33 }
 0x314   :  { %v6444_v26 = vsel %vm305_vm1, %v6232_v51, 0.0  ;;  %v6360_v30 = vadd.f32 %v6296_v19, %v4715_v24  ;;  %7263 = vst.msk [vmem:[%s13119_s2 + $0x268] sm:$0xf] %vm1339_vm2, %v7681_v8  ;;  %v4656_v31 = vmul.f32 %v11911_v55, %v11911_v55  ;;  %v6448_v46 = vsel %vm305_vm1, %v6234_v40, 0.0 }
 0x315   :  { %v6445_v58 = vadd.f32 %v6444_v26, %v6443_v53  ;;  %v7679_v32 = vpack.c.bf16 %v11917_v34, %v11917_v34  ;;  %v4590_v7 = vadd.f32 %v11917_v34, %v11000_v42  ;;  %v4654_v53 = vmul.f32 %v11917_v34, %v11917_v34  ;;  %v12135_v45 = vpop.f32.mrb[100].mxu0  ;;  %v13354_v42 = vld [vmem:[#allocation32_spill] sm:$0xff] }
 0x316   :  { %v6577_v6 = vsel %vm305_vm1, %v6360_v30, 0.0  ;;  %v4720_v24 = vadd.f32 %v4656_v31, %v11006_v49  ;;  %v7745_v55 = vpack.c.bf16 %v11927_v60, %v11927_v60  ;;  %v12141_v40 = vpop.f32.mrb[101].mxu0  ;;  %v6237_v8 = vadd.f32 %v11927_v60, %v4592_v52  ;;  %v13355_v30 = vld [vmem:[#allocation33_spill] sm:$0xff] }
 0x317   :  { %v6447_v51 = vadd.f32 %v6446_v17, %v6445_v58  ;;  %v6578_v19 = vadd.f32 %v6577_v6, %v6576_v48  ;;  %7261 = vst.msk [vmem:[%s13119_s2 + $0x260] sm:$0xf] %vm1339_vm2, %v7679_v32  ;;  %v4718_v34 = vadd.f32 %v4654_v53, %v13354_v42  ;;  %v6301_v17 = vmul.f32 %v11927_v60, %v11927_v60  ;;  %v12151_v26 = vpop.f32.mrb[100].mxu1  ;;  %v12153_v49 = vpop.f32.mrb[102].mxu0 }
 0x318   :  { %7489 = vst.msk [vmem:[%s13119_s2 + $0x368] sm:$0xf] %vm1339_vm2, %v7745_v55  ;;  %v7682_v48 = vpack.c.bf16 %v11929_v59, %v11929_v59  ;;  %v4593_v58 = vadd.f32 %v11929_v59, %v13355_v30  ;;  %v4657_v33 = vmul.f32 %v11929_v59, %v11929_v59  ;;  %v7743_v60 = vpack.c.bf16 %v11943_v11, %v11943_v11  ;;  %v12167_v52 = vpop.f32.mrb[101].mxu1  ;;  %v12169_v31 = vpop.f32.mrb[103].mxu0  ;;  %v13356_v59 = vld [vmem:[#allocation36_spill] sm:$0xff] }
 0x319   :  { %v6581_v32 = vsel %vm305_vm1, %v6362_v4, 0.0  ;;  %v6580_v53 = vadd.f32 %v6579_v10, %v6578_v19  ;;  %v6365_v6 = vadd.f32 %v6301_v17, %v4720_v24  ;;  %v6235_v55 = vadd.f32 %v11943_v11, %v4590_v7  ;;  %v12173_v42 = vpop.f32.mrb[102].mxu1 }
 0x31a   :  { %7264 = vst.msk [vmem:[%s13119_s2 + $0x26c] sm:$0xf] %vm1339_vm2, %v7682_v48  ;;  %v4721_v30 = vadd.f32 %v4657_v33, %v13356_v59  ;;  %7487 = vst.msk [vmem:[%s13119_s2 + $0x360] sm:$0xf] %vm1339_vm2, %v7743_v60  ;;  %v6299_v4 = vmul.f32 %v11943_v11, %v11943_v11  ;;  %v6449_v10 = vadd.f32 %v6448_v46, %v6447_v51  ;;  %v12188_v24 = vpop.f32.mrb[103].mxu1  ;;  %v6454_v19 = vsel %vm305_vm1, %v6237_v8, 0.0 }
 0x31b   :  { %v7680_v7 = vpack.c.bf16 %v11945_v16, %v11945_v16  ;;  %v6450_v17 = vsel %vm305_vm1, %v6235_v55, 0.0  ;;  %v6582_v48 = vadd.f32 %v6581_v32, %v6580_v53  ;;  %v13357_v33 = vld [vmem:[#allocation34_spill] sm:$0xff]  ;;  %v4655_v11 = vmul.f32 %v11945_v16, %v11945_v16  ;;  %v13358_v55 = vld [vmem:[#allocation37_spill] sm:$0xff] }
 0x31c   :  { %v4591_v59 = vadd.f32 %v11945_v16, %v13357_v33  ;;  %v6363_v35 = vadd.f32 %v6299_v4, %v4718_v34  ;;  %v6451_v20 = vadd.f32 %v6450_v17, %v6449_v10  ;;  %v7746_v46 = vpack.c.bf16 %v11949_v50, %v11949_v50 }
 0x31d   :  { %7262 = vst.msk [vmem:[%s13119_s2 + $0x264] sm:$0xf] %vm1339_vm2, %v7680_v7  ;;  %v6238_v51 = vadd.f32 %v11949_v50, %v4593_v58  ;;  %v6302_v8 = vmul.f32 %v11949_v50, %v11949_v50  ;;  %v7744_v34 = vpack.c.bf16 %v11964_v56, %v11964_v56  ;;  %v12208_v32 = vpop.f32.mrb[104].mxu0  ;;  %v4719_v4 = vadd.f32 %v4655_v11, %v13358_v55 }
 0x31e   :  { %v6236_v60 = vadd.f32 %v11964_v56, %v4591_v59  ;;  %v6583_v53 = vsel %vm305_vm1, %v6363_v35, 0.0  ;;  %7490 = vst.msk [vmem:[%s13119_s2 + $0x36c] sm:$0xf] %vm1339_vm2, %v7746_v46  ;;  %v6300_v16 = vmul.f32 %v11964_v56, %v11964_v56  ;;  %v7685_v50 = vpack.c.bf16 %v11984_v62, %v11984_v62  ;;  %v12220_v58 = vpop.f32.mrb[105].mxu0 }
 0x31f   :  { %v6587_v10 = vsel %vm305_vm1, %v6365_v6, 0.0  ;;  %v6584_v7 = vadd.f32 %v6583_v53, %v6582_v48  ;;  %v6366_v17 = vadd.f32 %v6302_v8, %v4721_v30  ;;  %7488 = vst.msk [vmem:[%s13119_s2 + $0x364] sm:$0xf] %vm1339_vm2, %v7744_v34  ;;  %v12228_v33 = vpop.f32.mrb[104].mxu1  ;;  %v12230_v59 = vpop.f32.mrb[106].mxu0  ;;  %v13359_v6 = vld [vmem:[#allocation38_spill] sm:$0xff]  ;;  %v4660_v48 = vmul.f32 %v11984_v62, %v11984_v62 }
 0x320   :  { %v6452_v35 = vsel %vm305_vm1, %v6236_v60, 0.0  ;;  %v6364_v56 = vadd.f32 %v6300_v16, %v4719_v4  ;;  %7267 = vst.msk [vmem:[%s13119_s2 + $0x278] sm:$0xf] %vm1339_vm2, %v7685_v50  ;;  %v4596_v30 = vadd.f32 %v11984_v62, %v13359_v6  ;;  %v12240_v46 = vpop.f32.mrb[105].mxu1  ;;  %v12242_v8 = vpop.f32.mrb[107].mxu0  ;;  %v6456_v34 = vsel %vm305_vm1, %v6238_v51, 0.0 }
 0x321   :  { %v6453_v11 = vadd.f32 %v6452_v35, %v6451_v20  ;;  %v7683_v20 = vpack.c.bf16 %v11996_v61, %v11996_v61  ;;  %v4594_v60 = vadd.f32 %v11996_v61, %v11060_v63  ;;  %v4658_v53 = vmul.f32 %v11996_v61, %v11996_v61  ;;  %v12251_v55 = vpop.f32.mrb[106].mxu1  ;;  %v13360_v63 = vld [vmem:[#allocation39_spill] sm:$0xff] }
 0x322   :  { %v6585_v62 = vsel %vm305_vm1, %v6364_v56, 0.0  ;;  %v4724_v16 = vadd.f32 %v4660_v48, %v11066_v3  ;;  %v7749_v50 = vpack.c.bf16 %v12004_v39, %v12004_v39  ;;  %v12257_v51 = vpop.f32.mrb[107].mxu1  ;;  %v6241_v6 = vadd.f32 %v12004_v39, %v4596_v30 }
 0x323   :  { %v6455_v4 = vadd.f32 %v6454_v19, %v6453_v11  ;;  %v6586_v35 = vadd.f32 %v6585_v62, %v6584_v7  ;;  %7265 = vst.msk [vmem:[%s13119_s2 + $0x270] sm:$0xf] %vm1339_vm2, %v7683_v20  ;;  %v4722_v61 = vadd.f32 %v4658_v53, %v13360_v63  ;;  %v6305_v19 = vmul.f32 %v12004_v39, %v12004_v39  ;;  %v13361_v7 = vld [vmem:[#allocation40_spill] sm:$0xff] }
 0x324   :  { %7493 = vst.msk [vmem:[%s13119_s2 + $0x378] sm:$0xf] %vm1339_vm2, %v7749_v50  ;;  %v7686_v3 = vpack.c.bf16 %v12006_v5, %v12006_v5  ;;  %v4597_v56 = vadd.f32 %v12006_v5, %v13361_v7  ;;  %v4661_v11 = vmul.f32 %v12006_v5, %v12006_v5  ;;  %v7747_v30 = vpack.c.bf16 %v12016_v13, %v12016_v13  ;;  %v13362_v50 = vld [vmem:[#allocation42_spill] sm:$0xff] }
 0x325   :  { %v6589_v48 = vsel %vm305_vm1, %v6366_v17, 0.0  ;;  %v6588_v39 = vadd.f32 %v6587_v10, %v6586_v35  ;;  %v6369_v20 = vadd.f32 %v6305_v19, %v4724_v16  ;;  %v6239_v53 = vadd.f32 %v12016_v13, %v4594_v60  ;;  %v12281_v62 = vpop.f32.mrb[108].mxu0 }
 0x326   :  { %7268 = vst.msk [vmem:[%s13119_s2 + $0x27c] sm:$0xf] %vm1339_vm2, %v7686_v3  ;;  %v4725_v63 = vadd.f32 %v4661_v11, %v13362_v50  ;;  %7491 = vst.msk [vmem:[%s13119_s2 + $0x370] sm:$0xf] %vm1339_vm2, %v7747_v30  ;;  %v6303_v5 = vmul.f32 %v12016_v13, %v12016_v13  ;;  %v6457_v10 = vadd.f32 %v6456_v34, %v6455_v4  ;;  %v12296_v60 = vpop.f32.mrb[109].mxu0  ;;  %v6462_v16 = vsel %vm305_vm1, %v6241_v6, 0.0 }
 0x327   :  { %v7684_v17 = vpack.c.bf16 %v12018_v28, %v12018_v28  ;;  %v6458_v35 = vsel %vm305_vm1, %v6239_v53, 0.0  ;;  %v6590_v19 = vadd.f32 %v6589_v48, %v6588_v39  ;;  %v13363_v3 = vld [vmem:[#allocation41_spill] sm:$0xff]  ;;  %v12302_v11 = vpop.f32.mrb[108].mxu1  ;;  %v12304_v30 = vpop.f32.mrb[110].mxu0  ;;  %v4659_v34 = vmul.f32 %v12018_v28, %v12018_v28 }
 0x328   :  { %v4595_v7 = vadd.f32 %v12018_v28, %v13363_v3  ;;  %v6367_v50 = vadd.f32 %v6303_v5, %v4722_v61  ;;  %v6459_v13 = vadd.f32 %v6458_v35, %v6457_v10  ;;  %v7750_v4 = vpack.c.bf16 %v12027_v27, %v12027_v27  ;;  %v12314_v6 = vpop.f32.mrb[109].mxu1  ;;  %v12316_v48 = vpop.f32.mrb[111].mxu0 }
 0x329   :  { %7266 = vst.msk [vmem:[%s13119_s2 + $0x274] sm:$0xf] %vm1339_vm2, %v7684_v17  ;;  %v6242_v39 = vadd.f32 %v12027_v27, %v4597_v56  ;;  %v6306_v61 = vmul.f32 %v12027_v27, %v12027_v27  ;;  %v7748_v53 = vpack.c.bf16 %v12033_v36, %v12033_v36  ;;  %v12324_v10 = vpop.f32.mrb[110].mxu1  ;;  %v13364_v17 = vld [vmem:[#allocation43_spill] sm:$0xff]  ;;  %v6304_v56 = vmul.f32 %v12033_v36, %v12033_v36 }
 0x32a   :  { %v6240_v5 = vadd.f32 %v12033_v36, %v4595_v7  ;;  %v6591_v28 = vsel %vm305_vm1, %v6367_v50, 0.0  ;;  %v4723_v35 = vadd.f32 %v4659_v34, %v13364_v17  ;;  %7494 = vst.msk [vmem:[%s13119_s2 + $0x37c] sm:$0xf] %vm1339_vm2, %v7750_v4  ;;  %v7689_v27 = vpack.c.bf16 %v12057_v44, %v12057_v44  ;;  %v12336_v3 = vpop.f32.mrb[111].mxu1  ;;  %v13365_v36 = vld [vmem:[#allocation44_spill] sm:$0xff] }
 0x32b   :  { %v6595_v7 = vsel %vm305_vm1, %v6369_v20, 0.0  ;;  %v6592_v41 = vadd.f32 %v6591_v28, %v6590_v19  ;;  %v6370_v15 = vadd.f32 %v6306_v61, %v4725_v63  ;;  %7492 = vst.msk [vmem:[%s13119_s2 + $0x374] sm:$0xf] %vm1339_vm2, %v7748_v53  ;;  %v4600_v17 = vadd.f32 %v12057_v44, %v13365_v36 }
 0x32c   :  { %v6460_v50 = vsel %vm305_vm1, %v6240_v5, 0.0  ;;  %v6368_v34 = vadd.f32 %v6304_v56, %v4723_v35  ;;  %7271 = vst.msk [vmem:[%s13119_s2 + $0x288] sm:$0xf] %vm1339_vm2, %v7689_v27  ;;  %v4664_v20 = vmul.f32 %v12057_v44, %v12057_v44  ;;  %v6464_v63 = vsel %vm305_vm1, %v6242_v39, 0.0 }
 0x32d   :  { %v6461_v4 = vadd.f32 %v6460_v50, %v6459_v13  ;;  %v7687_v19 = vpack.c.bf16 %v12072_v54, %v12072_v54  ;;  %v4598_v61 = vadd.f32 %v12072_v54, %v11120_v21  ;;  %v4662_v13 = vmul.f32 %v12072_v54, %v12072_v54  ;;  %v12359_v53 = vpop.f32.mrb[112].mxu0  ;;  %v13366_v21 = vld [vmem:[#allocation45_spill] sm:$0xff] }
 0x32e   :  { %v6593_v28 = vsel %vm305_vm1, %v6368_v34, 0.0  ;;  %v4728_v35 = vadd.f32 %v4664_v20, %v11126_v57  ;;  %v7753_v44 = vpack.c.bf16 %v12078_v12, %v12078_v12  ;;  %v12365_v39 = vpop.f32.mrb[113].mxu0  ;;  %v6245_v27 = vadd.f32 %v12078_v12, %v4600_v17  ;;  %v13367_v34 = vld [vmem:[#allocation46_spill] sm:$0xff] }
 0x32f   :  { %v6463_v5 = vadd.f32 %v6462_v16, %v6461_v4  ;;  %v6594_v56 = vadd.f32 %v6593_v28, %v6592_v41  ;;  %7269 = vst.msk [vmem:[%s13119_s2 + $0x280] sm:$0xf] %vm1339_vm2, %v7687_v19  ;;  %v4726_v54 = vadd.f32 %v4662_v13, %v13366_v21  ;;  %v6309_v16 = vmul.f32 %v12078_v12, %v12078_v12  ;;  %v12375_v50 = vpop.f32.mrb[112].mxu1  ;;  %v12377_v57 = vpop.f32.mrb[114].mxu0 }
 0x330   :  { %7497 = vst.msk [vmem:[%s13119_s2 + $0x388] sm:$0xf] %vm1339_vm2, %v7753_v44  ;;  %v7690_v41 = vpack.c.bf16 %v12080_v38, %v12080_v38  ;;  %v4601_v4 = vadd.f32 %v12080_v38, %v13367_v34  ;;  %v4665_v36 = vmul.f32 %v12080_v38, %v12080_v38  ;;  %v7751_v12 = vpack.c.bf16 %v12090_v23, %v12090_v23  ;;  %v12391_v17 = vpop.f32.mrb[113].mxu1  ;;  %v12393_v20 = vpop.f32.mrb[115].mxu0  ;;  %v13369_v38 = vld [vmem:[#allocation48_spill] sm:$0xff] }
 0x331   :  { %v6597_v19 = vsel %vm305_vm1, %v6370_v15, 0.0  ;;  %v6596_v13 = vadd.f32 %v6595_v7, %v6594_v56  ;;  %v6373_v28 = vadd.f32 %v6309_v16, %v4728_v35  ;;  %v6243_v44 = vadd.f32 %v12090_v23, %v4598_v61  ;;  %v12397_v21 = vpop.f32.mrb[114].mxu1 }
 0x332   :  { %13368 = vst [vmem:[#allocation35_spill] sm:$0xff] %v12397_v21  ;;  %7272 = vst.msk [vmem:[%s13119_s2 + $0x28c] sm:$0xf] %vm1339_vm2, %v7690_v41  ;;  %v4729_v34 = vadd.f32 %v4665_v36, %v13369_v38  ;;  %v6307_v15 = vmul.f32 %v12090_v23, %v12090_v23  ;;  %v6465_v7 = vadd.f32 %v6464_v63, %v6463_v5  ;;  %v12412_v35 = vpop.f32.mrb[115].mxu1  ;;  %v6470_v56 = vsel %vm305_vm1, %v6245_v27, 0.0  ;;  %v13370_v36 = vld [vmem:[#allocation47_spill] sm:$0xff] }
 0x333   :  { %7495 = vst.msk [vmem:[%s13119_s2 + $0x380] sm:$0xf] %vm1339_vm2, %v7751_v12  ;;  %v7688_v61 = vpack.c.bf16 %v12092_v0, %v12092_v0  ;;  %v6466_v16 = vsel %vm305_vm1, %v6243_v44, 0.0  ;;  %v6598_v41 = vadd.f32 %v6597_v19, %v6596_v13  ;;  %v4599_v38 = vadd.f32 %v12092_v0, %v13370_v36  ;;  %v13371_v44 = vld [vmem:[#allocation49_spill] sm:$0xff] }
 0x334   :  { %v6371_v22 = vadd.f32 %v6307_v15, %v4726_v54  ;;  %v6467_v21 = vadd.f32 %v6466_v16, %v6465_v7  ;;  %v4663_v23 = vmul.f32 %v12092_v0, %v12092_v0  ;;  %v7754_v63 = vpack.c.bf16 %v12100_v1, %v12100_v1 }
 0x335   :  { %7270 = vst.msk [vmem:[%s13119_s2 + $0x284] sm:$0xf] %vm1339_vm2, %v7688_v61  ;;  %v6246_v5 = vadd.f32 %v12100_v1, %v4601_v4  ;;  %v6310_v27 = vmul.f32 %v12100_v1, %v12100_v1  ;;  %v7752_v54 = vpack.c.bf16 %v12112_v14, %v12112_v14  ;;  %v6244_v12 = vadd.f32 %v12112_v14, %v4599_v38  ;;  %v12432_v19 = vpop.f32.mrb[116].mxu0 }
 0x336   :  { %v6599_v13 = vsel %vm305_vm1, %v6371_v22, 0.0  ;;  %v4727_v15 = vadd.f32 %v4663_v23, %v13371_v44  ;;  %7498 = vst.msk [vmem:[%s13119_s2 + $0x38c] sm:$0xf] %vm1339_vm2, %v7754_v63  ;;  %v6308_v0 = vmul.f32 %v12112_v14, %v12112_v14  ;;  %v7693_v1 = vpack.c.bf16 %v12135_v45, %v12135_v45  ;;  %v12444_v4 = vpop.f32.mrb[117].mxu0 }
 0x337   :  { %v6603_v7 = vsel %vm305_vm1, %v6373_v28, 0.0  ;;  %v6600_v61 = vadd.f32 %v6599_v13, %v6598_v41  ;;  %v6374_v16 = vadd.f32 %v6310_v27, %v4729_v34  ;;  %7496 = vst.msk [vmem:[%s13119_s2 + $0x384] sm:$0xf] %vm1339_vm2, %v7752_v54  ;;  %v6468_v22 = vsel %vm305_vm1, %v6244_v12, 0.0  ;;  %v12452_v36 = vpop.f32.mrb[116].mxu1  ;;  %v12454_v38 = vpop.f32.mrb[118].mxu0 }
 0x338   :  { %v6372_v14 = vadd.f32 %v6308_v0, %v4727_v15  ;;  %v6469_v23 = vadd.f32 %v6468_v22, %v6467_v21  ;;  %7275 = vst.msk [vmem:[%s13119_s2 + $0x298] sm:$0xf] %vm1339_vm2, %v7693_v1  ;;  %v13372_v28 = vld [vmem:[#allocation50_spill] sm:$0xff]  ;;  %v4668_v41 = vmul.f32 %v12135_v45, %v12135_v45  ;;  %v12464_v63 = vpop.f32.mrb[117].mxu1  ;;  %v12466_v27 = vpop.f32.mrb[119].mxu0  ;;  %v6472_v54 = vsel %vm305_vm1, %v6246_v5, 0.0 }
 0x339   :  { %v4604_v34 = vadd.f32 %v12135_v45, %v13372_v28  ;;  %v7691_v21 = vpack.c.bf16 %v12141_v40, %v12141_v40  ;;  %v4602_v12 = vadd.f32 %v12141_v40, %v11180_v9  ;;  %v4666_v13 = vmul.f32 %v12141_v40, %v12141_v40  ;;  %v12475_v44 = vpop.f32.mrb[118].mxu1  ;;  %v13373_v9 = vld [vmem:[#allocation51_spill] sm:$0xff] }
 0x33a   :  { %v6471_v15 = vadd.f32 %v6470_v56, %v6469_v23  ;;  %v6601_v45 = vsel %vm305_vm1, %v6372_v14, 0.0  ;;  %v4732_v0 = vadd.f32 %v4668_v41, %v11186_v29  ;;  %v7757_v1 = vpack.c.bf16 %v12151_v26, %v12151_v26  ;;  %v12481_v5 = vpop.f32.mrb[119].mxu1 }
 0x33b   :  { %v6602_v22 = vadd.f32 %v6601_v45, %v6600_v61  ;;  %7273 = vst.msk [vmem:[%s13119_s2 + $0x290] sm:$0xf] %vm1339_vm2, %v7691_v21  ;;  %v4730_v40 = vadd.f32 %v4666_v13, %v13373_v9  ;;  %v6249_v28 = vadd.f32 %v12151_v26, %v4604_v34  ;;  %v6313_v56 = vmul.f32 %v12151_v26, %v12151_v26  ;;  %v13374_v61 = vld [vmem:[#allocation52_spill] sm:$0xff] }
 0x33c   :  { %7501 = vst.msk [vmem:[%s13119_s2 + $0x398] sm:$0xf] %vm1339_vm2, %v7757_v1  ;;  %v7694_v29 = vpack.c.bf16 %v12153_v49, %v12153_v49  ;;  %v4605_v14 = vadd.f32 %v12153_v49, %v13374_v61  ;;  %v4669_v23 = vmul.f32 %v12153_v49, %v12153_v49  ;;  %v7755_v34 = vpack.c.bf16 %v12167_v52, %v12167_v52  ;;  %v13375_v1 = vld [vmem:[#allocation54_spill] sm:$0xff] }
 0x33d   :  { %v6605_v41 = vsel %vm305_vm1, %v6374_v16, 0.0  ;;  %v6604_v26 = vadd.f32 %v6603_v7, %v6602_v22  ;;  %v6377_v21 = vadd.f32 %v6313_v56, %v4732_v0  ;;  %v6247_v13 = vadd.f32 %v12167_v52, %v4602_v12  ;;  %v12505_v45 = vpop.f32.mrb[120].mxu0 }
 0x33e   :  { %7276 = vst.msk [vmem:[%s13119_s2 + $0x29c] sm:$0xf] %vm1339_vm2, %v7694_v29  ;;  %v4733_v9 = vadd.f32 %v4669_v23, %v13375_v1  ;;  %7499 = vst.msk [vmem:[%s13119_s2 + $0x390] sm:$0xf] %vm1339_vm2, %v7755_v34  ;;  %v6311_v49 = vmul.f32 %v12167_v52, %v12167_v52  ;;  %v6473_v7 = vadd.f32 %v6472_v54, %v6471_v15  ;;  %v12520_v12 = vpop.f32.mrb[121].mxu0  ;;  %v6478_v0 = vsel %vm305_vm1, %v6249_v28, 0.0 }
 0x33f   :  { %v7692_v16 = vpack.c.bf16 %v12169_v31, %v12169_v31  ;;  %v6474_v22 = vsel %vm305_vm1, %v6247_v13, 0.0  ;;  %v6606_v56 = vadd.f32 %v6605_v41, %v6604_v26  ;;  %v13376_v29 = vld [vmem:[#allocation53_spill] sm:$0xff]  ;;  %v12526_v23 = vpop.f32.mrb[120].mxu1  ;;  %v12528_v34 = vpop.f32.mrb[122].mxu0  ;;  %v4667_v54 = vmul.f32 %v12169_v31, %v12169_v31 }
 0x340   :  { %v4603_v61 = vadd.f32 %v12169_v31, %v13376_v29  ;;  %v6375_v1 = vadd.f32 %v6311_v49, %v4730_v40  ;;  %v6475_v52 = vadd.f32 %v6474_v22, %v6473_v7  ;;  %v7758_v15 = vpack.c.bf16 %v12173_v42, %v12173_v42  ;;  %v12538_v28 = vpop.f32.mrb[121].mxu1  ;;  %v12540_v41 = vpop.f32.mrb[123].mxu0 }
 0x341   :  { %7274 = vst.msk [vmem:[%s13119_s2 + $0x294] sm:$0xf] %vm1339_vm2, %v7692_v16  ;;  %13377 = vst [vmem:[#allocation2_spill] sm:$0xff] %v12540_v41  ;;  %v6250_v26 = vadd.f32 %v12173_v42, %v4605_v14  ;;  %v6314_v40 = vmul.f32 %v12173_v42, %v12173_v42  ;;  %v7756_v13 = vpack.c.bf16 %v12188_v24, %v12188_v24  ;;  %v12548_v7 = vpop.f32.mrb[122].mxu1  ;;  %v13379_v16 = vld [vmem:[#allocation55_spill] sm:$0xff] }
 0x342   :  { %v6248_v49 = vadd.f32 %v12188_v24, %v4603_v61  ;;  %13378 = vst [vmem:[#allocation3_spill] sm:$0xff] %v12548_v7  ;;  %v6607_v31 = vsel %vm305_vm1, %v6375_v1, 0.0  ;;  %v4731_v22 = vadd.f32 %v4667_v54, %v13379_v16  ;;  %7502 = vst.msk [vmem:[%s13119_s2 + $0x39c] sm:$0xf] %vm1339_vm2, %v7758_v15  ;;  %v6312_v14 = vmul.f32 %v12188_v24, %v12188_v24  ;;  %v12560_v29 = vpop.f32.mrb[123].mxu1  ;;  %v13380_v24 = vld [vmem:[#allocation56_spill] sm:$0xff] }
 0x343   :  { %v7697_v42 = vpack.c.bf16 %v12208_v32, %v12208_v32  ;;  %v6611_v61 = vsel %vm305_vm1, %v6377_v21, 0.0  ;;  %v6608_v7 = vadd.f32 %v6607_v31, %v6606_v56  ;;  %v6378_v41 = vadd.f32 %v6314_v40, %v4733_v9  ;;  %7500 = vst.msk [vmem:[%s13119_s2 + $0x394] sm:$0xf] %vm1339_vm2, %v7756_v13 }
 0x344   :  { %v6476_v1 = vsel %vm305_vm1, %v6248_v49, 0.0  ;;  %v6376_v54 = vadd.f32 %v6312_v14, %v4731_v22  ;;  %v4608_v16 = vadd.f32 %v12208_v32, %v13380_v24  ;;  %v4672_v21 = vmul.f32 %v12208_v32, %v12208_v32 }
 0x345   :  { %v6477_v15 = vadd.f32 %v6476_v1, %v6475_v52  ;;  %7279 = vst.msk [vmem:[%s13119_s2 + $0x2a8] sm:$0xf] %vm1339_vm2, %v7697_v42  ;;  %v6480_v9 = vsel %vm305_vm1, %v6250_v26, 0.0  ;;  %v7695_v56 = vpack.c.bf16 %v12220_v58, %v12220_v58  ;;  %v4606_v40 = vadd.f32 %v12220_v58, %v11240_v18  ;;  %v12583_v13 = vpop.f32.mrb[124].mxu0  ;;  %v13381_v18 = vld [vmem:[#allocation57_spill] sm:$0xff] }
 0x346   :  { %v4670_v52 = vmul.f32 %v12220_v58, %v12220_v58  ;;  %v6609_v31 = vsel %vm305_vm1, %v6376_v54, 0.0  ;;  %v4736_v22 = vadd.f32 %v4672_v21, %v11246_v37  ;;  %v7761_v32 = vpack.c.bf16 %v12228_v33, %v12228_v33  ;;  %v12589_v26 = vpop.f32.mrb[125].mxu0  ;;  %v13382_v54 = vld [vmem:[#allocation58_spill] sm:$0xff] }
 0x347   :  { %v6479_v49 = vadd.f32 %v6478_v0, %v6477_v15  ;;  %v6610_v14 = vadd.f32 %v6609_v31, %v6608_v7  ;;  %7277 = vst.msk [vmem:[%s13119_s2 + $0x2a0] sm:$0xf] %vm1339_vm2, %v7695_v56  ;;  %v6253_v42 = vadd.f32 %v12228_v33, %v4608_v16  ;;  %v6317_v0 = vmul.f32 %v12228_v33, %v12228_v33  ;;  %v12599_v1 = vpop.f32.mrb[124].mxu1  ;;  %v12601_v37 = vpop.f32.mrb[126].mxu0 }
 0x348   :  { %v4734_v58 = vadd.f32 %v4670_v52, %v13381_v18  ;;  %7505 = vst.msk [vmem:[%s13119_s2 + $0x3a8] sm:$0xf] %vm1339_vm2, %v7761_v32  ;;  %v7698_v7 = vpack.c.bf16 %v12230_v59, %v12230_v59  ;;  %v4609_v15 = vadd.f32 %v12230_v59, %v13382_v54  ;;  %v4673_v24 = vmul.f32 %v12230_v59, %v12230_v59  ;;  %v12615_v16 = vpop.f32.mrb[125].mxu1  ;;  %v12617_v21 = vpop.f32.mrb[127].mxu0  ;;  %v13385_v59 = vld [vmem:[#allocation60_spill] sm:$0xff] }
 0x349   :  { %v7759_v33 = vpack.c.bf16 %v12240_v46, %v12240_v46  ;;  %13383 = vst [vmem:[#allocation4_spill] sm:$0xff] %v12617_v21  ;;  %v6613_v56 = vsel %vm305_vm1, %v6378_v41, 0.0  ;;  %v6612_v52 = vadd.f32 %v6611_v61, %v6610_v14  ;;  %v6381_v31 = vadd.f32 %v6317_v0, %v4736_v22  ;;  %v12621_v18 = vpop.f32.mrb[126].mxu1 }
 0x34a   :  { %v6251_v32 = vadd.f32 %v12240_v46, %v4606_v40  ;;  %13384 = vst [vmem:[#allocation5_spill] sm:$0xff] %v12621_v18  ;;  %7280 = vst.msk [vmem:[%s13119_s2 + $0x2ac] sm:$0xf] %vm1339_vm2, %v7698_v7  ;;  %v4737_v54 = vadd.f32 %v4673_v24, %v13385_v59  ;;  %v6315_v41 = vmul.f32 %v12240_v46, %v12240_v46  ;;  %v12636_v22 = vpop.f32.mrb[127].mxu1  ;;  %v6486_v14 = vsel %vm305_vm1, %v6253_v42, 0.0  ;;  %v13386_v24 = vld [vmem:[#allocation59_spill] sm:$0xff] }
 0x34b   :  { %7503 = vst.msk [vmem:[%s13119_s2 + $0x3a0] sm:$0xf] %vm1339_vm2, %v7759_v33  ;;  %v6481_v61 = vadd.f32 %v6480_v9, %v6479_v49  ;;  %v7696_v40 = vpack.c.bf16 %v12242_v8, %v12242_v8  ;;  %v6614_v7 = vadd.f32 %v6613_v56, %v6612_v52  ;;  %v4607_v59 = vadd.f32 %v12242_v8, %v13386_v24  ;;  %v13387_v52 = vld [vmem:[#allocation61_spill] sm:$0xff] }
 0x34c   :  { %v6482_v0 = vsel %vm305_vm1, %v6251_v32, 0.0  ;;  %v6379_v18 = vadd.f32 %v6315_v41, %v4734_v58  ;;  %v4671_v46 = vmul.f32 %v12242_v8, %v12242_v8  ;;  %v7762_v9 = vpack.c.bf16 %v12251_v55, %v12251_v55 }
 0x34d   :  { %v6483_v21 = vadd.f32 %v6482_v0, %v6481_v61  ;;  %7278 = vst.msk [vmem:[%s13119_s2 + $0x2a4] sm:$0xf] %vm1339_vm2, %v7696_v40  ;;  %v6254_v49 = vadd.f32 %v12251_v55, %v4609_v15  ;;  %v6318_v42 = vmul.f32 %v12251_v55, %v12251_v55  ;;  %v7760_v58 = vpack.c.bf16 %v12257_v51, %v12257_v51 }
 0x34e   :  { %v6252_v33 = vadd.f32 %v12257_v51, %v4607_v59  ;;  %v6615_v56 = vsel %vm305_vm1, %v6379_v18, 0.0  ;;  %v4735_v32 = vadd.f32 %v4671_v46, %v13387_v52  ;;  %7506 = vst.msk [vmem:[%s13119_s2 + $0x3ac] sm:$0xf] %vm1339_vm2, %v7762_v9  ;;  %v6316_v8 = vmul.f32 %v12257_v51, %v12257_v51  ;;  %v13388_v51 = vld [vmem:[#allocation62_spill] sm:$0xff] }
 0x34f   :  { %v7701_v55 = vpack.c.bf16 %v12281_v62, %v12281_v62  ;;  %v6619_v15 = vsel %vm305_vm1, %v6381_v31, 0.0  ;;  %v6616_v41 = vadd.f32 %v6615_v56, %v6614_v7  ;;  %v6382_v61 = vadd.f32 %v6318_v42, %v4737_v54  ;;  %7504 = vst.msk [vmem:[%s13119_s2 + $0x3a4] sm:$0xf] %vm1339_vm2, %v7760_v58 }
 0x350   :  { %v6484_v18 = vsel %vm305_vm1, %v6252_v33, 0.0  ;;  %v6380_v40 = vadd.f32 %v6316_v8, %v4735_v32  ;;  %v4612_v24 = vadd.f32 %v12281_v62, %v13388_v51  ;;  %v4676_v31 = vmul.f32 %v12281_v62, %v12281_v62 }
 0x351   :  { %v6485_v0 = vadd.f32 %v6484_v18, %v6483_v21  ;;  %7283 = vst.msk [vmem:[%s13119_s2 + $0x2b8] sm:$0xf] %vm1339_vm2, %v7701_v55  ;;  %v6488_v54 = vsel %vm305_vm1, %v6254_v49, 0.0  ;;  %v7699_v7 = vpack.c.bf16 %v12296_v60, %v12296_v60  ;;  %v4610_v59 = vadd.f32 %v12296_v60, %v11300_v43  ;;  %v13389_v49 = vld [vmem:[#allocation63_spill] sm:$0xff]  ;;  %v13391_v18 = vld [vmem:[#allocation66_spill] sm:$0xff] }
 0x352   :  { %v4674_v21 = vmul.f32 %v12296_v60, %v12296_v60  ;;  %v6617_v9 = vsel %vm305_vm1, %v6380_v40, 0.0  ;;  %v4740_v42 = vadd.f32 %v4676_v31, %v11306_v2  ;;  %v7765_v58 = vpack.c.bf16 %v12302_v11, %v12302_v11  ;;  %v13392_v31 = vld [vmem:[#allocation65_spill] sm:$0xff] }
 0x353   :  { %v6487_v46 = vadd.f32 %v6486_v14, %v6485_v0  ;;  %v6618_v62 = vadd.f32 %v6617_v9, %v6616_v41  ;;  %7281 = vst.msk [vmem:[%s13119_s2 + $0x2b0] sm:$0xf] %vm1339_vm2, %v7699_v7  ;;  %v6257_v43 = vadd.f32 %v12302_v11, %v4612_v24  ;;  %v6321_v60 = vmul.f32 %v12302_v11, %v12302_v11  ;;  %v13390_v14 = vld [vmem:[#allocation64_spill] sm:$0xff] }
 0x354   :  { %v4738_v33 = vadd.f32 %v4674_v21, %v13389_v49  ;;  %7509 = vst.msk [vmem:[%s13119_s2 + $0x3b8] sm:$0xf] %vm1339_vm2, %v7765_v58  ;;  %v7702_v2 = vpack.c.bf16 %v12304_v30, %v12304_v30  ;;  %v4613_v56 = vadd.f32 %v12304_v30, %v13390_v14  ;;  %v4677_v52 = vmul.f32 %v12304_v30, %v12304_v30  ;;  %v13393_v49 = vld [vmem:[#allocation67_spill] sm:$0xff] }
 0x355   :  { %v7763_v32 = vpack.c.bf16 %v12314_v6, %v12314_v6  ;;  %v6621_v8 = vsel %vm305_vm1, %v6382_v61, 0.0  ;;  %v6620_v11 = vadd.f32 %v6619_v15, %v6618_v62  ;;  %v6385_v55 = vadd.f32 %v6321_v60, %v4740_v42 }
 0x356   :  { %v6255_v41 = vadd.f32 %v12314_v6, %v4610_v59  ;;  %7284 = vst.msk [vmem:[%s13119_s2 + $0x2bc] sm:$0xf] %vm1339_vm2, %v7702_v2  ;;  %v4741_v40 = vadd.f32 %v4677_v52, %v13391_v18  ;;  %v6319_v30 = vmul.f32 %v12314_v6, %v12314_v6  ;;  %v6489_v61 = vadd.f32 %v6488_v54, %v6487_v46 }
 0x357   :  { %7507 = vst.msk [vmem:[%s13119_s2 + $0x3b0] sm:$0xf] %vm1339_vm2, %v7763_v32  ;;  %v7700_v15 = vpack.c.bf16 %v12316_v48, %v12316_v48  ;;  %v6494_v0 = vsel %vm305_vm1, %v6257_v43, 0.0  ;;  %v6622_v24 = vadd.f32 %v6621_v8, %v6620_v11  ;;  %v4611_v7 = vadd.f32 %v12316_v48, %v13392_v31 }
 0x358   :  { %v6490_v51 = vsel %vm305_vm1, %v6255_v41, 0.0  ;;  %v6383_v59 = vadd.f32 %v6319_v30, %v4738_v33  ;;  %v4675_v6 = vmul.f32 %v12316_v48, %v12316_v48  ;;  %v7766_v54 = vpack.c.bf16 %v12324_v10, %v12324_v10 }
 0x359   :  { %v6491_v21 = vadd.f32 %v6490_v51, %v6489_v61  ;;  %7282 = vst.msk [vmem:[%s13119_s2 + $0x2b4] sm:$0xf] %vm1339_vm2, %v7700_v15  ;;  %v6258_v46 = vadd.f32 %v12324_v10, %v4613_v56  ;;  %v6322_v9 = vmul.f32 %v12324_v10, %v12324_v10  ;;  %v7764_v42 = vpack.c.bf16 %v12336_v3, %v12336_v3  ;;  %v13395_v51 = vld [vmem:[#allocation69_spill] sm:$0xff] }
 0x35a   :  { %v6256_v58 = vadd.f32 %v12336_v3, %v4611_v7  ;;  %v6623_v62 = vsel %vm305_vm1, %v6383_v59, 0.0  ;;  %v4739_v33 = vadd.f32 %v4675_v6, %v13393_v49  ;;  %7510 = vst.msk [vmem:[%s13119_s2 + $0x3bc] sm:$0xf] %vm1339_vm2, %v7766_v54  ;;  %v6320_v48 = vmul.f32 %v12336_v3, %v12336_v3  ;;  %v13394_v3 = vld [vmem:[#allocation68_spill] sm:$0xff] }
 0x35b   :  { %v7705_v10 = vpack.c.bf16 %v12359_v53, %v12359_v53  ;;  %v6627_v43 = vsel %vm305_vm1, %v6385_v55, 0.0  ;;  %v6624_v60 = vadd.f32 %v6623_v62, %v6622_v24  ;;  %v6386_v2 = vadd.f32 %v6322_v9, %v4741_v40  ;;  %7508 = vst.msk [vmem:[%s13119_s2 + $0x3b4] sm:$0xf] %vm1339_vm2, %v7764_v42 }
 0x35c   :  { %v6492_v14 = vsel %vm305_vm1, %v6256_v58, 0.0  ;;  %v6384_v56 = vadd.f32 %v6320_v48, %v4739_v33  ;;  %v4616_v32 = vadd.f32 %v12359_v53, %v13394_v3  ;;  %v4680_v8 = vmul.f32 %v12359_v53, %v12359_v53  ;;  %v13398_v48 = vld [vmem:[#allocation71_spill] sm:$0xff] }
 0x35d   :  { %v6493_v52 = vadd.f32 %v6492_v14, %v6491_v21  ;;  %7287 = vst.msk [vmem:[%s13119_s2 + $0x2c8] sm:$0xf] %vm1339_vm2, %v7705_v10  ;;  %v6496_v11 = vsel %vm305_vm1, %v6258_v46, 0.0  ;;  %v7703_v55 = vpack.c.bf16 %v12365_v39, %v12365_v39  ;;  %v4614_v41 = vadd.f32 %v12365_v39, %v11360_v47  ;;  %v13397_v46 = vld [vmem:[#allocation72_spill] sm:$0xff] }
 0x35e   :  { %v4678_v18 = vmul.f32 %v12365_v39, %v12365_v39  ;;  %v6625_v30 = vsel %vm305_vm1, %v6384_v56, 0.0  ;;  %v4744_v61 = vadd.f32 %v4680_v8, %v11366_v25  ;;  %v7769_v15 = vpack.c.bf16 %v12375_v50, %v12375_v50 }
 0x35f   :  { %v6495_v40 = vadd.f32 %v6494_v0, %v6493_v52  ;;  %v6626_v53 = vadd.f32 %v6625_v30, %v6624_v60  ;;  %7285 = vst.msk [vmem:[%s13119_s2 + $0x2c0] sm:$0xf] %vm1339_vm2, %v7703_v55  ;;  %v6261_v47 = vadd.f32 %v12375_v50, %v4616_v32  ;;  %v6325_v39 = vmul.f32 %v12375_v50, %v12375_v50  ;;  %v13396_v0 = vld [vmem:[#allocation70_spill] sm:$0xff] }
 0x360   :  { %v4742_v24 = vadd.f32 %v4678_v18, %v13395_v51  ;;  %7513 = vst.msk [vmem:[%s13119_s2 + $0x3c8] sm:$0xf] %vm1339_vm2, %v7769_v15  ;;  %v7706_v25 = vpack.c.bf16 %v12377_v57, %v12377_v57  ;;  %v4617_v31 = vadd.f32 %v12377_v57, %v13396_v0  ;;  %v4681_v7 = vmul.f32 %v12377_v57, %v12377_v57 }
 0x361   :  { %v7767_v59 = vpack.c.bf16 %v12391_v17, %v12391_v17  ;;  %v6629_v21 = vsel %vm305_vm1, %v6386_v2, 0.0  ;;  %v6628_v50 = vadd.f32 %v6627_v43, %v6626_v53  ;;  %v6389_v6 = vadd.f32 %v6325_v39, %v4744_v61  ;;  %v13399_v2 = vld [vmem:[#allocation35_spill] sm:$0xff] }
 0x362   :  { %v6259_v54 = vadd.f32 %v12391_v17, %v4614_v41  ;;  %7288 = vst.msk [vmem:[%s13119_s2 + $0x2cc] sm:$0xf] %vm1339_vm2, %v7706_v25  ;;  %v4745_v9 = vadd.f32 %v4681_v7, %v13397_v46  ;;  %v6323_v57 = vmul.f32 %v12391_v17, %v12391_v17  ;;  %v6497_v42 = vadd.f32 %v6496_v11, %v6495_v40  ;;  %v13400_v11 = vld [vmem:[#allocation73_spill] sm:$0xff]  ;;  %v13402_v25 = vld [vmem:[#allocation75_spill] sm:$0xff] }
 0x363   :  { %7511 = vst.msk [vmem:[%s13119_s2 + $0x3c0] sm:$0xf] %vm1339_vm2, %v7767_v59  ;;  %v7704_v58 = vpack.c.bf16 %v12393_v20, %v12393_v20  ;;  %v6502_v62 = vsel %vm305_vm1, %v6261_v47, 0.0  ;;  %v6630_v33 = vadd.f32 %v6629_v21, %v6628_v50  ;;  %v4615_v10 = vadd.f32 %v12393_v20, %v13398_v48  ;;  %v13403_v21 = vld [vmem:[#allocation76_spill] sm:$0xff] }
 0x364   :  { %v6498_v49 = vsel %vm305_vm1, %v6259_v54, 0.0  ;;  %v6387_v43 = vadd.f32 %v6323_v57, %v4742_v24  ;;  %v4679_v17 = vmul.f32 %v12393_v20, %v12393_v20  ;;  %v7770_v14 = vpack.c.bf16 %v13399_v2, %v13399_v2  ;;  %v13404_v54 = vld [vmem:[#allocation77_spill] sm:$0xff] }
 0x365   :  { %v6499_v60 = vadd.f32 %v6498_v49, %v6497_v42  ;;  %7286 = vst.msk [vmem:[%s13119_s2 + $0x2c4] sm:$0xf] %vm1339_vm2, %v7704_v58  ;;  %v6262_v56 = vadd.f32 %v13399_v2, %v4617_v31  ;;  %v6326_v52 = vmul.f32 %v13399_v2, %v13399_v2  ;;  %v7768_v3 = vpack.c.bf16 %v12412_v35, %v12412_v35  ;;  %v13405_v42 = vld [vmem:[#allocation78_spill] sm:$0xff] }
 0x366   :  { %v6260_v32 = vadd.f32 %v12412_v35, %v4615_v10  ;;  %v6631_v8 = vsel %vm305_vm1, %v6387_v43, 0.0  ;;  %v4743_v55 = vadd.f32 %v4679_v17, %v13400_v11  ;;  %7514 = vst.msk [vmem:[%s13119_s2 + $0x3cc] sm:$0xf] %vm1339_vm2, %v7770_v14  ;;  %v6324_v20 = vmul.f32 %v12412_v35, %v12412_v35  ;;  %v13401_v35 = vld [vmem:[#allocation74_spill] sm:$0xff]  ;;  %v13406_v43 = vld [vmem:[#allocation80_spill] sm:$0xff] }
 0x367   :  { %v7709_v41 = vpack.c.bf16 %v12432_v19, %v12432_v19  ;;  %v6635_v18 = vsel %vm305_vm1, %v6389_v6, 0.0  ;;  %v6632_v40 = vadd.f32 %v6631_v8, %v6630_v33  ;;  %v6390_v30 = vadd.f32 %v6326_v52, %v4745_v9  ;;  %7512 = vst.msk [vmem:[%s13119_s2 + $0x3c4] sm:$0xf] %vm1339_vm2, %v7768_v3  ;;  %v13407_v3 = vld [vmem:[#allocation79_spill] sm:$0xff] }
 0x368   :  { %v6500_v61 = vsel %vm305_vm1, %v6260_v32, 0.0  ;;  %v6388_v15 = vadd.f32 %v6324_v20, %v4743_v55  ;;  %v4620_v51 = vadd.f32 %v12432_v19, %v13401_v35  ;;  %v4684_v24 = vmul.f32 %v12432_v19, %v12432_v19 }
 0x369   :  { %v6501_v53 = vadd.f32 %v6500_v61, %v6499_v60  ;;  %7291 = vst.msk [vmem:[%s13119_s2 + $0x2d8] sm:$0xf] %vm1339_vm2, %v7709_v41  ;;  %v6504_v47 = vsel %vm305_vm1, %v6262_v56, 0.0  ;;  %v7707_v39 = vpack.c.bf16 %v12444_v4, %v12444_v4  ;;  %v4618_v0 = vadd.f32 %v12444_v4, %v13402_v25  ;;  %v13408_v61 = vld [vmem:[#allocation81_spill] sm:$0xff] }
 0x36a   :  { %v4682_v31 = vmul.f32 %v12444_v4, %v12444_v4  ;;  %v6633_v59 = vsel %vm305_vm1, %v6388_v15, 0.0  ;;  %v4748_v50 = vadd.f32 %v4684_v24, %v13403_v21  ;;  %v7773_v6 = vpack.c.bf16 %v12452_v36, %v12452_v36 }
 0x36b   :  { %v6503_v7 = vadd.f32 %v6502_v62, %v6501_v53  ;;  %v6634_v19 = vadd.f32 %v6633_v59, %v6632_v40  ;;  %7289 = vst.msk [vmem:[%s13119_s2 + $0x2d0] sm:$0xf] %vm1339_vm2, %v7707_v39  ;;  %v6265_v9 = vadd.f32 %v12452_v36, %v4620_v51  ;;  %v6329_v4 = vmul.f32 %v12452_v36, %v12452_v36  ;;  %v13410_v59 = vld [vmem:[#allocation83_spill] sm:$0xff] }
 0x36c   :  { %v4746_v46 = vadd.f32 %v4682_v31, %v13404_v54  ;;  %7517 = vst.msk [vmem:[%s13119_s2 + $0x3d8] sm:$0xf] %vm1339_vm2, %v7773_v6  ;;  %v7710_v57 = vpack.c.bf16 %v12454_v38, %v12454_v38  ;;  %v4621_v58 = vadd.f32 %v12454_v38, %v13405_v42  ;;  %v4685_v62 = vmul.f32 %v12454_v38, %v12454_v38  ;;  %v13411_v54 = vld [vmem:[#allocation84_spill] sm:$0xff] }
 0x36d   :  { %v7771_v49 = vpack.c.bf16 %v12464_v63, %v12464_v63  ;;  %v6637_v33 = vsel %vm305_vm1, %v6390_v30, 0.0  ;;  %v6636_v36 = vadd.f32 %v6635_v18, %v6634_v19  ;;  %v6393_v48 = vadd.f32 %v6329_v4, %v4748_v50  ;;  %v13412_v4 = vld [vmem:[#allocation85_spill] sm:$0xff] }
 0x36e   :  { %v6263_v10 = vadd.f32 %v12464_v63, %v4618_v0  ;;  %7292 = vst.msk [vmem:[%s13119_s2 + $0x2dc] sm:$0xf] %vm1339_vm2, %v7710_v57  ;;  %v4749_v60 = vadd.f32 %v4685_v62, %v13406_v43  ;;  %v6327_v38 = vmul.f32 %v12464_v63, %v12464_v63  ;;  %v6505_v17 = vadd.f32 %v6504_v47, %v6503_v7  ;;  %v13413_v62 = vld [vmem:[#allocation86_spill] sm:$0xff] }
 0x36f   :  { %7515 = vst.msk [vmem:[%s13119_s2 + $0x3d0] sm:$0xf] %vm1339_vm2, %v7771_v49  ;;  %v7708_v2 = vpack.c.bf16 %v12466_v27, %v12466_v27  ;;  %v6510_v14 = vsel %vm305_vm1, %v6265_v9, 0.0  ;;  %v6638_v52 = vadd.f32 %v6637_v33, %v6636_v36  ;;  %v4619_v32 = vadd.f32 %v12466_v27, %v13407_v3 }
 0x370   :  { %v6506_v56 = vsel %vm305_vm1, %v6263_v10, 0.0  ;;  %v6391_v8 = vadd.f32 %v6327_v38, %v4746_v46  ;;  %v4683_v63 = vmul.f32 %v12466_v27, %v12466_v27  ;;  %v7774_v55 = vpack.c.bf16 %v12475_v44, %v12475_v44 }
 0x371   :  { %v6507_v11 = vadd.f32 %v6506_v56, %v6505_v17  ;;  %7290 = vst.msk [vmem:[%s13119_s2 + $0x2d4] sm:$0xf] %vm1339_vm2, %v7708_v2  ;;  %v6266_v20 = vadd.f32 %v12475_v44, %v4621_v58  ;;  %v6330_v41 = vmul.f32 %v12475_v44, %v12475_v44  ;;  %v7772_v18 = vpack.c.bf16 %v12481_v5, %v12481_v5  ;;  %v13415_v2 = vld [vmem:[#allocation2_spill] sm:$0xff] }
 0x372   :  { %v6264_v40 = vadd.f32 %v12481_v5, %v4619_v32  ;;  %v6639_v30 = vsel %vm305_vm1, %v6391_v8, 0.0  ;;  %v4747_v15 = vadd.f32 %v4683_v63, %v13408_v61  ;;  %7518 = vst.msk [vmem:[%s13119_s2 + $0x3dc] sm:$0xf] %vm1339_vm2, %v7774_v55  ;;  %v6328_v27 = vmul.f32 %v12481_v5, %v12481_v5  ;;  %v13409_v5 = vld [vmem:[#allocation82_spill] sm:$0xff]  ;;  %v13416_v32 = vld [vmem:[#allocation87_spill] sm:$0xff] }
 0x373   :  { %v7713_v44 = vpack.c.bf16 %v12505_v45, %v12505_v45  ;;  %v6643_v53 = vsel %vm305_vm1, %v6393_v48, 0.0  ;;  %v6640_v35 = vadd.f32 %v6639_v30, %v6638_v52  ;;  %v6394_v51 = vadd.f32 %v6330_v41, %v4749_v60  ;;  %7516 = vst.msk [vmem:[%s13119_s2 + $0x3d4] sm:$0xf] %vm1339_vm2, %v7772_v18  ;;  %v13414_v60 = vld [vmem:[#allocation88_spill] sm:$0xff]  ;;  %v13417_v55 = vld [vmem:[#allocation3_spill] sm:$0xff] }
 0x374   :  { %v6508_v24 = vsel %vm305_vm1, %v6264_v40, 0.0  ;;  %v6392_v47 = vadd.f32 %v6328_v27, %v4747_v15  ;;  %v4624_v25 = vadd.f32 %v12505_v45, %v13409_v5  ;;  %v4688_v0 = vmul.f32 %v12505_v45, %v12505_v45  ;;  %v13418_v15 = vld [vmem:[#allocation89_spill] sm:$0xff] }
 0x375   :  { %v6509_v39 = vadd.f32 %v6508_v24, %v6507_v11  ;;  %7295 = vst.msk [vmem:[%s13119_s2 + $0x2e8] sm:$0xf] %vm1339_vm2, %v7713_v44  ;;  %v6512_v31 = vsel %vm305_vm1, %v6266_v20, 0.0  ;;  %v7711_v7 = vpack.c.bf16 %v12520_v12, %v12520_v12  ;;  %v4622_v21 = vadd.f32 %v12520_v12, %v13410_v59  ;;  %v13420_v59 = vld [vmem:[#allocation91_spill] sm:$0xff] }
 0x376   :  { %v4686_v50 = vmul.f32 %v12520_v12, %v12520_v12  ;;  %v6641_v19 = vsel %vm305_vm1, %v6392_v47, 0.0  ;;  %v4752_v46 = vadd.f32 %v4688_v0, %v13411_v54  ;;  %v7777_v9 = vpack.c.bf16 %v12526_v23, %v12526_v23  ;;  %v13421_v54 = vld [vmem:[#allocation92_spill] sm:$0xff] }
 0x377   :  { %v6511_v6 = vadd.f32 %v6510_v14, %v6509_v39  ;;  %v6642_v45 = vadd.f32 %v6641_v19, %v6640_v35  ;;  %7293 = vst.msk [vmem:[%s13119_s2 + $0x2e0] sm:$0xf] %vm1339_vm2, %v7711_v7  ;;  %v6269_v42 = vadd.f32 %v12526_v23, %v4624_v25  ;;  %v6333_v12 = vmul.f32 %v12526_v23, %v12526_v23 }
 0x378   :  { %v4750_v57 = vadd.f32 %v4686_v50, %v13412_v4  ;;  %7521 = vst.msk [vmem:[%s13119_s2 + $0x3e8] sm:$0xf] %vm1339_vm2, %v7777_v9  ;;  %v7714_v58 = vpack.c.bf16 %v12528_v34, %v12528_v34  ;;  %v4625_v49 = vadd.f32 %v12528_v34, %v13413_v62  ;;  %v4689_v33 = vmul.f32 %v12528_v34, %v12528_v34 }
 0x379   :  { %v7775_v36 = vpack.c.bf16 %v12538_v28, %v12538_v28  ;;  %v6645_v48 = vsel %vm305_vm1, %v6394_v51, 0.0  ;;  %v6644_v23 = vadd.f32 %v6643_v53, %v6642_v45  ;;  %v6397_v10 = vadd.f32 %v6333_v12, %v4752_v46  ;;  %v13422_v45 = vld [vmem:[#allocation93_spill] sm:$0xff]  ;;  %v13423_v12 = vld [vmem:[#allocation94_spill] sm:$0xff] }
 0x37a   :  { %v6267_v43 = vadd.f32 %v12538_v28, %v4622_v21  ;;  %7296 = vst.msk [vmem:[%s13119_s2 + $0x2ec] sm:$0xf] %vm1339_vm2, %v7714_v58  ;;  %v4753_v38 = vadd.f32 %v4689_v33, %v13414_v60  ;;  %v6331_v34 = vmul.f32 %v12538_v28, %v12538_v28  ;;  %v6513_v17 = vadd.f32 %v6512_v31, %v6511_v6  ;;  %v13425_v60 = vld [vmem:[#allocation4_spill] sm:$0xff] }
 0x37b   :  { %7519 = vst.msk [vmem:[%s13119_s2 + $0x3e0] sm:$0xf] %vm1339_vm2, %v7775_v36  ;;  %v7712_v14 = vpack.c.bf16 %v13415_v2, %v13415_v2  ;;  %v6518_v56 = vsel %vm305_vm1, %v6269_v42, 0.0  ;;  %v6646_v3 = vadd.f32 %v6645_v48, %v6644_v23  ;;  %v4623_v8 = vadd.f32 %v13415_v2, %v13416_v32  ;;  %v13424_v23 = vld [vmem:[#allocation96_spill] sm:$0xff] }
 0x37c   :  { %v6514_v52 = vsel %vm305_vm1, %v6267_v43, 0.0  ;;  %v6395_v11 = vadd.f32 %v6331_v34, %v4750_v57  ;;  %v4687_v28 = vmul.f32 %v13415_v2, %v13415_v2  ;;  %v7778_v20 = vpack.c.bf16 %v13417_v55, %v13417_v55  ;;  %v13426_v2 = vld [vmem:[#allocation95_spill] sm:$0xff] }
 0x37d   :  { %v6515_v63 = vadd.f32 %v6514_v52, %v6513_v17  ;;  %7294 = vst.msk [vmem:[%s13119_s2 + $0x2e4] sm:$0xf] %vm1339_vm2, %v7712_v14  ;;  %v6270_v41 = vadd.f32 %v13417_v55, %v4625_v49  ;;  %v6334_v18 = vmul.f32 %v13417_v55, %v13417_v55  ;;  %v7776_v40 = vpack.c.bf16 %v12560_v29, %v12560_v29 }
 0x37e   :  { %v6268_v30 = vadd.f32 %v12560_v29, %v4623_v8  ;;  %v6647_v61 = vsel %vm305_vm1, %v6395_v11, 0.0  ;;  %v4751_v27 = vadd.f32 %v4687_v28, %v13418_v15  ;;  %7522 = vst.msk [vmem:[%s13119_s2 + $0x3ec] sm:$0xf] %vm1339_vm2, %v7778_v20  ;;  %v6332_v44 = vmul.f32 %v12560_v29, %v12560_v29  ;;  %v13419_v29 = vld [vmem:[#allocation90_spill] sm:$0xff]  ;;  %v13428_v20 = vld [vmem:[#allocation97_spill] sm:$0xff] }
 0x37f   :  { %v7717_v53 = vpack.c.bf16 %v12583_v13, %v12583_v13  ;;  %v6651_v35 = vsel %vm305_vm1, %v6397_v10, 0.0  ;;  %v6648_v51 = vadd.f32 %v6647_v61, %v6646_v3  ;;  %v6398_v24 = vadd.f32 %v6334_v18, %v4753_v38  ;;  %7520 = vst.msk [vmem:[%s13119_s2 + $0x3e4] sm:$0xf] %vm1339_vm2, %v7776_v40  ;;  %v13427_v3 = vld [vmem:[#allocation5_spill] sm:$0xff] }
 0x380   :  { %v6516_v47 = vsel %vm305_vm1, %v6268_v30, 0.0  ;;  %v6396_v39 = vadd.f32 %v6332_v44, %v4751_v27  ;;  %v4628_v25 = vadd.f32 %v12583_v13, %v13419_v29  ;;  %v4692_v0 = vmul.f32 %v12583_v13, %v12583_v13 }
 0x381   :  { %v6517_v5 = vadd.f32 %v6516_v47, %v6515_v63  ;;  %7299 = vst.msk [vmem:[%s13119_s2 + $0x2f8] sm:$0xf] %vm1339_vm2, %v7717_v53  ;;  %v6520_v31 = vsel %vm305_vm1, %v6270_v41, 0.0  ;;  %v7715_v7 = vpack.c.bf16 %v12589_v26, %v12589_v26  ;;  %v4626_v21 = vadd.f32 %v12589_v26, %v13420_v59 }
 0x382   :  { %v4690_v50 = vmul.f32 %v12589_v26, %v12589_v26  ;;  %v6649_v19 = vsel %vm305_vm1, %v6396_v39, 0.0  ;;  %v4756_v46 = vadd.f32 %v4692_v0, %v13421_v54  ;;  %v7781_v9 = vpack.c.bf16 %v12599_v1, %v12599_v1 }
 0x383   :  { %v6519_v6 = vadd.f32 %v6518_v56, %v6517_v5  ;;  %v6650_v13 = vadd.f32 %v6649_v19, %v6648_v51  ;;  %7297 = vst.msk [vmem:[%s13119_s2 + $0x2f0] sm:$0xf] %vm1339_vm2, %v7715_v7  ;;  %v6273_v57 = vadd.f32 %v12599_v1, %v4628_v25  ;;  %v6337_v26 = vmul.f32 %v12599_v1, %v12599_v1 }
 0x384   :  { %v4754_v4 = vadd.f32 %v4690_v50, %v13422_v45  ;;  %7525 = vst.msk [vmem:[%s13119_s2 + $0x3f8] sm:$0xf] %vm1339_vm2, %v7781_v9  ;;  %v7718_v42 = vpack.c.bf16 %v12601_v37, %v12601_v37  ;;  %v4629_v58 = vadd.f32 %v12601_v37, %v13423_v12  ;;  %v4693_v62 = vmul.f32 %v12601_v37, %v12601_v37 }
 0x385   :  { %v7779_v49 = vpack.c.bf16 %v12615_v16, %v12615_v16  ;;  %v6653_v33 = vsel %vm305_vm1, %v6398_v24, 0.0  ;;  %v6652_v1 = vadd.f32 %v6651_v35, %v6650_v13  ;;  %v6401_v36 = vadd.f32 %v6337_v26, %v4756_v46 }
 0x386   :  { %v6271_v48 = vadd.f32 %v12615_v16, %v4626_v21  ;;  %7300 = vst.msk [vmem:[%s13119_s2 + $0x2fc] sm:$0xf] %vm1339_vm2, %v7718_v42  ;;  %v4757_v10 = vadd.f32 %v4693_v62, %v13424_v23  ;;  %v6335_v37 = vmul.f32 %v12615_v16, %v12615_v16  ;;  %v6521_v43 = vadd.f32 %v6520_v31, %v6519_v6 }
 0x387   :  { %7523 = vst.msk [vmem:[%s13119_s2 + $0x3f0] sm:$0xf] %vm1339_vm2, %v7779_v49  ;;  %v7716_v38 = vpack.c.bf16 %v13425_v60, %v13425_v60  ;;  %v6654_v17 = vadd.f32 %v6653_v33, %v6652_v1  ;;  %v4627_v14 = vadd.f32 %v13425_v60, %v13426_v2  ;;  %v4691_v16 = vmul.f32 %v13425_v60, %v13425_v60 }
 0x388   :  { %v6522_v34 = vsel %vm305_vm1, %v6271_v48, 0.0  ;;  %v6399_v56 = vadd.f32 %v6335_v37, %v4754_v4  ;;  %v7782_v32 = vpack.c.bf16 %v13427_v3, %v13427_v3  ;;  %v6274_v8 = vadd.f32 %v13427_v3, %v4629_v58 }
 0x389   :  { %v6523_v52 = vadd.f32 %v6522_v34, %v6521_v43  ;;  %7298 = vst.msk [vmem:[%s13119_s2 + $0x2f4] sm:$0xf] %vm1339_vm2, %v7716_v38  ;;  %v6338_v11 = vmul.f32 %v13427_v3, %v13427_v3  ;;  %v7780_v63 = vpack.c.bf16 %v12636_v22, %v12636_v22  ;;  %v6272_v28 = vadd.f32 %v12636_v22, %v4627_v14 }
 0x38a   :  { %v6655_v55 = vsel %vm305_vm1, %v6399_v56, 0.0  ;;  %v4755_v41 = vadd.f32 %v4691_v16, %v13428_v20  ;;  %7526 = vst.msk [vmem:[%s13119_s2 + $0x3fc] sm:$0xf] %vm1339_vm2, %v7782_v32  ;;  %v6336_v18 = vmul.f32 %v12636_v22, %v12636_v22  ;;  %v6526_v44 = vsel %vm305_vm1, %v6273_v57, 0.0 }
 0x38b   :  { %v6656_v40 = vadd.f32 %v6655_v55, %v6654_v17  ;;  %v6402_v30 = vadd.f32 %v6338_v11, %v4757_v10  ;;  %7524 = vst.msk [vmem:[%s13119_s2 + $0x3f4] sm:$0xf] %vm1339_vm2, %v7780_v63  ;;  %v6524_v61 = vsel %vm305_vm1, %v6272_v28, 0.0  ;;  %v6528_v51 = vsel %vm305_vm1, %v6274_v8, 0.0  ;;  %s9002_s2 = smov 8  }
 0x38c   :  { %v6400_v15 = vadd.f32 %v6336_v18, %v4755_v41  ;;  %v6525_v27 = vadd.f32 %v6524_v61, %v6523_v52  ;;  %v6659_v22 = vsel %vm305_vm1, %v6401_v36, 0.0  ;;  %v6674_v54 = vlaneseq }
 0x38d   :  { %v6661_v5 = vsel %vm305_vm1, %v6402_v30, 0.0 }
 0x38e   :  { %v6527_v53 = vadd.f32 %v6526_v44, %v6525_v27  ;;  %v6657_v35 = vsel %vm305_vm1, %v6400_v15, 0.0  ;;  %v6675_v9 = vshrl.u32 %v6674_v54, 7 }
 0x38f   :  { %v6658_v24 = vadd.f32 %v6657_v35, %v6656_v40 }
 0x390   :  { %v6529_v47 = vadd.f32 %v6528_v51, %v6527_v53  ;;  %v6676_v45 = vsub.s32 0, %v6675_v9 }
 0x391   :  { %v6660_v39 = vadd.f32 %v6659_v22, %v6658_v24 }
 0x392   :  { %v6530_v50 = vrot.slane %v6529_v47, 4 }
 0x393   :  { %v6662_v29 = vadd.f32 %v6661_v5, %v6660_v39 }
 0x394   :  { %v6531_v6 = vadd.f32 %v6530_v50, %v6529_v47 }
 0x395   :  { %v6663_v25 = vrot.slane %v6662_v29, 4 }
 0x396   :  { %v6532_v19 = vrot.slane %v6531_v6, 2 }
 0x397   :  { %v6664_v0 = vadd.f32 %v6663_v25, %v6662_v29 }
 0x398   :  { %v6533_v46 = vadd.f32 %v6532_v19, %v6531_v6 }
 0x399   :  { %v6665_v31 = vrot.slane %v6664_v0, 2 }
 0x39a   :  { %v6534_v13 = vrot.slane %v6533_v46, 1 }
 0x39b   :  { %v6666_v7 = vadd.f32 %v6665_v31, %v6664_v0 }
 0x39c   :  { %v6535_v4 = vadd.f32 %v6534_v13, %v6533_v46 }
 0x39d   :  { %v6667_v59 = vrot.slane %v6666_v7, 1 }
 0x39f   :  { %v6668_v21 = vadd.f32 %v6667_v59, %v6666_v7 }
 0x3a1   :  { %6670 = vrot.lane.b32.xlu0 %v6668_v21, %s9002_s2 }
 0x413   :  { %v6671_v57 = vpop.permute.xlu0 %6670 }
 0x414   :  { %v6673_v26 = vsel %vm305_vm1, %v6535_v4, %v6671_v57 }
 0x415   :  { %v6677_v42 = vrot.slane %v6673_v26, %v6676_v45 }
 0x417   :  { %6679 = vst.msk [vmem:[%s13120_s3] sm:$0xff] %vm6678_vm3, %v6677_v42 }

</bundles_post_ra>
